<compile_context>
chip_gen: v7x
topology: tpu7x:2x2x1
jax: 0.10.0
libtpu: 0.0.40
codegen_flags: <defaults>
</compile_context>

<pallas_src>
import functools

import jax
import jax.numpy as jnp
from jax import lax
from jax.experimental import pallas as pl
from jax.experimental.pallas import tpu as pltpu


# ----------------------------------------------------------------------------
# Fused kernel: startBlock + backBone + policy conv + full value head
# ----------------------------------------------------------------------------
def _fused_resnet_kernel(
    x_ref,               # (NT, H, W, 11)  f32   NHWC input tile
    ws_ref, bs_ref,       # (9*CP, C) bf16, (1, C) f32          startBlock conv+BN
    wb_ref, bb_ref,       # (2B, 9*CP, C) bf16, (2B, 1, C) f32  backbone convs+BN
    wpc_ref, bpc_ref,     # (9*CP, 32) bf16, (1, 32) f32        policy conv+BN
    wvc_ref, bvc_ref,     # (9*CP, 3) bf16, (1, 3) f32          value conv+BN
    wvl_ref, bvl_ref,     # (H*W, 3) f32, (1, 1) f32            value linear (NHWC rows)
    polfeat_ref,          # out (NT, H*W, 32) bf16  policy conv features (NHWC)
    val_ref,              # out (NT, 1) f32         tanh(value)
    xpad_ref,             # scratch (NT, H+2, W+2, CP) bf16  padded activation
    act_ref,              # scratch (NT*H*W, C) f32          trunk activation
    *, num_blocks, H, W, C, CP):
    NT = x_ref.shape[0]
    cin0 = x_ref.shape[3]
    P = H * W
    NP = NT * P

    # Zero once: the 1-pixel halo (and channel padding rows) stays zero for the
    # whole forward pass; the interior is overwritten before every conv.
    xpad_ref[...] = jnp.zeros_like(xpad_ref)

    def set_activation(a_nhwc, cin):
        # Write activation into the interior of the bf16 halo buffer.
        xpad_ref[:, 1:H + 1, 1:W + 1, :cin] = a_nhwc.astype(xpad_ref.dtype)
        if cin < CP:   # static branch: keep channel padding zero
            xpad_ref[:, 1:H + 1, 1:W + 1, cin:] = jnp.zeros(
                (NT, H, W, CP - cin), xpad_ref.dtype)

    def conv_bn(w, b):
        # 3x3 'same' conv as 9 shifted-window MXU dots (no im2col staging).
        # BN scale pre-folded into w; f32 accumulation; bias-only epilogue.
        cout = w.shape[-1]
        acc = jnp.zeros((NP, cout), jnp.float32)
        for t in range(9):
            dy, dx = divmod(t, 3)
            tap = xpad_ref[:, dy:dy + H, dx:dx + W, :].reshape(NP, CP)
            acc = acc + jnp.dot(tap, w[t * CP:(t + 1) * CP, :],
                                preferred_element_type=jnp.float32)
        return acc + b

    # ---- startBlock: conv + BN + ReLU --------------------------------------
    set_activation(x_ref[...], cin0)
    act_ref[...] = jnp.maximum(conv_bn(ws_ref[...], bs_ref[...]), 0.0)

    # ---- backBone: ResBlocks (dynamic loop; weights indexed per block) -----
    def res_block(i, carry):
        a = act_ref[...]
        set_activation(a.reshape(NT, H, W, C), C)
        y = jnp.maximum(conv_bn(wb_ref[2 * i], bb_ref[2 * i]), 0.0)
        set_activation(y.reshape(NT, H, W, C), C)
        act_ref[...] = jnp.maximum(
            conv_bn(wb_ref[2 * i + 1], bb_ref[2 * i + 1]) + a, 0.0)
        return carry

    lax.fori_loop(0, num_blocks, res_block, 0)

    # ---- heads share the final trunk activation's halo buffer --------------
    a = act_ref[...]
    set_activation(a.reshape(NT, H, W, C), C)

    # policyHead conv+BN+ReLU; written NHWC so the (pixel, channel) flatten
    # matches the pre-permuted policy Linear rows (matmul done in the wrapper).
    yp = jnp.maximum(conv_bn(wpc_ref[...], bpc_ref[...]), 0.0)
    polfeat_ref[...] = yp.reshape(NT, P, yp.shape[-1]).astype(polfeat_ref.dtype)

    # valueHead: conv+BN+ReLU -> Flatten -> Linear(out=1) -> Tanh, in-kernel.
    yv = jnp.maximum(conv_bn(wvc_ref[...], bvc_ref[...]), 0.0)
    yv3 = yv.reshape(NT, P, yv.shape[-1])
    v = jnp.sum(yv3 * wvl_ref[...], axis=2)                 # (NT, P)
    v = jnp.sum(v, axis=1, keepdims=True) + bvl_ref[...]    # (NT, 1)
    val_ref[...] = jnp.tanh(v).astype(val_ref.dtype)


# ----------------------------------------------------------------------------
# Wrapper: batch-gridded pallas_call; policy Linear as one XLA matmul
# ----------------------------------------------------------------------------
def _resnet_forward(x_nchw, w_start, b_start, w_blocks, b_blocks,
                    w_pconv, b_pconv, w_plin, b_plin,
                    w_vconv, b_vconv, w_vlin, b_vlin,
                    *, num_blocks, H, W, C, CP, action_size):
    # NCHW (PyTorch) -> NHWC (TPU channels-last), tiny one-time transpose.
    x = jnp.transpose(x_nchw, (0, 2, 3, 1)).astype(jnp.float32)
    N = x.shape[0]
    cin0 = x.shape[3]
    P = H * W
    cpo = w_pconv.shape[1]

    # Batch tile: NT*H*W >= 256 fills the v6e/v7x MXU M dim when it divides;
    # a tile smaller than N must be a multiple of 8 (sublane alignment).
    if N <= 8 or N % 8 != 0:
        NT = N
    else:
        NT = 8
    grid = (N // NT,)

    def whole(a):  # whole-array (resident) spec: same block at every grid step
        return pl.BlockSpec(a.shape, lambda n, _nd=a.ndim: (0,) * _nd)

    weights = (w_start, b_start, w_blocks, b_blocks, w_pconv, b_pconv,
               w_vconv, b_vconv, w_vlin, b_vlin)
    in_specs = ([pl.BlockSpec((NT, H, W, cin0), lambda n: (n, 0, 0, 0))]
                + [whole(w) for w in weights])
    out_specs = (pl.BlockSpec((NT, P, cpo), lambda n: (n, 0, 0)),
                 pl.BlockSpec((NT, 1), lambda n: (n, 0)))

    # VMEM budget: weights + scratch + double-buffered I/O blocks, x2 headroom,
    # clamped to 64 MiB so the same setting is valid on v5e/v6e/v7x.
    def nbytes(a):
        return int(a.size) * a.dtype.itemsize
    scratch_bytes = NT * (H + 2) * (W + 2) * CP * 2 + NT * P * C * 4
    block_bytes = 2 * (NT * H * W * cin0 * 4 + NT * P * cpo * 2 + NT * 4)
    vmem_bytes = sum(nbytes(w) for w in weights) + scratch_bytes + block_bytes
    vmem_limit = int(min(64 * 1024 * 1024,
                         max(32 * 1024 * 1024, 2 * vmem_bytes + (4 << 20))))

    conv_flops = 2 * P * 9 * CP * (C * (1 + 2 * num_blocks) + cpo + 3)
    cost = pl.CostEstimate(
        flops=int(N * (conv_flops + 2 * P * 3)),
        transcendentals=int(N),
        bytes_accessed=int(nbytes(x) + sum(nbytes(w) for w in weights)
                           + N * P * cpo * 2 + N * 4))

    kernel = functools.partial(_fused_resnet_kernel, num_blocks=num_blocks,
                               H=H, W=W, C=C, CP=CP)
    polfeat, value = pl.pallas_call(
        kernel,
        grid=grid,
        in_specs=in_specs,
        out_specs=out_specs,
        out_shape=(jax.ShapeDtypeStruct((N, P, cpo), jnp.bfloat16),
                   jax.ShapeDtypeStruct((N, 1), jnp.float32)),
        scratch_shapes=[
            pltpu.VMEM((NT, H + 2, W + 2, CP), jnp.bfloat16),  # halo buffer
            pltpu.VMEM((NT * P, C), jnp.float32),              # trunk activation
        ],
        compiler_params=pltpu.CompilerParams(
            dimension_semantics=("parallel",),
            vmem_limit_bytes=vmem_limit),
        cost_estimate=cost,
    )(x, *weights)

    # Policy Linear: one lane-dense matmul on the NHWC-flattened features.
    policy = jnp.dot(polfeat.reshape(N, P * cpo), w_plin,
                     preferred_element_type=jnp.float32) + b_plin
    return policy, value


# ----------------------------------------------------------------------------
# Deterministic parameter construction (synthetic; shapes follow __init__)
# ----------------------------------------------------------------------------
def _make_conv_bn(key, cin, cout, cpad):
    """Conv2d(cin,cout,3,pad=1)+BatchNorm2d(cout), folded for inference."""
    k1, k2, k3, k4, k5, k6 = jax.random.split(key, 6)
    w = 0.1 * jax.random.normal(k1, (cout, cin, 3, 3), jnp.float32)  # torch layout
    conv_b = 0.1 * jax.random.normal(k2, (cout,), jnp.float32)
    gamma = 1.0 + 0.1 * jax.random.normal(k3, (cout,), jnp.float32)
    beta = 0.1 * jax.random.normal(k4, (cout,), jnp.float32)
    mean = 0.1 * jax.random.normal(k5, (cout,), jnp.float32)
    var = jax.random.uniform(k6, (cout,), jnp.float32, minval=0.5, maxval=1.5)
    scale = gamma / jnp.sqrt(var + 1e-5)
    bias = (conv_b - mean) * scale + beta
    w = w * scale[:, None, None, None]                          # fold BN scale
    w = jnp.transpose(w, (2, 3, 1, 0)).reshape(9, cin, cout)    # tap-major rows
    if cin < cpad:                                              # zero-pad Cin rows
        w = jnp.pad(w, ((0, 0), (0, cpad - cin), (0, 0)))
    w = w.reshape(9 * cpad, cout)
    return w.astype(jnp.bfloat16), bias.reshape(1, cout)


def _make_linear(key, fin, fout):
    k1, k2 = jax.random.split(key)
    bound = 1.0 / (fin ** 0.5)
    w = jax.random.uniform(k1, (fin, fout), jnp.float32, minval=-bound, maxval=bound)
    b = jax.random.uniform(k2, (1, fout), jnp.float32, minval=-bound, maxval=bound)
    return w, b   # rows indexed by the PyTorch NCHW flatten (c*H*W + p)


class ResNetPallas:
    """Mirrors src/alpha_zero.py::ResNet inference forward pass."""

    def __init__(self, num_res_blocks, num_hidden, row_count, column_count,
                 action_size, key):
        H, W, C = row_count, column_count, num_hidden
        CP = ((max(C, 11) + 7) // 8) * 8   # sublane-friendly channel block
        keys = jax.random.split(key, 2 * num_res_blocks + 5)
        ki = iter(keys)

        # startBlock: Conv2d(11, C, 3, pad=1) + BN + ReLU
        w_start, b_start = _make_conv_bn(next(ki), 11, C, CP)

        # backBone: ResBlocks (two conv+BN each), stacked on a leading axis
        wbs, bbs = [], []
        for _ in range(num_res_blocks):
            for _ in range(2):
                w, b = _make_conv_bn(next(ki), C, C, CP)
                wbs.append(w)
                bbs.append(b)
        w_blocks = jnp.stack(wbs)          # (2B, 9*CP, C)
        b_blocks = jnp.stack(bbs)          # (2B, 1, C)

        # policyHead: Conv2d(C,32)+BN+ReLU -> Flatten -> Linear(32*H*W, A)
        w_pconv, b_pconv = _make_conv_bn(next(ki), C, 32, CP)
        w_plin, b_plin = _make_linear(next(ki), 32 * H * W, action_size)
        # Permute Linear rows from NCHW-flatten (PyTorch) to NHWC-flatten order
        # so the kernel's (pixel, channel) feature layout needs no transpose.
        w_plin = (w_plin.reshape(32, H * W, action_size)
                  .transpose(1, 0, 2).reshape(H * W * 32, action_size))

        # valueHead: Conv2d(C,3)+BN+ReLU -> Flatten -> Linear(3*H*W, 1) -> Tanh
        w_vconv, b_vconv = _make_conv_bn(next(ki), C, 3, CP)
        w_vlin, b_vlin = _make_linear(next(ki), 3 * H * W, 1)
        w_vlin = w_vlin.reshape(3, H * W).transpose(1, 0)      # (H*W, 3) NHWC

        self._params = (
            w_start, b_start, w_blocks, b_blocks,
            w_pconv, b_pconv, w_plin.astype(jnp.bfloat16), b_plin,
            w_vconv, b_vconv, w_vlin, b_vlin,
        )
        self._fwd = jax.jit(functools.partial(
            _resnet_forward, num_blocks=num_res_blocks,
            H=H, W=W, C=C, CP=CP, action_size=action_size))

    def __call__(self, x_nchw):
        return self._fwd(x_nchw, *self._params)


if __name__ == "__main__":
    # Small config: 8x8 board, 11 input planes, 32 hidden, 2 res blocks.
    BATCH, IN_PLANES, ROWS, COLS = 2, 11, 8, 8
    NUM_HIDDEN, NUM_BLOCKS, ACTION_SIZE = 32, 2, 64

    key = jax.random.PRNGKey(0)
    k_params, k_input = jax.random.split(key)

    model = ResNetPallas(NUM_BLOCKS, NUM_HIDDEN, ROWS, COLS, ACTION_SIZE, k_params)
    x = jax.random.normal(k_input, (BATCH, IN_PLANES, ROWS, COLS), jnp.float32)

    policy, value = model(x)
    policy = jax.block_until_ready(policy)
    value = jax.block_until_ready(value)

    assert policy.shape == (BATCH, ACTION_SIZE), policy.shape
    assert value.shape == (BATCH, 1), value.shape
    assert bool(jnp.all(jnp.isfinite(policy))) and bool(jnp.all(jnp.isfinite(value)))
    assert bool(jnp.all(jnp.abs(value) <= 1.0))

    print("KERNEL_OK")
</pallas_src>

<mosaic_0001>
module attributes {stable_mosaic.version = 11 : i64} {
  func.func @_fused_resnet_kernel(%arg0: i32, %arg1: memref<2x8x8x11xf32, #tpu.memory_space<vmem>>, %arg2: memref<288x32xbf16, #tpu.memory_space<vmem>>, %arg3: memref<1x32xf32, #tpu.memory_space<vmem>>, %arg4: memref<4x288x32xbf16, #tpu.memory_space<vmem>>, %arg5: memref<4x1x32xf32, #tpu.memory_space<vmem>>, %arg6: memref<288x32xbf16, #tpu.memory_space<vmem>>, %arg7: memref<1x32xf32, #tpu.memory_space<vmem>>, %arg8: memref<288x3xbf16, #tpu.memory_space<vmem>>, %arg9: memref<1x3xf32, #tpu.memory_space<vmem>>, %arg10: memref<64x3xf32, #tpu.memory_space<vmem>>, %arg11: memref<1x1xf32, #tpu.memory_space<vmem>>, %arg12: memref<2x64x32xbf16, #tpu.memory_space<vmem>>, %arg13: memref<2x1xf32, #tpu.memory_space<vmem>>, %arg14: memref<2x10x10x32xbf16, #tpu.memory_space<vmem>>, %arg15: memref<128x32xf32, #tpu.memory_space<vmem>>) attributes {dimension_semantics = [#tpu.dimension_semantics<parallel>], iteration_bounds = array<i64: 1>, scalar_prefetch = 0 : i64, scratch_operands = 2 : i64, tpu.core_type = #tpu.core_type<tc>, window_params = [{transform_indices = @transform_0, window_bounds = array<i64: 2, 8, 8, 11>}, {pipeline_mode = #tpu.pipeline_mode<synchronous>, transform_indices = @transform_1, window_bounds = array<i64: 288, 32>}, {pipeline_mode = #tpu.pipeline_mode<synchronous>, transform_indices = @transform_2, window_bounds = array<i64: 1, 32>}, {pipeline_mode = #tpu.pipeline_mode<synchronous>, transform_indices = @transform_3, window_bounds = array<i64: 4, 288, 32>}, {pipeline_mode = #tpu.pipeline_mode<synchronous>, transform_indices = @transform_4, window_bounds = array<i64: 4, 1, 32>}, {pipeline_mode = #tpu.pipeline_mode<synchronous>, transform_indices = @transform_5, window_bounds = array<i64: 288, 32>}, {pipeline_mode = #tpu.pipeline_mode<synchronous>, transform_indices = @transform_6, window_bounds = array<i64: 1, 32>}, {pipeline_mode = #tpu.pipeline_mode<synchronous>, transform_indices = @transform_7, window_bounds = array<i64: 288, 3>}, {pipeline_mode = #tpu.pipeline_mode<synchronous>, transform_indices = @transform_8, window_bounds = array<i64: 1, 3>}, {pipeline_mode = #tpu.pipeline_mode<synchronous>, transform_indices = @transform_9, window_bounds = array<i64: 64, 3>}, {pipeline_mode = #tpu.pipeline_mode<synchronous>, transform_indices = @transform_10, window_bounds = array<i64: 1, 1>}, {transform_indices = @transform_11, window_bounds = array<i64: 2, 64, 32>}, {transform_indices = @transform_12, window_bounds = array<i64: 2, 1>}]} {
    %cst = arith.constant 0.000000e+00 : bf16
    %0 = vector.broadcast %cst : bf16 to vector<2x10x10x32xbf16>
    %c0 = arith.constant 0 : index
    %c0_0 = arith.constant 0 : index
    %c0_1 = arith.constant 0 : index
    %c0_2 = arith.constant 0 : index
    %1 = vector.load %arg14[%c0, %c0_0, %c0_1, %c0_2] : memref<2x10x10x32xbf16, #tpu.memory_space<vmem>>, vector<2x10x10x32xbf16>
    tpu.vector_store %arg14[%c0, %c0_0, %c0_1, %c0_2], %0 {strides = array<i32>} : memref<2x10x10x32xbf16, #tpu.memory_space<vmem>>, vector<2x10x10x32xbf16>,
    %c0_3 = arith.constant 0 : index
    %c0_4 = arith.constant 0 : index
    %c0_5 = arith.constant 0 : index
    %c0_6 = arith.constant 0 : index
    %2 = vector.load %arg1[%c0_3, %c0_4, %c0_5, %c0_6] : memref<2x8x8x11xf32, #tpu.memory_space<vmem>>, vector<2x8x8x11xf32>
    %3 = arith.truncf %2 : vector<2x8x8x11xf32> to vector<2x8x8x11xbf16>
    %c0_7 = arith.constant 0 : index
    %c1 = arith.constant 1 : index
    %c1_8 = arith.constant 1 : index
    %c0_9 = arith.constant 0 : index
    %4 = vector.load %arg14[%c0_7, %c1, %c1_8, %c0_9] : memref<2x10x10x32xbf16, #tpu.memory_space<vmem>>, vector<2x8x8x11xbf16>
    tpu.vector_store %arg14[%c0_7, %c1, %c1_8, %c0_9], %3 {strides = array<i32>} : memref<2x10x10x32xbf16, #tpu.memory_space<vmem>>, vector<2x8x8x11xbf16>,
    %cst_10 = arith.constant 0.000000e+00 : bf16
    %5 = vector.broadcast %cst_10 : bf16 to vector<2x8x8x21xbf16>
    %c0_11 = arith.constant 0 : index
    %c1_12 = arith.constant 1 : index
    %c1_13 = arith.constant 1 : index
    %c11 = arith.constant 11 : index
    %6 = vector.load %arg14[%c0_11, %c1_12, %c1_13, %c11] : memref<2x10x10x32xbf16, #tpu.memory_space<vmem>>, vector<2x8x8x21xbf16>
    tpu.vector_store %arg14[%c0_11, %c1_12, %c1_13, %c11], %5 {strides = array<i32>} : memref<2x10x10x32xbf16, #tpu.memory_space<vmem>>, vector<2x8x8x21xbf16>,
    %c0_14 = arith.constant 0 : index
    %c0_15 = arith.constant 0 : index
    %7 = vector.load %arg2[%c0_14, %c0_15] : memref<288x32xbf16, #tpu.memory_space<vmem>>, vector<288x32xbf16>
    %c0_16 = arith.constant 0 : index
    %c0_17 = arith.constant 0 : index
    %8 = vector.load %arg3[%c0_16, %c0_17] : memref<1x32xf32, #tpu.memory_space<vmem>>, vector<1x32xf32>
    %cst_18 = arith.constant 0.000000e+00 : f32
    %9 = vector.broadcast %cst_18 : f32 to vector<128x32xf32>
    %c0_19 = arith.constant 0 : index
    %c0_20 = arith.constant 0 : index
    %c0_21 = arith.constant 0 : index
    %c0_22 = arith.constant 0 : index
    %10 = vector.load %arg14[%c0_19, %c0_20, %c0_21, %c0_22] : memref<2x10x10x32xbf16, #tpu.memory_space<vmem>>, vector<2x8x8x32xbf16>
    %11 = vector.shape_cast %10 : vector<2x8x8x32xbf16> to vector<128x32xbf16>
    %12 = vector.extract_strided_slice %7 {offsets = [0, 0], sizes = [32, 32], strides = [1, 1]} : vector<288x32xbf16> to vector<32x32xbf16>
    %cst_23 = arith.constant dense<0.000000e+00> : vector<128x32xf32>
    %13 = tpu.matmul %11, %12, %cst_23 {dimension_numbers = #tpu.dot_dimension_numbers<[1], [0], [0], [1], [0, 0, 1, 1], [], []>} : vector<128x32xbf16>, vector<32x32xbf16>, vector<128x32xf32> -> vector<128x32xf32>
    %14 = arith.addf %9, %13 : vector<128x32xf32>
    %c0_24 = arith.constant 0 : index
    %c0_25 = arith.constant 0 : index
    %c1_26 = arith.constant 1 : index
    %c0_27 = arith.constant 0 : index
    %15 = vector.load %arg14[%c0_24, %c0_25, %c1_26, %c0_27] : memref<2x10x10x32xbf16, #tpu.memory_space<vmem>>, vector<2x8x8x32xbf16>
    %16 = vector.shape_cast %15 : vector<2x8x8x32xbf16> to vector<128x32xbf16>
    %17 = vector.extract_strided_slice %7 {offsets = [32, 0], sizes = [32, 32], strides = [1, 1]} : vector<288x32xbf16> to vector<32x32xbf16>
    %cst_28 = arith.constant dense<0.000000e+00> : vector<128x32xf32>
    %18 = tpu.matmul %16, %17, %cst_28 {dimension_numbers = #tpu.dot_dimension_numbers<[1], [0], [0], [1], [0, 0, 1, 1], [], []>} : vector<128x32xbf16>, vector<32x32xbf16>, vector<128x32xf32> -> vector<128x32xf32>
    %19 = arith.addf %14, %18 : vector<128x32xf32>
    %c0_29 = arith.constant 0 : index
    %c0_30 = arith.constant 0 : index
    %c2 = arith.constant 2 : index
    %c0_31 = arith.constant 0 : index
    %20 = vector.load %arg14[%c0_29, %c0_30, %c2, %c0_31] : memref<2x10x10x32xbf16, #tpu.memory_space<vmem>>, vector<2x8x8x32xbf16>
    %21 = vector.shape_cast %20 : vector<2x8x8x32xbf16> to vector<128x32xbf16>
    %22 = vector.extract_strided_slice %7 {offsets = [64, 0], sizes = [32, 32], strides = [1, 1]} : vector<288x32xbf16> to vector<32x32xbf16>
    %cst_32 = arith.constant dense<0.000000e+00> : vector<128x32xf32>
    %23 = tpu.matmul %21, %22, %cst_32 {dimension_numbers = #tpu.dot_dimension_numbers<[1], [0], [0], [1], [0, 0, 1, 1], [], []>} : vector<128x32xbf16>, vector<32x32xbf16>, vector<128x32xf32> -> vector<128x32xf32>
    %24 = arith.addf %19, %23 : vector<128x32xf32>
    %c0_33 = arith.constant 0 : index
    %c1_34 = arith.constant 1 : index
    %c0_35 = arith.constant 0 : index
    %c0_36 = arith.constant 0 : index
    %25 = vector.load %arg14[%c0_33, %c1_34, %c0_35, %c0_36] : memref<2x10x10x32xbf16, #tpu.memory_space<vmem>>, vector<2x8x8x32xbf16>
    %26 = vector.shape_cast %25 : vector<2x8x8x32xbf16> to vector<128x32xbf16>
    %27 = vector.extract_strided_slice %7 {offsets = [96, 0], sizes = [32, 32], strides = [1, 1]} : vector<288x32xbf16> to vector<32x32xbf16>
    %cst_37 = arith.constant dense<0.000000e+00> : vector<128x32xf32>
    %28 = tpu.matmul %26, %27, %cst_37 {dimension_numbers = #tpu.dot_dimension_numbers<[1], [0], [0], [1], [0, 0, 1, 1], [], []>} : vector<128x32xbf16>, vector<32x32xbf16>, vector<128x32xf32> -> vector<128x32xf32>
    %29 = arith.addf %24, %28 : vector<128x32xf32>
    %c0_38 = arith.constant 0 : index
    %c1_39 = arith.constant 1 : index
    %c1_40 = arith.constant 1 : index
    %c0_41 = arith.constant 0 : index
    %30 = vector.load %arg14[%c0_38, %c1_39, %c1_40, %c0_41] : memref<2x10x10x32xbf16, #tpu.memory_space<vmem>>, vector<2x8x8x32xbf16>
    %31 = vector.shape_cast %30 : vector<2x8x8x32xbf16> to vector<128x32xbf16>
    %32 = vector.extract_strided_slice %7 {offsets = [128, 0], sizes = [32, 32], strides = [1, 1]} : vector<288x32xbf16> to vector<32x32xbf16>
    %cst_42 = arith.constant dense<0.000000e+00> : vector<128x32xf32>
    %33 = tpu.matmul %31, %32, %cst_42 {dimension_numbers = #tpu.dot_dimension_numbers<[1], [0], [0], [1], [0, 0, 1, 1], [], []>} : vector<128x32xbf16>, vector<32x32xbf16>, vector<128x32xf32> -> vector<128x32xf32>
    %34 = arith.addf %29, %33 : vector<128x32xf32>
    %c0_43 = arith.constant 0 : index
    %c1_44 = arith.constant 1 : index
    %c2_45 = arith.constant 2 : index
    %c0_46 = arith.constant 0 : index
    %35 = vector.load %arg14[%c0_43, %c1_44, %c2_45, %c0_46] : memref<2x10x10x32xbf16, #tpu.memory_space<vmem>>, vector<2x8x8x32xbf16>
    %36 = vector.shape_cast %35 : vector<2x8x8x32xbf16> to vector<128x32xbf16>
    %37 = vector.extract_strided_slice %7 {offsets = [160, 0], sizes = [32, 32], strides = [1, 1]} : vector<288x32xbf16> to vector<32x32xbf16>
    %cst_47 = arith.constant dense<0.000000e+00> : vector<128x32xf32>
    %38 = tpu.matmul %36, %37, %cst_47 {dimension_numbers = #tpu.dot_dimension_numbers<[1], [0], [0], [1], [0, 0, 1, 1], [], []>} : vector<128x32xbf16>, vector<32x32xbf16>, vector<128x32xf32> -> vector<128x32xf32>
    %39 = arith.addf %34, %38 : vector<128x32xf32>
    %c0_48 = arith.constant 0 : index
    %c2_49 = arith.constant 2 : index
    %c0_50 = arith.constant 0 : index
    %c0_51 = arith.constant 0 : index
    %40 = vector.load %arg14[%c0_48, %c2_49, %c0_50, %c0_51] : memref<2x10x10x32xbf16, #tpu.memory_space<vmem>>, vector<2x8x8x32xbf16>
    %41 = vector.shape_cast %40 : vector<2x8x8x32xbf16> to vector<128x32xbf16>
    %42 = vector.extract_strided_slice %7 {offsets = [192, 0], sizes = [32, 32], strides = [1, 1]} : vector<288x32xbf16> to vector<32x32xbf16>
    %cst_52 = arith.constant dense<0.000000e+00> : vector<128x32xf32>
    %43 = tpu.matmul %41, %42, %cst_52 {dimension_numbers = #tpu.dot_dimension_numbers<[1], [0], [0], [1], [0, 0, 1, 1], [], []>} : vector<128x32xbf16>, vector<32x32xbf16>, vector<128x32xf32> -> vector<128x32xf32>
    %44 = arith.addf %39, %43 : vector<128x32xf32>
    %c0_53 = arith.constant 0 : index
    %c2_54 = arith.constant 2 : index
    %c1_55 = arith.constant 1 : index
    %c0_56 = arith.constant 0 : index
    %45 = vector.load %arg14[%c0_53, %c2_54, %c1_55, %c0_56] : memref<2x10x10x32xbf16, #tpu.memory_space<vmem>>, vector<2x8x8x32xbf16>
    %46 = vector.shape_cast %45 : vector<2x8x8x32xbf16> to vector<128x32xbf16>
    %47 = vector.extract_strided_slice %7 {offsets = [224, 0], sizes = [32, 32], strides = [1, 1]} : vector<288x32xbf16> to vector<32x32xbf16>
    %cst_57 = arith.constant dense<0.000000e+00> : vector<128x32xf32>
    %48 = tpu.matmul %46, %47, %cst_57 {dimension_numbers = #tpu.dot_dimension_numbers<[1], [0], [0], [1], [0, 0, 1, 1], [], []>} : vector<128x32xbf16>, vector<32x32xbf16>, vector<128x32xf32> -> vector<128x32xf32>
    %49 = arith.addf %44, %48 : vector<128x32xf32>
    %c0_58 = arith.constant 0 : index
    %c2_59 = arith.constant 2 : index
    %c2_60 = arith.constant 2 : index
    %c0_61 = arith.constant 0 : index
    %50 = vector.load %arg14[%c0_58, %c2_59, %c2_60, %c0_61] : memref<2x10x10x32xbf16, #tpu.memory_space<vmem>>, vector<2x8x8x32xbf16>
    %51 = vector.shape_cast %50 : vector<2x8x8x32xbf16> to vector<128x32xbf16>
    %52 = vector.extract_strided_slice %7 {offsets = [256, 0], sizes = [32, 32], strides = [1, 1]} : vector<288x32xbf16> to vector<32x32xbf16>
    %cst_62 = arith.constant dense<0.000000e+00> : vector<128x32xf32>
    %53 = tpu.matmul %51, %52, %cst_62 {dimension_numbers = #tpu.dot_dimension_numbers<[1], [0], [0], [1], [0, 0, 1, 1], [], []>} : vector<128x32xbf16>, vector<32x32xbf16>, vector<128x32xf32> -> vector<128x32xf32>
    %54 = arith.addf %49, %53 : vector<128x32xf32>
    %55 = vector.broadcast %8 : vector<1x32xf32> to vector<128x32xf32>
    %56 = arith.addf %54, %55 : vector<128x32xf32>
    %cst_63 = arith.constant 0.000000e+00 : f32
    %57 = vector.broadcast %cst_63 : f32 to vector<128x32xf32>
    %58 = arith.maximumf %56, %57 : vector<128x32xf32>
    %c0_64 = arith.constant 0 : index
    %c0_65 = arith.constant 0 : index
    %59 = vector.load %arg15[%c0_64, %c0_65] : memref<128x32xf32, #tpu.memory_space<vmem>>, vector<128x32xf32>
    tpu.vector_store %arg15[%c0_64, %c0_65], %58 {strides = array<i32>} : memref<128x32xf32, #tpu.memory_space<vmem>>, vector<128x32xf32>,
    %c0_i32 = arith.constant 0 : i32
    %c2_i32 = arith.constant 2 : i32
    %60 = arith.addi %c0_i32, %c2_i32 : i32
    %c1_i32 = arith.constant 1 : i32
    scf.for %arg16 = %c0_i32 to %60 step %c1_i32  : i32 {
      %c0_186 = arith.constant 0 : index
      %c0_187 = arith.constant 0 : index
      %185 = vector.load %arg15[%c0_186, %c0_187] : memref<128x32xf32, #tpu.memory_space<vmem>>, vector<128x32xf32>
      %186 = vector.shape_cast %185 : vector<128x32xf32> to vector<2x8x8x32xf32>
      %187 = arith.truncf %186 : vector<2x8x8x32xf32> to vector<2x8x8x32xbf16>
      %c0_188 = arith.constant 0 : index
      %c1_189 = arith.constant 1 : index
      %c1_190 = arith.constant 1 : index
      %c0_191 = arith.constant 0 : index
      %188 = vector.load %arg14[%c0_188, %c1_189, %c1_190, %c0_191] : memref<2x10x10x32xbf16, #tpu.memory_space<vmem>>, vector<2x8x8x32xbf16>
      tpu.vector_store %arg14[%c0_188, %c1_189, %c1_190, %c0_191], %187 {strides = array<i32>} : memref<2x10x10x32xbf16, #tpu.memory_space<vmem>>, vector<2x8x8x32xbf16>,
      %c2_i32_192 = arith.constant 2 : i32
      %189 = arith.muli %c2_i32_192, %arg16 : i32
      %190 = arith.index_cast %189 : i32 to index
      %c0_193 = arith.constant 0 : index
      %c0_194 = arith.constant 0 : index
      %191 = vector.load %arg4[%190, %c0_193, %c0_194] : memref<4x288x32xbf16, #tpu.memory_space<vmem>>, vector<1x288x32xbf16>
      %192 = vector.shape_cast %191 : vector<1x288x32xbf16> to vector<288x32xbf16>
      %c2_i32_195 = arith.constant 2 : i32
      %193 = arith.muli %c2_i32_195, %arg16 : i32
      %194 = arith.index_cast %193 : i32 to index
      %c0_196 = arith.constant 0 : index
      %c0_197 = arith.constant 0 : index
      %195 = vector.load %arg5[%194, %c0_196, %c0_197] : memref<4x1x32xf32, #tpu.memory_space<vmem>>, vector<1x1x32xf32>
      %196 = vector.shape_cast %195 : vector<1x1x32xf32> to vector<1x32xf32>
      %cst_198 = arith.constant 0.000000e+00 : f32
      %197 = vector.broadcast %cst_198 : f32 to vector<128x32xf32>
      %c0_199 = arith.constant 0 : index
      %c0_200 = arith.constant 0 : index
      %c0_201 = arith.constant 0 : index
      %c0_202 = arith.constant 0 : index
      %198 = vector.load %arg14[%c0_199, %c0_200, %c0_201, %c0_202] : memref<2x10x10x32xbf16, #tpu.memory_space<vmem>>, vector<2x8x8x32xbf16>
      %199 = vector.shape_cast %198 : vector<2x8x8x32xbf16> to vector<128x32xbf16>
      %200 = vector.extract_strided_slice %192 {offsets = [0, 0], sizes = [32, 32], strides = [1, 1]} : vector<288x32xbf16> to vector<32x32xbf16>
      %cst_203 = arith.constant dense<0.000000e+00> : vector<128x32xf32>
      %201 = tpu.matmul %199, %200, %cst_203 {dimension_numbers = #tpu.dot_dimension_numbers<[1], [0], [0], [1], [0, 0, 1, 1], [], []>} : vector<128x32xbf16>, vector<32x32xbf16>, vector<128x32xf32> -> vector<128x32xf32>
      %202 = arith.addf %197, %201 : vector<128x32xf32>
      %c0_204 = arith.constant 0 : index
      %c0_205 = arith.constant 0 : index
      %c1_206 = arith.constant 1 : index
      %c0_207 = arith.constant 0 : index
      %203 = vector.load %arg14[%c0_204, %c0_205, %c1_206, %c0_207] : memref<2x10x10x32xbf16, #tpu.memory_space<vmem>>, vector<2x8x8x32xbf16>
      %204 = vector.shape_cast %203 : vector<2x8x8x32xbf16> to vector<128x32xbf16>
      %205 = vector.extract_strided_slice %192 {offsets = [32, 0], sizes = [32, 32], strides = [1, 1]} : vector<288x32xbf16> to vector<32x32xbf16>
      %cst_208 = arith.constant dense<0.000000e+00> : vector<128x32xf32>
      %206 = tpu.matmul %204, %205, %cst_208 {dimension_numbers = #tpu.dot_dimension_numbers<[1], [0], [0], [1], [0, 0, 1, 1], [], []>} : vector<128x32xbf16>, vector<32x32xbf16>, vector<128x32xf32> -> vector<128x32xf32>
      %207 = arith.addf %202, %206 : vector<128x32xf32>
      %c0_209 = arith.constant 0 : index
      %c0_210 = arith.constant 0 : index
      %c2_211 = arith.constant 2 : index
      %c0_212 = arith.constant 0 : index
      %208 = vector.load %arg14[%c0_209, %c0_210, %c2_211, %c0_212] : memref<2x10x10x32xbf16, #tpu.memory_space<vmem>>, vector<2x8x8x32xbf16>
      %209 = vector.shape_cast %208 : vector<2x8x8x32xbf16> to vector<128x32xbf16>
      %210 = vector.extract_strided_slice %192 {offsets = [64, 0], sizes = [32, 32], strides = [1, 1]} : vector<288x32xbf16> to vector<32x32xbf16>
      %cst_213 = arith.constant dense<0.000000e+00> : vector<128x32xf32>
      %211 = tpu.matmul %209, %210, %cst_213 {dimension_numbers = #tpu.dot_dimension_numbers<[1], [0], [0], [1], [0, 0, 1, 1], [], []>} : vector<128x32xbf16>, vector<32x32xbf16>, vector<128x32xf32> -> vector<128x32xf32>
      %212 = arith.addf %207, %211 : vector<128x32xf32>
      %c0_214 = arith.constant 0 : index
      %c1_215 = arith.constant 1 : index
      %c0_216 = arith.constant 0 : index
      %c0_217 = arith.constant 0 : index
      %213 = vector.load %arg14[%c0_214, %c1_215, %c0_216, %c0_217] : memref<2x10x10x32xbf16, #tpu.memory_space<vmem>>, vector<2x8x8x32xbf16>
      %214 = vector.shape_cast %213 : vector<2x8x8x32xbf16> to vector<128x32xbf16>
      %215 = vector.extract_strided_slice %192 {offsets = [96, 0], sizes = [32, 32], strides = [1, 1]} : vector<288x32xbf16> to vector<32x32xbf16>
      %cst_218 = arith.constant dense<0.000000e+00> : vector<128x32xf32>
      %216 = tpu.matmul %214, %215, %cst_218 {dimension_numbers = #tpu.dot_dimension_numbers<[1], [0], [0], [1], [0, 0, 1, 1], [], []>} : vector<128x32xbf16>, vector<32x32xbf16>, vector<128x32xf32> -> vector<128x32xf32>
      %217 = arith.addf %212, %216 : vector<128x32xf32>
      %c0_219 = arith.constant 0 : index
      %c1_220 = arith.constant 1 : index
      %c1_221 = arith.constant 1 : index
      %c0_222 = arith.constant 0 : index
      %218 = vector.load %arg14[%c0_219, %c1_220, %c1_221, %c0_222] : memref<2x10x10x32xbf16, #tpu.memory_space<vmem>>, vector<2x8x8x32xbf16>
      %219 = vector.shape_cast %218 : vector<2x8x8x32xbf16> to vector<128x32xbf16>
      %220 = vector.extract_strided_slice %192 {offsets = [128, 0], sizes = [32, 32], strides = [1, 1]} : vector<288x32xbf16> to vector<32x32xbf16>
      %cst_223 = arith.constant dense<0.000000e+00> : vector<128x32xf32>
      %221 = tpu.matmul %219, %220, %cst_223 {dimension_numbers = #tpu.dot_dimension_numbers<[1], [0], [0], [1], [0, 0, 1, 1], [], []>} : vector<128x32xbf16>, vector<32x32xbf16>, vector<128x32xf32> -> vector<128x32xf32>
      %222 = arith.addf %217, %221 : vector<128x32xf32>
      %c0_224 = arith.constant 0 : index
      %c1_225 = arith.constant 1 : index
      %c2_226 = arith.constant 2 : index
      %c0_227 = arith.constant 0 : index
      %223 = vector.load %arg14[%c0_224, %c1_225, %c2_226, %c0_227] : memref<2x10x10x32xbf16, #tpu.memory_space<vmem>>, vector<2x8x8x32xbf16>
      %224 = vector.shape_cast %223 : vector<2x8x8x32xbf16> to vector<128x32xbf16>
      %225 = vector.extract_strided_slice %192 {offsets = [160, 0], sizes = [32, 32], strides = [1, 1]} : vector<288x32xbf16> to vector<32x32xbf16>
      %cst_228 = arith.constant dense<0.000000e+00> : vector<128x32xf32>
      %226 = tpu.matmul %224, %225, %cst_228 {dimension_numbers = #tpu.dot_dimension_numbers<[1], [0], [0], [1], [0, 0, 1, 1], [], []>} : vector<128x32xbf16>, vector<32x32xbf16>, vector<128x32xf32> -> vector<128x32xf32>
      %227 = arith.addf %222, %226 : vector<128x32xf32>
      %c0_229 = arith.constant 0 : index
      %c2_230 = arith.constant 2 : index
      %c0_231 = arith.constant 0 : index
      %c0_232 = arith.constant 0 : index
      %228 = vector.load %arg14[%c0_229, %c2_230, %c0_231, %c0_232] : memref<2x10x10x32xbf16, #tpu.memory_space<vmem>>, vector<2x8x8x32xbf16>
      %229 = vector.shape_cast %228 : vector<2x8x8x32xbf16> to vector<128x32xbf16>
      %230 = vector.extract_strided_slice %192 {offsets = [192, 0], sizes = [32, 32], strides = [1, 1]} : vector<288x32xbf16> to vector<32x32xbf16>
      %cst_233 = arith.constant dense<0.000000e+00> : vector<128x32xf32>
      %231 = tpu.matmul %229, %230, %cst_233 {dimension_numbers = #tpu.dot_dimension_numbers<[1], [0], [0], [1], [0, 0, 1, 1], [], []>} : vector<128x32xbf16>, vector<32x32xbf16>, vector<128x32xf32> -> vector<128x32xf32>
      %232 = arith.addf %227, %231 : vector<128x32xf32>
      %c0_234 = arith.constant 0 : index
      %c2_235 = arith.constant 2 : index
      %c1_236 = arith.constant 1 : index
      %c0_237 = arith.constant 0 : index
      %233 = vector.load %arg14[%c0_234, %c2_235, %c1_236, %c0_237] : memref<2x10x10x32xbf16, #tpu.memory_space<vmem>>, vector<2x8x8x32xbf16>
      %234 = vector.shape_cast %233 : vector<2x8x8x32xbf16> to vector<128x32xbf16>
      %235 = vector.extract_strided_slice %192 {offsets = [224, 0], sizes = [32, 32], strides = [1, 1]} : vector<288x32xbf16> to vector<32x32xbf16>
      %cst_238 = arith.constant dense<0.000000e+00> : vector<128x32xf32>
      %236 = tpu.matmul %234, %235, %cst_238 {dimension_numbers = #tpu.dot_dimension_numbers<[1], [0], [0], [1], [0, 0, 1, 1], [], []>} : vector<128x32xbf16>, vector<32x32xbf16>, vector<128x32xf32> -> vector<128x32xf32>
      %237 = arith.addf %232, %236 : vector<128x32xf32>
      %c0_239 = arith.constant 0 : index
      %c2_240 = arith.constant 2 : index
      %c2_241 = arith.constant 2 : index
      %c0_242 = arith.constant 0 : index
      %238 = vector.load %arg14[%c0_239, %c2_240, %c2_241, %c0_242] : memref<2x10x10x32xbf16, #tpu.memory_space<vmem>>, vector<2x8x8x32xbf16>
      %239 = vector.shape_cast %238 : vector<2x8x8x32xbf16> to vector<128x32xbf16>
      %240 = vector.extract_strided_slice %192 {offsets = [256, 0], sizes = [32, 32], strides = [1, 1]} : vector<288x32xbf16> to vector<32x32xbf16>
      %cst_243 = arith.constant dense<0.000000e+00> : vector<128x32xf32>
      %241 = tpu.matmul %239, %240, %cst_243 {dimension_numbers = #tpu.dot_dimension_numbers<[1], [0], [0], [1], [0, 0, 1, 1], [], []>} : vector<128x32xbf16>, vector<32x32xbf16>, vector<128x32xf32> -> vector<128x32xf32>
      %242 = arith.addf %237, %241 : vector<128x32xf32>
      %243 = vector.broadcast %196 : vector<1x32xf32> to vector<128x32xf32>
      %244 = arith.addf %242, %243 : vector<128x32xf32>
      %cst_244 = arith.constant 0.000000e+00 : f32
      %245 = vector.broadcast %cst_244 : f32 to vector<128x32xf32>
      %246 = arith.maximumf %244, %245 : vector<128x32xf32>
      %247 = vector.shape_cast %246 : vector<128x32xf32> to vector<2x8x8x32xf32>
      %248 = arith.truncf %247 : vector<2x8x8x32xf32> to vector<2x8x8x32xbf16>
      %c0_245 = arith.constant 0 : index
      %c1_246 = arith.constant 1 : index
      %c1_247 = arith.constant 1 : index
      %c0_248 = arith.constant 0 : index
      %249 = vector.load %arg14[%c0_245, %c1_246, %c1_247, %c0_248] : memref<2x10x10x32xbf16, #tpu.memory_space<vmem>>, vector<2x8x8x32xbf16>
      tpu.vector_store %arg14[%c0_245, %c1_246, %c1_247, %c0_248], %248 {strides = array<i32>} : memref<2x10x10x32xbf16, #tpu.memory_space<vmem>>, vector<2x8x8x32xbf16>,
      %c2_i32_249 = arith.constant 2 : i32
      %250 = arith.muli %c2_i32_249, %arg16 : i32
      %c1_i32_250 = arith.constant 1 : i32
      %251 = arith.addi %250, %c1_i32_250 : i32
      %252 = arith.index_cast %251 : i32 to index
      %c0_251 = arith.constant 0 : index
      %c0_252 = arith.constant 0 : index
      %253 = vector.load %arg4[%252, %c0_251, %c0_252] : memref<4x288x32xbf16, #tpu.memory_space<vmem>>, vector<1x288x32xbf16>
      %254 = vector.shape_cast %253 : vector<1x288x32xbf16> to vector<288x32xbf16>
      %c2_i32_253 = arith.constant 2 : i32
      %255 = arith.muli %c2_i32_253, %arg16 : i32
      %c1_i32_254 = arith.constant 1 : i32
      %256 = arith.addi %255, %c1_i32_254 : i32
      %257 = arith.index_cast %256 : i32 to index
      %c0_255 = arith.constant 0 : index
      %c0_256 = arith.constant 0 : index
      %258 = vector.load %arg5[%257, %c0_255, %c0_256] : memref<4x1x32xf32, #tpu.memory_space<vmem>>, vector<1x1x32xf32>
      %259 = vector.shape_cast %258 : vector<1x1x32xf32> to vector<1x32xf32>
      %cst_257 = arith.constant 0.000000e+00 : f32
      %260 = vector.broadcast %cst_257 : f32 to vector<128x32xf32>
      %c0_258 = arith.constant 0 : index
      %c0_259 = arith.constant 0 : index
      %c0_260 = arith.constant 0 : index
      %c0_261 = arith.constant 0 : index
      %261 = vector.load %arg14[%c0_258, %c0_259, %c0_260, %c0_261] : memref<2x10x10x32xbf16, #tpu.memory_space<vmem>>, vector<2x8x8x32xbf16>
      %262 = vector.shape_cast %261 : vector<2x8x8x32xbf16> to vector<128x32xbf16>
      %263 = vector.extract_strided_slice %254 {offsets = [0, 0], sizes = [32, 32], strides = [1, 1]} : vector<288x32xbf16> to vector<32x32xbf16>
      %cst_262 = arith.constant dense<0.000000e+00> : vector<128x32xf32>
      %264 = tpu.matmul %262, %263, %cst_262 {dimension_numbers = #tpu.dot_dimension_numbers<[1], [0], [0], [1], [0, 0, 1, 1], [], []>} : vector<128x32xbf16>, vector<32x32xbf16>, vector<128x32xf32> -> vector<128x32xf32>
      %265 = arith.addf %260, %264 : vector<128x32xf32>
      %c0_263 = arith.constant 0 : index
      %c0_264 = arith.constant 0 : index
      %c1_265 = arith.constant 1 : index
      %c0_266 = arith.constant 0 : index
      %266 = vector.load %arg14[%c0_263, %c0_264, %c1_265, %c0_266] : memref<2x10x10x32xbf16, #tpu.memory_space<vmem>>, vector<2x8x8x32xbf16>
      %267 = vector.shape_cast %266 : vector<2x8x8x32xbf16> to vector<128x32xbf16>
      %268 = vector.extract_strided_slice %254 {offsets = [32, 0], sizes = [32, 32], strides = [1, 1]} : vector<288x32xbf16> to vector<32x32xbf16>
      %cst_267 = arith.constant dense<0.000000e+00> : vector<128x32xf32>
      %269 = tpu.matmul %267, %268, %cst_267 {dimension_numbers = #tpu.dot_dimension_numbers<[1], [0], [0], [1], [0, 0, 1, 1], [], []>} : vector<128x32xbf16>, vector<32x32xbf16>, vector<128x32xf32> -> vector<128x32xf32>
      %270 = arith.addf %265, %269 : vector<128x32xf32>
      %c0_268 = arith.constant 0 : index
      %c0_269 = arith.constant 0 : index
      %c2_270 = arith.constant 2 : index
      %c0_271 = arith.constant 0 : index
      %271 = vector.load %arg14[%c0_268, %c0_269, %c2_270, %c0_271] : memref<2x10x10x32xbf16, #tpu.memory_space<vmem>>, vector<2x8x8x32xbf16>
      %272 = vector.shape_cast %271 : vector<2x8x8x32xbf16> to vector<128x32xbf16>
      %273 = vector.extract_strided_slice %254 {offsets = [64, 0], sizes = [32, 32], strides = [1, 1]} : vector<288x32xbf16> to vector<32x32xbf16>
      %cst_272 = arith.constant dense<0.000000e+00> : vector<128x32xf32>
      %274 = tpu.matmul %272, %273, %cst_272 {dimension_numbers = #tpu.dot_dimension_numbers<[1], [0], [0], [1], [0, 0, 1, 1], [], []>} : vector<128x32xbf16>, vector<32x32xbf16>, vector<128x32xf32> -> vector<128x32xf32>
      %275 = arith.addf %270, %274 : vector<128x32xf32>
      %c0_273 = arith.constant 0 : index
      %c1_274 = arith.constant 1 : index
      %c0_275 = arith.constant 0 : index
      %c0_276 = arith.constant 0 : index
      %276 = vector.load %arg14[%c0_273, %c1_274, %c0_275, %c0_276] : memref<2x10x10x32xbf16, #tpu.memory_space<vmem>>, vector<2x8x8x32xbf16>
      %277 = vector.shape_cast %276 : vector<2x8x8x32xbf16> to vector<128x32xbf16>
      %278 = vector.extract_strided_slice %254 {offsets = [96, 0], sizes = [32, 32], strides = [1, 1]} : vector<288x32xbf16> to vector<32x32xbf16>
      %cst_277 = arith.constant dense<0.000000e+00> : vector<128x32xf32>
      %279 = tpu.matmul %277, %278, %cst_277 {dimension_numbers = #tpu.dot_dimension_numbers<[1], [0], [0], [1], [0, 0, 1, 1], [], []>} : vector<128x32xbf16>, vector<32x32xbf16>, vector<128x32xf32> -> vector<128x32xf32>
      %280 = arith.addf %275, %279 : vector<128x32xf32>
      %c0_278 = arith.constant 0 : index
      %c1_279 = arith.constant 1 : index
      %c1_280 = arith.constant 1 : index
      %c0_281 = arith.constant 0 : index
      %281 = vector.load %arg14[%c0_278, %c1_279, %c1_280, %c0_281] : memref<2x10x10x32xbf16, #tpu.memory_space<vmem>>, vector<2x8x8x32xbf16>
      %282 = vector.shape_cast %281 : vector<2x8x8x32xbf16> to vector<128x32xbf16>
      %283 = vector.extract_strided_slice %254 {offsets = [128, 0], sizes = [32, 32], strides = [1, 1]} : vector<288x32xbf16> to vector<32x32xbf16>
      %cst_282 = arith.constant dense<0.000000e+00> : vector<128x32xf32>
      %284 = tpu.matmul %282, %283, %cst_282 {dimension_numbers = #tpu.dot_dimension_numbers<[1], [0], [0], [1], [0, 0, 1, 1], [], []>} : vector<128x32xbf16>, vector<32x32xbf16>, vector<128x32xf32> -> vector<128x32xf32>
      %285 = arith.addf %280, %284 : vector<128x32xf32>
      %c0_283 = arith.constant 0 : index
      %c1_284 = arith.constant 1 : index
      %c2_285 = arith.constant 2 : index
      %c0_286 = arith.constant 0 : index
      %286 = vector.load %arg14[%c0_283, %c1_284, %c2_285, %c0_286] : memref<2x10x10x32xbf16, #tpu.memory_space<vmem>>, vector<2x8x8x32xbf16>
      %287 = vector.shape_cast %286 : vector<2x8x8x32xbf16> to vector<128x32xbf16>
      %288 = vector.extract_strided_slice %254 {offsets = [160, 0], sizes = [32, 32], strides = [1, 1]} : vector<288x32xbf16> to vector<32x32xbf16>
      %cst_287 = arith.constant dense<0.000000e+00> : vector<128x32xf32>
      %289 = tpu.matmul %287, %288, %cst_287 {dimension_numbers = #tpu.dot_dimension_numbers<[1], [0], [0], [1], [0, 0, 1, 1], [], []>} : vector<128x32xbf16>, vector<32x32xbf16>, vector<128x32xf32> -> vector<128x32xf32>
      %290 = arith.addf %285, %289 : vector<128x32xf32>
      %c0_288 = arith.constant 0 : index
      %c2_289 = arith.constant 2 : index
      %c0_290 = arith.constant 0 : index
      %c0_291 = arith.constant 0 : index
      %291 = vector.load %arg14[%c0_288, %c2_289, %c0_290, %c0_291] : memref<2x10x10x32xbf16, #tpu.memory_space<vmem>>, vector<2x8x8x32xbf16>
      %292 = vector.shape_cast %291 : vector<2x8x8x32xbf16> to vector<128x32xbf16>
      %293 = vector.extract_strided_slice %254 {offsets = [192, 0], sizes = [32, 32], strides = [1, 1]} : vector<288x32xbf16> to vector<32x32xbf16>
      %cst_292 = arith.constant dense<0.000000e+00> : vector<128x32xf32>
      %294 = tpu.matmul %292, %293, %cst_292 {dimension_numbers = #tpu.dot_dimension_numbers<[1], [0], [0], [1], [0, 0, 1, 1], [], []>} : vector<128x32xbf16>, vector<32x32xbf16>, vector<128x32xf32> -> vector<128x32xf32>
      %295 = arith.addf %290, %294 : vector<128x32xf32>
      %c0_293 = arith.constant 0 : index
      %c2_294 = arith.constant 2 : index
      %c1_295 = arith.constant 1 : index
      %c0_296 = arith.constant 0 : index
      %296 = vector.load %arg14[%c0_293, %c2_294, %c1_295, %c0_296] : memref<2x10x10x32xbf16, #tpu.memory_space<vmem>>, vector<2x8x8x32xbf16>
      %297 = vector.shape_cast %296 : vector<2x8x8x32xbf16> to vector<128x32xbf16>
      %298 = vector.extract_strided_slice %254 {offsets = [224, 0], sizes = [32, 32], strides = [1, 1]} : vector<288x32xbf16> to vector<32x32xbf16>
      %cst_297 = arith.constant dense<0.000000e+00> : vector<128x32xf32>
      %299 = tpu.matmul %297, %298, %cst_297 {dimension_numbers = #tpu.dot_dimension_numbers<[1], [0], [0], [1], [0, 0, 1, 1], [], []>} : vector<128x32xbf16>, vector<32x32xbf16>, vector<128x32xf32> -> vector<128x32xf32>
      %300 = arith.addf %295, %299 : vector<128x32xf32>
      %c0_298 = arith.constant 0 : index
      %c2_299 = arith.constant 2 : index
      %c2_300 = arith.constant 2 : index
      %c0_301 = arith.constant 0 : index
      %301 = vector.load %arg14[%c0_298, %c2_299, %c2_300, %c0_301] : memref<2x10x10x32xbf16, #tpu.memory_space<vmem>>, vector<2x8x8x32xbf16>
      %302 = vector.shape_cast %301 : vector<2x8x8x32xbf16> to vector<128x32xbf16>
      %303 = vector.extract_strided_slice %254 {offsets = [256, 0], sizes = [32, 32], strides = [1, 1]} : vector<288x32xbf16> to vector<32x32xbf16>
      %cst_302 = arith.constant dense<0.000000e+00> : vector<128x32xf32>
      %304 = tpu.matmul %302, %303, %cst_302 {dimension_numbers = #tpu.dot_dimension_numbers<[1], [0], [0], [1], [0, 0, 1, 1], [], []>} : vector<128x32xbf16>, vector<32x32xbf16>, vector<128x32xf32> -> vector<128x32xf32>
      %305 = arith.addf %300, %304 : vector<128x32xf32>
      %306 = vector.broadcast %259 : vector<1x32xf32> to vector<128x32xf32>
      %307 = arith.addf %305, %306 : vector<128x32xf32>
      %308 = arith.addf %307, %185 : vector<128x32xf32>
      %cst_303 = arith.constant 0.000000e+00 : f32
      %309 = vector.broadcast %cst_303 : f32 to vector<128x32xf32>
      %310 = arith.maximumf %308, %309 : vector<128x32xf32>
      %c0_304 = arith.constant 0 : index
      %c0_305 = arith.constant 0 : index
      %311 = vector.load %arg15[%c0_304, %c0_305] : memref<128x32xf32, #tpu.memory_space<vmem>>, vector<128x32xf32>
      tpu.vector_store %arg15[%c0_304, %c0_305], %310 {strides = array<i32>} : memref<128x32xf32, #tpu.memory_space<vmem>>, vector<128x32xf32>,
    }
    %c2_i32_66 = arith.constant 2 : i32
    %c0_67 = arith.constant 0 : index
    %c0_68 = arith.constant 0 : index
    %61 = vector.load %arg15[%c0_67, %c0_68] : memref<128x32xf32, #tpu.memory_space<vmem>>, vector<128x32xf32>
    %62 = vector.shape_cast %61 : vector<128x32xf32> to vector<2x8x8x32xf32>
    %63 = arith.truncf %62 : vector<2x8x8x32xf32> to vector<2x8x8x32xbf16>
    %c0_69 = arith.constant 0 : index
    %c1_70 = arith.constant 1 : index
    %c1_71 = arith.constant 1 : index
    %c0_72 = arith.constant 0 : index
    %64 = vector.load %arg14[%c0_69, %c1_70, %c1_71, %c0_72] : memref<2x10x10x32xbf16, #tpu.memory_space<vmem>>, vector<2x8x8x32xbf16>
    tpu.vector_store %arg14[%c0_69, %c1_70, %c1_71, %c0_72], %63 {strides = array<i32>} : memref<2x10x10x32xbf16, #tpu.memory_space<vmem>>, vector<2x8x8x32xbf16>,
    %c0_73 = arith.constant 0 : index
    %c0_74 = arith.constant 0 : index
    %65 = vector.load %arg6[%c0_73, %c0_74] : memref<288x32xbf16, #tpu.memory_space<vmem>>, vector<288x32xbf16>
    %c0_75 = arith.constant 0 : index
    %c0_76 = arith.constant 0 : index
    %66 = vector.load %arg7[%c0_75, %c0_76] : memref<1x32xf32, #tpu.memory_space<vmem>>, vector<1x32xf32>
    %cst_77 = arith.constant 0.000000e+00 : f32
    %67 = vector.broadcast %cst_77 : f32 to vector<128x32xf32>
    %c0_78 = arith.constant 0 : index
    %c0_79 = arith.constant 0 : index
    %c0_80 = arith.constant 0 : index
    %c0_81 = arith.constant 0 : index
    %68 = vector.load %arg14[%c0_78, %c0_79, %c0_80, %c0_81] : memref<2x10x10x32xbf16, #tpu.memory_space<vmem>>, vector<2x8x8x32xbf16>
    %69 = vector.shape_cast %68 : vector<2x8x8x32xbf16> to vector<128x32xbf16>
    %70 = vector.extract_strided_slice %65 {offsets = [0, 0], sizes = [32, 32], strides = [1, 1]} : vector<288x32xbf16> to vector<32x32xbf16>
    %cst_82 = arith.constant dense<0.000000e+00> : vector<128x32xf32>
    %71 = tpu.matmul %69, %70, %cst_82 {dimension_numbers = #tpu.dot_dimension_numbers<[1], [0], [0], [1], [0, 0, 1, 1], [], []>} : vector<128x32xbf16>, vector<32x32xbf16>, vector<128x32xf32> -> vector<128x32xf32>
    %72 = arith.addf %67, %71 : vector<128x32xf32>
    %c0_83 = arith.constant 0 : index
    %c0_84 = arith.constant 0 : index
    %c1_85 = arith.constant 1 : index
    %c0_86 = arith.constant 0 : index
    %73 = vector.load %arg14[%c0_83, %c0_84, %c1_85, %c0_86] : memref<2x10x10x32xbf16, #tpu.memory_space<vmem>>, vector<2x8x8x32xbf16>
    %74 = vector.shape_cast %73 : vector<2x8x8x32xbf16> to vector<128x32xbf16>
    %75 = vector.extract_strided_slice %65 {offsets = [32, 0], sizes = [32, 32], strides = [1, 1]} : vector<288x32xbf16> to vector<32x32xbf16>
    %cst_87 = arith.constant dense<0.000000e+00> : vector<128x32xf32>
    %76 = tpu.matmul %74, %75, %cst_87 {dimension_numbers = #tpu.dot_dimension_numbers<[1], [0], [0], [1], [0, 0, 1, 1], [], []>} : vector<128x32xbf16>, vector<32x32xbf16>, vector<128x32xf32> -> vector<128x32xf32>
    %77 = arith.addf %72, %76 : vector<128x32xf32>
    %c0_88 = arith.constant 0 : index
    %c0_89 = arith.constant 0 : index
    %c2_90 = arith.constant 2 : index
    %c0_91 = arith.constant 0 : index
    %78 = vector.load %arg14[%c0_88, %c0_89, %c2_90, %c0_91] : memref<2x10x10x32xbf16, #tpu.memory_space<vmem>>, vector<2x8x8x32xbf16>
    %79 = vector.shape_cast %78 : vector<2x8x8x32xbf16> to vector<128x32xbf16>
    %80 = vector.extract_strided_slice %65 {offsets = [64, 0], sizes = [32, 32], strides = [1, 1]} : vector<288x32xbf16> to vector<32x32xbf16>
    %cst_92 = arith.constant dense<0.000000e+00> : vector<128x32xf32>
    %81 = tpu.matmul %79, %80, %cst_92 {dimension_numbers = #tpu.dot_dimension_numbers<[1], [0], [0], [1], [0, 0, 1, 1], [], []>} : vector<128x32xbf16>, vector<32x32xbf16>, vector<128x32xf32> -> vector<128x32xf32>
    %82 = arith.addf %77, %81 : vector<128x32xf32>
    %c0_93 = arith.constant 0 : index
    %c1_94 = arith.constant 1 : index
    %c0_95 = arith.constant 0 : index
    %c0_96 = arith.constant 0 : index
    %83 = vector.load %arg14[%c0_93, %c1_94, %c0_95, %c0_96] : memref<2x10x10x32xbf16, #tpu.memory_space<vmem>>, vector<2x8x8x32xbf16>
    %84 = vector.shape_cast %83 : vector<2x8x8x32xbf16> to vector<128x32xbf16>
    %85 = vector.extract_strided_slice %65 {offsets = [96, 0], sizes = [32, 32], strides = [1, 1]} : vector<288x32xbf16> to vector<32x32xbf16>
    %cst_97 = arith.constant dense<0.000000e+00> : vector<128x32xf32>
    %86 = tpu.matmul %84, %85, %cst_97 {dimension_numbers = #tpu.dot_dimension_numbers<[1], [0], [0], [1], [0, 0, 1, 1], [], []>} : vector<128x32xbf16>, vector<32x32xbf16>, vector<128x32xf32> -> vector<128x32xf32>
    %87 = arith.addf %82, %86 : vector<128x32xf32>
    %c0_98 = arith.constant 0 : index
    %c1_99 = arith.constant 1 : index
    %c1_100 = arith.constant 1 : index
    %c0_101 = arith.constant 0 : index
    %88 = vector.load %arg14[%c0_98, %c1_99, %c1_100, %c0_101] : memref<2x10x10x32xbf16, #tpu.memory_space<vmem>>, vector<2x8x8x32xbf16>
    %89 = vector.shape_cast %88 : vector<2x8x8x32xbf16> to vector<128x32xbf16>
    %90 = vector.extract_strided_slice %65 {offsets = [128, 0], sizes = [32, 32], strides = [1, 1]} : vector<288x32xbf16> to vector<32x32xbf16>
    %cst_102 = arith.constant dense<0.000000e+00> : vector<128x32xf32>
    %91 = tpu.matmul %89, %90, %cst_102 {dimension_numbers = #tpu.dot_dimension_numbers<[1], [0], [0], [1], [0, 0, 1, 1], [], []>} : vector<128x32xbf16>, vector<32x32xbf16>, vector<128x32xf32> -> vector<128x32xf32>
    %92 = arith.addf %87, %91 : vector<128x32xf32>
    %c0_103 = arith.constant 0 : index
    %c1_104 = arith.constant 1 : index
    %c2_105 = arith.constant 2 : index
    %c0_106 = arith.constant 0 : index
    %93 = vector.load %arg14[%c0_103, %c1_104, %c2_105, %c0_106] : memref<2x10x10x32xbf16, #tpu.memory_space<vmem>>, vector<2x8x8x32xbf16>
    %94 = vector.shape_cast %93 : vector<2x8x8x32xbf16> to vector<128x32xbf16>
    %95 = vector.extract_strided_slice %65 {offsets = [160, 0], sizes = [32, 32], strides = [1, 1]} : vector<288x32xbf16> to vector<32x32xbf16>
    %cst_107 = arith.constant dense<0.000000e+00> : vector<128x32xf32>
    %96 = tpu.matmul %94, %95, %cst_107 {dimension_numbers = #tpu.dot_dimension_numbers<[1], [0], [0], [1], [0, 0, 1, 1], [], []>} : vector<128x32xbf16>, vector<32x32xbf16>, vector<128x32xf32> -> vector<128x32xf32>
    %97 = arith.addf %92, %96 : vector<128x32xf32>
    %c0_108 = arith.constant 0 : index
    %c2_109 = arith.constant 2 : index
    %c0_110 = arith.constant 0 : index
    %c0_111 = arith.constant 0 : index
    %98 = vector.load %arg14[%c0_108, %c2_109, %c0_110, %c0_111] : memref<2x10x10x32xbf16, #tpu.memory_space<vmem>>, vector<2x8x8x32xbf16>
    %99 = vector.shape_cast %98 : vector<2x8x8x32xbf16> to vector<128x32xbf16>
    %100 = vector.extract_strided_slice %65 {offsets = [192, 0], sizes = [32, 32], strides = [1, 1]} : vector<288x32xbf16> to vector<32x32xbf16>
    %cst_112 = arith.constant dense<0.000000e+00> : vector<128x32xf32>
    %101 = tpu.matmul %99, %100, %cst_112 {dimension_numbers = #tpu.dot_dimension_numbers<[1], [0], [0], [1], [0, 0, 1, 1], [], []>} : vector<128x32xbf16>, vector<32x32xbf16>, vector<128x32xf32> -> vector<128x32xf32>
    %102 = arith.addf %97, %101 : vector<128x32xf32>
    %c0_113 = arith.constant 0 : index
    %c2_114 = arith.constant 2 : index
    %c1_115 = arith.constant 1 : index
    %c0_116 = arith.constant 0 : index
    %103 = vector.load %arg14[%c0_113, %c2_114, %c1_115, %c0_116] : memref<2x10x10x32xbf16, #tpu.memory_space<vmem>>, vector<2x8x8x32xbf16>
    %104 = vector.shape_cast %103 : vector<2x8x8x32xbf16> to vector<128x32xbf16>
    %105 = vector.extract_strided_slice %65 {offsets = [224, 0], sizes = [32, 32], strides = [1, 1]} : vector<288x32xbf16> to vector<32x32xbf16>
    %cst_117 = arith.constant dense<0.000000e+00> : vector<128x32xf32>
    %106 = tpu.matmul %104, %105, %cst_117 {dimension_numbers = #tpu.dot_dimension_numbers<[1], [0], [0], [1], [0, 0, 1, 1], [], []>} : vector<128x32xbf16>, vector<32x32xbf16>, vector<128x32xf32> -> vector<128x32xf32>
    %107 = arith.addf %102, %106 : vector<128x32xf32>
    %c0_118 = arith.constant 0 : index
    %c2_119 = arith.constant 2 : index
    %c2_120 = arith.constant 2 : index
    %c0_121 = arith.constant 0 : index
    %108 = vector.load %arg14[%c0_118, %c2_119, %c2_120, %c0_121] : memref<2x10x10x32xbf16, #tpu.memory_space<vmem>>, vector<2x8x8x32xbf16>
    %109 = vector.shape_cast %108 : vector<2x8x8x32xbf16> to vector<128x32xbf16>
    %110 = vector.extract_strided_slice %65 {offsets = [256, 0], sizes = [32, 32], strides = [1, 1]} : vector<288x32xbf16> to vector<32x32xbf16>
    %cst_122 = arith.constant dense<0.000000e+00> : vector<128x32xf32>
    %111 = tpu.matmul %109, %110, %cst_122 {dimension_numbers = #tpu.dot_dimension_numbers<[1], [0], [0], [1], [0, 0, 1, 1], [], []>} : vector<128x32xbf16>, vector<32x32xbf16>, vector<128x32xf32> -> vector<128x32xf32>
    %112 = arith.addf %107, %111 : vector<128x32xf32>
    %113 = vector.broadcast %66 : vector<1x32xf32> to vector<128x32xf32>
    %114 = arith.addf %112, %113 : vector<128x32xf32>
    %cst_123 = arith.constant 0.000000e+00 : f32
    %115 = vector.broadcast %cst_123 : f32 to vector<128x32xf32>
    %116 = arith.maximumf %114, %115 : vector<128x32xf32>
    %117 = vector.shape_cast %116 : vector<128x32xf32> to vector<2x64x32xf32>
    %118 = arith.truncf %117 : vector<2x64x32xf32> to vector<2x64x32xbf16>
    %c0_124 = arith.constant 0 : index
    %c0_125 = arith.constant 0 : index
    %c0_126 = arith.constant 0 : index
    %119 = vector.load %arg12[%c0_124, %c0_125, %c0_126] : memref<2x64x32xbf16, #tpu.memory_space<vmem>>, vector<2x64x32xbf16>
    tpu.vector_store %arg12[%c0_124, %c0_125, %c0_126], %118 {strides = array<i32>} : memref<2x64x32xbf16, #tpu.memory_space<vmem>>, vector<2x64x32xbf16>,
    %c0_127 = arith.constant 0 : index
    %c0_128 = arith.constant 0 : index
    %120 = vector.load %arg8[%c0_127, %c0_128] : memref<288x3xbf16, #tpu.memory_space<vmem>>, vector<288x3xbf16>
    %c0_129 = arith.constant 0 : index
    %c0_130 = arith.constant 0 : index
    %121 = vector.load %arg9[%c0_129, %c0_130] : memref<1x3xf32, #tpu.memory_space<vmem>>, vector<1x3xf32>
    %cst_131 = arith.constant 0.000000e+00 : f32
    %122 = vector.broadcast %cst_131 : f32 to vector<128x3xf32>
    %c0_132 = arith.constant 0 : index
    %c0_133 = arith.constant 0 : index
    %c0_134 = arith.constant 0 : index
    %c0_135 = arith.constant 0 : index
    %123 = vector.load %arg14[%c0_132, %c0_133, %c0_134, %c0_135] : memref<2x10x10x32xbf16, #tpu.memory_space<vmem>>, vector<2x8x8x32xbf16>
    %124 = vector.shape_cast %123 : vector<2x8x8x32xbf16> to vector<128x32xbf16>
    %125 = vector.extract_strided_slice %120 {offsets = [0, 0], sizes = [32, 3], strides = [1, 1]} : vector<288x3xbf16> to vector<32x3xbf16>
    %cst_136 = arith.constant dense<0.000000e+00> : vector<128x3xf32>
    %126 = tpu.matmul %124, %125, %cst_136 {dimension_numbers = #tpu.dot_dimension_numbers<[1], [0], [0], [1], [0, 0, 1, 1], [], []>} : vector<128x32xbf16>, vector<32x3xbf16>, vector<128x3xf32> -> vector<128x3xf32>
    %127 = arith.addf %122, %126 : vector<128x3xf32>
    %c0_137 = arith.constant 0 : index
    %c0_138 = arith.constant 0 : index
    %c1_139 = arith.constant 1 : index
    %c0_140 = arith.constant 0 : index
    %128 = vector.load %arg14[%c0_137, %c0_138, %c1_139, %c0_140] : memref<2x10x10x32xbf16, #tpu.memory_space<vmem>>, vector<2x8x8x32xbf16>
    %129 = vector.shape_cast %128 : vector<2x8x8x32xbf16> to vector<128x32xbf16>
    %130 = vector.extract_strided_slice %120 {offsets = [32, 0], sizes = [32, 3], strides = [1, 1]} : vector<288x3xbf16> to vector<32x3xbf16>
    %cst_141 = arith.constant dense<0.000000e+00> : vector<128x3xf32>
    %131 = tpu.matmul %129, %130, %cst_141 {dimension_numbers = #tpu.dot_dimension_numbers<[1], [0], [0], [1], [0, 0, 1, 1], [], []>} : vector<128x32xbf16>, vector<32x3xbf16>, vector<128x3xf32> -> vector<128x3xf32>
    %132 = arith.addf %127, %131 : vector<128x3xf32>
    %c0_142 = arith.constant 0 : index
    %c0_143 = arith.constant 0 : index
    %c2_144 = arith.constant 2 : index
    %c0_145 = arith.constant 0 : index
    %133 = vector.load %arg14[%c0_142, %c0_143, %c2_144, %c0_145] : memref<2x10x10x32xbf16, #tpu.memory_space<vmem>>, vector<2x8x8x32xbf16>
    %134 = vector.shape_cast %133 : vector<2x8x8x32xbf16> to vector<128x32xbf16>
    %135 = vector.extract_strided_slice %120 {offsets = [64, 0], sizes = [32, 3], strides = [1, 1]} : vector<288x3xbf16> to vector<32x3xbf16>
    %cst_146 = arith.constant dense<0.000000e+00> : vector<128x3xf32>
    %136 = tpu.matmul %134, %135, %cst_146 {dimension_numbers = #tpu.dot_dimension_numbers<[1], [0], [0], [1], [0, 0, 1, 1], [], []>} : vector<128x32xbf16>, vector<32x3xbf16>, vector<128x3xf32> -> vector<128x3xf32>
    %137 = arith.addf %132, %136 : vector<128x3xf32>
    %c0_147 = arith.constant 0 : index
    %c1_148 = arith.constant 1 : index
    %c0_149 = arith.constant 0 : index
    %c0_150 = arith.constant 0 : index
    %138 = vector.load %arg14[%c0_147, %c1_148, %c0_149, %c0_150] : memref<2x10x10x32xbf16, #tpu.memory_space<vmem>>, vector<2x8x8x32xbf16>
    %139 = vector.shape_cast %138 : vector<2x8x8x32xbf16> to vector<128x32xbf16>
    %140 = vector.extract_strided_slice %120 {offsets = [96, 0], sizes = [32, 3], strides = [1, 1]} : vector<288x3xbf16> to vector<32x3xbf16>
    %cst_151 = arith.constant dense<0.000000e+00> : vector<128x3xf32>
    %141 = tpu.matmul %139, %140, %cst_151 {dimension_numbers = #tpu.dot_dimension_numbers<[1], [0], [0], [1], [0, 0, 1, 1], [], []>} : vector<128x32xbf16>, vector<32x3xbf16>, vector<128x3xf32> -> vector<128x3xf32>
    %142 = arith.addf %137, %141 : vector<128x3xf32>
    %c0_152 = arith.constant 0 : index
    %c1_153 = arith.constant 1 : index
    %c1_154 = arith.constant 1 : index
    %c0_155 = arith.constant 0 : index
    %143 = vector.load %arg14[%c0_152, %c1_153, %c1_154, %c0_155] : memref<2x10x10x32xbf16, #tpu.memory_space<vmem>>, vector<2x8x8x32xbf16>
    %144 = vector.shape_cast %143 : vector<2x8x8x32xbf16> to vector<128x32xbf16>
    %145 = vector.extract_strided_slice %120 {offsets = [128, 0], sizes = [32, 3], strides = [1, 1]} : vector<288x3xbf16> to vector<32x3xbf16>
    %cst_156 = arith.constant dense<0.000000e+00> : vector<128x3xf32>
    %146 = tpu.matmul %144, %145, %cst_156 {dimension_numbers = #tpu.dot_dimension_numbers<[1], [0], [0], [1], [0, 0, 1, 1], [], []>} : vector<128x32xbf16>, vector<32x3xbf16>, vector<128x3xf32> -> vector<128x3xf32>
    %147 = arith.addf %142, %146 : vector<128x3xf32>
    %c0_157 = arith.constant 0 : index
    %c1_158 = arith.constant 1 : index
    %c2_159 = arith.constant 2 : index
    %c0_160 = arith.constant 0 : index
    %148 = vector.load %arg14[%c0_157, %c1_158, %c2_159, %c0_160] : memref<2x10x10x32xbf16, #tpu.memory_space<vmem>>, vector<2x8x8x32xbf16>
    %149 = vector.shape_cast %148 : vector<2x8x8x32xbf16> to vector<128x32xbf16>
    %150 = vector.extract_strided_slice %120 {offsets = [160, 0], sizes = [32, 3], strides = [1, 1]} : vector<288x3xbf16> to vector<32x3xbf16>
    %cst_161 = arith.constant dense<0.000000e+00> : vector<128x3xf32>
    %151 = tpu.matmul %149, %150, %cst_161 {dimension_numbers = #tpu.dot_dimension_numbers<[1], [0], [0], [1], [0, 0, 1, 1], [], []>} : vector<128x32xbf16>, vector<32x3xbf16>, vector<128x3xf32> -> vector<128x3xf32>
    %152 = arith.addf %147, %151 : vector<128x3xf32>
    %c0_162 = arith.constant 0 : index
    %c2_163 = arith.constant 2 : index
    %c0_164 = arith.constant 0 : index
    %c0_165 = arith.constant 0 : index
    %153 = vector.load %arg14[%c0_162, %c2_163, %c0_164, %c0_165] : memref<2x10x10x32xbf16, #tpu.memory_space<vmem>>, vector<2x8x8x32xbf16>
    %154 = vector.shape_cast %153 : vector<2x8x8x32xbf16> to vector<128x32xbf16>
    %155 = vector.extract_strided_slice %120 {offsets = [192, 0], sizes = [32, 3], strides = [1, 1]} : vector<288x3xbf16> to vector<32x3xbf16>
    %cst_166 = arith.constant dense<0.000000e+00> : vector<128x3xf32>
    %156 = tpu.matmul %154, %155, %cst_166 {dimension_numbers = #tpu.dot_dimension_numbers<[1], [0], [0], [1], [0, 0, 1, 1], [], []>} : vector<128x32xbf16>, vector<32x3xbf16>, vector<128x3xf32> -> vector<128x3xf32>
    %157 = arith.addf %152, %156 : vector<128x3xf32>
    %c0_167 = arith.constant 0 : index
    %c2_168 = arith.constant 2 : index
    %c1_169 = arith.constant 1 : index
    %c0_170 = arith.constant 0 : index
    %158 = vector.load %arg14[%c0_167, %c2_168, %c1_169, %c0_170] : memref<2x10x10x32xbf16, #tpu.memory_space<vmem>>, vector<2x8x8x32xbf16>
    %159 = vector.shape_cast %158 : vector<2x8x8x32xbf16> to vector<128x32xbf16>
    %160 = vector.extract_strided_slice %120 {offsets = [224, 0], sizes = [32, 3], strides = [1, 1]} : vector<288x3xbf16> to vector<32x3xbf16>
    %cst_171 = arith.constant dense<0.000000e+00> : vector<128x3xf32>
    %161 = tpu.matmul %159, %160, %cst_171 {dimension_numbers = #tpu.dot_dimension_numbers<[1], [0], [0], [1], [0, 0, 1, 1], [], []>} : vector<128x32xbf16>, vector<32x3xbf16>, vector<128x3xf32> -> vector<128x3xf32>
    %162 = arith.addf %157, %161 : vector<128x3xf32>
    %c0_172 = arith.constant 0 : index
    %c2_173 = arith.constant 2 : index
    %c2_174 = arith.constant 2 : index
    %c0_175 = arith.constant 0 : index
    %163 = vector.load %arg14[%c0_172, %c2_173, %c2_174, %c0_175] : memref<2x10x10x32xbf16, #tpu.memory_space<vmem>>, vector<2x8x8x32xbf16>
    %164 = vector.shape_cast %163 : vector<2x8x8x32xbf16> to vector<128x32xbf16>
    %165 = vector.extract_strided_slice %120 {offsets = [256, 0], sizes = [32, 3], strides = [1, 1]} : vector<288x3xbf16> to vector<32x3xbf16>
    %cst_176 = arith.constant dense<0.000000e+00> : vector<128x3xf32>
    %166 = tpu.matmul %164, %165, %cst_176 {dimension_numbers = #tpu.dot_dimension_numbers<[1], [0], [0], [1], [0, 0, 1, 1], [], []>} : vector<128x32xbf16>, vector<32x3xbf16>, vector<128x3xf32> -> vector<128x3xf32>
    %167 = arith.addf %162, %166 : vector<128x3xf32>
    %168 = vector.broadcast %121 : vector<1x3xf32> to vector<128x3xf32>
    %169 = arith.addf %167, %168 : vector<128x3xf32>
    %cst_177 = arith.constant 0.000000e+00 : f32
    %170 = vector.broadcast %cst_177 : f32 to vector<128x3xf32>
    %171 = arith.maximumf %169, %170 : vector<128x3xf32>
    %172 = vector.shape_cast %171 : vector<128x3xf32> to vector<2x64x3xf32>
    %c0_178 = arith.constant 0 : index
    %c0_179 = arith.constant 0 : index
    %173 = vector.load %arg10[%c0_178, %c0_179] : memref<64x3xf32, #tpu.memory_space<vmem>>, vector<64x3xf32>
    %174 = vector.shape_cast %173 : vector<64x3xf32> to vector<1x64x3xf32>
    %175 = vector.broadcast %174 : vector<1x64x3xf32> to vector<2x64x3xf32>
    %176 = arith.mulf %172, %175 : vector<2x64x3xf32>
    %cst_180 = arith.constant dense<0.000000e+00> : vector<2x64xf32>
    %177 = vector.multi_reduction <add>, %176, %cst_180 [2] : vector<2x64x3xf32> to vector<2x64xf32>
    %cst_181 = arith.constant dense<0.000000e+00> : vector<2xf32>
    %178 = vector.multi_reduction <add>, %177, %cst_181 [1] : vector<2x64xf32> to vector<2xf32>
    %179 = vector.shape_cast %178 : vector<2xf32> to vector<2x1xf32>
    %c0_182 = arith.constant 0 : index
    %c0_183 = arith.constant 0 : index
    %180 = vector.load %arg11[%c0_182, %c0_183] : memref<1x1xf32, #tpu.memory_space<vmem>>, vector<1x1xf32>
    %181 = vector.broadcast %180 : vector<1x1xf32> to vector<2x1xf32>
    %182 = arith.addf %179, %181 : vector<2x1xf32>
    %183 = math.tanh %182 : vector<2x1xf32>
    %c0_184 = arith.constant 0 : index
    %c0_185 = arith.constant 0 : index
    %184 = vector.load %arg13[%c0_184, %c0_185] : memref<2x1xf32, #tpu.memory_space<vmem>>, vector<2x1xf32>
    tpu.vector_store %arg13[%c0_184, %c0_185], %183 {strides = array<i32>} : memref<2x1xf32, #tpu.memory_space<vmem>>, vector<2x1xf32>,
    return
  }
  func.func @transform_0(%arg0: i32) -> (i32, i32, i32, i32) {
    %c0_i32 = arith.constant 0 : i32
    %c0_i32_0 = arith.constant 0 : i32
    %c0_i32_1 = arith.constant 0 : i32
    %c0_i32_2 = arith.constant 0 : i32
    return %arg0, %c0_i32, %c0_i32_0, %c0_i32_1 : i32, i32, i32, i32
  }
  func.func @transform_1(%arg0: i32) -> (i32, i32) {
    %c0_i32 = arith.constant 0 : i32
    %c0_i32_0 = arith.constant 0 : i32
    %c0_i32_1 = arith.constant 0 : i32
    return %c0_i32, %c0_i32_0 : i32, i32
  }
  func.func @transform_2(%arg0: i32) -> (i32, i32) {
    %c0_i32 = arith.constant 0 : i32
    %c0_i32_0 = arith.constant 0 : i32
    %c0_i32_1 = arith.constant 0 : i32
    return %c0_i32, %c0_i32_0 : i32, i32
  }
  func.func @transform_3(%arg0: i32) -> (i32, i32, i32) {
    %c0_i32 = arith.constant 0 : i32
    %c0_i32_0 = arith.constant 0 : i32
    %c0_i32_1 = arith.constant 0 : i32
    %c0_i32_2 = arith.constant 0 : i32
    return %c0_i32, %c0_i32_0, %c0_i32_1 : i32, i32, i32
  }
  func.func @transform_4(%arg0: i32) -> (i32, i32, i32) {
    %c0_i32 = arith.constant 0 : i32
    %c0_i32_0 = arith.constant 0 : i32
    %c0_i32_1 = arith.constant 0 : i32
    %c0_i32_2 = arith.constant 0 : i32
    return %c0_i32, %c0_i32_0, %c0_i32_1 : i32, i32, i32
  }
  func.func @transform_5(%arg0: i32) -> (i32, i32) {
    %c0_i32 = arith.constant 0 : i32
    %c0_i32_0 = arith.constant 0 : i32
    %c0_i32_1 = arith.constant 0 : i32
    return %c0_i32, %c0_i32_0 : i32, i32
  }
  func.func @transform_6(%arg0: i32) -> (i32, i32) {
    %c0_i32 = arith.constant 0 : i32
    %c0_i32_0 = arith.constant 0 : i32
    %c0_i32_1 = arith.constant 0 : i32
    return %c0_i32, %c0_i32_0 : i32, i32
  }
  func.func @transform_7(%arg0: i32) -> (i32, i32) {
    %c0_i32 = arith.constant 0 : i32
    %c0_i32_0 = arith.constant 0 : i32
    %c0_i32_1 = arith.constant 0 : i32
    return %c0_i32, %c0_i32_0 : i32, i32
  }
  func.func @transform_8(%arg0: i32) -> (i32, i32) {
    %c0_i32 = arith.constant 0 : i32
    %c0_i32_0 = arith.constant 0 : i32
    %c0_i32_1 = arith.constant 0 : i32
    return %c0_i32, %c0_i32_0 : i32, i32
  }
  func.func @transform_9(%arg0: i32) -> (i32, i32) {
    %c0_i32 = arith.constant 0 : i32
    %c0_i32_0 = arith.constant 0 : i32
    %c0_i32_1 = arith.constant 0 : i32
    return %c0_i32, %c0_i32_0 : i32, i32
  }
  func.func @transform_10(%arg0: i32) -> (i32, i32) {
    %c0_i32 = arith.constant 0 : i32
    %c0_i32_0 = arith.constant 0 : i32
    %c0_i32_1 = arith.constant 0 : i32
    return %c0_i32, %c0_i32_0 : i32, i32
  }
  func.func @transform_11(%arg0: i32) -> (i32, i32, i32) {
    %c0_i32 = arith.constant 0 : i32
    %c0_i32_0 = arith.constant 0 : i32
    %c0_i32_1 = arith.constant 0 : i32
    return %arg0, %c0_i32, %c0_i32_0 : i32, i32, i32
  }
  func.func @transform_12(%arg0: i32) -> (i32, i32) {
    %c0_i32 = arith.constant 0 : i32
    %c0_i32_0 = arith.constant 0 : i32
    return %arg0, %c0_i32 : i32, i32
  }
}

</mosaic_0001>

<bundles_post_ra>
// kernel: _resnet_forward.1
= control target key start
LH: loop header
LB: loop body
LE: loop exit
PB: predicated region body
PF: predicated region fallthrough
CT: control target
= control target key end

     0   :  { %vm43_vm0 = vcmask 257024   ;;  %vm45_vm1 = vcmask 253952   ;;  %v19340_v2 = vmov 0   ;;  %vm326_vm2 = vcmask 84992   ;;  %s24380_s1 = inlined_call_operand.vmem [shape: bf16[288,32], index: 1, kind: input, shape index: {}]   ;;  %s24381_s3 = inlined_call_operand.vmem [shape: bf16[4,288,32], index: 3, kind: input, shape index: {}]   ;;  %s24382_s4 = inlined_call_operand.vmem [shape: f32[4,1,32], index: 4, kind: input, shape index: {}]   ;;  %s24383_s5 = inlined_call_operand.vmem [shape: bf16[288,32], index: 5, kind: input, shape index: {}]   ;;  %s24384_s6 = inlined_call_operand.vmem [shape: f32[1,32], index: 6, kind: input, shape index: {}]   ;;  %s24385_s7 = inlined_call_operand.vmem [shape: bf16[288,3], index: 7, kind: input, shape index: {}]   ;;  %s24386_s8 = inlined_call_operand.vmem [shape: f32[1,3], index: 8, kind: input, shape index: {}]   ;;  %s24387_s9 = inlined_call_operand.vmem [shape: f32[64,3], index: 9, kind: input, shape index: {}]   ;;  %s24388_s10 = inlined_call_operand.<no memory space> [shape: f32[1,1], index: 10, kind: input, shape index: {}]   ;;  %s24389_s11 = inlined_call_operand.vmem [shape: bf16[2,64,32], index: 11, kind: output, shape index: {0}]   ;;  %s24390_s12 = inlined_call_operand.vmem [shape: f32[2,1], index: 12, kind: output, shape index: {1}]   ;;  %s24391_s0 = inlined_call_operand.vmem [shape: f32[2,8,8,11], index: 0, kind: input, shape index: {}]   ;;  %s24392_s2 = inlined_call_operand.vmem [shape: f32[1,32], index: 2, kind: input, shape index: {}]  }
   0x1   :  { %v18_v0 = vstv %s24388_s10  ;;  %v19087_v1 = vld [vmem:[%s24380_s1 + $0x10] sm:$0xff]   ;;  %44 = vst.msk [vmem:[#allocation2] sm:$0xf] %vm43_vm0, %v19340_v2  ;;  %47 = vst.msk [vmem:[#allocation2 + $0x8] sm:$0xf] %vm43_vm0, %v19340_v2  ;;  %v19088_v3 = vld [vmem:[%s24380_s1 + $0x40] sm:$0xff]  }
   0x2   :  { %46 = vst.msk [vmem:[#allocation2 + $0x4] sm:$0x1] %vm45_vm1, %v19340_v2  ;;  %48 = vst.msk [vmem:[#allocation2 + $0xc] sm:$0x1] %vm45_vm1, %v19340_v2  ;;  %17534 = vmatprep.subr.bf16.mxu1 %v19087_v1  ;;  %v19089_v4 = vld [vmem:[%s24380_s1 + $0x18] sm:$0xff]   ;;  %17614 = vmatprep.subr.bf16.mxu0 %v19088_v3  ;;  %v19090_v5 = vld [vmem:[%s24380_s1 + $0x48] sm:$0xff]  }
   0x3   :  { %49 = vst.msk [vmem:[#allocation2 + $0x10] sm:$0xf] %vm43_vm0, %v19340_v2  ;;  %51 = vst.msk [vmem:[#allocation2 + $0x18] sm:$0xf] %vm43_vm0, %v19340_v2  ;;  %17535 = vmatpush3.bf16.msra.mxu1 %v19087_v1  ;;  %17615 = vmatpush3.bf16.msra.mxu0 %v19088_v3  ;;  %v85_v6 = vld [vmem:[%s24391_s0] sm:$0xff]  ;;  %vm332_vm4 = vcmask 81920  }
   0x4   :  { %50 = vst.msk [vmem:[#allocation2 + $0x14] sm:$0x1] %vm45_vm1, %v19340_v2  ;;  %52 = vst.msk [vmem:[#allocation2 + $0x1c] sm:$0x1] %vm45_vm1, %v19340_v2  ;;  %17536 = vmatprep.subr.bf16.mxu1 %v19089_v4  ;;  %v19467_v7 = vld [vmem:[%s24380_s1] sm:$0xff]   ;;  %17616 = vmatprep.subr.bf16.mxu0 %v19090_v5  ;;  %v17003_v8 = vpack.c.bf16 %v85_v6, %v85_v6  ;;  %v86_v9 = vld [vmem:[%s24391_s0 + $0x8] sm:$0xff] }
   0x5   :  { %53 = vst.msk [vmem:[#allocation2 + $0x20] sm:$0xf] %vm43_vm0, %v19340_v2  ;;  %55 = vst.msk [vmem:[#allocation2 + $0x28] sm:$0xf] %vm43_vm0, %v19340_v2  ;;  %vm327_vm3 = vsmask.f32 7938  ;;  %v17004_v12 = vpack.c.bf16 %v86_v9, %v86_v9 }
   0x6   :  { %54 = vst.msk [vmem:[#allocation2 + $0x24] sm:$0x1] %vm45_vm1, %v19340_v2  ;;  %56 = vst.msk [vmem:[#allocation2 + $0x2c] sm:$0x1] %vm45_vm1, %v19340_v2  ;;  %v166_v10 = vshrl.u32 %v17003_v8, 16  ;;  %v169_v11 = vshll.u32 %v17003_v8, 16 }
   0x7   :  { %57 = vst.msk [vmem:[#allocation2 + $0x30] sm:$0xf] %vm43_vm0, %v19340_v2  ;;  %59 = vst.msk [vmem:[#allocation2 + $0x38] sm:$0xf] %vm43_vm0, %v19340_v2  ;;  %17537 = vmatpush3.bf16.msra.mxu1 %v19089_v4  ;;  %vm333_vm5 = vsmask.f32 256  ;;  %17617 = vmatpush3.bf16.msra.mxu0 %v19090_v5 }
   0x8   :  { %58 = vst.msk [vmem:[#allocation2 + $0x34] sm:$0x1] %vm45_vm1, %v19340_v2  ;;  %60 = vst.msk [vmem:[#allocation2 + $0x3c] sm:$0x1] %vm45_vm1, %v19340_v2  ;;  %v565_v13 = vld [vmem:[#allocation2] sm:$0xf]  ;;  %17554 = vmatprep.subr.bf16.mxu1 %v19467_v7 }
   0x9   :  { %61 = vst.msk [vmem:[#allocation2 + $0x40] sm:$0xf] %vm43_vm0, %v19340_v2  ;;  %63 = vst.msk [vmem:[#allocation2 + $0x48] sm:$0xf] %vm43_vm0, %v19340_v2  ;;  %v581_v14 = vld [vmem:[#allocation2 + $0x4] sm:$0x1] }
   0xa   :  { %62 = vst.msk [vmem:[#allocation2 + $0x44] sm:$0x1] %vm45_vm1, %v19340_v2  ;;  %64 = vst.msk [vmem:[#allocation2 + $0x4c] sm:$0x1] %vm45_vm1, %v19340_v2  ;;  %v168_v15 = vrot.slane %v166_v10, 7  ;;  %v601_v18 = vshrl.u32 %v565_v13, 16 }
   0xb   :  { %65 = vst.msk [vmem:[#allocation2 + $0x50] sm:$0xf] %vm43_vm0, %v19340_v2  ;;  %67 = vst.msk [vmem:[#allocation2 + $0x58] sm:$0xf] %vm43_vm0, %v19340_v2  ;;  %v329_v17 = vld [vmem:[#allocation2 + $0x8] sm:$0xf] }
   0xc   :  { %66 = vst.msk [vmem:[#allocation2 + $0x54] sm:$0x1] %vm45_vm1, %v19340_v2  ;;  %68 = vst.msk [vmem:[#allocation2 + $0x5c] sm:$0x1] %vm45_vm1, %v19340_v2  ;;  %v604_v19 = vshll.u32 %v565_v13, 16  ;;  %v174_v22 = vshrl.u32 %v17004_v12, 16  ;;  %v171_v25 = vor.u32 %v169_v11, %v168_v15 }
   0xd   :  { %69 = vst.msk [vmem:[#allocation2 + $0x60] sm:$0xf] %vm43_vm0, %v19340_v2  ;;  %71 = vst.msk [vmem:[#allocation2 + $0x68] sm:$0xf] %vm43_vm0, %v19340_v2  ;;  %v335_v21 = vld [vmem:[#allocation2 + $0xc] sm:$0x1] }
   0xe   :  { %70 = vst.msk [vmem:[#allocation2 + $0x64] sm:$0x1] %vm45_vm1, %v19340_v2  ;;  %72 = vst.msk [vmem:[#allocation2 + $0x6c] sm:$0x1] %vm45_vm1, %v19340_v2  ;;  %v177_v23 = vshll.u32 %v17004_v12, 16  ;;  %v19487_v24 = vld [vmem:[%s24380_s1 + $0x50] sm:$0xff]  }
   0xf   :  { %73 = vst.msk [vmem:[#allocation2 + $0x70] sm:$0xf] %vm43_vm0, %v19340_v2  ;;  %75 = vst.msk [vmem:[#allocation2 + $0x78] sm:$0xf] %vm43_vm0, %v19340_v2  ;;  %v172_v26 = vrot.slane %v168_v15, 4  ;;  %vm428_vm8 = vcmask 257112   ;;  %17634 = vmatprep.subr.bf16.mxu0 %v19487_v24 }
  0x10   :  { %74 = vst.msk [vmem:[#allocation2 + $0x74] sm:$0x1] %vm45_vm1, %v19340_v2  ;;  %76 = vst.msk [vmem:[#allocation2 + $0x7c] sm:$0x1] %vm45_vm1, %v19340_v2  ;;  %v610_v27 = vshll.u32 %v581_v14, 16  ;;  %v87_v28 = vld [vmem:[%s24391_s0 + $0x10] sm:$0xff] }
  0x11   :  { %77 = vst.msk [vmem:[#allocation2 + $0x80] sm:$0xf] %vm43_vm0, %v19340_v2  ;;  %79 = vst.msk [vmem:[#allocation2 + $0x88] sm:$0xf] %vm43_vm0, %v19340_v2  ;;  %vm433_vm9 = vcmask 254040   ;;  %v176_v29 = vrot.slane %v174_v22, 7  ;;  %v17005_v31 = vpack.c.bf16 %v87_v28, %v87_v28 }
  0x12   :  { %78 = vst.msk [vmem:[#allocation2 + $0x84] sm:$0x1] %vm45_vm1, %v19340_v2  ;;  %80 = vst.msk [vmem:[#allocation2 + $0x8c] sm:$0x1] %vm45_vm1, %v19340_v2  ;;  %v338_v30 = vld [vmem:[#allocation2 + $0x10] sm:$0xf] }
  0x13   :  { %81 = vst.msk [vmem:[#allocation2 + $0x90] sm:$0xf] %vm43_vm0, %v19340_v2  ;;  %83 = vst.msk [vmem:[#allocation2 + $0x98] sm:$0xf] %vm43_vm0, %v19340_v2  ;;  %v19497_v34 = vrot.slane %v601_v18, 4  ;;  %v19499_v35 = vrot.slane %v604_v19, 5  ;;  %v179_v38 = vor.u32 %v177_v23, %v176_v29 }
  0x14   :  { %82 = vst.msk [vmem:[#allocation2 + $0x94] sm:$0x1] %vm45_vm1, %v19340_v2  ;;  %84 = vst.msk [vmem:[#allocation2 + $0x9c] sm:$0x1] %vm45_vm1, %v19340_v2  ;;  %v341_v36 = vld [vmem:[#allocation2 + $0x14] sm:$0x1] }
  0x15   :  { %19 = vst [vmem:[#allocation4] sm:$0x1] %v18_v0  ;;  %vm19474_vm6 = vmand %vm326_vm2, %vm327_vm3  ;;  %v88_v37 = vld [vmem:[%s24391_s0 + $0x18] sm:$0xff]  ;;  %v180_v39 = vrot.slane %v176_v29, 4  ;;  %v182_v40 = vshrl.u32 %v17005_v31, 16  ;;  %v185_v41 = vshll.u32 %v17005_v31, 16  ;;  %v607_v53 = vor.u32 %v19499_v35, %v19497_v34 }
  0x16   :  { %vm19480_vm7 = vmand %vm332_vm4, %vm333_vm5  ;;  %v330_v32 = vsel %vm19474_vm6, %v171_v25, %v329_v17  ;;  %v89_v42 = vld [vmem:[%s24391_s0 + $0x20] sm:$0xff]  ;;  %vm597_vm10 = vsmask.f32 3328  ;;  %vm598_vm11 = vsmask.f32 7440  ;;  %v19507_v43 = vrot.slane %v610_v27, 5 }
  0x17   :  { %v336_v33 = vsel %vm19480_vm7, %v172_v26, %v335_v21  ;;  %331 = vst [vmem:[#allocation2 + $0x8] sm:$0xf] %v330_v32  ;;  %v17006_v44 = vpack.c.bf16 %v88_v37, %v88_v37  ;;  %v17007_v45 = vpack.c.bf16 %v89_v42, %v89_v42  ;;  %v90_v46 = vld [vmem:[%s24391_s0 + $0x28] sm:$0xff]  ;;  %v339_v47 = vsel %vm19474_vm6, %v179_v38, %v338_v30  ;;  %v344_v50 = vld [vmem:[#allocation2 + $0x18] sm:$0xf]  ;;  %v91_v57 = vld [vmem:[%s24391_s0 + $0x30] sm:$0xff] }
  0x18   :  { %337 = vst [vmem:[#allocation2 + $0xc] sm:$0x1] %v336_v33  ;;  %v342_v48 = vsel %vm19480_vm7, %v180_v39, %v341_v36  ;;  %v184_v49 = vrot.slane %v182_v40, 7  ;;  %v347_v51 = vld [vmem:[#allocation2 + $0x1c] sm:$0x1]  ;;  %v17008_v52 = vpack.c.bf16 %v90_v46, %v90_v46  ;;  %vm19523_vm12 = vmand %vm428_vm8, %vm327_vm3  ;;  %v17009_v9 = vpack.c.bf16 %v91_v57, %v91_v57  ;;  %v93_v33 = vld [vmem:[%s24391_s0 + $0x40] sm:$0xff] }
  0x19   :  { %340 = vst [vmem:[#allocation2 + $0x10] sm:$0xf] %v339_v47  ;;  %343 = vst [vmem:[#allocation2 + $0x14] sm:$0x1] %v342_v48  ;;  %v190_v54 = vshrl.u32 %v17006_v44, 16  ;;  %v193_v55 = vshll.u32 %v17006_v44, 16 }
  0x1a   :  { %v198_v56 = vshrl.u32 %v17007_v45, 16  ;;  %v187_v59 = vor.u32 %v185_v41, %v184_v49  ;;  %v188_v60 = vrot.slane %v184_v49, 4  ;;  %v350_v61 = vld [vmem:[#allocation2 + $0x20] sm:$0xf]  ;;  %v353_v62 = vld [vmem:[#allocation2 + $0x24] sm:$0x1]  ;;  %vm19532_vm13 = vmand %vm433_vm9, %vm333_vm5 }
  0x1b   :  { %v201_v63 = vshll.u32 %v17007_v45, 16  ;;  %v356_v0 = vld [vmem:[#allocation2 + $0x28] sm:$0xf]  ;;  %v206_v1 = vshrl.u32 %v17008_v52, 16  ;;  %v92_v2 = vld [vmem:[%s24391_s0 + $0x38] sm:$0xff]  ;;  %v192_v4 = vrot.slane %v190_v54, 7  ;;  %vm19572_vm14 = vmor %vm597_vm10, %vm598_vm11 }
  0x1c   :  { %v200_v5 = vrot.slane %v198_v56, 7  ;;  %v359_v6 = vld [vmem:[#allocation2 + $0x2c] sm:$0x1]  ;;  %v209_v8 = vshll.u32 %v17008_v52, 16  ;;  %v345_v10 = vsel %vm19474_vm6, %v187_v59, %v344_v50  ;;  %v348_v11 = vsel %vm19480_vm7, %v188_v60, %v347_v51  ;;  %v362_v13 = vld [vmem:[#allocation2 + $0x30] sm:$0xf] }
  0x1d   :  { %v208_v12 = vrot.slane %v206_v1, 7  ;;  %v365_v14 = vld [vmem:[#allocation2 + $0x34] sm:$0x1]  ;;  %v19540_v15 = vpack.c.bf16 %v92_v2, %v92_v2  ;;  %346 = vst [vmem:[#allocation2 + $0x18] sm:$0xf] %v345_v10  ;;  %v195_v19 = vor.u32 %v193_v55, %v192_v4  ;;  %v196_v21 = vrot.slane %v192_v4, 4 }
  0x1e   :  { %v430_v17 = vld [vmem:[#allocation2 + $0x8] sm:$0xf]  ;;  %349 = vst [vmem:[#allocation2 + $0x1c] sm:$0x1] %v348_v11  ;;  %v203_v22 = vor.u32 %v201_v63, %v200_v5  ;;  %v204_v23 = vrot.slane %v200_v5, 4  ;;  %v214_v39 = vshrl.u32 %v17009_v9, 16  ;;  %v19579_v52 = vpack.c.bf16 %v93_v33, %v93_v33 }
  0x1f   :  { %v435_v18 = vld [vmem:[#allocation2 + $0xc] sm:$0x1]  ;;  %v431_v25 = vsel %vm19523_vm12, 0, %v430_v17  ;;  %v211_v27 = vor.u32 %v209_v8, %v208_v12  ;;  %v212_v28 = vrot.slane %v208_v12, 4  ;;  %v351_v29 = vsel %vm19474_vm6, %v195_v19, %v350_v61  ;;  %v19557_v34 = vld [vmem:[#allocation2 + $0x50] sm:$0xf] }
  0x20   :  { %v436_v26 = vsel %vm19532_vm13, 0, %v435_v18  ;;  %432 = vst [vmem:[#allocation2 + $0x8] sm:$0xf] %v431_v25  ;;  %v354_v30 = vsel %vm19480_vm7, %v196_v21, %v353_v62  ;;  %v357_v31 = vsel %vm19474_vm6, %v203_v22, %v356_v0  ;;  %v360_v32 = vsel %vm19480_vm7, %v204_v23, %v359_v6  ;;  %v438_v35 = vld [vmem:[#allocation2 + $0x10] sm:$0xf]  ;;  %v94_v54 = vld [vmem:[%s24391_s0 + $0x48] sm:$0xff] }
  0x21   :  { %437 = vst [vmem:[#allocation2 + $0xc] sm:$0x1] %v436_v26  ;;  %v441_v36 = vld [vmem:[#allocation2 + $0x14] sm:$0x1]  ;;  %352 = vst [vmem:[#allocation2 + $0x20] sm:$0xf] %v351_v29  ;;  %v363_v37 = vsel %vm19474_vm6, %v211_v27, %v362_v13  ;;  %v366_v38 = vsel %vm19480_vm7, %v212_v28, %v365_v14 }
  0x22   :  { %355 = vst [vmem:[#allocation2 + $0x24] sm:$0x1] %v354_v30  ;;  %358 = vst [vmem:[#allocation2 + $0x28] sm:$0xf] %v357_v31  ;;  %v217_v40 = vshll.u32 %v17009_v9, 16  ;;  %v19563_v41 = vrot.slane %v607_v53, 4  ;;  %v19601_v9 = vpack.c.bf16 %v94_v54, %v94_v54 }
  0x23   :  { %361 = vst [vmem:[#allocation2 + $0x2c] sm:$0x1] %v360_v32  ;;  %v439_v42 = vsel %vm19523_vm12, 0, %v438_v35  ;;  %v442_v44 = vsel %vm19532_vm13, 0, %v441_v36  ;;  %364 = vst [vmem:[#allocation2 + $0x30] sm:$0xf] %v363_v37 }
  0x24   :  { %367 = vst [vmem:[#allocation2 + $0x34] sm:$0x1] %v366_v38  ;;  %v368_v45 = vld [vmem:[#allocation2 + $0x38] sm:$0xf]  ;;  %v371_v46 = vld [vmem:[#allocation2 + $0x3c] sm:$0x1]  ;;  %v613_v4 = vsel %vm19572_vm14, %v19563_v41, %v19507_v43 }
  0x25   :  { %v222_v47 = vshrl.u32 %v19540_v15, 16  ;;  %440 = vst [vmem:[#allocation2 + $0x10] sm:$0xf] %v439_v42  ;;  %443 = vst [vmem:[#allocation2 + $0x14] sm:$0x1] %v442_v44  ;;  %v216_v49 = vrot.slane %v214_v39, 7 }
  0x26   :  { %v225_v50 = vshll.u32 %v19540_v15, 16  ;;  %v19577_v51 = vld [vmem:[#allocation2 + $0x54] sm:$0x1]  ;;  %v713_v53 = vshrl.u32 %v19557_v34, 16  ;;  %v444_v55 = vld [vmem:[#allocation2 + $0x18] sm:$0xf] }
  0x27   :  { %v447_v56 = vld [vmem:[#allocation2 + $0x1c] sm:$0x1]  ;;  %v219_v57 = vor.u32 %v217_v40, %v216_v49  ;;  %v220_v59 = vrot.slane %v216_v49, 4  ;;  %v19585_v60 = vrot.slane %v222_v47, 7  ;;  %v445_v61 = vsel %vm19523_vm12, 0, %v444_v55 }
  0x28   :  { %v448_v62 = vsel %vm19532_vm13, 0, %v447_v56  ;;  %v716_v63 = vshll.u32 %v19557_v34, 16  ;;  %v722_v0 = vshll.u32 %v19577_v51, 16  ;;  %v566_v1 = vld [vmem:[#allocation2 + $0x8] sm:$0xf]  ;;  %vm860_vm15 = vcmask 261120  }
  0x29   :  { %v582_v2 = vld [vmem:[#allocation2 + $0xc] sm:$0x1]  ;;  %v1648_v5 = vld [vmem:[#allocation2 + $0x8] sm:$0xf]  ;;  %446 = vst [vmem:[#allocation2 + $0x18] sm:$0xf] %v445_v61  ;;  %v369_v6 = vsel %vm19474_vm6, %v219_v57, %v368_v45  ;;  %v372_v8 = vsel %vm19480_vm7, %v220_v59, %v371_v46  ;;  %v19607_v18 = vor.u32 %v225_v50, %v19585_v60 }
  0x2a   :  { %449 = vst [vmem:[#allocation2 + $0x1c] sm:$0x1] %v448_v62  ;;  %v615_v10 = vshrl.u32 %v566_v1, 16  ;;  %v618_v11 = vshll.u32 %v566_v1, 16  ;;  %v624_v12 = vshll.u32 %v582_v2, 16  ;;  %v230_v43 = vshrl.u32 %v19579_v52, 16 }
  0x2b   :  { %v19603_v13 = vld [vmem:[#allocation2 + $0xc] sm:$0x1]  ;;  %370 = vst [vmem:[#allocation2 + $0x38] sm:$0xf] %v369_v6  ;;  %373 = vst [vmem:[#allocation2 + $0x3c] sm:$0x1] %v372_v8 }
  0x2c   :  { %v1681_v14 = vshrl.u32 %v1648_v5, 16  ;;  %v1684_v15 = vshll.u32 %v1648_v5, 16  ;;  %v450_v17 = vld [vmem:[#allocation2 + $0x20] sm:$0xf]  ;;  %v228_v19 = vrot.slane %v19585_v60, 4  ;;  %v617_v21 = vrot.slane %v615_v10, 4 }
  0x2d   :  { %v620_v22 = vrot.slane %v618_v11, 5  ;;  %v1650_v23 = vld [vmem:[#allocation2 + $0x10] sm:$0xf]  ;;  %v1690_v25 = vshll.u32 %v19603_v13, 16  ;;  %v451_v26 = vsel %vm19523_vm12, 0, %v450_v17  ;;  %v2127_v31 = vrot.slane %v19603_v13, 5 }
  0x2e   :  { %v19613_v27 = vld [vmem:[#allocation2 + $0x14] sm:$0x1]  ;;  %v1683_v28 = vrot.slane %v1681_v14, 4  ;;  %v1686_v29 = vrot.slane %v1684_v15, 5  ;;  %v1695_v30 = vshrl.u32 %v1650_v23, 16  ;;  %v626_v33 = vrot.slane %v624_v12, 5 }
  0x2f   :  { %452 = vst [vmem:[#allocation2 + $0x20] sm:$0xf] %v451_v26  ;;  %v621_v32 = vor.u32 %v620_v22, %v617_v21  ;;  %v1698_v35 = vshll.u32 %v1650_v23, 16  ;;  %v1704_v36 = vshll.u32 %v19613_v27, 16  ;;  %v19617_v37 = vld [vmem:[#allocation2 + $0x10] sm:$0xf] }
  0x30   :  { %v1687_v38 = vor.u32 %v1686_v29, %v1683_v28  ;;  %v1697_v39 = vrot.slane %v1695_v30, 4  ;;  %v583_v40 = vld [vmem:[#allocation2 + $0x14] sm:$0x1]  ;;  %v629_v41 = vshrl.u32 %v19617_v37, 16  ;;  %v632_v42 = vshll.u32 %v19617_v37, 16 }
  0x31   :  { %v622_v44 = vrot.slane %v621_v32, 4  ;;  %v1692_v45 = vrot.slane %v1690_v25, 5  ;;  %v1700_v46 = vrot.slane %v1698_v35, 5  ;;  %v19621_v47 = vld [vmem:[#allocation2 + $0x18] sm:$0xf]  ;;  %v638_v49 = vshll.u32 %v583_v40, 16 }
  0x32   :  { %v1688_v50 = vrot.slane %v1687_v38, 4  ;;  %v584_v54 = vld [vmem:[#allocation2 + $0x1c] sm:$0x1]  ;;  %v631_v55 = vrot.slane %v629_v41, 4  ;;  %v634_v56 = vrot.slane %v632_v42, 5  ;;  %v643_v57 = vshrl.u32 %v19621_v47, 16 }
  0x33   :  { %v627_v59 = vsel %vm19572_vm14, %v622_v44, %v626_v33  ;;  %v1701_v61 = vor.u32 %v1700_v46, %v1697_v39  ;;  %v1706_v62 = vrot.slane %v1704_v36, 5  ;;  %v646_v1 = vshll.u32 %v19621_v47, 16  ;;  %v453_v2 = vld [vmem:[#allocation2 + $0x24] sm:$0x1]  ;;  %v1652_v5 = vld [vmem:[#allocation2 + $0x18] sm:$0xf] }
  0x34   :  { %v15840_v6 = vcombine.low %v613_v4, %v627_v59  ;;  %v635_v8 = vor.u32 %v634_v56, %v631_v55  ;;  %v640_v10 = vrot.slane %v638_v49, 5  ;;  %v645_v11 = vrot.slane %v643_v57, 4  ;;  %v19629_v21 = vld [vmem:[#allocation2 + $0x1c] sm:$0x1]  ;;  %v456_v33 = vld [vmem:[#allocation2 + $0x28] sm:$0xf] }
  0x35   :  { %v1693_v12 = vsel %vm19572_vm14, %v1688_v50, %v1692_v45  ;;  %v1702_v14 = vrot.slane %v1701_v61, 4  ;;  %v648_v15 = vrot.slane %v646_v1, 5  ;;  %v652_v17 = vshll.u32 %v584_v54, 16  ;;  %v459_v35 = vld [vmem:[#allocation2 + $0x2c] sm:$0x1]  ;;  %v95_v60 = vld [vmem:[%s24391_s0 + $0x50] sm:$0xff] }
  0x36   :  { %17538 = vmatprep.mubr.msk.bf16.mxu1 %vm860_vm15, %v15840_v6  ;;  %v2131_v22 = vrot.slane %v19613_v27, 5  ;;  %v636_v23 = vrot.slane %v635_v8, 4  ;;  %v454_v25 = vsel %vm19532_vm13, 0, %v453_v2  ;;  %v1654_v4 = vld [vmem:[#allocation2 + $0x20] sm:$0xf]  ;;  %v1709_v26 = vshrl.u32 %v1652_v5, 16 }
  0x37   :  { %v1707_v28 = vsel %vm19572_vm14, %v1702_v14, %v1706_v62  ;;  %v649_v29 = vor.u32 %v648_v15, %v645_v11  ;;  %v654_v30 = vrot.slane %v652_v17, 5  ;;  %455 = vst [vmem:[#allocation2 + $0x24] sm:$0x1] %v454_v25  ;;  %v1712_v32 = vshll.u32 %v1652_v5, 16  ;;  %v19640_v41 = vld [vmem:[#allocation2 + $0x20] sm:$0xf] }
  0x38   :  { %v15928_v36 = vcombine.low %v1693_v12, %v1707_v28  ;;  %v641_v38 = vsel %vm19572_vm14, %v636_v23, %v640_v10  ;;  %v1711_v39 = vrot.slane %v1709_v26, 4  ;;  %v1718_v40 = vshll.u32 %v19629_v21, 16  ;;  %v462_v42 = vld [vmem:[#allocation2 + $0x30] sm:$0xf]  ;;  %v465_v50 = vld [vmem:[#allocation2 + $0x34] sm:$0x1] }
  0x39   :  { %v650_v44 = vrot.slane %v649_v29, 4  ;;  %v1714_v45 = vrot.slane %v1712_v32, 5  ;;  %v1723_v46 = vshrl.u32 %v1654_v4, 16  ;;  %v1726_v49 = vshll.u32 %v1654_v4, 16  ;;  %v468_v59 = vld [vmem:[#allocation2 + $0x38] sm:$0xf] }
  0x3a   :  { %17618 = vmatprep.mubr.msk.bf16.mxu0 %vm860_vm15, %v15928_v36  ;;  %v19643_v54 = vrot.slane %v1718_v40, 5  ;;  %v2135_v55 = vrot.slane %v19629_v21, 5  ;;  %v457_v56 = vsel %vm19523_vm12, 0, %v456_v33  ;;  %v460_v57 = vsel %vm19532_vm13, 0, %v459_v35  ;;  %v374_v5 = vld [vmem:[#allocation2 + $0x40] sm:$0xf] }
  0x3b   :  { %v655_v61 = vsel %vm19572_vm14, %v650_v44, %v654_v30  ;;  %v1715_v62 = vor.u32 %v1714_v45, %v1711_v39  ;;  %v1725_v1 = vrot.slane %v1723_v46, 4  ;;  %v1728_v2 = vrot.slane %v1726_v49, 5  ;;  %458 = vst [vmem:[#allocation2 + $0x28] sm:$0xf] %v457_v56  ;;  %461 = vst [vmem:[#allocation2 + $0x2c] sm:$0x1] %v460_v57 }
  0x3c   :  { %v377_v6 = vld [vmem:[#allocation2 + $0x44] sm:$0x1]  ;;  %v15841_v8 = vcombine.low %v641_v38, %v655_v61  ;;  %v657_v10 = vshrl.u32 %v19640_v41, 16  ;;  %v660_v11 = vshll.u32 %v19640_v41, 16  ;;  %v463_v12 = vsel %vm19523_vm12, 0, %v462_v42  ;;  %v19094_v14 = vld [vmem:[%s24380_s1 + $0x8] sm:$0xff]  }
  0x3d   :  { %v1716_v15 = vrot.slane %v1715_v62, 4  ;;  %v1729_v17 = vor.u32 %v1728_v2, %v1725_v1  ;;  %464 = vst [vmem:[#allocation2 + $0x30] sm:$0xf] %v463_v12  ;;  %v466_v23 = vsel %vm19532_vm13, 0, %v465_v50  ;;  %v469_v25 = vsel %vm19523_vm12, 0, %v468_v59  ;;  %v19694_v44 = vld [vmem:[%s24380_s1 + $0x20] sm:$0xff]  }
  0x3e   :  { %v471_v4 = vld [vmem:[#allocation2 + $0x3c] sm:$0x1]  ;;  %17539 = vmatmul.mubr.msk.bf16.vlgmr.msra.gmra.mrb[0].mxu1 %vm860_vm15, %v15841_v8  ;;  %v19664_v26 = vld [vmem:[#allocation2 + $0x24] sm:$0x1]  ;;  %v659_v29 = vrot.slane %v657_v10, 4  ;;  %v662_v30 = vrot.slane %v660_v11, 5  ;;  %v375_v32 = vsel %vm19474_vm6, %v19607_v18, %v374_v5  ;;  %v378_v33 = vsel %vm19480_vm7, %v228_v19, %v377_v6 }
  0x3f   :  { %v585_v28 = vld [vmem:[#allocation2 + $0x24] sm:$0x1]  ;;  %467 = vst [vmem:[#allocation2 + $0x34] sm:$0x1] %v466_v23  ;;  %470 = vst [vmem:[#allocation2 + $0x38] sm:$0xf] %v469_v25  ;;  %17555 = vmatpush3.bf16.msra.mxu1 %v19467_v7  ;;  %v1721_v35 = vsel %vm19572_vm14, %v1716_v15, %v19643_v54  ;;  %v19707_v59 = vpack.c.bf16 %v95_v60, %v95_v60 }
  0x40   :  { %v1730_v36 = vrot.slane %v1729_v17, 4  ;;  %v1732_v38 = vshll.u32 %v19664_v26, 16  ;;  %v2139_v39 = vrot.slane %v19664_v26, 5  ;;  %376 = vst [vmem:[#allocation2 + $0x40] sm:$0xf] %v375_v32  ;;  %v96_v18 = vld [vmem:[%s24391_s0 + $0x58] sm:$0xff]  ;;  %v663_v7 = vor.u32 %v662_v30, %v659_v29  ;;  %17556 = vmatprep.subr.bf16.mxu1 %v19094_v14 }
  0x41   :  { %379 = vst [vmem:[#allocation2 + $0x44] sm:$0x1] %v378_v33  ;;  %v666_v19 = vshll.u32 %v585_v28, 16  ;;  %v472_v40 = vsel %vm19532_vm13, 0, %v471_v4  ;;  %v19689_v42 = vrot.slane %v230_v43, 7  ;;  %v233_v46 = vshll.u32 %v19579_v52, 16 }
  0x42   :  { %v1734_v45 = vrot.slane %v1732_v38, 5  ;;  %473 = vst [vmem:[#allocation2 + $0x3c] sm:$0x1] %v472_v40  ;;  %v19699_v49 = vrot.slane %v713_v53, 4  ;;  %v19703_v50 = vrot.slane %v716_v63, 5  ;;  %v664_v56 = vrot.slane %v663_v7, 4 }
  0x43   :  { %v19705_v43 = vld [vmem:[#allocation2 + $0x28] sm:$0xf]  ;;  %v586_v54 = vld [vmem:[#allocation2 + $0x2c] sm:$0x1]  ;;  %v668_v57 = vrot.slane %v666_v19, 5  ;;  %v19709_v61 = vpack.c.bf16 %v96_v18, %v96_v18  ;;  %v19093_v63 = vld [vmem:[%s24380_s1 + $0x58] sm:$0xff]   ;;  %17557 = vmatpush3.bf16.msra.mxu1 %v19094_v14  ;;  %v19736_v60 = vor.u32 %v233_v46, %v19689_v42 }
  0x44   :  { %v1735_v52 = vsel %vm19572_vm14, %v1730_v36, %v1734_v45  ;;  %v671_v62 = vshrl.u32 %v19705_v43, 16  ;;  %v674_v53 = vshll.u32 %v19705_v43, 16  ;;  %v680_v1 = vshll.u32 %v586_v54, 16  ;;  %v1656_v34 = vld [vmem:[#allocation2 + $0x28] sm:$0xf]  ;;  %17574 = vmatprep.subr.bf16.mxu1 %v19694_v44  ;;  %v19744_v45 = vld [vmem:[%s24380_s1 + $0x60] sm:$0xff]  }
  0x45   :  { %v15929_v2 = vcombine.low %v1721_v35, %v1735_v52  ;;  %v669_v5 = vsel %vm19572_vm14, %v664_v56, %v668_v57  ;;  %v19720_v6 = vld [vmem:[#allocation2 + $0x2c] sm:$0x1]  ;;  %v1658_v8 = vld [vmem:[#allocation2 + $0x30] sm:$0xf]  ;;  %v1737_v10 = vshrl.u32 %v1656_v34, 16  ;;  %v1740_v11 = vshll.u32 %v1656_v34, 16 }
  0x46   :  { %v673_v12 = vrot.slane %v671_v62, 4  ;;  %v676_v15 = vrot.slane %v674_v53, 5  ;;  %v682_v17 = vrot.slane %v680_v1, 5  ;;  %v19723_v23 = vld [vmem:[#allocation2 + $0x34] sm:$0x1]  ;;  %v1746_v25 = vshll.u32 %v19720_v6, 16 }
  0x47   :  { %17619 = vmatmul.mubr.msk.bf16.vlgmr.msra.gmra.mrb[0].mxu0 %vm860_vm15, %v15929_v2  ;;  %v1739_v14 = vrot.slane %v1737_v10, 4  ;;  %v1742_v4 = vrot.slane %v1740_v11, 5  ;;  %v1751_v28 = vshrl.u32 %v1658_v8, 16  ;;  %v1754_v29 = vshll.u32 %v1658_v8, 16  ;;  %v19727_v30 = vld [vmem:[#allocation2 + $0x30] sm:$0xf] }
  0x48   :  { %17635 = vmatpush3.bf16.msra.mxu0 %v19487_v24  ;;  %v677_v32 = vor.u32 %v676_v15, %v673_v12  ;;  %v1748_v33 = vrot.slane %v1746_v25, 5  ;;  %v1760_v35 = vshll.u32 %v19723_v23, 16  ;;  %v19731_v36 = vld [vmem:[#allocation2 + $0x38] sm:$0xf]  ;;  %v19733_v38 = vld [vmem:[#allocation2 + $0x34] sm:$0x1] }
  0x49   :  { %vm1203_vm2 = vcmask 1042432   ;;  %vm1204_vm4 = vcmask 1046532   ;;  %v1743_v18 = vor.u32 %v1742_v4, %v1739_v14  ;;  %v1753_v7 = vrot.slane %v1751_v28, 4  ;;  %17636 = vmatprep.subr.bf16.mxu0 %v19093_v63  ;;  %v19738_v40 = vld [vmem:[#allocation2 + $0x3c] sm:$0x1] }
  0x4a   :  { %v1756_v19 = vrot.slane %v1754_v29, 5  ;;  %v685_v24 = vshrl.u32 %v19727_v30, 16  ;;  %v678_v54 = vrot.slane %v677_v32, 4  ;;  %v1762_v56 = vrot.slane %v1760_v35, 5  ;;  %v474_v52 = vld [vmem:[#allocation2 + $0x40] sm:$0xf]  ;;  %vm19788_vm8 = vmor %vm1203_vm2, %vm1204_vm4 }
  0x4b   :  { %v688_v46 = vshll.u32 %v19727_v30, 16  ;;  %v694_v57 = vshll.u32 %v19733_v38, 16  ;;  %v1744_v62 = vrot.slane %v1743_v18, 4  ;;  %v699_v34 = vshrl.u32 %v19731_v36, 16  ;;  %v477_v2 = vld [vmem:[#allocation2 + $0x44] sm:$0x1] }
  0x4c   :  { %v1757_v53 = vor.u32 %v1756_v19, %v1753_v7  ;;  %v687_v1 = vrot.slane %v685_v24, 4  ;;  %v683_v8 = vsel %vm19572_vm14, %v678_v54, %v682_v17  ;;  %v702_v12 = vshll.u32 %v19731_v36, 16  ;;  %v1660_v15 = vld [vmem:[#allocation2 + $0x38] sm:$0xf]  ;;  %17637 = vmatpush3.bf16.msra.mxu0 %v19093_v63  ;;  %v19758_v18 = vld [vmem:[#allocation2 + $0x3c] sm:$0x1] }
  0x4d   :  { %v690_v10 = vrot.slane %v688_v46, 5  ;;  %v696_v11 = vrot.slane %v694_v57, 5  ;;  %v15842_v25 = vcombine.low %v669_v5, %v683_v8  ;;  %v1749_v14 = vsel %vm19572_vm14, %v1744_v62, %v1748_v33  ;;  %17654 = vmatprep.subr.bf16.mxu0 %v19744_v45  ;;  %v380_v19 = vld [vmem:[#allocation2 + $0x58] sm:$0xf]  ;;  %v2077_v62 = vld [vmem:[#allocation2 + $0x8] sm:$0xe] }
  0x4e   :  { %v1758_v4 = vrot.slane %v1757_v53, 4  ;;  %v701_v28 = vrot.slane %v699_v34, 4  ;;  %v704_v32 = vrot.slane %v702_v12, 5  ;;  %v708_v35 = vshll.u32 %v19738_v40, 16  ;;  %v2078_v8 = vld [vmem:[#allocation2 + $0x10] sm:$0xe] }
  0x4f   :  { %v691_v29 = vor.u32 %v690_v10, %v687_v1  ;;  %v475_v17 = vsel %vm19523_vm12, 0, %v474_v52  ;;  %17542 = vmatprep.mubr.msk.bf16.mxu1 %vm860_vm15, %v15842_v25  ;;  %v478_v5 = vsel %vm19532_vm13, 0, %v477_v2  ;;  %v1765_v33 = vshrl.u32 %v1660_v15, 16  ;;  %v383_v52 = vld [vmem:[#allocation2 + $0x5c] sm:$0x1]  ;;  %v97_v25 = vld [vmem:[%s24391_s0 + $0x60] sm:$0xff] }
  0x50   :  { %v1763_v63 = vsel %vm19572_vm14, %v1758_v4, %v1762_v56  ;;  %476 = vst [vmem:[#allocation2 + $0x40] sm:$0xf] %v475_v17  ;;  %v1768_v7 = vshll.u32 %v1660_v15, 16  ;;  %v705_v46 = vor.u32 %v704_v32, %v701_v28  ;;  %v710_v57 = vrot.slane %v708_v35, 5  ;;  %479 = vst [vmem:[#allocation2 + $0x44] sm:$0x1] %v478_v5 }
  0x51   :  { %v15930_v24 = vcombine.low %v1749_v14, %v1763_v63  ;;  %v692_v54 = vrot.slane %v691_v29, 4  ;;  %v1767_v53 = vrot.slane %v1765_v33, 4  ;;  %v1774_v34 = vshll.u32 %v19758_v18, 16  ;;  %v398_v21 = vld [vmem:[#allocation2 + $0x70] sm:$0xf] }
  0x52   :  { %v1770_v1 = vrot.slane %v1768_v7, 5  ;;  %v236_v56 = vrot.slane %v19689_v42, 4  ;;  %v706_v10 = vrot.slane %v705_v46, 4  ;;  %v381_v12 = vsel %vm19474_vm6, %v19736_v60, %v380_v19  ;;  %v389_v46 = vld [vmem:[#allocation2 + $0x64] sm:$0x1] }
  0x53   :  { %17622 = vmatprep.mubr.msk.bf16.mxu0 %vm860_vm15, %v15930_v24  ;;  %v697_v2 = vsel %vm19572_vm14, %v692_v54, %v696_v11  ;;  %v719_v15 = vor.u32 %v19703_v50, %v19699_v49  ;;  %v19778_v42 = vrot.slane %v1774_v34, 5  ;;  %382 = vst [vmem:[#allocation2 + $0x58] sm:$0xf] %v381_v12  ;;  %v19784_v11 = vrot.slane %v722_v0, 5  ;;  %v2079_v0 = vld [vmem:[#allocation2 + $0x18] sm:$0xe] }
  0x54   :  { %v1771_v14 = vor.u32 %v1770_v1, %v1767_v53  ;;  %v384_v4 = vsel %vm19480_vm7, %v236_v56, %v383_v52  ;;  %v711_v49 = vsel %vm19572_vm14, %v706_v10, %v710_v57  ;;  %v15946_v28 = vrot.slane %v2077_v62, 9  ;;  %v2080_v24 = vld [vmem:[#allocation2 + $0x20] sm:$0xe]  ;;  %v392_v57 = vld [vmem:[#allocation2 + $0x68] sm:$0xf] }
  0x55   :  { %385 = vst [vmem:[#allocation2 + $0x5c] sm:$0x1] %v384_v4  ;;  %v19794_v50 = vrot.slane %v719_v15, 4  ;;  %v15947_v29 = vrot.slane %v2078_v8, 9  ;;  %v15843_v32 = vcombine.low %v697_v2, %v711_v49  ;;  %v238_v51 = vshrl.u32 %v19601_v9, 16 }
  0x56   :  { %v19796_v35 = vrot.slane %v1771_v14, 4  ;;  %v19799_v17 = vpack.c.bf16 %v97_v25, %v97_v25  ;;  %v19805_v5 = vsel %vm19788_vm8, %v15946_v28, %v2127_v31  ;;  %v241_v7 = vshll.u32 %v19601_v9, 16  ;;  %v386_v9 = vld [vmem:[#allocation2 + $0x60] sm:$0xf]  ;;  %v395_v34 = vld [vmem:[#allocation2 + $0x6c] sm:$0x1] }
  0x57   :  { %v1662_v63 = vld [vmem:[#allocation2 + $0x40] sm:$0xf]  ;;  %v19811_v33 = vsel %vm19788_vm8, %v15947_v29, %v2131_v22  ;;  %v246_v19 = vshrl.u32 %v19707_v59, 16  ;;  %17543 = vmatmul.mubr.msk.bf16.gmra.mrb[4].mxu1 %vm860_vm15, %v15843_v32  ;;  %v19816_v54 = vld [vmem:[#allocation2 + $0x44] sm:$0x1]  ;;  %v725_v22 = vsel %vm19572_vm14, %v19794_v50, %v19784_v11  ;;  %v240_v62 = vrot.slane %v238_v51, 7 }
  0x58   :  { %v1777_v13 = vsel %vm19572_vm14, %v19796_v35, %v19778_v42  ;;  %v1779_v31 = vshrl.u32 %v1662_v63, 16  ;;  %v1782_v27 = vshll.u32 %v1662_v63, 16  ;;  %v1788_v52 = vshll.u32 %v19816_v54, 16  ;;  %v2081_v4 = vld [vmem:[#allocation2 + $0x28] sm:$0xe] }
  0x59   :  { %v248_v53 = vrot.slane %v246_v19, 7  ;;  %v249_v1 = vshll.u32 %v19707_v59, 16  ;;  %v15962_v2 = vcombine.low %v19805_v5, %v19811_v33  ;;  %v15948_v10 = vrot.slane %v2079_v0, 9  ;;  %v2082_v35 = vld [vmem:[#allocation2 + $0x30] sm:$0xe] }
  0x5a   :  { %v1781_v56 = vrot.slane %v1779_v31, 4  ;;  %v1784_v8 = vrot.slane %v1782_v27, 5  ;;  %v480_v12 = vld [vmem:[#allocation2 + $0x58] sm:$0xf]  ;;  %v243_v15 = vor.u32 %v241_v7, %v240_v62  ;;  %v244_v25 = vrot.slane %v240_v62, 4 }
  0x5b   :  { %v251_v14 = vor.u32 %v249_v1, %v248_v53  ;;  %v15949_v42 = vrot.slane %v2080_v24, 9  ;;  %v1790_v28 = vrot.slane %v1788_v52, 5  ;;  %v481_v29 = vsel %vm19523_vm12, 0, %v480_v12  ;;  %v404_v62 = vld [vmem:[#allocation2 + $0x78] sm:$0xf] }
  0x5c   :  { %v1785_v49 = vor.u32 %v1784_v8, %v1781_v56  ;;  %v483_v32 = vld [vmem:[#allocation2 + $0x5c] sm:$0x1]  ;;  %v252_v59 = vrot.slane %v248_v53, 4  ;;  %482 = vst [vmem:[#allocation2 + $0x58] sm:$0xf] %v481_v29  ;;  %v387_v0 = vsel %vm19474_vm6, %v243_v15, %v386_v9  ;;  %v390_v63 = vsel %vm19480_vm7, %v244_v25, %v389_v46  ;;  %v99_v8 = vld [vmem:[%s24391_s0 + $0x70] sm:$0xff] }
  0x5d   :  { %v484_v51 = vsel %vm19532_vm13, 0, %v483_v32  ;;  %v393_v5 = vsel %vm19474_vm6, %v251_v14, %v392_v57  ;;  %388 = vst [vmem:[#allocation2 + $0x60] sm:$0xf] %v387_v0  ;;  %391 = vst [vmem:[#allocation2 + $0x64] sm:$0x1] %v390_v63  ;;  %v19846_v19 = vsel %vm19788_vm8, %v15948_v10, %v2135_v55  ;;  %v254_v24 = vshrl.u32 %v19709_v61, 16 }
  0x5e   :  { %v1786_v33 = vrot.slane %v1785_v49, 4  ;;  %485 = vst [vmem:[#allocation2 + $0x5c] sm:$0x1] %v484_v51  ;;  %394 = vst [vmem:[#allocation2 + $0x68] sm:$0xf] %v393_v5  ;;  %v396_v7 = vsel %vm19480_vm7, %v252_v59, %v395_v34  ;;  %v19853_v31 = vsel %vm19788_vm8, %v15949_v42, %v2139_v39  ;;  %v257_v27 = vshll.u32 %v19709_v61, 16 }
  0x5f   :  { %397 = vst [vmem:[#allocation2 + $0x6c] sm:$0x1] %v396_v7  ;;  %v262_v9 = vshrl.u32 %v19799_v17, 16  ;;  %v265_v46 = vshll.u32 %v19799_v17, 16  ;;  %v401_v57 = vld [vmem:[#allocation2 + $0x74] sm:$0x1]  ;;  %v15963_v10 = vcombine.low %v19846_v19, %v19853_v31 }
  0x60   :  { %v98_v55 = vld [vmem:[%s24391_s0 + $0x68] sm:$0xff]  ;;  %v1791_v52 = vsel %vm19572_vm14, %v1786_v33, %v1790_v28  ;;  %v256_v26 = vrot.slane %v254_v24, 7  ;;  %v407_v53 = vld [vmem:[#allocation2 + $0x7c] sm:$0x1]  ;;  %v15950_v39 = vrot.slane %v2081_v4, 9  ;;  %v2143_v1 = vrot.slane %v19720_v6, 5 }
  0x61   :  { %v15931_v61 = vcombine.low %v1777_v13, %v1791_v52  ;;  %v264_v34 = vrot.slane %v262_v9, 7  ;;  %v15951_v56 = vrot.slane %v2082_v35, 9  ;;  %v2147_v17 = vrot.slane %v19723_v23, 5  ;;  %v2083_v32 = vld [vmem:[#allocation2 + $0x38] sm:$0xe] }
  0x62   :  { %v259_v12 = vor.u32 %v257_v27, %v256_v26  ;;  %v260_v15 = vrot.slane %v256_v26, 4  ;;  %v17016_v25 = vpack.c.bf16 %v98_v55, %v98_v55  ;;  %v19873_v6 = vsel %vm19788_vm8, %v15950_v39, %v2143_v1  ;;  %v19894_v5 = vld [vmem:[#allocation2 + $0x40] sm:$0xe] }
  0x63   :  { %17623 = vmatmul.mubr.msk.bf16.gmra.mrb[4].mxu0 %vm860_vm15, %v15931_v61  ;;  %v267_v14 = vor.u32 %v265_v46, %v264_v34  ;;  %v268_v42 = vrot.slane %v264_v34, 4  ;;  %v2148_v23 = vsel %vm19788_vm8, %v15951_v56, %v2147_v17  ;;  %v19877_v13 = vld [vmem:[#allocation2 + $0x58] sm:$0xf]  ;;  %v19884_v28 = vpack.c.bf16 %v99_v8, %v99_v8  ;;  %v410_v26 = vld [vmem:[#allocation2 + $0x80] sm:$0xf] }
  0x64   :  { %17638 = vmatprep.mubr.msk.bf16.mxu0 %vm860_vm15, %v15962_v2  ;;  %v399_v4 = vsel %vm19474_vm6, %v259_v12, %v398_v21  ;;  %v402_v49 = vsel %vm19480_vm7, %v260_v15, %v401_v57  ;;  %v270_v29 = vshrl.u32 %v17016_v25, 16  ;;  %v727_v35 = vshrl.u32 %v19877_v13, 16  ;;  %v486_v0 = vld [vmem:[#allocation2 + $0x60] sm:$0xf]  ;;  %v489_v19 = vld [vmem:[#allocation2 + $0x64] sm:$0x1] }
  0x65   :  { %v19886_v59 = vld [vmem:[#allocation2 + $0x5c] sm:$0x1]  ;;  %v730_v51 = vshll.u32 %v19877_v13, 16  ;;  %400 = vst [vmem:[#allocation2 + $0x70] sm:$0xf] %v399_v4  ;;  %v405_v2 = vsel %vm19474_vm6, %v267_v14, %v404_v62  ;;  %v408_v63 = vsel %vm19480_vm7, %v268_v42, %v407_v53  ;;  %v487_v7 = vsel %vm19523_vm12, 0, %v486_v0 }
  0x66   :  { %403 = vst [vmem:[#allocation2 + $0x74] sm:$0x1] %v402_v49  ;;  %v736_v33 = vshll.u32 %v19886_v59, 16  ;;  %v492_v24 = vld [vmem:[#allocation2 + $0x68] sm:$0xf]  ;;  %v15964_v31 = vcombine.low %v19873_v6, %v2148_v23  ;;  %v15859_v9 = vcombine.low %v19617_v37, %v19621_v47  ;;  %v729_v46 = vrot.slane %v727_v35, 4 }
  0x67   :  { %406 = vst [vmem:[#allocation2 + $0x78] sm:$0xf] %v405_v2  ;;  %409 = vst [vmem:[#allocation2 + $0x7c] sm:$0x1] %v408_v63  ;;  %v19900_v27 = vld [vmem:[#allocation2 + $0x58] sm:$0xe] }
  0x68   :  { %v732_v21 = vrot.slane %v730_v51, 5  ;;  %488 = vst [vmem:[#allocation2 + $0x60] sm:$0xf] %v487_v7  ;;  %v490_v57 = vsel %vm19532_vm13, 0, %v489_v19  ;;  %v493_v55 = vsel %vm19523_vm12, 0, %v492_v24  ;;  %v738_v53 = vrot.slane %v736_v33, 5 }
  0x69   :  { %v495_v52 = vld [vmem:[#allocation2 + $0x6c] sm:$0x1]  ;;  %v413_v62 = vld [vmem:[#allocation2 + $0x84] sm:$0x1]  ;;  %491 = vst [vmem:[#allocation2 + $0x64] sm:$0x1] %v490_v57 }
  0x6a   :  { %494 = vst [vmem:[#allocation2 + $0x68] sm:$0xf] %v493_v55  ;;  %v496_v39 = vsel %vm19532_vm13, 0, %v495_v52  ;;  %v272_v1 = vrot.slane %v270_v29, 7  ;;  %v273_v61 = vshll.u32 %v17016_v25, 16  ;;  %v733_v56 = vor.u32 %v732_v21, %v729_v46  ;;  %v19097_v15 = vld [vmem:[%s24380_s1 + $0x68] sm:$0xff]  }
  0x6b   :  { %v19910_v34 = vld [vmem:[#allocation2 + $0x5c] sm:$0x1]  ;;  %497 = vst [vmem:[#allocation2 + $0x6c] sm:$0x1] %v496_v39  ;;  %v278_v17 = vshrl.u32 %v19884_v28, 16  ;;  %v281_v8 = vshll.u32 %v19884_v28, 16  ;;  %17639 = vmatmul.mubr.msk.bf16.vlgmr.msra.gmra.mrb[0].mxu0 %vm860_vm15, %v15963_v10 }
  0x6c   :  { %v15952_v12 = vrot.slane %v2083_v32, 9  ;;  %v275_v14 = vor.u32 %v273_v61, %v272_v1  ;;  %v276_v42 = vrot.slane %v272_v1, 4  ;;  %v416_v6 = vld [vmem:[#allocation2 + $0x88] sm:$0xf]  ;;  %v2151_v23 = vrot.slane %v19758_v18, 5  ;;  %17655 = vmatpush3.bf16.msra.mxu0 %v19744_v45  ;;  %17642 = vmatprep.mubr.msk.bf16.mxu0 %vm860_vm15, %v15964_v31  ;;  %v20101_v37 = vld [vmem:[%s24380_s1 + $0x30] sm:$0xff]  }
  0x6d   :  { %v15953_v25 = vrot.slane %v19894_v5, 9  ;;  %v734_v4 = vrot.slane %v733_v56, 4  ;;  %v280_v49 = vrot.slane %v278_v17, 7  ;;  %v419_v29 = vld [vmem:[#allocation2 + $0x8c] sm:$0x1]  ;;  %v2155_v35 = vrot.slane %v19816_v54, 5  ;;  %17656 = vmatprep.subr.bf16.mxu0 %v19097_v15 }
  0x6e   :  { %v15954_v28 = vrot.slane %v19900_v27, 9  ;;  %v498_v32 = vld [vmem:[#allocation2 + $0x70] sm:$0xf]  ;;  %v501_v51 = vld [vmem:[#allocation2 + $0x74] sm:$0x1]  ;;  %v411_v18 = vsel %vm19474_vm6, %v275_v14, %v410_v26  ;;  %v414_v0 = vsel %vm19480_vm7, %v276_v42, %v413_v62  ;;  %v2152_v10 = vsel %vm19788_vm8, %v15952_v12, %v2151_v23 }
  0x6f   :  { %v2159_v2 = vrot.slane %v19910_v34, 5  ;;  %v19934_v54 = vld [vmem:[%s24380_s1 + $0x70] sm:$0xff]   ;;  %v739_v45 = vsel %vm19572_vm14, %v734_v4, %v738_v53  ;;  %v499_v63 = vsel %vm19523_vm12, 0, %v498_v32  ;;  %v502_v5 = vsel %vm19532_vm13, 0, %v501_v51  ;;  %v504_v33 = vld [vmem:[#allocation2 + $0x78] sm:$0xf] }
  0x70   :  { %v507_v7 = vld [vmem:[#allocation2 + $0x7c] sm:$0x1]  ;;  %v283_v19 = vor.u32 %v281_v8, %v280_v49  ;;  %412 = vst [vmem:[#allocation2 + $0x80] sm:$0xf] %v411_v18  ;;  %415 = vst [vmem:[#allocation2 + $0x84] sm:$0x1] %v414_v0  ;;  %v15844_v24 = vcombine.low %v725_v22, %v739_v45  ;;  %v2156_v22 = vsel %vm19788_vm8, %v15953_v25, %v2155_v35  ;;  %17657 = vmatpush3.bf16.msra.mxu0 %v19097_v15 }
  0x71   :  { %v19947_v31 = vld [vmem:[#allocation2 + $0x60] sm:$0xf]  ;;  %500 = vst [vmem:[#allocation2 + $0x70] sm:$0xf] %v499_v63  ;;  %503 = vst [vmem:[#allocation2 + $0x74] sm:$0x1] %v502_v5  ;;  %v15965_v17 = vcombine.low %v2152_v10, %v2156_v22  ;;  %17674 = vmatprep.subr.bf16.mxu0 %v19934_v54  ;;  %v2160_v25 = vsel %vm19788_vm8, %v15954_v28, %v2159_v2 }
  0x72   :  { %v505_v27 = vsel %vm19523_vm12, 0, %v504_v33  ;;  %v508_v46 = vsel %vm19532_vm13, 0, %v507_v7  ;;  %v284_v21 = vrot.slane %v280_v49, 4  ;;  %v19953_v57 = vld [vmem:[#allocation2 + $0x68] sm:$0xf]  ;;  %v741_v52 = vshrl.u32 %v19947_v31, 16  ;;  %17546 = vmatprep.mubr.msk.bf16.mxu1 %vm860_vm15, %v15844_v24 }
  0x73   :  { %v19955_v55 = vld [vmem:[#allocation2 + $0x64] sm:$0x1]  ;;  %v744_v11 = vshll.u32 %v19947_v31, 16  ;;  %506 = vst [vmem:[#allocation2 + $0x78] sm:$0xf] %v505_v27  ;;  %v417_v50 = vsel %vm19474_vm6, %v283_v19, %v416_v6  ;;  %v755_v53 = vshrl.u32 %v19953_v57, 16  ;;  %17643 = vmatmul.mubr.msk.bf16.gmra.mrb[4].mxu0 %vm860_vm15, %v15965_v17 }
  0x74   :  { %509 = vst [vmem:[#allocation2 + $0x7c] sm:$0x1] %v508_v46  ;;  %v19964_v26 = vld [vmem:[#allocation2 + $0x6c] sm:$0x1]  ;;  %v750_v62 = vshll.u32 %v19955_v55, 16  ;;  %v758_v39 = vshll.u32 %v19953_v57, 16  ;;  %v420_v1 = vsel %vm19480_vm7, %v284_v21, %v419_v29 }
  0x75   :  { %418 = vst [vmem:[#allocation2 + $0x88] sm:$0xf] %v417_v50  ;;  %v743_v61 = vrot.slane %v741_v52, 4  ;;  %v746_v34 = vrot.slane %v744_v11, 5  ;;  %v764_v56 = vshll.u32 %v19964_v26, 16  ;;  %v757_v14 = vrot.slane %v755_v53, 4 }
  0x76   :  { %421 = vst [vmem:[#allocation2 + $0x8c] sm:$0x1] %v420_v1  ;;  %v1667_v8 = vld [vmem:[#allocation2 + $0x64] sm:$0x1]  ;;  %v752_v12 = vrot.slane %v750_v62, 5  ;;  %v760_v42 = vrot.slane %v758_v39, 5 }
  0x77   :  { %v2086_v6 = vld [vmem:[#allocation2 + $0x60] sm:$0xe]  ;;  %v747_v23 = vor.u32 %v746_v34, %v743_v61  ;;  %v2163_v4 = vrot.slane %v1667_v8, 5  ;;  %v766_v29 = vrot.slane %v764_v56, 5  ;;  %v513_v45 = vld [vmem:[#allocation2 + $0x84] sm:$0x1] }
  0x78   :  { %v15955_v15 = vrot.slane %v2086_v6, 9  ;;  %v761_v49 = vor.u32 %v760_v42, %v757_v14  ;;  %v510_v35 = vld [vmem:[#allocation2 + $0x80] sm:$0xf]  ;;  %v19978_v18 = vld [vmem:[#allocation2 + $0x70] sm:$0xf]  ;;  %v100_v17 = vld [vmem:[%s24391_s0 + $0x78] sm:$0xff] }
  0x79   :  { %v748_v51 = vrot.slane %v747_v23, 4  ;;  %v19980_v0 = vld [vmem:[#allocation2 + $0x74] sm:$0x1]  ;;  %v511_v10 = vsel %vm19523_vm12, 0, %v510_v35  ;;  %v19986_v2 = vld [vmem:[#allocation2 + $0x6c] sm:$0x1] }
  0x7a   :  { %v2164_v28 = vsel %vm19788_vm8, %v15955_v15, %v2163_v4  ;;  %v762_v5 = vrot.slane %v761_v49, 4  ;;  %v19990_v33 = vld [vmem:[#allocation2 + $0x78] sm:$0xf]  ;;  %v769_v19 = vshrl.u32 %v19978_v18, 16  ;;  %512 = vst [vmem:[#allocation2 + $0x80] sm:$0xf] %v511_v10 }
  0x7b   :  { %v19992_v7 = vld [vmem:[#allocation2 + $0x7c] sm:$0x1]  ;;  %v15966_v24 = vcombine.low %v2160_v25, %v2164_v28  ;;  %v753_v27 = vsel %vm19572_vm14, %v748_v51, %v752_v12  ;;  %v772_v46 = vshll.u32 %v19978_v18, 16  ;;  %v778_v21 = vshll.u32 %v19980_v0, 16  ;;  %v20005_v56 = vld [vmem:[#allocation2 + $0x74] sm:$0x1] }
  0x7c   :  { %v783_v52 = vshrl.u32 %v19990_v33, 16  ;;  %v516_v11 = vld [vmem:[#allocation2 + $0x88] sm:$0xf]  ;;  %v767_v50 = vsel %vm19572_vm14, %v762_v5, %v766_v29  ;;  %v771_v22 = vrot.slane %v769_v19, 4  ;;  %v786_v62 = vshll.u32 %v19990_v33, 16 }
  0x7d   :  { %v792_v53 = vshll.u32 %v19992_v7, 16  ;;  %v519_v39 = vld [vmem:[#allocation2 + $0x8c] sm:$0x1]  ;;  %17646 = vmatprep.mubr.msk.bf16.mxu0 %vm860_vm15, %v15966_v24  ;;  %v15845_v1 = vcombine.low %v753_v27, %v767_v50  ;;  %v774_v61 = vrot.slane %v772_v46, 5  ;;  %v514_v12 = vsel %vm19532_vm13, 0, %v513_v45 }
  0x7e   :  { %v785_v34 = vrot.slane %v783_v52, 4  ;;  %v788_v8 = vrot.slane %v786_v62, 5  ;;  %v517_v14 = vsel %vm19523_vm12, 0, %v516_v11  ;;  %v2087_v42 = vld [vmem:[#allocation2 + $0x68] sm:$0xe]  ;;  %v2167_v6 = vrot.slane %v19986_v2, 5 }
  0x7f   :  { %17547 = vmatmul.mubr.msk.bf16.gmra.mrb[8].mxu1 %vm860_vm15, %v15845_v1  ;;  %v775_v23 = vor.u32 %v774_v61, %v771_v22  ;;  %v780_v25 = vrot.slane %v778_v21, 5  ;;  %v794_v15 = vrot.slane %v792_v53, 5  ;;  %515 = vst [vmem:[#allocation2 + $0x84] sm:$0x1] %v514_v12  ;;  %518 = vst [vmem:[#allocation2 + $0x88] sm:$0xf] %v517_v14  ;;  %v17018_v24 = vpack.c.bf16 %v100_v17, %v100_v17 }
  0x80   :  { %v520_v4 = vsel %vm19532_vm13, 0, %v519_v39  ;;  %v2088_v49 = vld [vmem:[#allocation2 + $0x70] sm:$0xe]  ;;  %v789_v29 = vor.u32 %v788_v8, %v785_v34  ;;  %v15956_v35 = vrot.slane %v2087_v42, 9  ;;  %v2171_v10 = vrot.slane %v20005_v56, 5 }
  0x81   :  { %521 = vst [vmem:[#allocation2 + $0x8c] sm:$0x1] %v520_v4  ;;  %v15957_v51 = vrot.slane %v2088_v49, 9  ;;  %v1673_v45 = vld [vmem:[#allocation2 + $0x7c] sm:$0x1]  ;;  %v776_v28 = vrot.slane %v775_v23, 4 }
  0x82   :  { %v20019_v5 = vld [vmem:[#allocation2 + $0x80] sm:$0xf]  ;;  %v2089_v19 = vld [vmem:[#allocation2 + $0x78] sm:$0xe]  ;;  %v790_v27 = vrot.slane %v789_v29, 4  ;;  %v2168_v52 = vsel %vm19788_vm8, %v15956_v35, %v2167_v6  ;;  %v2175_v53 = vrot.slane %v1673_v45, 5 }
  0x83   :  { %v797_v46 = vshrl.u32 %v20019_v5, 16  ;;  %v800_v21 = vshll.u32 %v20019_v5, 16  ;;  %v2090_v11 = vld [vmem:[#allocation2 + $0x80] sm:$0xe]  ;;  %v781_v50 = vsel %vm19572_vm14, %v776_v28, %v780_v25  ;;  %v2172_v22 = vsel %vm19788_vm8, %v15957_v51, %v2171_v10  ;;  %v422_v51 = vld [vmem:[#allocation2 + $0x90] sm:$0xf] }
  0x84   :  { %v15958_v62 = vrot.slane %v2089_v19, 9  ;;  %v795_v39 = vsel %vm19572_vm14, %v790_v27, %v794_v15  ;;  %v15967_v34 = vcombine.low %v2168_v52, %v2172_v22  ;;  %v15959_v8 = vrot.slane %v2090_v11, 9  ;;  %v425_v10 = vld [vmem:[#allocation2 + $0x94] sm:$0x1]  ;;  %v1156_v22 = vld [vmem:[#allocation2 + $0x8] sm:$0xe] }
  0x85   :  { %v799_v1 = vrot.slane %v797_v46, 4  ;;  %v802_v61 = vrot.slane %v800_v21, 5  ;;  %v15846_v17 = vcombine.low %v781_v50, %v795_v39  ;;  %v286_v12 = vshrl.u32 %v17018_v24, 16  ;;  %v1155_v46 = vld [vmem:[#allocation2] sm:$0xe] }
  0x86   :  { %v20031_v14 = vld [vmem:[#allocation2 + $0x88] sm:$0xf]  ;;  %v20033_v42 = vld [vmem:[#allocation2 + $0x84] sm:$0x1]  ;;  %17647 = vmatmul.mubr.msk.bf16.gmra.mrb[8].mxu0 %vm860_vm15, %v15967_v34  ;;  %v2176_v25 = vsel %vm19788_vm8, %v15958_v62, %v2175_v53  ;;  %v289_v27 = vshll.u32 %v17018_v24, 16  ;;  %v1248_v3 = vrot.slane %v19955_v55, 5 }
  0x87   :  { %v803_v6 = vor.u32 %v802_v61, %v799_v1  ;;  %v1675_v23 = vld [vmem:[#allocation2 + $0x84] sm:$0x1]  ;;  %17550 = vmatprep.mubr.msk.bf16.mxu1 %vm860_vm15, %v15846_v17  ;;  %v806_v4 = vshll.u32 %v20033_v42, 16  ;;  %v811_v49 = vshrl.u32 %v20031_v14, 16  ;;  %v814_v29 = vshll.u32 %v20031_v14, 16 }
  0x88   :  { %v20039_v15 = vld [vmem:[#allocation2 + $0x8c] sm:$0x1]  ;;  %v2179_v35 = vrot.slane %v1675_v23, 5  ;;  %v288_v19 = vrot.slane %v286_v12, 7  ;;  %v19128_v62 = vld [vmem:[#allocation2 + $0x4] sm:$0x1] }
  0x89   :  { %v804_v45 = vrot.slane %v803_v6, 4  ;;  %v820_v28 = vshll.u32 %v20039_v15, 16  ;;  %v808_v21 = vrot.slane %v806_v4, 5  ;;  %v813_v52 = vrot.slane %v811_v49, 4  ;;  %v19129_v34 = vld [vmem:[#allocation2 + $0xc] sm:$0x1] }
  0x8a   :  { %v816_v11 = vrot.slane %v814_v29, 5  ;;  %v2180_v50 = vsel %vm19788_vm8, %v15959_v8, %v2179_v35  ;;  %v1208_v53 = vrot.slane %v19128_v62, 5  ;;  %v291_v1 = vor.u32 %v289_v27, %v288_v19  ;;  %v19130_v6 = vld [vmem:[#allocation2 + $0x14] sm:$0x1]  ;;  %v19131_v24 = vld [vmem:[#allocation2 + $0x1c] sm:$0x1] }
  0x8b   :  { %v15968_v39 = vcombine.low %v2176_v25, %v2180_v50  ;;  %v292_v61 = vrot.slane %v288_v19, 4  ;;  %v1212_v17 = vrot.slane %v19129_v34, 5  ;;  %v1216_v23 = vrot.slane %v19130_v6, 5  ;;  %v1157_v25 = vld [vmem:[#allocation2 + $0x10] sm:$0xe]  ;;  %v19102_v34 = vld [vmem:[%s24380_s1 + $0x28] sm:$0xff]  }
  0x8c   :  { %v817_v63 = vor.u32 %v816_v11, %v813_v52  ;;  %v822_v12 = vrot.slane %v820_v28, 5  ;;  %v1220_v32 = vrot.slane %v19131_v24, 5  ;;  %v423_v4 = vsel %vm19474_vm6, %v291_v1, %v422_v51  ;;  %v1158_v28 = vld [vmem:[#allocation2 + $0x18] sm:$0xe]  ;;  %v19132_v51 = vld [vmem:[#allocation2] sm:$0xf] }
  0x8d   :  { %17650 = vmatprep.mubr.msk.bf16.mxu0 %vm860_vm15, %v15968_v39  ;;  %v426_v8 = vsel %vm19480_vm7, %v292_v61, %v425_v10  ;;  %v15876_v49 = vrot.slane %v1155_v46, 9  ;;  %v809_v29 = vsel %vm19572_vm14, %v804_v45, %v808_v21  ;;  %424 = vst [vmem:[#allocation2 + $0x90] sm:$0xf] %v423_v4  ;;  %v15877_v19 = vrot.slane %v1156_v22, 9  ;;  %v19133_v10 = vld [vmem:[#allocation2 + $0x8] sm:$0xf] }
  0x8e   :  { %v818_v35 = vrot.slane %v817_v63, 4  ;;  %427 = vst [vmem:[#allocation2 + $0x94] sm:$0x1] %v426_v8  ;;  %v15878_v27 = vrot.slane %v1157_v25, 9  ;;  %v15879_v16 = vrot.slane %v1158_v28, 9  ;;  %v15858_v46 = vcombine.low %v19132_v51, %v19133_v10 }
  0x8f   :  { %v20056_v52 = vsel %vm19788_vm8, %v15876_v49, %v1208_v53  ;;  %v20062_v45 = vsel %vm19788_vm8, %v15877_v19, %v1212_v17  ;;  %v20082_v61 = vld [vmem:[#allocation2 + $0x8c] sm:$0x1]  ;;  %v1165_v6 = vld [vmem:[#allocation2 + $0x60] sm:$0xe]  ;;  %v19134_v25 = vld [vmem:[#allocation2 + $0x50] sm:$0xf]  ;;  %v24437_v51 = vcombine.low %v19727_v30, %v19731_v36 }
  0x90   :  { %v823_v20 = vsel %vm19572_vm14, %v818_v35, %v822_v12  ;;  %v20066_v63 = vsel %vm19788_vm8, %v15878_v27, %v1216_v23  ;;  %v15892_v11 = vcombine.low %v20056_v52, %v20062_v45  ;;  %v20072_v50 = vsel %vm19788_vm8, %v15879_v16, %v1220_v32  ;;  %v2091_v32 = vld [vmem:[#allocation2 + $0x88] sm:$0xe]  ;;  %v19103_v28 = vld [vmem:[#allocation2 + $0x10] ss:$8 sps:$4 sm:$0xff]  }
  0x91   :  { %v15847_v21 = vcombine.low %v809_v29, %v823_v20  ;;  %v15893_v22 = vcombine.low %v20066_v63, %v20072_v50  ;;  %v15960_v17 = vrot.slane %v2091_v32, 9  ;;  %v2183_v58 = vrot.slane %v20082_v61, 5  ;;  %v1166_v12 = vld [vmem:[#allocation2 + $0x68] sm:$0xe]  ;;  %v1167_v27 = vld [vmem:[#allocation2 + $0x70] sm:$0xe] }
  0x92   :  { %v24436_v23 = vcombine.low %v19640_v41, %v19705_v43  ;;  %v15886_v24 = vrot.slane %v1165_v6, 9  ;;  %v15887_v47 = vrot.slane %v1166_v12, 9  ;;  %v1830_v35 = vshll.u32 %v19986_v2, 16  ;;  %v1168_v20 = vld [vmem:[#allocation2 + $0x78] sm:$0xe] }
  0x93   :  { %17551 = vmatmul.mubr.msk.bf16.gmra.mrb[12].mxu1 %vm860_vm15, %v15847_v21  ;;  %v2184_v41 = vsel %vm19788_vm8, %v15960_v17, %v2183_v58  ;;  %v1160_v10 = vld [vmem:[#allocation2 + $0x28] sm:$0xe]  ;;  %v15888_v2 = vrot.slane %v1167_v27, 9  ;;  %v15889_v30 = vrot.slane %v1168_v20, 9  ;;  %v1260_v36 = vrot.slane %v19992_v7, 5 }
  0x94   :  { %17558 = vmatprep.mubr.msk.bf16.mxu1 %vm860_vm15, %v15858_v46  ;;  %v522_v62 = vld [vmem:[#allocation2 + $0x90] sm:$0xf]  ;;  %v1256_v46 = vrot.slane %v19980_v0, 5  ;;  %v20131_v21 = vrot.slane %v1830_v35, 5  ;;  %v19136_v17 = vld [vmem:[#allocation2 + $0x2c] sm:$0x1] }
  0x95   :  { %v525_v53 = vld [vmem:[#allocation2 + $0x94] sm:$0x1]  ;;  %v523_v39 = vsel %vm19523_vm12, 0, %v522_v62  ;;  %v19135_v62 = vld [vmem:[#allocation2 + $0x24] sm:$0x1]  ;;  %v1228_v58 = vrot.slane %v19136_v17, 5 }
  0x96   :  { %v526_v1 = vsel %vm19532_vm13, 0, %v525_v53  ;;  %524 = vst [vmem:[#allocation2 + $0x90] sm:$0xf] %v523_v39  ;;  %v1224_v53 = vrot.slane %v19135_v62, 5  ;;  %v20134_v39 = vld [vmem:[#allocation2 + $0x30] sm:$0xe]  ;;  %v20139_v0 = vsel %vm19788_vm8, %v15888_v2, %v1256_v46 }
  0x97   :  { %527 = vst [vmem:[#allocation2 + $0x94] sm:$0x1] %v526_v1  ;;  %v19106_v1 = vld [vmem:[#allocation2 + $0x20] ss:$8 sps:$4 sm:$0xff]   ;;  %v2568_v6 = vld [vmem:[#allocation2 + $0x10] sm:$0xf] }
  0x98   :  { %v1162_v12 = vld [vmem:[#allocation2 + $0x38] sm:$0xe]  ;;  %v1169_v7 = vld [vmem:[#allocation2 + $0x80] sm:$0xe]  ;;  %v20161_v35 = vld [vmem:[#allocation2 + $0x1c] sm:$0x1] }
  0x99   :  { %v15890_v27 = vrot.slane %v1169_v7, 9  ;;  %v1264_v20 = vrot.slane %v20033_v42, 5  ;;  %v20176_v2 = vld [vmem:[#allocation2 + $0x54] sm:$0x1]  ;;  %v1268_v62 = vrot.slane %v20039_v15, 5 }
  0x9a   :  { %v1240_v46 = vrot.slane %v20176_v2, 5  ;;  %v2578_v7 = vld [vmem:[#allocation2 + $0x38] sm:$0xf]  ;;  %v20278_v63 = vld [vmem:[#allocation2 + $0x4c] sm:$0x1] }
  0x9b   :  { %17559 = vmatmul.mubr.msk.bf16.vlgmr.msra.gmra.mrb[0].mxu1 %vm860_vm15, %v15859_v9  ;;  %v1252_v9 = vrot.slane %v19964_v26, 5  ;;  %v15862_v26 = vcombine.low %v19134_v25, %v19877_v13  ;;  %v1159_v13 = vld [vmem:[#allocation2 + $0x20] sm:$0xe]  ;;  %v1236_v25 = vrot.slane %v19738_v40, 5 }
  0x9c   :  { %17575 = vmatpush3.bf16.msra.mxu1 %v19694_v44  ;;  %17562 = vmatprep.mubr.msk.bf16.mxu1 %vm860_vm15, %v24436_v23  ;;  %v20108_v44 = vsel %vm19788_vm8, %v15886_v24, %v1248_v3  ;;  %v15880_v32 = vrot.slane %v1159_v13, 9  ;;  %v15863_v3 = vcombine.low %v19947_v31, %v19953_v57  ;;  %v19108_v23 = vld [vmem:[#allocation2 + $0x30] ss:$8 sps:$4 sm:$0xff]   ;;  %v2572_v40 = vld [vmem:[#allocation2 + $0x20] sm:$0xf]  ;;  %v15883_v13 = vrot.slane %v1162_v12, 9 }
  0x9d   :  { %17576 = vmatprep.subr.bf16.mxu1 %v19102_v34  ;;  %v2092_v55 = vld [vmem:[#allocation2 + $0x90] sm:$0xe]  ;;  %v20115_v49 = vsel %vm19788_vm8, %v15887_v47, %v1252_v9  ;;  %v2570_v24 = vld [vmem:[#allocation2 + $0x18] sm:$0xf]  ;;  %v20145_v47 = vsel %vm19788_vm8, %v15889_v30, %v1260_v36  ;;  %v15864_v9 = vcombine.low %v19978_v18, %v19990_v33  ;;  %v2601_v18 = vshrl.u32 %v2568_v6, 16 }
  0x9e   :  { %v20104_v4 = vld [vmem:[#allocation2 + $0x94] sm:$0x1]  ;;  %v15961_v43 = vrot.slane %v2092_v55, 9  ;;  %v15897_v29 = vcombine.low %v20108_v44, %v20115_v49  ;;  %v19113_v55 = vld [vmem:[%s24380_s1 + $0x78] sm:$0xff]   ;;  %v20154_v31 = vld [vmem:[#allocation2 + $0x50] sm:$0xe]  ;;  %v15898_v57 = vcombine.low %v20139_v0, %v20145_v47  ;;  %v20188_v36 = vsel %vm19788_vm8, %v15890_v27, %v1264_v20 }
  0x9f   :  { %v2187_v8 = vrot.slane %v20104_v4, 5  ;;  %v2604_v33 = vshll.u32 %v2568_v6, 16  ;;  %v2574_v30 = vld [vmem:[#allocation2 + $0x28] sm:$0xf]  ;;  %v2629_v15 = vshrl.u32 %v2572_v40, 16  ;;  %v2632_v17 = vshll.u32 %v2572_v40, 16 }
  0xa0   :  { %17577 = vmatpush3.bf16.msra.mxu1 %v19102_v34  ;;  %v15881_v34 = vrot.slane %v1160_v10, 9  ;;  %v15884_v10 = vrot.slane %v20154_v31, 9  ;;  %v2646_v27 = vshll.u32 %v2574_v30, 16 }
  0xa1   :  { %v2188_v19 = vsel %vm19788_vm8, %v15961_v43, %v2187_v8  ;;  %17594 = vmatprep.subr.bf16.mxu1 %v20101_v37  ;;  %v1232_v43 = vrot.slane %v19733_v38, 5  ;;  %v1170_v8 = vld [vmem:[#allocation2 + $0x88] sm:$0xe]  ;;  %v20166_v38 = vsel %vm19788_vm8, %v15880_v32, %v1224_v53  ;;  %v20182_v53 = vrot.slane %v2601_v18, 4  ;;  %v1164_v32 = vld [vmem:[#allocation2 + $0x58] sm:$0xe] }
  0xa2   :  { %v15969_v16 = vcombine.low %v2184_v41, %v2188_v19  ;;  %v15882_v41 = vrot.slane %v20134_v39, 9  ;;  %v2615_v19 = vshrl.u32 %v2570_v24, 16  ;;  %v2624_v39 = vshll.u32 %v20161_v35, 16  ;;  %v20205_v18 = vld [vmem:[#allocation2 + $0x24] sm:$0x1] }
  0xa3   :  { %17563 = vmatmul.mubr.msk.bf16.gmra.mrb[4].mxu1 %vm860_vm15, %v24437_v51  ;;  %v15891_v51 = vrot.slane %v1170_v8, 9  ;;  %v2631_v20 = vrot.slane %v2629_v15, 4 }
  0xa4   :  { %17651 = vmatmul.mubr.msk.bf16.gmra.mrb[12].mxu0 %vm860_vm15, %v15969_v16  ;;  %17566 = vmatprep.mubr.msk.bf16.mxu1 %vm860_vm15, %v15862_v26  ;;  %v20159_v26 = vld [vmem:[#allocation2 + $0x14] sm:$0x1]  ;;  %v20170_v16 = vsel %vm19788_vm8, %v15881_v34, %v1228_v58  ;;  %v2606_v34 = vrot.slane %v2604_v33, 5  ;;  %v2576_v58 = vld [vmem:[#allocation2 + $0x30] sm:$0xf]  ;;  %v2617_v12 = vrot.slane %v2615_v19, 4  ;;  %v20209_v40 = vsel %vm19788_vm8, %v15882_v41, %v1232_v43 }
  0xa5   :  { %17658 = vmatprep.mubr.msk.bf16.mxu0 %vm860_vm15, %v19103_v28  ;;  %v2618_v28 = vshll.u32 %v2570_v24, 16  ;;  %v2610_v42 = vshll.u32 %v20159_v26, 16  ;;  %v20197_v6 = vsel %vm19788_vm8, %v15891_v51, %v1268_v62  ;;  %v15894_v8 = vcombine.low %v20166_v38, %v20170_v16  ;;  %v20292_v38 = vld [vmem:[#allocation2 + $0x64] sm:$0x1] }
  0xa6   :  { %v2643_v33 = vshrl.u32 %v2574_v30, 16  ;;  %v2660_v19 = vshll.u32 %v2576_v58, 16  ;;  %v2634_v51 = vrot.slane %v2632_v17, 5  ;;  %v2671_v62 = vshrl.u32 %v2578_v7, 16 }
  0xa7   :  { %v2620_v24 = vrot.slane %v2618_v28, 5  ;;  %v20216_v28 = vld [vmem:[#allocation2 + $0x2c] sm:$0x1]  ;;  %v1244_v41 = vrot.slane %v19886_v59, 5  ;;  %v2607_v43 = vor.u32 %v2606_v34, %v20182_v53  ;;  %v20221_v30 = vrot.slane %v2610_v42, 5 }
  0xa8   :  { %v2645_v15 = vrot.slane %v2643_v33, 4  ;;  %v2648_v17 = vrot.slane %v2646_v27, 5  ;;  %v20230_v59 = vrot.slane %v2624_v39, 5  ;;  %v2652_v53 = vshll.u32 %v20216_v28, 16  ;;  %v20233_v42 = vld [vmem:[#allocation2 + $0x34] sm:$0x1] }
  0xa9   :  { %v19114_v34 = vld [vmem:[#allocation2 + $0x70] ss:$8 sps:$4 sm:$0xff]   ;;  %v2635_v45 = vor.u32 %v2634_v51, %v2631_v20  ;;  %v20245_v39 = vsel %vm19788_vm8, %v15884_v10, %v1240_v46  ;;  %v2584_v51 = vld [vmem:[#allocation2 + $0x60] sm:$0xf]  ;;  %v2586_v46 = vld [vmem:[#allocation2 + $0x68] sm:$0xf] }
  0xaa   :  { %v20253_v2 = vrot.slane %v2652_v53, 5  ;;  %v2713_v53 = vshrl.u32 %v2584_v51, 16  ;;  %v2727_v50 = vshrl.u32 %v2586_v46, 16 }
  0xab   :  { %17567 = vmatmul.mubr.msk.bf16.gmra.mrb[8].mxu1 %vm860_vm15, %v15863_v3  ;;  %v15865_v3 = vcombine.low %v20019_v5, %v20031_v14  ;;  %v20213_v5 = vsel %vm19788_vm8, %v15883_v13, %v1236_v25  ;;  %v2657_v14 = vshrl.u32 %v2576_v58, 16  ;;  %v2621_v25 = vor.u32 %v2620_v24, %v2617_v12  ;;  %v2580_v58 = vld [vmem:[#allocation2 + $0x40] sm:$0xf] }
  0xac   :  { %17659 = vmatmul.mubr.msk.bf16.vlgmr.msra.gmra.mrb[0].mxu0 %vm860_vm15, %v19106_v1  ;;  %17570 = vmatprep.mubr.msk.bf16.mxu1 %vm860_vm15, %v15864_v9  ;;  %v19110_v1 = vld [vmem:[#allocation2 + $0x40] ss:$8 sps:$4 sm:$0xff]   ;;  %v2674_v9 = vshll.u32 %v2578_v7, 16  ;;  %v2638_v13 = vshll.u32 %v20205_v18, 16  ;;  %v15895_v52 = vcombine.low %v20209_v40, %v20213_v5  ;;  %v2685_v33 = vshrl.u32 %v2580_v58, 16 }
  0xad   :  { %17675 = vmatpush3.bf16.msra.mxu0 %v19934_v54  ;;  %17662 = vmatprep.mubr.msk.bf16.mxu0 %vm860_vm15, %v19108_v23  ;;  %v20193_v54 = vld [vmem:[%s24380_s1 + $0x80] sm:$0xff]   ;;  %v2582_v7 = vld [vmem:[#allocation2 + $0x48] sm:$0xf]  ;;  %v2688_v27 = vshll.u32 %v2580_v58, 16 }
  0xae   :  { %17676 = vmatprep.subr.bf16.mxu0 %v19113_v55  ;;  %v19112_v23 = vld [vmem:[#allocation2 + $0x60] ss:$8 sps:$4 sm:$0xff]   ;;  %v2676_v12 = vrot.slane %v2674_v9, 5  ;;  %v20251_v20 = vrot.slane %v2638_v13, 5  ;;  %v2649_v9 = vor.u32 %v2648_v17, %v2645_v15  ;;  %v2699_v13 = vshrl.u32 %v2582_v7, 16 }
  0xaf   :  { %v19115_v24 = vld [vmem:[#allocation2 + $0x80] ss:$8 sps:$4 sm:$0xff]   ;;  %v2702_v15 = vshll.u32 %v2582_v7, 16  ;;  %v2687_v17 = vrot.slane %v2685_v33, 4  ;;  %v2690_v58 = vrot.slane %v2688_v27, 5 }
  0xb0   :  { %v2701_v27 = vrot.slane %v2699_v13, 4 }
  0xb1   :  { %17677 = vmatpush3.bf16.msra.mxu0 %v19113_v55  ;;  %v15885_v55 = vrot.slane %v1164_v32, 9  ;;  %v2662_v32 = vrot.slane %v2660_v19, 5  ;;  %v2622_v19 = vrot.slane %v2621_v25, 4  ;;  %v20262_v25 = vld [vmem:[#allocation2 + $0x44] sm:$0x1]  ;;  %v2691_v16 = vor.u32 %v2690_v58, %v2687_v17 }
  0xb2   :  { %17694 = vmatprep.subr.bf16.mxu0 %v20193_v54  ;;  %v2694_v33 = vshll.u32 %v20262_v25, 16 }
  0xb3   :  { %17571 = vmatmul.mubr.msk.bf16.gmra.mrb[12].mxu1 %vm860_vm15, %v15865_v3  ;;  %v2673_v3 = vrot.slane %v2671_v62, 4  ;;  %v2666_v62 = vshll.u32 %v20233_v42, 16  ;;  %v20324_v58 = vrot.slane %v2691_v16, 4 }
  0xb4   :  { %17663 = vmatmul.mubr.msk.bf16.gmra.mrb[4].mxu0 %vm860_vm15, %v19110_v1  ;;  %17578 = vmatprep.mubr.msk.bf16.mxu1 %vm860_vm15, %v15892_v11  ;;  %v2659_v1 = vrot.slane %v2657_v14, 4  ;;  %v20237_v11 = vld [vmem:[#allocation2 + $0x3c] sm:$0x1]  ;;  %v2608_v14 = vrot.slane %v2607_v43, 4 }
  0xb5   :  { %17666 = vmatprep.mubr.msk.bf16.mxu0 %vm860_vm15, %v19112_v23  ;;  %v20249_v23 = vsel %vm19788_vm8, %v15885_v55, %v1244_v41  ;;  %v2680_v10 = vshll.u32 %v20237_v11, 16  ;;  %v19117_v55 = vld [vmem:[%s24380_s1 + $0x38] sm:$0xff]   ;;  %v20260_v41 = vrot.slane %v2635_v45, 4  ;;  %v2677_v43 = vor.u32 %v2676_v12, %v2673_v3 }
  0xb6   :  { %v2663_v31 = vor.u32 %v2662_v32, %v2659_v1  ;;  %v2716_v1 = vshll.u32 %v2584_v51, 16  ;;  %v2613_v32 = vsel %vm19572_vm14, %v2608_v14, %v20221_v30  ;;  %v2627_v45 = vsel %vm19572_vm14, %v2622_v19, %v20230_v59  ;;  %v2588_v59 = vld [vmem:[#allocation2 + $0x70] sm:$0xf] }
  0xb7   :  { %v20276_v3 = vrot.slane %v2649_v9, 4  ;;  %v20289_v30 = vrot.slane %v2680_v10, 5  ;;  %v19116_v12 = vld [vmem:[#allocation2 + $0x90] ss:$8 sps:$4 sm:$0xff]   ;;  %v2678_v7 = vrot.slane %v2677_v43, 4  ;;  %v2704_v14 = vrot.slane %v2702_v15, 5 }
  0xb8   :  { %v2715_v19 = vrot.slane %v2713_v53, 4  ;;  %v2718_v9 = vrot.slane %v2716_v1, 5  ;;  %v15896_v51 = vcombine.low %v20245_v39, %v20249_v23  ;;  %v2590_v10 = vld [vmem:[#allocation2 + $0x78] sm:$0xf]  ;;  %v2641_v43 = vsel %vm19572_vm14, %v20260_v41, %v20251_v20  ;;  %v20310_v15 = vld [vmem:[%s24380_s1 + $0x40] sm:$0xff]  }
  0xb9   :  { %v2655_v13 = vsel %vm19572_vm14, %v20276_v3, %v20253_v2  ;;  %v2744_v23 = vshll.u32 %v2588_v59, 16  ;;  %v20317_v41 = vrot.slane %v2694_v33, 5  ;;  %v2705_v17 = vor.u32 %v2704_v14, %v2701_v27  ;;  %v20337_v27 = vld [vmem:[#allocation2 + $0x7c] sm:$0x1] }
  0xba   :  { %v2722_v2 = vshll.u32 %v20292_v38, 16  ;;  %v2755_v1 = vshrl.u32 %v2590_v10, 16  ;;  %v2719_v3 = vor.u32 %v2718_v9, %v2715_v19  ;;  %v2683_v40 = vsel %vm19572_vm14, %v2678_v7, %v20289_v30  ;;  %v19120_v30 = vld [vmem:[%s24380_s1 + $0x88] sm:$0xff]  }
  0xbb   :  { %17579 = vmatmul.mubr.msk.bf16.vlgmr.msra.gmra.mrb[0].mxu1 %vm860_vm15, %v15893_v22  ;;  %v20285_v22 = vrot.slane %v2663_v31, 4  ;;  %v15998_v31 = vcombine.low %v2613_v32, %v2627_v45  ;;  %v2758_v32 = vshll.u32 %v2590_v10, 16  ;;  %v2594_v45 = vld [vmem:[#allocation2 + $0x88] sm:$0xf]  ;;  %v2706_v33 = vrot.slane %v2705_v17, 4 }
  0xbc   :  { %17595 = vmatpush3.bf16.msra.mxu1 %v20101_v37  ;;  %17667 = vmatmul.mubr.msk.bf16.gmra.mrb[8].mxu0 %vm860_vm15, %v19114_v34  ;;  %v20287_v37 = vrot.slane %v2666_v62, 5  ;;  %v2730_v34 = vshll.u32 %v2586_v46, 16  ;;  %v2729_v62 = vrot.slane %v2727_v50, 4  ;;  %v2741_v46 = vshrl.u32 %v2588_v59, 16  ;;  %v20343_v17 = vld [vmem:[#allocation2 + $0x84] sm:$0x1] }
  0xbd   :  { %17582 = vmatprep.mubr.msk.bf16.mxu1 %vm860_vm15, %v15894_v8  ;;  %17670 = vmatprep.mubr.msk.bf16.mxu0 %vm860_vm15, %v19115_v24  ;;  %v2708_v8 = vshll.u32 %v20278_v63, 16  ;;  %v20295_v24 = vld [vmem:[#allocation2 + $0x6c] sm:$0x1]  ;;  %v2746_v59 = vrot.slane %v2744_v23, 5  ;;  %v2783_v14 = vshrl.u32 %v2594_v45, 16  ;;  %v2786_v16 = vshll.u32 %v2594_v45, 16 }
  0xbe   :  { %17596 = vmatprep.subr.bf16.mxu1 %v19117_v55  ;;  %v2732_v39 = vrot.slane %v2730_v34, 5  ;;  %v2669_v20 = vsel %vm19572_vm14, %v20285_v22, %v20287_v37  ;;  %v2736_v50 = vshll.u32 %v20295_v24, 16  ;;  %v2743_v34 = vrot.slane %v2741_v46, 4 }
  0xbf   :  { %v20326_v53 = vrot.slane %v2708_v8, 5  ;;  %v15999_v8 = vcombine.low %v2641_v43, %v2655_v13  ;;  %v2757_v19 = vrot.slane %v2755_v1, 4  ;;  %v2760_v9 = vrot.slane %v2758_v32, 5 }
  0xc0   :  { %17597 = vmatpush3.bf16.msra.mxu1 %v19117_v55  ;;  %v2592_v55 = vld [vmem:[#allocation2 + $0x80] sm:$0xf]  ;;  %v2733_v5 = vor.u32 %v2732_v39, %v2729_v62  ;;  %v16000_v46 = vcombine.low %v2669_v20, %v2683_v40  ;;  %v2738_v23 = vrot.slane %v2736_v50, 5  ;;  %v2785_v43 = vrot.slane %v2783_v14, 4 }
  0xc1   :  { %18434 = vmatprep.subr.bf16.mxu1 %v20310_v15  ;;  %v2769_v22 = vshrl.u32 %v2592_v55, 16  ;;  %v2772_v37 = vshll.u32 %v2592_v55, 16  ;;  %v2747_v55 = vor.u32 %v2746_v59, %v2743_v34  ;;  %v2788_v13 = vrot.slane %v2786_v16, 5 }
  0xc2   :  { %v2734_v39 = vrot.slane %v2733_v5, 4  ;;  %v2697_v20 = vsel %vm19572_vm14, %v20324_v58, %v20317_v41  ;;  %v2711_v45 = vsel %vm19572_vm14, %v2706_v33, %v20326_v53  ;;  %v2764_v50 = vshll.u32 %v20337_v27, 16  ;;  %v20369_v58 = vld [vmem:[#allocation2 + $0x94] sm:$0x1]  ;;  %v19119_v33 = vld [vmem:[#allocation2 + $0x8] ss:$8 sps:$4 sm:$0xff]  }
  0xc3   :  { %17583 = vmatmul.mubr.msk.bf16.gmra.mrb[4].mxu1 %vm860_vm15, %v15895_v52  ;;  %v20335_v52 = vld [vmem:[#allocation2 + $0x74] sm:$0x1]  ;;  %v2771_v62 = vrot.slane %v2769_v22, 4  ;;  %v2774_v10 = vrot.slane %v2772_v37, 5  ;;  %v20357_v22 = vld [vmem:[#allocation2 + $0x8c] sm:$0x1]  ;;  %v2789_v37 = vor.u32 %v2788_v13, %v2785_v43  ;;  %v16001_v16 = vcombine.low %v2697_v20, %v2711_v45 }
  0xc4   :  { %17671 = vmatmul.mubr.msk.bf16.gmra.mrb[12].mxu0 %vm860_vm15, %v19116_v12  ;;  %17586 = vmatprep.mubr.msk.bf16.mxu1 %vm860_vm15, %v15896_v51  ;;  %v2724_v12 = vrot.slane %v2722_v2, 5  ;;  %v2596_v51 = vld [vmem:[#allocation2 + $0x90] sm:$0xf]  ;;  %v2750_v7 = vshll.u32 %v20335_v52, 16  ;;  %v2598_v2 = vld [vmem:[#allocation2 + $0x98] sm:$0xf]  ;;  %v2739_v53 = vsel %vm19572_vm14, %v2734_v39, %v2738_v23 }
  0xc5   :  { %17678 = vmatprep.mubr.msk.bf16.mxu0 %vm860_vm15, %v15998_v31  ;;  %v2720_v31 = vrot.slane %v2719_v3, 4  ;;  %v2797_v1 = vshrl.u32 %v2596_v51, 16  ;;  %v2800_v32 = vshll.u32 %v2596_v51, 16  ;;  %v2761_v3 = vor.u32 %v2760_v9, %v2757_v19  ;;  %v20378_v9 = vld [vmem:[#allocation2 + $0x9c] sm:$0x1] }
  0xc6   :  { %v20366_v49 = vrot.slane %v2750_v7, 5  ;;  %v2778_v41 = vshll.u32 %v20343_v17, 16  ;;  %v2748_v0 = vrot.slane %v2747_v55, 4  ;;  %v2811_v47 = vshrl.u32 %v2598_v2, 16  ;;  %v1668_v51 = vld [vmem:[#allocation2 + $0x68] sm:$0xf] }
  0xc7   :  { %v2725_v44 = vsel %vm19572_vm14, %v2720_v31, %v2724_v12  ;;  %v2792_v40 = vshll.u32 %v20357_v22, 16  ;;  %v2799_v5 = vrot.slane %v2797_v1, 4  ;;  %v2802_v34 = vrot.slane %v2800_v32, 5  ;;  %v2998_v45 = vld [vmem:[#allocation2 + $0x18] sm:$0xe] }
  0xc8   :  { %v1844_v59 = vshll.u32 %v20005_v56, 16  ;;  %v2762_v12 = vrot.slane %v2761_v3, 4  ;;  %v2766_v14 = vrot.slane %v2764_v50, 5  ;;  %v2780_v19 = vrot.slane %v2778_v41, 5 }
  0xc9   :  { %v16002_v31 = vcombine.low %v2725_v44, %v2739_v53  ;;  %v2813_v7 = vrot.slane %v2811_v47, 4  ;;  %v2753_v56 = vsel %vm19572_vm14, %v2748_v0, %v20366_v49  ;;  %v2790_v39 = vrot.slane %v2789_v37, 4 }
  0xca   :  { %v2794_v23 = vrot.slane %v2792_v40, 5  ;;  %v2803_v55 = vor.u32 %v2802_v34, %v2799_v5  ;;  %v2767_v43 = vsel %vm19572_vm14, %v2762_v12, %v2766_v14  ;;  %v1821_v13 = vshrl.u32 %v1668_v51, 16  ;;  %v2999_v40 = vld [vmem:[#allocation2 + $0x20] sm:$0xe]  ;;  %v1664_v5 = vld [vmem:[#allocation2 + $0x58] sm:$0xf] }
  0xcb   :  { %17587 = vmatmul.mubr.msk.bf16.gmra.mrb[8].mxu1 %vm860_vm15, %v15897_v29  ;;  %v2775_v29 = vor.u32 %v2774_v10, %v2771_v62  ;;  %v2997_v10 = vld [vmem:[#allocation2 + $0x10] sm:$0xe]  ;;  %v1824_v1 = vshll.u32 %v1668_v51, 16  ;;  %v2820_v20 = vshll.u32 %v20378_v9, 16  ;;  %v3047_v50 = vrot.slane %v20159_v26, 5 }
  0xcc   :  { %17679 = vmatmul.mubr.msk.bf16.vlgmr.msra.gmra.mrb[0].mxu0 %vm860_vm15, %v15999_v8  ;;  %17590 = vmatprep.mubr.msk.bf16.mxu1 %vm860_vm15, %v15898_v57  ;;  %v2814_v57 = vshll.u32 %v2598_v2, 16  ;;  %v24438_v2 = vcombine.low %v20188_v36, %v20197_v6  ;;  %v16016_v36 = vrot.slane %v2997_v10, 9  ;;  %v1823_v44 = vrot.slane %v1821_v13, 4  ;;  %v3001_v10 = vld [vmem:[#allocation2 + $0x30] sm:$0xe] }
  0xcd   :  { %17695 = vmatpush3.bf16.msra.mxu0 %v20193_v54  ;;  %17682 = vmatprep.mubr.msk.bf16.mxu0 %vm860_vm15, %v16000_v46  ;;  %v2806_v54 = vshll.u32 %v20369_v58, 16  ;;  %v2776_v8 = vrot.slane %v2775_v29, 4  ;;  %v1670_v46 = vld [vmem:[#allocation2 + $0x70] sm:$0xf]  ;;  %v1826_v49 = vrot.slane %v1824_v1, 5  ;;  %v2795_v41 = vsel %vm19572_vm14, %v2790_v39, %v2794_v23 }
  0xce   :  { %17696 = vmatprep.subr.bf16.mxu0 %v19120_v30  ;;  %v2816_v62 = vrot.slane %v2814_v57, 5  ;;  %v1835_v6 = vshrl.u32 %v1670_v46, 16  ;;  %v19121_v29 = vld [vmem:[#allocation2 + $0x18] ss:$8 sps:$4 sm:$0xff]   ;;  %v2804_v53 = vrot.slane %v2803_v55, 4  ;;  %v1838_v47 = vshll.u32 %v1670_v46, 16 }
  0xcf   :  { %v2781_v32 = vsel %vm19572_vm14, %v2776_v8, %v2780_v19  ;;  %v16017_v57 = vrot.slane %v2998_v45, 9  ;;  %v3051_v37 = vrot.slane %v20161_v35, 5  ;;  %v1827_v34 = vor.u32 %v1826_v49, %v1823_v44  ;;  %v3002_v39 = vld [vmem:[#allocation2 + $0x38] sm:$0xe]  ;;  %v3004_v49 = vld [vmem:[#allocation2 + $0x48] sm:$0xe] }
  0xd0   :  { %v2817_v3 = vor.u32 %v2816_v62, %v2813_v7  ;;  %v1837_v0 = vrot.slane %v1835_v6, 4  ;;  %v16003_v12 = vcombine.low %v2753_v56, %v2767_v43  ;;  %v2822_v14 = vrot.slane %v2820_v20, 5 }
  0xd1   :  { %17697 = vmatpush3.bf16.msra.mxu0 %v19120_v30  ;;  %v20389_v30 = vrot.slane %v2806_v54, 5  ;;  %v1666_v54 = vld [vmem:[#allocation2 + $0x60] sm:$0xf]  ;;  %v1840_v26 = vrot.slane %v1838_v47, 5  ;;  %v16004_v8 = vcombine.low %v2781_v32, %v2795_v41  ;;  %v20403_v51 = vsel %vm19788_vm8, %v16016_v36, %v3047_v50 }
  0xd2   :  { %v2818_v19 = vrot.slane %v2817_v3, 4  ;;  %v1828_v7 = vrot.slane %v1827_v34, 4  ;;  %v16018_v62 = vrot.slane %v2999_v40, 9  ;;  %v3052_v56 = vsel %vm19788_vm8, %v16017_v57, %v3051_v37  ;;  %v19123_v32 = vld [vmem:[#allocation2 + $0x38] ss:$8 sps:$4 sm:$0xff]  }
  0xd3   :  { %17591 = vmatmul.mubr.msk.bf16.gmra.mrb[12].mxu1 %vm860_vm15, %v24438_v2  ;;  %v2809_v35 = vsel %vm19572_vm14, %v2804_v53, %v20389_v30  ;;  %v1841_v46 = vor.u32 %v1840_v26, %v1837_v0  ;;  %v1796_v23 = vshll.u32 %v1664_v5, 16  ;;  %v1807_v55 = vshrl.u32 %v1666_v54, 16  ;;  %v3003_v3 = vld [vmem:[#allocation2 + $0x40] sm:$0xe]  ;;  %v3006_v34 = vld [vmem:[#allocation2 + $0x68] sm:$0xe] }
  0xd4   :  { %17683 = vmatmul.mubr.msk.bf16.gmra.mrb[4].mxu0 %vm860_vm15, %v16001_v16  ;;  %17598 = vmatprep.mubr.msk.bf16.mxu1 %vm860_vm15, %v19119_v33  ;;  %v1846_v33 = vrot.slane %v1844_v59, 5  ;;  %v19122_v16 = vld [vmem:[#allocation2 + $0x28] ss:$8 sps:$4 sm:$0xff]   ;;  %v1793_v59 = vshrl.u32 %v1664_v5, 16  ;;  %v1810_v2 = vshll.u32 %v1666_v54, 16  ;;  %v3055_v43 = vrot.slane %v20205_v18, 5 }
  0xd5   :  { %17686 = vmatprep.mubr.msk.bf16.mxu0 %vm860_vm15, %v16002_v31  ;;  %v3000_v31 = vld [vmem:[#allocation2 + $0x28] sm:$0xe]  ;;  %v1833_v13 = vsel %vm19572_vm14, %v1828_v7, %v20131_v21  ;;  %v1842_v1 = vrot.slane %v1841_v46, 4  ;;  %v2823_v20 = vsel %vm19572_vm14, %v2818_v19, %v2822_v14  ;;  %v16020_v45 = vrot.slane %v3001_v10, 9  ;;  %v19124_v0 = vld [vmem:[#allocation2 + $0x58] ss:$8 sps:$4 sm:$0xff]  }
  0xd6   :  { %v16019_v30 = vrot.slane %v3000_v31, 9  ;;  %v3063_v36 = vrot.slane %v20233_v42, 5  ;;  %v19139_v18 = vld [vmem:[%s24380_s1 + $0x48] sm:$0xff]   ;;  %v16021_v21 = vrot.slane %v3002_v39, 9  ;;  %v3067_v6 = vrot.slane %v20237_v11, 5 }
  0xd7   :  { %v1795_v50 = vrot.slane %v1793_v59, 4  ;;  %v1847_v44 = vsel %vm19572_vm14, %v1842_v1, %v1846_v33  ;;  %v1809_v41 = vrot.slane %v1807_v55, 4  ;;  %v16005_v42 = vcombine.low %v2809_v35, %v2823_v20  ;;  %v3005_v5 = vld [vmem:[#allocation2 + $0x60] sm:$0xe]  ;;  %v1672_v26 = vld [vmem:[#allocation2 + $0x78] sm:$0xf] }
  0xd8   :  { %v20429_v53 = vcombine.low %v1833_v13, %v1847_v44  ;;  %v16032_v47 = vcombine.low %v20403_v51, %v3052_v56  ;;  %v3056_v57 = vsel %vm19788_vm8, %v16018_v62, %v3055_v43  ;;  %v3071_v37 = vrot.slane %v20262_v25, 5  ;;  %v19140_v19 = vld [vmem:[#allocation2 + $0x5c] sm:$0x1]  ;;  %v19141_v31 = vld [vmem:[#allocation2 + $0x64] sm:$0x1] }
  0xd9   :  { %v3075_v40 = vrot.slane %v20278_v63, 5  ;;  %v3064_v33 = vsel %vm19788_vm8, %v16020_v45, %v3063_v36  ;;  %v16022_v14 = vrot.slane %v3003_v3, 9  ;;  %v16023_v54 = vrot.slane %v3004_v49, 9  ;;  %v19126_v1 = vld [vmem:[#allocation2 + $0x78] ss:$8 sps:$4 sm:$0xff]  }
  0xda   :  { %v1802_v51 = vshll.u32 %v19140_v19, 16  ;;  %v1816_v63 = vshll.u32 %v19141_v31, 16  ;;  %v16024_v7 = vrot.slane %v3005_v5, 9  ;;  %v3079_v35 = vrot.slane %v20292_v38, 5  ;;  %v3007_v45 = vld [vmem:[#allocation2 + $0x70] sm:$0xe] }
  0xdb   :  { %17599 = vmatmul.mubr.msk.bf16.vlgmr.msra.gmra.mrb[0].mxu1 %vm860_vm15, %v19121_v29  ;;  %v1798_v29 = vrot.slane %v1796_v23, 5  ;;  %v16025_v62 = vrot.slane %v3006_v34, 9  ;;  %v3083_v10 = vrot.slane %v20295_v24, 5  ;;  %v1849_v59 = vshrl.u32 %v1672_v26, 16  ;;  %v1676_v36 = vld [vmem:[#allocation2 + $0x88] sm:$0xf] }
  0xdc   :  { %18436 = vmatpush3.bf16.msra.mxu1 %v20310_v15  ;;  %17687 = vmatmul.mubr.msk.bf16.gmra.mrb[8].mxu0 %vm860_vm15, %v16003_v12  ;;  %v3059_v15 = vrot.slane %v20216_v28, 5  ;;  %v1812_v28 = vrot.slane %v1810_v2, 5  ;;  %v3068_v12 = vsel %vm19788_vm8, %v16021_v21, %v3067_v6  ;;  %v1852_v46 = vshll.u32 %v1672_v26, 16  ;;  %v19125_v2 = vld [vmem:[#allocation2 + $0x68] ss:$8 sps:$4 sm:$0xff]  }
  0xdd   :  { %17602 = vmatprep.mubr.msk.bf16.mxu1 %vm860_vm15, %v19122_v16  ;;  %17690 = vmatprep.mubr.msk.bf16.mxu0 %vm860_vm15, %v16004_v8  ;;  %v1674_v16 = vld [vmem:[#allocation2 + $0x80] sm:$0xf]  ;;  %v1799_v8 = vor.u32 %v1798_v29, %v1795_v50  ;;  %v20450_v23 = vsel %vm19788_vm8, %v16022_v14, %v3071_v37  ;;  %v20454_v55 = vsel %vm19788_vm8, %v16023_v54, %v3075_v40  ;;  %v1804_v38 = vrot.slane %v1802_v51, 5  ;;  %v1678_v50 = vld [vmem:[#allocation2 + $0x90] sm:$0xf] }
  0xde   :  { %18435 = vmatprep.subr.bf16.mxu1 %v19139_v18  ;;  %v3060_v11 = vsel %vm19788_vm8, %v16019_v30, %v3059_v15  ;;  %v1813_v25 = vor.u32 %v1812_v28, %v1809_v41  ;;  %v1863_v56 = vshrl.u32 %v1674_v16, 16  ;;  %v1866_v39 = vshll.u32 %v1674_v16, 16  ;;  %v3008_v28 = vld [vmem:[#allocation2 + $0x78] sm:$0xe]  ;;  %v19142_v34 = vld [vmem:[#allocation2 + $0x7c] sm:$0x1] }
  0xdf   :  { %v1800_v43 = vrot.slane %v1799_v8, 4  ;;  %v1818_v13 = vrot.slane %v1816_v63, 5  ;;  %v16033_v24 = vcombine.low %v3056_v57, %v3060_v11  ;;  %v3080_v20 = vsel %vm19788_vm8, %v16024_v7, %v3079_v35  ;;  %v19143_v14 = vld [vmem:[#allocation2 + $0x84] sm:$0x1]  ;;  %v19127_v51 = vld [vmem:[#allocation2 + $0x88] ss:$8 sps:$4 sm:$0xff]  }
  0xe0   :  { %18437 = vmatpush3.bf16.msra.mxu1 %v19139_v18  ;;  %v1814_v30 = vrot.slane %v1813_v25, 4  ;;  %v3084_v15 = vsel %vm19788_vm8, %v16025_v62, %v3083_v10  ;;  %v1851_v18 = vrot.slane %v1849_v59, 4  ;;  %v1854_v21 = vrot.slane %v1852_v46, 5 }
  0xe1   :  { %v1865_v6 = vrot.slane %v1863_v56, 4  ;;  %v1868_v3 = vrot.slane %v1866_v39, 5  ;;  %v16035_v44 = vcombine.low %v20450_v23, %v20454_v55  ;;  %v1805_v49 = vsel %vm19572_vm14, %v1800_v43, %v1804_v38 }
  0xe2   :  { %v1819_v29 = vsel %vm19572_vm14, %v1814_v30, %v1818_v13  ;;  %v16036_v41 = vcombine.low %v3080_v20, %v3084_v15  ;;  %v1877_v57 = vshrl.u32 %v1676_v36, 16  ;;  %v1880_v11 = vshll.u32 %v1676_v36, 16 }
  0xe3   :  { %17603 = vmatmul.mubr.msk.bf16.gmra.mrb[4].mxu1 %vm860_vm15, %v19123_v32  ;;  %v16034_v32 = vcombine.low %v3064_v33, %v3068_v12  ;;  %v1891_v37 = vshrl.u32 %v1678_v50, 16  ;;  %v1894_v40 = vshll.u32 %v1678_v50, 16  ;;  %v1855_v5 = vor.u32 %v1854_v21, %v1851_v18 }
  0xe4   :  { %17691 = vmatmul.mubr.msk.bf16.gmra.mrb[12].mxu0 %vm860_vm15, %v16005_v42  ;;  %17606 = vmatprep.mubr.msk.bf16.mxu1 %vm860_vm15, %v19124_v0  ;;  %v16026_v42 = vrot.slane %v3007_v45, 9  ;;  %v3009_v0 = vld [vmem:[#allocation2 + $0x80] sm:$0xe]  ;;  %v1858_v33 = vshll.u32 %v19142_v34, 16  ;;  %v1869_v12 = vor.u32 %v1868_v3, %v1865_v6  ;;  %v1872_v54 = vshll.u32 %v19143_v14, 16 }
  0xe5   :  { %17698 = vmatprep.mubr.msk.bf16.mxu0 %vm860_vm15, %v16032_v47  ;;  %v3010_v47 = vld [vmem:[#allocation2 + $0x88] sm:$0xe]  ;;  %v15932_v26 = vcombine.low %v1805_v49, %v1819_v29  ;;  %v3087_v16 = vrot.slane %v20335_v52, 5  ;;  %v16027_v8 = vrot.slane %v3008_v28, 9  ;;  %v3091_v19 = vrot.slane %v20337_v27, 5 }
  0xe6   :  { %v16028_v25 = vrot.slane %v3009_v0, 9  ;;  %v3095_v31 = vrot.slane %v20343_v17, 5  ;;  %v16029_v63 = vrot.slane %v3010_v47, 9  ;;  %v3099_v7 = vrot.slane %v20357_v22, 5 }
  0xe7   :  { %v1879_v35 = vrot.slane %v1877_v57, 4  ;;  %v1882_v62 = vrot.slane %v1880_v11, 5  ;;  %v1893_v10 = vrot.slane %v1891_v37, 4  ;;  %v1896_v59 = vrot.slane %v1894_v40, 5  ;;  %v20512_v37 = vld [vmem:[%s24392_s2] ss:$0 sm:$0xff] }
  0xe8   :  { %v1856_v46 = vrot.slane %v1855_v5, 4  ;;  %v1860_v56 = vrot.slane %v1858_v33, 5  ;;  %v1870_v39 = vrot.slane %v1869_v12, 4  ;;  %v1874_v23 = vrot.slane %v1872_v54, 5  ;;  %s20546_s2 = smov 0  }
  0xe9   :  { %v3088_v52 = vsel %vm19788_vm8, %v16026_v42, %v3087_v16  ;;  %v3092_v27 = vsel %vm19788_vm8, %v16027_v8, %v3091_v19  ;;  %v3096_v17 = vsel %vm19788_vm8, %v16028_v25, %v3095_v31  ;;  %v1886_v22 = vshll.u32 %v20082_v61, 16  ;;  %v3011_v61 = vld [vmem:[#allocation2 + $0x90] sm:$0xe] }
  0xea   :  { %v3100_v55 = vsel %vm19788_vm8, %v16029_v63, %v3099_v7  ;;  %v1897_v43 = vor.u32 %v1896_v59, %v1893_v10  ;;  %v1900_v38 = vshll.u32 %v20104_v4, 16  ;;  %v1861_v30 = vsel %vm19572_vm14, %v1856_v46, %v1860_v56 }
  0xeb   :  { %17607 = vmatmul.mubr.msk.bf16.gmra.mrb[8].mxu1 %vm860_vm15, %v19125_v2  ;;  %v1883_v2 = vor.u32 %v1882_v62, %v1879_v35  ;;  %v1875_v13 = vsel %vm19572_vm14, %v1870_v39, %v1874_v23  ;;  %v1888_v20 = vrot.slane %v1886_v22, 5  ;;  %v16030_v21 = vrot.slane %v3011_v61, 9 }
  0xec   :  { %17699 = vmatmul.mubr.msk.bf16.vlgmr.msra.gmra.mrb[0].mxu0 %vm860_vm15, %v16033_v24  ;;  %17610 = vmatprep.mubr.msk.bf16.mxu1 %vm860_vm15, %v19126_v1  ;;  %v3012_v24 = vld [vmem:[#allocation2 + $0x98] sm:$0xe]  ;;  %v16037_v1 = vcombine.low %v3088_v52, %v3092_v27  ;;  %v15934_v15 = vcombine.low %v1861_v30, %v1875_v13  ;;  %v1898_v36 = vrot.slane %v1897_v43, 4  ;;  %v1902_v18 = vrot.slane %v1900_v38, 5 }
  0xed   :  { %17702 = vmatprep.mubr.msk.bf16.mxu0 %vm860_vm15, %v16034_v32  ;;  %v16038_v32 = vcombine.low %v3096_v17, %v3100_v55  ;;  %v1884_v45 = vrot.slane %v1883_v2, 4  ;;  %v3103_v4 = vrot.slane %v20369_v58, 5  ;;  %v16031_v6 = vrot.slane %v3012_v24, 9 }
  0xee   :  { %v3107_v3 = vrot.slane %v20378_v9, 5 }
  0xef   :  { %v1889_v50 = vsel %vm19572_vm14, %v1884_v45, %v1888_v20  ;;  %v3104_v58 = vsel %vm19788_vm8, %v16030_v21, %v3103_v4 }
  0xf0   :  { %v3108_v9 = vsel %vm19788_vm8, %v16031_v6, %v3107_v3 }
  0xf3   :  { %17611 = vmatmul.mubr.msk.bf16.gmra.mrb[12].mxu1 %vm860_vm15, %v19127_v51 }
  0xf4   :  { %17703 = vmatmul.mubr.msk.bf16.gmra.mrb[4].mxu0 %vm860_vm15, %v16035_v44  ;;  %17626 = vmatprep.mubr.msk.bf16.mxu1 %vm860_vm15, %v15932_v26  ;;  %v1903_v44 = vsel %vm19572_vm14, %v1898_v36, %v1902_v18 }
  0xf5   :  { %17706 = vmatprep.mubr.msk.bf16.mxu0 %vm860_vm15, %v16036_v41  ;;  %v15935_v49 = vcombine.low %v1889_v50, %v1903_v44 }
  0xfb   :  { %17627 = vmatmul.mubr.msk.bf16.vlgmr.msra.gmra.mrb[8].mxu1 %vm860_vm15, %v20429_v53  ;;  %v16039_v53 = vcombine.low %v3104_v58, %v3108_v9 }
  0xfc   :  { %17707 = vmatmul.mubr.msk.bf16.gmra.mrb[8].mxu0 %vm860_vm15, %v16037_v1  ;;  %17630 = vmatprep.mubr.msk.bf16.mxu1 %vm860_vm15, %v15934_v15 }
  0xfd   :  { %17710 = vmatprep.mubr.msk.bf16.mxu0 %vm860_vm15, %v16038_v32 }
 0x103   :  { %17631 = vmatmul.mubr.msk.bf16.gmra.mrb[12].mxu1 %vm860_vm15, %v15935_v49 }
 0x104   :  { %17711 = vmatmul.mubr.msk.bf16.gmra.mrb[12].mxu0 %vm860_vm15, %v16039_v53 }
 0x1ae   :  { %v17600_v29 = vpop.f32.mrb[0].mxu1 }
 0x1af   :  { %v1569_v41 = vpop.f32.mrb[1].mxu1 }
 0x1b0   :  { %v17601_v28 = vpop.f32.mrb[2].mxu1 }
 0x1b1   :  { %v1572_v42 = vpop.f32.mrb[3].mxu1 }
 0x1b6   :  { %v17604_v0 = vpop.f32.mrb[4].mxu1 }
 0x1b7   :  { %v1585_v47 = vpop.f32.mrb[5].mxu1 }
 0x1b8   :  { %v17605_v57 = vpop.f32.mrb[6].mxu1 }
 0x1b9   :  { %v1588_v11 = vpop.f32.mrb[7].mxu1 }
 0x1bf   :  { %v17700_v40 = vpop.f32.mrb[0].mxu0 }
 0x1c0   :  { %v18438_v5 = vadd.f32 %v17700_v40, %v17600_v29  ;;  %v3203_v34 = vpop.f32.mrb[1].mxu0 }
 0x1c1   :  { %v18439_v33 = vadd.f32 %v3203_v34, %v1569_v41  ;;  %v17701_v12 = vpop.f32.mrb[2].mxu0 }
 0x1c2   :  { %v3290_v14 = vadd.f32 %v18438_v5, %v20512_v37  ;;  %v18440_v54 = vadd.f32 %v17701_v12, %v17601_v28  ;;  %v3206_v26 = vpop.f32.mrb[3].mxu0 }
 0x1c3   :  { %v3288_v16 = vadd.f32 %v18439_v33, %v20512_v37  ;;  %v18441_v8 = vadd.f32 %v3206_v26, %v1572_v42 }
 0x1c4   :  { %v3306_v19 = vmax.f32 %v3290_v14, 0.0  ;;  %v3291_v51 = vadd.f32 %v18440_v54, %v20512_v37 }
 0x1c5   :  { %v3304_v25 = vmax.f32 %v3288_v16, 0.0  ;;  %v3289_v31 = vadd.f32 %v18441_v8, %v20512_v37 }
 0x1c6   :  { %3322 = vst.msk [vmem:[#allocation3 + $0x10] sm:$0xff] %vm860_vm15, %v3306_v19  ;;  %v3307_v63 = vmax.f32 %v3291_v51, 0.0 }
 0x1c7   :  { %3320 = vst.msk [vmem:[#allocation3] sm:$0xff] %vm860_vm15, %v3304_v25  ;;  %v3305_v7 = vmax.f32 %v3289_v31, 0.0  ;;  %v17704_v35 = vpop.f32.mrb[4].mxu0 }
 0x1c8   :  { %3323 = vst.msk [vmem:[#allocation3 + $0x18] sm:$0xff] %vm860_vm15, %v3307_v63  ;;  %v18442_v62 = vadd.f32 %v17704_v35, %v17604_v0  ;;  %v3219_v10 = vpop.f32.mrb[5].mxu0 }
 0x1c9   :  { %3321 = vst.msk [vmem:[#allocation3 + $0x8] sm:$0xff] %vm860_vm15, %v3305_v7  ;;  %v18443_v59 = vadd.f32 %v3219_v10, %v1585_v47  ;;  %v17705_v46 = vpop.f32.mrb[6].mxu0 }
 0x1ca   :  { %v3294_v56 = vadd.f32 %v18442_v62, %v20512_v37  ;;  %v18444_v39 = vadd.f32 %v17705_v46, %v17605_v57  ;;  %v3222_v23 = vpop.f32.mrb[7].mxu0 }
 0x1cb   :  { %v3292_v52 = vadd.f32 %v18443_v59, %v20512_v37  ;;  %v18445_v27 = vadd.f32 %v3222_v23, %v1588_v11 }
 0x1cc   :  { %v3310_v17 = vmax.f32 %v3294_v56, 0.0  ;;  %v3295_v22 = vadd.f32 %v18444_v39, %v20512_v37 }
 0x1cd   :  { %v3308_v55 = vmax.f32 %v3292_v52, 0.0  ;;  %v3293_v2 = vadd.f32 %v18445_v27, %v20512_v37 }
 0x1ce   :  { %3326 = vst.msk [vmem:[#allocation3 + $0x30] sm:$0xff] %vm860_vm15, %v3310_v17  ;;  %v3311_v43 = vmax.f32 %v3295_v22, 0.0  ;;  %v17628_v38 = vpop.f32.mrb[8].mxu1 }
 0x1cf   :  { %3324 = vst.msk [vmem:[#allocation3 + $0x20] sm:$0xff] %vm860_vm15, %v3308_v55  ;;  %v3309_v30 = vmax.f32 %v3293_v2, 0.0  ;;  %v17708_v13 = vpop.f32.mrb[8].mxu0  ;;  %v2030_v61 = vpop.f32.mrb[9].mxu1 }
 0x1d0   :  { %3327 = vst.msk [vmem:[#allocation3 + $0x38] sm:$0xff] %vm860_vm15, %v3311_v43  ;;  %v18446_v24 = vadd.f32 %v17708_v13, %v17628_v38  ;;  %v3235_v1 = vpop.f32.mrb[9].mxu0  ;;  %v17629_v32 = vpop.f32.mrb[10].mxu1 }
 0x1d1   :  { %3325 = vst.msk [vmem:[#allocation3 + $0x28] sm:$0xff] %vm860_vm15, %v3309_v30  ;;  %v18447_v20 = vadd.f32 %v3235_v1, %v2030_v61  ;;  %v17709_v15 = vpop.f32.mrb[10].mxu0  ;;  %v2033_v45 = vpop.f32.mrb[11].mxu1 }
 0x1d2   :  { %v3298_v36 = vadd.f32 %v18446_v24, %v20512_v37  ;;  %v18448_v18 = vadd.f32 %v17709_v15, %v17629_v32  ;;  %v3238_v21 = vpop.f32.mrb[11].mxu0 }
 0x1d3   :  { %v3296_v4 = vadd.f32 %v18447_v20, %v20512_v37  ;;  %v18449_v6 = vadd.f32 %v3238_v21, %v2033_v45 }
 0x1d4   :  { %v3314_v3 = vmax.f32 %v3298_v36, 0.0  ;;  %v3299_v50 = vadd.f32 %v18448_v18, %v20512_v37 }
 0x1d5   :  { %v3312_v44 = vmax.f32 %v3296_v4, 0.0  ;;  %v3297_v58 = vadd.f32 %v18449_v6, %v20512_v37 }
 0x1d6   :  { %3330 = vst.msk [vmem:[#allocation3 + $0x50] sm:$0xff] %vm860_vm15, %v3314_v3  ;;  %v3315_v9 = vmax.f32 %v3299_v50, 0.0  ;;  %v17632_v49 = vpop.f32.mrb[12].mxu1 }
 0x1d7   :  { %3328 = vst.msk [vmem:[#allocation3 + $0x40] sm:$0xff] %vm860_vm15, %v3312_v44  ;;  %v3313_v53 = vmax.f32 %v3297_v58, 0.0  ;;  %v17712_v29 = vpop.f32.mrb[12].mxu0  ;;  %v2046_v41 = vpop.f32.mrb[13].mxu1 }
 0x1d8   :  { %3331 = vst.msk [vmem:[#allocation3 + $0x58] sm:$0xff] %vm860_vm15, %v3315_v9  ;;  %v18450_v28 = vadd.f32 %v17712_v29, %v17632_v49  ;;  %v3251_v42 = vpop.f32.mrb[13].mxu0  ;;  %v17633_v0 = vpop.f32.mrb[14].mxu1 }
 0x1d9   :  { %3329 = vst.msk [vmem:[#allocation3 + $0x48] sm:$0xff] %vm860_vm15, %v3313_v53  ;;  %v18451_v47 = vadd.f32 %v3251_v42, %v2046_v41  ;;  %v17713_v57 = vpop.f32.mrb[14].mxu0  ;;  %v2049_v11 = vpop.f32.mrb[15].mxu1 }
 0x1da   :  { %v3302_v40 = vadd.f32 %v18450_v28, %v20512_v37  ;;  %v18452_v5 = vadd.f32 %v17713_v57, %v17633_v0  ;;  %v3254_v34 = vpop.f32.mrb[15].mxu0 }
 0x1db   :  { %v3300_v33 = vadd.f32 %v18451_v47, %v20512_v37  ;;  %v18453_v12 = vadd.f32 %v3254_v34, %v2049_v11 }
 0x1dc   :  { %v3318_v14 = vmax.f32 %v3302_v40, 0.0  ;;  %v3303_v54 = vadd.f32 %v18452_v5, %v20512_v37 }
 0x1dd   :  { %v3316_v26 = vmax.f32 %v3300_v33, 0.0  ;;  %v3301_v16 = vadd.f32 %v18453_v12, %v20512_v37 }
 0x1de   :  { %3334 = vst.msk [vmem:[#allocation3 + $0x70] sm:$0xff] %vm860_vm15, %v3318_v14  ;;  %v3319_v8 = vmax.f32 %v3303_v54, 0.0 }
 0x1df   :  { %3332 = vst.msk [vmem:[#allocation3 + $0x60] sm:$0xff] %vm860_vm15, %v3316_v26  ;;  %v3317_v19 = vmax.f32 %v3301_v16, 0.0 }
 0x1e0   :  { %3335 = vst.msk [vmem:[#allocation3 + $0x78] sm:$0xff] %vm860_vm15, %v3319_v8 }
 0x1e1   :  { %3333 = vst.msk [vmem:[#allocation3 + $0x68] sm:$0xff] %vm860_vm15, %v3317_v19 }
 0x1e2 LB: > { %v3342_v51 = vld [vmem:[#allocation3] sm:$0xff]  ;;  %s17035_s19 = smul.u32 288, %s19338_s2  ;;  %v3343_v35 = vld [vmem:[#allocation3 + $0x8] sm:$0xff]  ;;  %vm20560_vm6 = vmand %vm43_vm0, %vm327_vm3  ;;  %v24439_v59 = vmov 0  ;;  %v24442_v52 = vmov 0  ;;  %s16067_s22 = sshll.u32 %s19338_s2, 1  ;;  %s19338_s2 = sphi %s20546_s2, %s3341_s2  }
 0x1e3   : > { %v17019_v37 = vpack.c.bf16 %v3342_v51, %v3342_v51  ;;  %v20551_v25 = vld [vmem:[#allocation2] sm:$0xf]  ;;  %v20554_v31 = vld [vmem:[#allocation2 + $0x4] sm:$0x1]  ;;  %v24440_v59 = vsel %vm20560_vm6, 4294967295, %v24439_v59  ;;  %v3344_v56 = vld [vmem:[#allocation3 + $0x10] sm:$0xff]  ;;  %v17020_v55 = vpack.c.bf16 %v3343_v35, %v3343_v35  ;;  %s21323_s10 = scalar_lea.vmem %s24382_s4, %s16067_s22 }
 0x1e4   : > { %v3757_v63 = vshrl.u32 %v20551_v25, 16  ;;  %v3760_v7 = vshll.u32 %v20551_v25, 16  ;;  %24441 = vst [vmem:[#allocation5_spill] sm:$0xff] %v24440_v59  ;;  %v3766_v46 = vshll.u32 %v20554_v31, 16  ;;  %v3345_v39 = vld [vmem:[#allocation3 + $0x18] sm:$0xff]  ;;  %s20568_s0 = scalar_lea.vmem %s24381_s3, %s17035_s19  ;;  %vm20572_vm7 = vmand %vm45_vm1, %vm333_vm5  ;;  %v17021_v2 = vpack.c.bf16 %v3344_v56, %v3344_v56  ;;  %v3346_v50 = vld [vmem:[#allocation3 + $0x20] sm:$0xff] }
 0x1e5   : > { %v3423_v62 = vshrl.u32 %v17019_v37, 16  ;;  %v3426_v10 = vshll.u32 %v17019_v37, 16  ;;  %v3584_v23 = vld [vmem:[#allocation2 + $0x8] sm:$0xf]  ;;  %v24443_v52 = vsel %vm20572_vm7, 4294967295, %v24442_v52  ;;  %v19144_v43 = vld [vmem:[%s20568_s0 + $0x10] sm:$0xff]   ;;  %v17022_v30 = vpack.c.bf16 %v3345_v39, %v3345_v39 }
 0x1e6   : > { %24444 = vst [vmem:[#allocation6_spill] sm:$0xff] %v24443_v52  ;;  %v3589_v27 = vld [vmem:[#allocation2 + $0xc] sm:$0x1]  ;;  %v3759_v17 = vrot.slane %v3757_v63, 4  ;;  %v3762_v22 = vrot.slane %v3760_v7, 5  ;;  %v19145_v13 = vld [vmem:[%s20568_s0 + $0x18] sm:$0xff]   ;;  %17714 = vmatprep.subr.bf16.mxu0 %v19144_v43  ;;  %v17023_v41 = vpack.c.bf16 %v3346_v50, %v3346_v50 }
 0x1e7   : > { %v3425_v38 = vrot.slane %v3423_v62, 7  ;;  %17715 = vmatpush3.bf16.msra.mxu0 %v19144_v43  ;;  %v20578_v32 = vrot.slane %v3766_v46, 5  ;;  %v3431_v20 = vshrl.u32 %v17020_v55, 16  ;;  %v3434_v15 = vshll.u32 %v17020_v55, 16  ;;  %v20585_v21 = vld [vmem:[%s20568_s0] sm:$0xff]   ;;  %v3347_v58 = vld [vmem:[#allocation3 + $0x28] sm:$0xff] }
 0x1e8   : > { %v3763_v61 = vor.u32 %v3762_v22, %v3759_v17  ;;  %v3439_v45 = vshrl.u32 %v17021_v2, 16  ;;  %17716 = vmatprep.subr.bf16.mxu0 %v19145_v13  ;;  %v3442_v4 = vshll.u32 %v17021_v2, 16  ;;  %v3592_v6 = vld [vmem:[#allocation2 + $0x10] sm:$0xf]  ;;  %v3595_v3 = vld [vmem:[#allocation2 + $0x14] sm:$0x1]  ;;  %v17024_v57 = vpack.c.bf16 %v3347_v58, %v3347_v58 }
 0x1e9   : > { %v3428_v24 = vor.u32 %v3426_v10, %v3425_v38  ;;  %v3429_v1 = vrot.slane %v3425_v38, 4  ;;  %v3447_v44 = vshrl.u32 %v17022_v30, 16  ;;  %v3433_v49 = vrot.slane %v3431_v20, 7  ;;  %v3598_v29 = vld [vmem:[#allocation2 + $0x18] sm:$0xf]  ;;  %v3348_v12 = vld [vmem:[#allocation3 + $0x30] sm:$0xff] }
 0x1ea   : > { %v20587_v9 = vrot.slane %v3763_v61, 4  ;;  %v3441_v53 = vrot.slane %v3439_v45, 7  ;;  %v3601_v28 = vld [vmem:[#allocation2 + $0x1c] sm:$0x1]  ;;  %v3450_v0 = vshll.u32 %v17022_v30, 16  ;;  %v3455_v26 = vshrl.u32 %v17023_v41, 16 }
 0x1eb   : > { %v3585_v36 = vsel %vm20560_vm6, %v3428_v24, %v3584_v23  ;;  %v3590_v18 = vsel %vm20572_vm7, %v3429_v1, %v3589_v27  ;;  %v3449_v42 = vrot.slane %v3447_v44, 7  ;;  %v3604_v47 = vld [vmem:[#allocation2 + $0x20] sm:$0xf]  ;;  %17717 = vmatpush3.bf16.msra.mxu0 %v19145_v13  ;;  %v3436_v11 = vor.u32 %v3434_v15, %v3433_v49  ;;  %v3607_v33 = vld [vmem:[#allocation2 + $0x24] sm:$0x1]  ;;  %s3341_s2 = sadd.s32 1, %s19338_s2  }
 0x1ec   : > { %3586 = vst [vmem:[#allocation2 + $0x8] sm:$0xf] %v3585_v36  ;;  %3591 = vst [vmem:[#allocation2 + $0xc] sm:$0x1] %v3590_v18  ;;  %v3437_v40 = vrot.slane %v3433_v49, 4  ;;  %v3444_v5 = vor.u32 %v3442_v4, %v3441_v53  ;;  %v3445_v34 = vrot.slane %v3441_v53, 4  ;;  %17734 = vmatprep.subr.bf16.mxu0 %v20585_v21  ;;  %v17025_v46 = vpack.c.bf16 %v3348_v12, %v3348_v12 }
 0x1ed   : > { %v3452_v14 = vor.u32 %v3450_v0, %v3449_v42  ;;  %v3453_v54 = vrot.slane %v3449_v42, 4  ;;  %v3458_v16 = vshll.u32 %v17023_v41, 16  ;;  %v3593_v8 = vsel %vm20560_vm6, %v3436_v11, %v3592_v6  ;;  %v3350_v63 = vld [vmem:[#allocation3 + $0x40] sm:$0xff]  ;;  %v3610_v10 = vld [vmem:[#allocation2 + $0x28] sm:$0xf]  ;;  %v3352_v41 = vld [vmem:[#allocation3 + $0x50] sm:$0xff] }
 0x1ee   : > { %v3596_v19 = vsel %vm20572_vm7, %v3437_v40, %v3595_v3  ;;  %v3599_v51 = vsel %vm20560_vm6, %v3444_v5, %v3598_v29  ;;  %v3602_v37 = vsel %vm20572_vm7, %v3445_v34, %v3601_v28  ;;  %3594 = vst [vmem:[#allocation2 + $0x10] sm:$0xf] %v3593_v8  ;;  %v3457_v7 = vrot.slane %v3455_v26, 7  ;;  %v3613_v39 = vld [vmem:[#allocation2 + $0x2c] sm:$0x1]  ;;  %v3353_v28 = vld [vmem:[#allocation3 + $0x58] sm:$0xff] }
 0x1ef   : > { %3597 = vst [vmem:[#allocation2 + $0x14] sm:$0x1] %v3596_v19  ;;  %3600 = vst [vmem:[#allocation2 + $0x18] sm:$0xf] %v3599_v51  ;;  %v3605_v35 = vsel %vm20560_vm6, %v3452_v14, %v3604_v47  ;;  %v3608_v62 = vsel %vm20572_vm7, %v3453_v54, %v3607_v33  ;;  %v3769_v56 = vsel %vm19572_vm14, %v20587_v9, %v20578_v32  ;;  %v3463_v23 = vshrl.u32 %v17024_v57, 16  ;;  %v3351_v4 = vld [vmem:[#allocation3 + $0x48] sm:$0xff] }
 0x1f0   : > { %3603 = vst [vmem:[#allocation2 + $0x1c] sm:$0x1] %v3602_v37  ;;  %3606 = vst [vmem:[#allocation2 + $0x20] sm:$0xf] %v3605_v35  ;;  %v3466_v27 = vshll.u32 %v17024_v57, 16  ;;  %v3460_v2 = vor.u32 %v3458_v16, %v3457_v7  ;;  %v3461_v43 = vrot.slane %v3457_v7, 4  ;;  %v20612_v13 = vpack.c.bf16 %v3350_v63, %v3350_v63 }
 0x1f1   : > { %3609 = vst [vmem:[#allocation2 + $0x24] sm:$0x1] %v3608_v62  ;;  %v20606_v17 = vld [vmem:[#allocation2 + $0x50] sm:$0xf]  ;;  %v3471_v38 = vshrl.u32 %v17025_v46, 16  ;;  %v20617_v20 = vrot.slane %v3463_v23, 7  ;;  %v20639_v5 = vpack.c.bf16 %v3351_v4, %v3351_v4  ;;  %v20651_v51 = vpack.c.bf16 %v3352_v41, %v3352_v41 }
 0x1f2   : > { %v3616_v30 = vld [vmem:[#allocation2 + $0x30] sm:$0xf]  ;;  %v3611_v15 = vsel %vm20560_vm6, %v3460_v2, %v3610_v10  ;;  %v3614_v45 = vsel %vm20572_vm7, %v3461_v43, %v3613_v39  ;;  %v3474_v18 = vshll.u32 %v17025_v46, 16  ;;  %v3869_v44 = vshrl.u32 %v20606_v17, 16  ;;  %p3338_p0 = scmp.ge.s32.totalorder %s3341_s2, 2  }
 0x1f3   : > { %v20608_v22 = vld [vmem:[#allocation2 + $0x8] sm:$0xf]  ;;  %v20610_v55 = vld [vmem:[#allocation2 + $0xc] sm:$0x1]  ;;  %v20623_v36 = vrot.slane %v3471_v38, 7  ;;  %v3468_v50 = vor.u32 %v3466_v27, %v20617_v20  ;;  %v3469_v49 = vrot.slane %v20617_v20, 4  ;;  %v20655_v62 = vpack.c.bf16 %v3353_v28, %v3353_v28 }
 0x1f4   : > { %v3771_v61 = vshrl.u32 %v20608_v22, 16  ;;  %v3774_v24 = vshll.u32 %v20608_v22, 16  ;;  %v3780_v1 = vshll.u32 %v20610_v55, 16  ;;  %3612 = vst [vmem:[#allocation2 + $0x28] sm:$0xf] %v3611_v15  ;;  %v3487_v29 = vshrl.u32 %v20612_v13, 16 }
 0x1f5   : > { %3615 = vst [vmem:[#allocation2 + $0x2c] sm:$0x1] %v3614_v45  ;;  %v3477_v53 = vrot.slane %v20623_v36, 4  ;;  %v20630_v0 = vld [vmem:[#allocation2 + $0x10] sm:$0xf]  ;;  %v3476_v11 = vor.u32 %v3474_v18, %v20623_v36  ;;  %v3617_v40 = vsel %vm20560_vm6, %v3468_v50, %v3616_v30  ;;  %vm15623_vm1 = vcmask (%p3338_p0), 23552  }
 0x1f6   : > { %v3773_v6 = vrot.slane %v3771_v61, 4  ;;  %v3776_v3 = vrot.slane %v3774_v24, 5  ;;  %v3782_v58 = vrot.slane %v3780_v1, 5  ;;  %v20632_v47 = vld [vmem:[#allocation2 + $0x18] sm:$0xf]  ;;  %v3785_v33 = vshrl.u32 %v20630_v0, 16 }
 0x1f7   : > { %v20634_v57 = vld [vmem:[#allocation2 + $0x14] sm:$0x1]  ;;  %v20641_v34 = vld [vmem:[#allocation2 + $0x1c] sm:$0x1]  ;;  %v3788_v12 = vshll.u32 %v20630_v0, 16  ;;  %v3799_v54 = vshrl.u32 %v20632_v47, 16 }
 0x1f8   : > { %v3777_v42 = vor.u32 %v3776_v3, %v3773_v6  ;;  %v3794_v14 = vshll.u32 %v20634_v57, 16  ;;  %3618 = vst [vmem:[#allocation2 + $0x30] sm:$0xf] %v3617_v40  ;;  %v3802_v16 = vshll.u32 %v20632_v47, 16  ;;  %v3808_v8 = vshll.u32 %v20641_v34, 16  ;;  %v15601_v60 = vld [vmem:[%s24387_s9 + $0x10] sm:$0xff] (%p3338_p0) }
 0x1f9   : > { %v20649_v19 = vld [vmem:[#allocation2 + $0x20] sm:$0xf]  ;;  %v3787_v37 = vrot.slane %v3785_v33, 4  ;;  %v3790_v63 = vrot.slane %v3788_v12, 5  ;;  %v3801_v7 = vrot.slane %v3799_v54, 4  ;;  %v3489_v36 = vrot.slane %v3487_v29, 7 }
 0x1fa   : > { %v3778_v26 = vrot.slane %v3777_v42, 4  ;;  %v20653_v35 = vld [vmem:[#allocation2 + $0x24] sm:$0x1]  ;;  %v3796_v46 = vrot.slane %v3794_v14, 5  ;;  %v3804_v39 = vrot.slane %v3802_v16, 5  ;;  %v3810_v23 = vrot.slane %v3808_v8, 5 }
 0x1fb   : > { %v3619_v27 = vld [vmem:[#allocation2 + $0x34] sm:$0x1]  ;;  %v3791_v43 = vor.u32 %v3790_v63, %v3787_v37  ;;  %v20664_v38 = vld [vmem:[#allocation2 + $0x28] sm:$0xf]  ;;  %v3813_v61 = vshrl.u32 %v20649_v19, 16  ;;  %v3816_v24 = vshll.u32 %v20649_v19, 16 }
 0x1fc   : > { %v3783_v10 = vsel %vm19572_vm14, %v3778_v26, %v3782_v58  ;;  %v20666_v30 = vld [vmem:[#allocation2 + $0x2c] sm:$0x1]  ;;  %v3805_v1 = vor.u32 %v3804_v39, %v3801_v7  ;;  %v3822_v20 = vshll.u32 %v20653_v35, 16  ;;  %v3827_v15 = vshrl.u32 %v20664_v38, 16  ;;  %v3622_v18 = vld [vmem:[#allocation2 + $0x38] sm:$0xf] }
 0x1fd   : > { %v16070_v2 = vcombine.low %v3769_v56, %v3783_v10  ;;  %v3830_v45 = vshll.u32 %v20664_v38, 16  ;;  %v3792_v32 = vrot.slane %v3791_v43, 4  ;;  %v3815_v9 = vrot.slane %v3813_v61, 4  ;;  %v3625_v6 = vld [vmem:[#allocation2 + $0x3c] sm:$0x1]  ;;  %v19147_v39 = vld [vmem:[%s20568_s0 + $0x8] sm:$0xff]  }
 0x1fe   : > { %v3818_v56 = vrot.slane %v3816_v24, 5  ;;  %v3836_v4 = vshll.u32 %v20666_v30, 16  ;;  %v3806_v3 = vrot.slane %v3805_v1, 4  ;;  %v3824_v50 = vrot.slane %v3822_v20, 5  ;;  %v3634_v7 = vld [vmem:[#allocation2 + $0x58] sm:$0xf] }
 0x1ff   : > { %17718 = vmatprep.mubr.msk.bf16.mxu0 %vm860_vm15, %v16070_v2  ;;  %v3829_v58 = vrot.slane %v3827_v15, 4  ;;  %v3832_v41 = vrot.slane %v3830_v45, 5  ;;  %v20675_v28 = vld [vmem:[#allocation2 + $0x30] sm:$0xf]  ;;  %v3797_v42 = vsel %vm19572_vm14, %v3792_v32, %v3796_v46  ;;  %v3620_v12 = vsel %vm20572_vm7, %v3469_v49, %v3619_v27  ;;  %v3637_v10 = vld [vmem:[#allocation2 + $0x5c] sm:$0x1] }
 0x200   : > { %v3819_v40 = vor.u32 %v3818_v56, %v3815_v9  ;;  %v3838_v33 = vrot.slane %v3836_v4, 5  ;;  %v3811_v14 = vsel %vm19572_vm14, %v3806_v3, %v3810_v23  ;;  %3621 = vst [vmem:[#allocation2 + $0x34] sm:$0x1] %v3620_v12  ;;  %v3623_v26 = vsel %vm20560_vm6, %v3476_v11, %v3622_v18  ;;  %v20691_v46 = vld [vmem:[#allocation2 + $0x54] sm:$0x1]  ;;  %v3354_v18 = vld [vmem:[#allocation3 + $0x60] sm:$0xff] }
 0x201   : > { %v3833_v54 = vor.u32 %v3832_v41, %v3829_v58  ;;  %v3626_v16 = vsel %vm20572_vm7, %v3477_v53, %v3625_v6  ;;  %v16071_v8 = vcombine.low %v3797_v42, %v3811_v14  ;;  %3624 = vst [vmem:[#allocation2 + $0x38] sm:$0xf] %v3623_v26  ;;  %v3841_v63 = vshrl.u32 %v20675_v28, 16  ;;  %v3355_v32 = vld [vmem:[#allocation3 + $0x68] sm:$0xff]  ;;  %v20709_v9 = vld [vmem:[%s20568_s0 + $0x20] sm:$0xff]  }
 0x202   : > { %v3820_v37 = vrot.slane %v3819_v40, 4  ;;  %3627 = vst [vmem:[#allocation2 + $0x3c] sm:$0x1] %v3626_v16  ;;  %v3844_v49 = vshll.u32 %v20675_v28, 16  ;;  %v3490_v11 = vshll.u32 %v20612_v13, 16  ;;  %v3871_v53 = vrot.slane %v3869_v44, 4 }
 0x203   : > { %v3834_v23 = vrot.slane %v3833_v54, 4  ;;  %17719 = vmatmul.mubr.msk.bf16.vlgmr.msra.gmra.mrb[0].mxu0 %vm860_vm15, %v16071_v8  ;;  %v3843_v2 = vrot.slane %v3841_v63, 4  ;;  %v3872_v61 = vshll.u32 %v20606_v17, 16  ;;  %v3493_v13 = vrot.slane %v3489_v36, 4  ;;  %v3640_v40 = vld [vmem:[#allocation2 + $0x60] sm:$0xf] }
 0x204   : > { %v3825_v27 = vsel %vm19572_vm14, %v3820_v37, %v3824_v50  ;;  %v3846_v43 = vrot.slane %v3844_v49, 5  ;;  %17735 = vmatpush3.bf16.msra.mxu0 %v20585_v21  ;;  %v3492_v24 = vor.u32 %v3490_v11, %v3489_v36  ;;  %v3878_v1 = vshll.u32 %v20691_v46, 16  ;;  %v3643_v49 = vld [vmem:[#allocation2 + $0x64] sm:$0x1] }
 0x205   : > { %v3839_v29 = vsel %vm19572_vm14, %v3834_v23, %v3838_v33  ;;  %v3874_v15 = vrot.slane %v3872_v61, 5  ;;  %17736 = vmatprep.subr.bf16.mxu0 %v19147_v39  ;;  %v3495_v45 = vshrl.u32 %v20639_v5, 16  ;;  %v3638_v56 = vsel %vm20572_vm7, %v3493_v13, %v3637_v10 }
 0x206   : > { %v16072_v44 = vcombine.low %v3825_v27, %v3839_v29  ;;  %v3847_v20 = vor.u32 %v3846_v43, %v3843_v2  ;;  %v3635_v21 = vsel %vm20560_vm6, %v3492_v24, %v3634_v7  ;;  %v20715_v4 = vrot.slane %v3878_v1, 5  ;;  %3639 = vst [vmem:[#allocation2 + $0x5c] sm:$0x1] %v3638_v56  ;;  %v3649_v2 = vld [vmem:[#allocation2 + $0x6c] sm:$0x1] }
 0x207   : > { %v3498_v6 = vshll.u32 %v20639_v5, 16  ;;  %v20719_v3 = vld [vmem:[#allocation2 + $0x34] sm:$0x1]  ;;  %3636 = vst [vmem:[#allocation2 + $0x58] sm:$0xf] %v3635_v21  ;;  %v3875_v58 = vor.u32 %v3874_v15, %v3871_v53  ;;  %v3497_v41 = vrot.slane %v3495_v45, 7  ;;  %v17031_v54 = vpack.c.bf16 %v3354_v18, %v3354_v18 }
 0x208   : > { %17722 = vmatprep.mubr.msk.bf16.mxu0 %vm860_vm15, %v16072_v44  ;;  %v20721_v50 = vrot.slane %v3847_v20, 4  ;;  %v3503_v42 = vshrl.u32 %v20651_v51, 16  ;;  %v20724_v33 = vld [vmem:[#allocation2 + $0x38] sm:$0xf]  ;;  %v3850_v14 = vshll.u32 %v20719_v3, 16  ;;  %v3506_v5 = vshll.u32 %v20651_v51, 16  ;;  %17737 = vmatpush3.bf16.msra.mxu0 %v19147_v39 }
 0x209   : > { %v20726_v12 = vld [vmem:[#allocation2 + $0x3c] sm:$0x1]  ;;  %v20730_v26 = vpack.c.bf16 %v3355_v32, %v3355_v32  ;;  %v3855_v16 = vshrl.u32 %v20724_v33, 16  ;;  %v3858_v8 = vshll.u32 %v20724_v33, 16  ;;  %v20735_v63 = vrot.slane %v3875_v58, 4  ;;  %17754 = vmatprep.subr.bf16.mxu0 %v20709_v9  ;;  %v3356_v15 = vld [vmem:[#allocation3 + $0x70] sm:$0xff] }
 0x20a   : > { %v3864_v37 = vshll.u32 %v20726_v12, 16  ;;  %v3852_v7 = vrot.slane %v3850_v14, 5  ;;  %v3500_v10 = vor.u32 %v3498_v6, %v3497_v41  ;;  %v3501_v23 = vrot.slane %v3497_v41, 4  ;;  %v3646_v51 = vld [vmem:[#allocation2 + $0x68] sm:$0xf] }
 0x20b   : > { %v3505_v36 = vrot.slane %v3503_v42, 7  ;;  %v3857_v39 = vrot.slane %v3855_v16, 4  ;;  %v3860_v11 = vrot.slane %v3858_v8, 5  ;;  %v3881_v27 = vsel %vm19572_vm14, %v20735_v63, %v20715_v4  ;;  %v3652_v42 = vld [vmem:[#allocation2 + $0x70] sm:$0xf] }
 0x20c   : > { %v3866_v53 = vrot.slane %v3864_v37, 5  ;;  %v3853_v43 = vsel %vm19572_vm14, %v20721_v50, %v3852_v7  ;;  %v3641_v24 = vsel %vm20560_vm6, %v3500_v10, %v3640_v40  ;;  %v3644_v1 = vsel %vm20572_vm7, %v3501_v23, %v3643_v49  ;;  %v3655_v40 = vld [vmem:[#allocation2 + $0x74] sm:$0x1]  ;;  %v3658_v14 = vld [vmem:[#allocation2 + $0x78] sm:$0xf] }
 0x20d   : > { %v3508_v61 = vor.u32 %v3506_v5, %v3505_v36  ;;  %v3509_v29 = vrot.slane %v3505_v36, 4  ;;  %v3861_v13 = vor.u32 %v3860_v11, %v3857_v39  ;;  %3642 = vst [vmem:[#allocation2 + $0x60] sm:$0xf] %v3641_v24  ;;  %v3511_v44 = vshrl.u32 %v20655_v62, 16  ;;  %v20753_v18 = vld [vmem:[#allocation2 + $0x5c] sm:$0x1] }
 0x20e   : > { %v3514_v20 = vshll.u32 %v20655_v62, 16  ;;  %v20751_v45 = vld [vmem:[#allocation2 + $0x58] sm:$0xf]  ;;  %3645 = vst [vmem:[#allocation2 + $0x64] sm:$0x1] %v3644_v1  ;;  %v3519_v56 = vshrl.u32 %v17031_v54, 16  ;;  %v17033_v37 = vpack.c.bf16 %v3356_v15, %v3356_v15 }
 0x20f   : > { %v3647_v32 = vsel %vm20560_vm6, %v3508_v61, %v3646_v51  ;;  %v3650_v21 = vsel %vm20572_vm7, %v3509_v29, %v3649_v2  ;;  %v3522_v6 = vshll.u32 %v17031_v54, 16  ;;  %v3862_v50 = vrot.slane %v3861_v13, 4  ;;  %v3661_v8 = vld [vmem:[#allocation2 + $0x7c] sm:$0x1]  ;;  %v3670_v4 = vld [vmem:[#allocation2 + $0x88] sm:$0xf] }
 0x210   : > { %v3883_v58 = vshrl.u32 %v20751_v45, 16  ;;  %v3886_v41 = vshll.u32 %v20751_v45, 16  ;;  %v3892_v62 = vshll.u32 %v20753_v18, 16  ;;  %3648 = vst [vmem:[#allocation2 + $0x68] sm:$0xf] %v3647_v32  ;;  %v3513_v5 = vrot.slane %v3511_v44, 7 }
 0x211   : > { %3651 = vst [vmem:[#allocation2 + $0x6c] sm:$0x1] %v3650_v21  ;;  %v3521_v16 = vrot.slane %v3519_v56, 7  ;;  %v3527_v49 = vshrl.u32 %v20730_v26, 16  ;;  %v3867_v54 = vsel %vm19572_vm14, %v3862_v50, %v3866_v53  ;;  %v3530_v24 = vshll.u32 %v20730_v26, 16 }
 0x212   : > { %v3885_v7 = vrot.slane %v3883_v58, 4  ;;  %v3888_v10 = vrot.slane %v3886_v41, 5  ;;  %v3894_v23 = vrot.slane %v3892_v62, 5  ;;  %v16073_v36 = vcombine.low %v3853_v43, %v3867_v54  ;;  %v3664_v56 = vld [vmem:[#allocation2 + $0x80] sm:$0xf] }
 0x213   : > { %v3516_v51 = vor.u32 %v3514_v20, %v3513_v5  ;;  %v3517_v39 = vrot.slane %v3513_v5, 4  ;;  %v3524_v11 = vor.u32 %v3522_v6, %v3521_v16  ;;  %v3525_v61 = vrot.slane %v3521_v16, 4  ;;  %v3667_v16 = vld [vmem:[#allocation2 + $0x84] sm:$0x1] }
 0x214   : > { %v3889_v2 = vor.u32 %v3888_v10, %v3885_v7  ;;  %v3529_v29 = vrot.slane %v3527_v49, 7  ;;  %17723 = vmatmul.mubr.msk.bf16.gmra.mrb[4].mxu0 %vm860_vm15, %v16073_v36  ;;  %v20767_v13 = vld [vmem:[#allocation2 + $0x60] sm:$0xf]  ;;  %v3535_v44 = vshrl.u32 %v17033_v37, 16  ;;  %vm15706_vm3 = vcmask (%p3338_p0), 195712  }
 0x215   : > { %v3653_v1 = vsel %vm20560_vm6, %v3516_v51, %v3652_v42  ;;  %v3656_v53 = vsel %vm20572_vm7, %v3517_v39, %v3655_v40  ;;  %v3659_v43 = vsel %vm20560_vm6, %v3524_v11, %v3658_v14  ;;  %v20775_v15 = vld [vmem:[#allocation2 + $0x64] sm:$0x1]  ;;  %v3897_v32 = vshrl.u32 %v20767_v13, 16 }
 0x216   : > { %v3890_v20 = vrot.slane %v3889_v2, 4  ;;  %v3900_v26 = vshll.u32 %v20767_v13, 16  ;;  %3654 = vst [vmem:[#allocation2 + $0x70] sm:$0xf] %v3653_v1  ;;  %3657 = vst [vmem:[#allocation2 + $0x74] sm:$0x1] %v3656_v53  ;;  %v3662_v21 = vsel %vm20572_vm7, %v3525_v61, %v3661_v8  ;;  %v3532_v41 = vor.u32 %v3530_v24, %v3529_v29 }
 0x217   : > { %3660 = vst [vmem:[#allocation2 + $0x78] sm:$0xf] %v3659_v43  ;;  %v20781_v6 = vld [vmem:[#allocation2 + $0x68] sm:$0xf]  ;;  %v3906_v58 = vshll.u32 %v20775_v15, 16  ;;  %v3533_v62 = vrot.slane %v3529_v29, 4 }
 0x218   : > { %v20783_v50 = vld [vmem:[#allocation2 + $0x6c] sm:$0x1]  ;;  %3663 = vst [vmem:[#allocation2 + $0x7c] sm:$0x1] %v3662_v21  ;;  %v3895_v42 = vsel %vm19572_vm14, %v3890_v20, %v3894_v23  ;;  %v3899_v40 = vrot.slane %v3897_v32, 4  ;;  %v3902_v14 = vrot.slane %v3900_v26, 5  ;;  %v3665_v11 = vsel %vm20560_vm6, %v3532_v41, %v3664_v56 }
 0x219   : > { %v3911_v5 = vshrl.u32 %v20781_v6, 16  ;;  %v16074_v8 = vcombine.low %v3881_v27, %v3895_v42  ;;  %v3908_v49 = vrot.slane %v3906_v58, 5  ;;  %v3914_v54 = vshll.u32 %v20781_v6, 16  ;;  %3666 = vst [vmem:[#allocation2 + $0x80] sm:$0xf] %v3665_v11 }
 0x21a   : > { %v3920_v7 = vshll.u32 %v20783_v50, 16  ;;  %v3903_v10 = vor.u32 %v3902_v14, %v3899_v40  ;;  %v3537_v51 = vrot.slane %v3535_v44, 7  ;;  %v3538_v23 = vshll.u32 %v17033_v37, 16 }
 0x21b   : > { %v3913_v36 = vrot.slane %v3911_v5, 4  ;;  %17726 = vmatprep.mubr.msk.bf16.mxu0 %vm860_vm15, %v16074_v8  ;;  %v3916_v39 = vrot.slane %v3914_v54, 5  ;;  %v3668_v2 = vsel %vm20572_vm7, %v3533_v62, %v3667_v16  ;;  %v3673_v62 = vld [vmem:[#allocation2 + $0x8c] sm:$0x1]  ;;  %vm15713_vm5 = vcmask (%p3338_p0), 261312  }
 0x21c   : > { %v3904_v63 = vrot.slane %v3903_v10, 4  ;;  %v3922_v27 = vrot.slane %v3920_v7, 5  ;;  %v3540_v61 = vor.u32 %v3538_v23, %v3537_v51  ;;  %v3541_v29 = vrot.slane %v3537_v51, 4  ;;  %3669 = vst [vmem:[#allocation2 + $0x84] sm:$0x1] %v3668_v2 }
 0x21d   : > { %v3917_v24 = vor.u32 %v3916_v39, %v3913_v36  ;;  %v20801_v1 = vld [vmem:[#allocation2 + $0x70] sm:$0xf]  ;;  %v20805_v53 = vld [vmem:[#allocation2 + $0x74] sm:$0x1]  ;;  %vm15720_vm9 = vcmask (%p3338_p0), 326912   ;;  %vm15727_vm10 = vcmask (%p3338_p0), 392512  }
 0x21e   : > { %v20803_v37 = vld [vmem:[#allocation2 + $0x78] sm:$0xf]  ;;  %v3909_v43 = vsel %vm19572_vm14, %v3904_v63, %v3908_v49  ;;  %v3925_v20 = vshrl.u32 %v20801_v1, 16  ;;  %v3928_v32 = vshll.u32 %v20801_v1, 16  ;;  %v3934_v26 = vshll.u32 %v20805_v53, 16 }
 0x21f   : > { %v20809_v44 = vld [vmem:[#allocation2 + $0x7c] sm:$0x1]  ;;  %v3918_v21 = vrot.slane %v3917_v24, 4  ;;  %v3939_v56 = vshrl.u32 %v20803_v37, 16  ;;  %v3942_v58 = vshll.u32 %v20803_v37, 16  ;;  %v3671_v14 = vsel %vm20560_vm6, %v3540_v61, %v3670_v4 }
 0x220   : > { %v3948_v41 = vshll.u32 %v20809_v44, 16  ;;  %v3927_v42 = vrot.slane %v3925_v20, 4  ;;  %v3930_v40 = vrot.slane %v3928_v32, 5  ;;  %3672 = vst [vmem:[#allocation2 + $0x88] sm:$0xf] %v3671_v14  ;;  %v3936_v7 = vrot.slane %v3934_v26, 5 }
 0x221   : > { %v3923_v5 = vsel %vm19572_vm14, %v3918_v21, %v3922_v27  ;;  %v3941_v16 = vrot.slane %v3939_v56, 4  ;;  %v3944_v8 = vrot.slane %v3942_v58, 5  ;;  %v3674_v10 = vsel %vm20572_vm7, %v3541_v29, %v3673_v62  ;;  %v20823_v23 = vld [vmem:[#allocation2 + $0x80] sm:$0xf] }
 0x222   : > { %v16075_v49 = vcombine.low %v3909_v43, %v3923_v5  ;;  %v3931_v54 = vor.u32 %v3930_v40, %v3927_v42  ;;  %v3950_v51 = vrot.slane %v3948_v41, 5  ;;  %3675 = vst [vmem:[#allocation2 + $0x8c] sm:$0x1] %v3674_v10  ;;  %v3953_v2 = vshrl.u32 %v20823_v23, 16 }
 0x223   : > { %v3945_v36 = vor.u32 %v3944_v8, %v3941_v16  ;;  %v20825_v39 = vld [vmem:[#allocation2 + $0x84] sm:$0x1]  ;;  %v3956_v4 = vshll.u32 %v20823_v23, 16  ;;  %vm15734_vm11 = vcmask (%p3338_p0), 458112   ;;  %vm15741_vm12 = vcmask (%p3338_p0), 523712  }
 0x224   : > { %17727 = vmatmul.mubr.msk.bf16.gmra.mrb[8].mxu0 %vm860_vm15, %v16075_v49  ;;  %v3932_v11 = vrot.slane %v3931_v54, 4  ;;  %v3955_v61 = vrot.slane %v3953_v2, 4  ;;  %v3962_v24 = vshll.u32 %v20825_v39, 16  ;;  %vm15782_vm13 = vcmask (%p3338_p0), 1041409  }
 0x225   : > { %v3946_v63 = vrot.slane %v3945_v36, 4  ;;  %v3958_v29 = vrot.slane %v3956_v4, 5  ;;  %v3349_v36 = vld [vmem:[#allocation3 + $0x38] sm:$0xff]  ;;  %v16089_v4 = vcombine.low %v20630_v0, %v20632_v47  ;;  %v20860_v0 = vld [vmem:[%s20568_s0 + $0x30] sm:$0xff]  }
 0x226   : > { %v3937_v27 = vsel %vm19572_vm14, %v3932_v11, %v3936_v7  ;;  %v3964_v41 = vrot.slane %v3962_v24, 5  ;;  %v16088_v7 = vcombine.low %v20551_v25, %v20608_v22  ;;  %v17026_v11 = vpack.c.bf16 %v3349_v36, %v3349_v36  ;;  %v19154_v22 = vld [vmem:[%s20568_s0 + $0x28] sm:$0xff]   ;;  %v4314_v36 = vld [vmem:[#allocation2 + $0x20] sm:$0xe] }
 0x227   : > { %v3951_v43 = vsel %vm19572_vm14, %v3946_v63, %v3950_v51  ;;  %v20835_v32 = vld [vmem:[#allocation2 + $0x88] sm:$0xf]  ;;  %v3959_v26 = vor.u32 %v3958_v29, %v3955_v61  ;;  %v3357_v51 = vld [vmem:[#allocation3 + $0x78] sm:$0xff]  ;;  %v16090_v29 = vcombine.low %v20649_v19, %v20664_v38  ;;  %v16091_v38 = vcombine.low %v20675_v28, %v20724_v33  ;;  %v4310_v33 = vld [vmem:[#allocation2] sm:$0xe] }
 0x228   : > { %v16076_v20 = vcombine.low %v3937_v27, %v3951_v43  ;;  %v3967_v21 = vshrl.u32 %v20835_v32, 16  ;;  %v3970_v56 = vshll.u32 %v20835_v32, 16  ;;  %v17034_v2 = vpack.c.bf16 %v3357_v51, %v3357_v51 }
 0x229   : > { %v20840_v58 = vld [vmem:[#allocation2 + $0x8c] sm:$0x1]  ;;  %v3960_v62 = vrot.slane %v3959_v26, 4  ;;  %v3479_v63 = vshrl.u32 %v17026_v11, 16  ;;  %v3482_v27 = vshll.u32 %v17026_v11, 16 }
 0x22a   : > { %17730 = vmatprep.mubr.msk.bf16.mxu0 %vm860_vm15, %v16076_v20  ;;  %v3969_v42 = vrot.slane %v3967_v21, 4  ;;  %v3972_v40 = vrot.slane %v3970_v56, 5  ;;  %v3976_v14 = vshll.u32 %v20840_v58, 16  ;;  %v3543_v61 = vshrl.u32 %v17034_v2, 16  ;;  %v3628_v20 = vld [vmem:[#allocation2 + $0x40] sm:$0xf] }
 0x22b   : > { %v3965_v8 = vsel %vm19572_vm14, %v3960_v62, %v3964_v41  ;;  %v3546_v25 = vshll.u32 %v17034_v2, 16  ;;  %v3481_v24 = vrot.slane %v3479_v63, 7  ;;  %v3676_v26 = vld [vmem:[#allocation2 + $0x90] sm:$0xf]  ;;  %v16092_v41 = vcombine.low %v20606_v17, %v20751_v45 }
 0x22c   : > { %v3973_v5 = vor.u32 %v3972_v40, %v3969_v42  ;;  %v3978_v16 = vrot.slane %v3976_v14, 5  ;;  %v3545_v43 = vrot.slane %v3543_v61, 7  ;;  %v3631_v42 = vld [vmem:[#allocation2 + $0x44] sm:$0x1]  ;;  %v3679_v40 = vld [vmem:[#allocation2 + $0x94] sm:$0x1]  ;;  %v16093_v17 = vcombine.low %v20767_v13, %v20781_v6 }
 0x22d   : > { %v3484_v21 = vor.u32 %v3482_v27, %v3481_v24  ;;  %v16094_v45 = vcombine.low %v20801_v1, %v20803_v37  ;;  %v4312_v13 = vld [vmem:[#allocation2 + $0x10] sm:$0xe]  ;;  %v4313_v6 = vld [vmem:[#allocation2 + $0x18] sm:$0xe]  ;;  %v4315_v1 = vld [vmem:[#allocation2 + $0x28] sm:$0xe]  ;;  %v16095_v37 = vcombine.low %v20823_v23, %v20835_v32 }
 0x22e   : > { %v3974_v49 = vrot.slane %v3973_v5, 4  ;;  %v3548_v56 = vor.u32 %v3546_v25, %v3545_v43  ;;  %v3549_v62 = vrot.slane %v3545_v43, 4  ;;  %v4311_v5 = vld [vmem:[#allocation2 + $0x8] sm:$0xe]  ;;  %v16108_v11 = vrot.slane %v4312_v13, 9 }
 0x22f   : > { %v3629_v47 = vsel %vm20560_vm6, %v3484_v21, %v3628_v20  ;;  %v16109_v2 = vrot.slane %v4313_v6, 9  ;;  %v4376_v63 = vrot.slane %v20653_v35, 5  ;;  %v16111_v27 = vrot.slane %v4315_v1, 9  ;;  %v4319_v25 = vld [vmem:[#allocation2 + $0x58] sm:$0xe] }
 0x230   : > { %v3979_v54 = vsel %vm19572_vm14, %v3974_v49, %v3978_v16  ;;  %v3677_v19 = vsel %vm20560_vm6, %v3548_v56, %v3676_v26  ;;  %3630 = vst [vmem:[#allocation2 + $0x40] sm:$0xf] %v3629_v47  ;;  %v3680_v28 = vsel %vm20572_vm7, %v3549_v62, %v3679_v40  ;;  %v4360_v16 = vrot.slane %v20554_v31, 5  ;;  %v4321_v62 = vld [vmem:[#allocation2 + $0x68] sm:$0xe] }
 0x231   : > { %v16077_v10 = vcombine.low %v3965_v8, %v3979_v54  ;;  %3678 = vst [vmem:[#allocation2 + $0x90] sm:$0xf] %v3677_v19  ;;  %3681 = vst [vmem:[#allocation2 + $0x94] sm:$0x1] %v3680_v28  ;;  %v16106_v8 = vrot.slane %v4310_v33, 9  ;;  %v16107_v49 = vrot.slane %v4311_v5, 9 }
 0x232   : > { %v4364_v54 = vrot.slane %v20610_v55, 5  ;;  %v4368_v31 = vrot.slane %v20634_v57, 5  ;;  %v4372_v55 = vrot.slane %v20641_v34, 5  ;;  %v4380_v61 = vrot.slane %v20666_v30, 5  ;;  %v4316_v34 = vld [vmem:[#allocation2 + $0x30] sm:$0xe] }
 0x233   : > { %17731 = vmatmul.mubr.msk.bf16.gmra.mrb[12].mxu0 %vm860_vm15, %v16077_v10  ;;  %v4318_v30 = vld [vmem:[#allocation2 + $0x50] sm:$0xe]  ;;  %v4384_v20 = vrot.slane %v20719_v3, 5  ;;  %v4388_v21 = vrot.slane %v20726_v12, 5  ;;  %v4392_v47 = vrot.slane %v20691_v46, 5  ;;  %v16115_v19 = vrot.slane %v4319_v25, 9 }
 0x234   : > { %17738 = vmatprep.mubr.msk.bf16.mxu0 %vm860_vm15, %v16088_v7  ;;  %v4361_v7 = vsel %vm19788_vm8, %v16106_v8, %v4360_v16  ;;  %v4365_v10 = vsel %vm19788_vm8, %v16107_v49, %v4364_v54  ;;  %v4369_v57 = vsel %vm19788_vm8, %v16108_v11, %v4368_v31  ;;  %v4373_v23 = vsel %vm19788_vm8, %v16109_v2, %v4372_v55  ;;  %v4322_v40 = vld [vmem:[#allocation2 + $0x70] sm:$0xe]  ;;  %v4325_v13 = vld [vmem:[#allocation2 + $0x88] sm:$0xe] }
 0x235   : > { %v16122_v51 = vcombine.low %v4361_v7, %v4365_v10  ;;  %v4381_v35 = vsel %vm19788_vm8, %v16111_v27, %v4380_v61  ;;  %v16114_v56 = vrot.slane %v4318_v30, 9  ;;  %v4400_v33 = vrot.slane %v20775_v15, 5  ;;  %v4324_v10 = vld [vmem:[#allocation2 + $0x80] sm:$0xe]  ;;  %v19160_v2 = vld [vmem:[#allocation2 + $0x8] ss:$8 sps:$4 sm:$0xff]  }
 0x236   : > { %v16118_v16 = vrot.slane %v4322_v40, 9  ;;  %v4408_v8 = vrot.slane %v20805_v53, 5  ;;  %v4412_v54 = vrot.slane %v20809_v44, 5  ;;  %v16120_v6 = vrot.slane %v4324_v10, 9  ;;  %v4804_v27 = vld [vmem:[#allocation2 + $0x18] sm:$0xf] }
 0x237   : > { %v4393_v46 = vsel %vm19788_vm8, %v16114_v56, %v4392_v47  ;;  %v16121_v31 = vrot.slane %v4325_v13, 9  ;;  %v19162_v61 = vld [vmem:[#allocation2 + $0x18] ss:$8 sps:$4 sm:$0xff]   ;;  %v4861_v30 = vshrl.u32 %v4804_v27, 16  ;;  %v4864_v25 = vshll.u32 %v4804_v27, 16 }
 0x23b   : > { %17739 = vmatmul.mubr.msk.bf16.vlgmr.msra.gmra.mrb[0].mxu0 %vm860_vm15, %v16089_v4  ;;  %v16110_v4 = vrot.slane %v4314_v36, 9  ;;  %v4416_v36 = vrot.slane %v20825_v39, 5  ;;  %v4802_v39 = vld [vmem:[#allocation2 + $0x10] sm:$0xf] }
 0x23c   : > { %17755 = vmatpush3.bf16.msra.mxu0 %v20709_v9  ;;  %17742 = vmatprep.mubr.msk.bf16.mxu0 %vm860_vm15, %v16090_v29  ;;  %v3485_v9 = vrot.slane %v3481_v24, 4  ;;  %v4317_v29 = vld [vmem:[#allocation2 + $0x38] sm:$0xe]  ;;  %v16112_v24 = vrot.slane %v4316_v34, 9  ;;  %v4847_v34 = vshrl.u32 %v4802_v39, 16 }
 0x23d   : > { %17756 = vmatprep.subr.bf16.mxu0 %v19154_v22  ;;  %v4377_v32 = vsel %vm19788_vm8, %v16110_v4, %v4376_v63  ;;  %v16113_v26 = vrot.slane %v4317_v29, 9  ;;  %v4417_v55 = vsel %vm19788_vm8, %v16120_v6, %v4416_v36  ;;  %v4800_v4 = vld [vmem:[#allocation2 + $0x8] sm:$0xf]  ;;  %v4816_v6 = vld [vmem:[#allocation2 + $0x58] sm:$0xf] }
 0x23e   : > { %v3632_v14 = vsel %vm20572_vm7, %v3485_v9, %v3631_v42  ;;  %v16124_v43 = vcombine.low %v4377_v32, %v4381_v35  ;;  %v4385_v3 = vsel %vm19788_vm8, %v16112_v24, %v4384_v20  ;;  %v4320_v9 = vld [vmem:[#allocation2 + $0x60] sm:$0xe]  ;;  %v4836_v63 = vshll.u32 %v4800_v4, 16 }
 0x23f   : > { %3633 = vst [vmem:[#allocation2 + $0x44] sm:$0x1] %v3632_v14  ;;  %v4389_v12 = vsel %vm19788_vm8, %v16113_v26, %v4388_v21  ;;  %v19161_v42 = vld [vmem:[%s20568_s0 + $0x40] sm:$0xff]   ;;  %v16116_v28 = vrot.slane %v4320_v9, 9  ;;  %v4850_v32 = vshll.u32 %v4802_v39, 16  ;;  %v4849_v20 = vrot.slane %v4847_v34, 4 }
 0x240   : > { %17757 = vmatpush3.bf16.msra.mxu0 %v19154_v22  ;;  %v16123_v22 = vcombine.low %v4369_v57, %v4373_v23  ;;  %v16125_v14 = vcombine.low %v4385_v3, %v4389_v12  ;;  %v19163_v57 = vld [vmem:[#allocation2 + $0x28] ss:$8 sps:$4 sm:$0xff]   ;;  %v4838_v29 = vrot.slane %v4836_v63, 5  ;;  %v4806_v24 = vld [vmem:[#allocation2 + $0x20] sm:$0xf] }
 0x241   : > { %17774 = vmatprep.subr.bf16.mxu0 %v20860_v0  ;;  %v4401_v7 = vsel %vm19788_vm8, %v16116_v28, %v4400_v33  ;;  %v19166_v23 = vld [vmem:[%s20568_s0 + $0x48] sm:$0xff]   ;;  %v4852_v26 = vrot.slane %v4850_v32, 5  ;;  %v19165_v3 = vld [vmem:[#allocation2 + $0x58] ss:$8 sps:$4 sm:$0xff]   ;;  %v20957_v12 = vld [vmem:[#allocation2 + $0x1c] sm:$0x1] }
 0x242   : > { %v4808_v21 = vld [vmem:[#allocation2 + $0x28] sm:$0xf]  ;;  %v4875_v9 = vshrl.u32 %v4806_v24, 16  ;;  %v20960_v28 = vld [vmem:[#allocation2 + $0x24] sm:$0x1] }
 0x243   : > { %17743 = vmatmul.mubr.msk.bf16.gmra.mrb[4].mxu0 %vm860_vm15, %v16091_v38  ;;  %v4396_v38 = vrot.slane %v20753_v18, 5  ;;  %v4892_v40 = vshll.u32 %v4808_v21, 16  ;;  %v4812_v33 = vld [vmem:[#allocation2 + $0x38] sm:$0xf]  ;;  %v20985_v34 = vld [vmem:[#allocation2 + $0x3c] sm:$0x1] }
 0x244   : > { %17746 = vmatprep.mubr.msk.bf16.mxu0 %vm860_vm15, %v16092_v41  ;;  %v19159_v41 = vld [vmem:[%s20568_s0 + $0x38] sm:$0xff]   ;;  %v4917_v13 = vshrl.u32 %v4812_v33, 16 }
 0x245   : > { %v4397_v18 = vsel %vm19788_vm8, %v16115_v19, %v4396_v38  ;;  %v20955_v19 = vld [vmem:[%s20568_s0 + $0x50] sm:$0xff]   ;;  %v4863_v38 = vrot.slane %v4861_v30, 4 }
 0x246   : > { %v16126_v5 = vcombine.low %v4393_v46, %v4397_v18  ;;  %v4878_v46 = vshll.u32 %v4806_v24, 16  ;;  %v19164_v18 = vld [vmem:[#allocation2 + $0x38] ss:$8 sps:$4 sm:$0xff]   ;;  %v4919_v32 = vrot.slane %v4917_v13, 4  ;;  %v4945_v24 = vshrl.u32 %v4816_v6, 16 }
 0x24b   : > { %17747 = vmatmul.mubr.msk.bf16.gmra.mrb[8].mxu0 %vm860_vm15, %v16093_v17  ;;  %v16117_v17 = vrot.slane %v4321_v62, 9  ;;  %v4810_v62 = vld [vmem:[#allocation2 + $0x30] sm:$0xf] }
 0x24c   : > { %17750 = vmatprep.mubr.msk.bf16.mxu0 %vm860_vm15, %v16094_v45  ;;  %v4404_v45 = vrot.slane %v20783_v50, 5  ;;  %v4409_v50 = vsel %vm19788_vm8, %v16118_v16, %v4408_v8  ;;  %v4870_v16 = vshll.u32 %v20957_v12, 16  ;;  %v20968_v8 = vld [vmem:[#allocation2 + $0x2c] sm:$0x1]  ;;  %v4906_v10 = vshll.u32 %v4810_v62, 16 }
 0x24e   : > { %v4405_v15 = vsel %vm19788_vm8, %v16117_v17, %v4404_v45  ;;  %v4908_v27 = vrot.slane %v4906_v10, 5 }
 0x24f   : > { %v16127_v44 = vcombine.low %v4401_v7, %v4405_v15  ;;  %v20970_v7 = vld [vmem:[#allocation2 + $0x34] sm:$0x1]  ;;  %v4903_v15 = vshrl.u32 %v4810_v62, 16 }
 0x251   : > { %v4905_v63 = vrot.slane %v4903_v15, 4  ;;  %v19169_v15 = vld [vmem:[#allocation2 + $0x88] ss:$8 sps:$4 sm:$0xff]  }
 0x253   : > { %17751 = vmatmul.mubr.msk.bf16.gmra.mrb[12].mxu0 %vm860_vm15, %v16095_v37  ;;  %v4420_v37 = vrot.slane %v20840_v58, 5  ;;  %v4833_v58 = vshrl.u32 %v4800_v4, 16  ;;  %v19168_v4 = vld [vmem:[#allocation2 + $0x78] ss:$8 sps:$4 sm:$0xff]  }
 0x254   : > { %17758 = vmatprep.mubr.msk.bf16.mxu0 %vm860_vm15, %v16122_v51 }
 0x255   : > { %v4421_v51 = vsel %vm19788_vm8, %v16121_v31, %v4420_v37  ;;  %v4835_v35 = vrot.slane %v4833_v58, 4  ;;  %v4884_v31 = vshll.u32 %v20960_v28, 16  ;;  %v19167_v37 = vld [vmem:[#allocation2 + $0x68] ss:$8 sps:$4 sm:$0xff]   ;;  %v4898_v58 = vshll.u32 %v20968_v8, 16 }
 0x256   : > { %v16129_v11 = vcombine.low %v4417_v55, %v4421_v51 }
 0x257   : > { %v4839_v56 = vor.u32 %v4838_v29, %v4835_v35 }
 0x25b   : > { %17759 = vmatmul.mubr.msk.bf16.vlgmr.msra.gmra.mrb[0].mxu0 %vm860_vm15, %v16123_v22  ;;  %v20947_v22 = vld [vmem:[#allocation2 + $0xc] sm:$0x1] }
 0x25c   : > { %17775 = vmatpush3.bf16.msra.mxu0 %v20860_v0  ;;  %17762 = vmatprep.mubr.msk.bf16.mxu0 %vm860_vm15, %v16124_v43  ;;  %v4323_v0 = vld [vmem:[#allocation2 + $0x78] sm:$0xe]  ;;  %v20951_v43 = vld [vmem:[#allocation2 + $0x14] sm:$0x1]  ;;  %v4842_v47 = vshll.u32 %v20947_v22, 16 }
 0x25d   : > { %17776 = vmatprep.subr.bf16.mxu0 %v19159_v41  ;;  %v16119_v49 = vrot.slane %v4323_v0, 9  ;;  %v4853_v0 = vor.u32 %v4852_v26, %v4849_v20  ;;  %v4948_v20 = vshll.u32 %v4816_v6, 16 }
 0x25e   : > { %v20964_v17 = vrot.slane %v4842_v47, 5 }
 0x25f   : > { %v4413_v53 = vsel %vm19788_vm8, %v16119_v49, %v4412_v54  ;;  %v4877_v49 = vrot.slane %v4875_v9, 4  ;;  %v4880_v54 = vrot.slane %v4878_v46, 5  ;;  %v4854_v36 = vrot.slane %v4853_v0, 4 }
 0x260   : > { %17777 = vmatpush3.bf16.msra.mxu0 %v19159_v41  ;;  %v16128_v1 = vcombine.low %v4409_v50, %v4413_v53  ;;  %v4866_v41 = vrot.slane %v4864_v25, 5  ;;  %v4894_v53 = vrot.slane %v4892_v40, 5  ;;  %v20987_v25 = vld [vmem:[#allocation2 + $0x5c] sm:$0x1]  ;;  %v4909_v9 = vor.u32 %v4908_v27, %v4905_v63 }
 0x261   : > { %17794 = vmatprep.subr.bf16.mxu0 %v19161_v42  ;;  %v4881_v39 = vor.u32 %v4880_v54, %v4877_v49  ;;  %v4926_v46 = vshll.u32 %v20985_v34, 16  ;;  %v4954_v0 = vshll.u32 %v20987_v25, 16  ;;  %v21009_v49 = vld [vmem:[#allocation2 + $0x6c] sm:$0x1]  ;;  %v4824_v54 = vld [vmem:[#allocation2 + $0x78] sm:$0xf] }
 0x262   : > { %v4867_v45 = vor.u32 %v4866_v41, %v4863_v38 }
 0x263   : > { %17763 = vmatmul.mubr.msk.bf16.gmra.mrb[4].mxu0 %vm860_vm15, %v16125_v14  ;;  %v4856_v14 = vshll.u32 %v20951_v43, 16  ;;  %v20995_v41 = vrot.slane %v4881_v39, 4  ;;  %v21027_v39 = vld [vmem:[#allocation2 + $0x74] sm:$0x1] }
 0x264   : > { %17766 = vmatprep.mubr.msk.bf16.mxu0 %vm860_vm15, %v16126_v5  ;;  %v20962_v5 = vrot.slane %v4839_v56, 4  ;;  %v20979_v51 = vrot.slane %v4867_v45, 4  ;;  %v20993_v56 = vld [vmem:[#allocation2 + $0x64] sm:$0x1]  ;;  %v4947_v45 = vrot.slane %v4945_v24, 4 }
 0x266   : > { %v4845_v55 = vsel %vm19572_vm14, %v20962_v5, %v20964_v17 }
 0x26b   : > { %17767 = vmatmul.mubr.msk.bf16.gmra.mrb[8].mxu0 %vm860_vm15, %v16127_v44  ;;  %v4920_v44 = vshll.u32 %v4812_v33, 16  ;;  %v21007_v33 = vld [vmem:[#allocation2 + $0x44] sm:$0x1] }
 0x26c   : > { %17770 = vmatprep.mubr.msk.bf16.mxu0 %vm860_vm15, %v16128_v1  ;;  %v4858_v1 = vrot.slane %v4856_v14, 5  ;;  %v4822_v14 = vld [vmem:[#allocation2 + $0x70] sm:$0xf] }
 0x26d   : > { %v4922_v35 = vrot.slane %v4920_v44, 5  ;;  %v4826_v44 = vld [vmem:[#allocation2 + $0x80] sm:$0xf]  ;;  %v4990_v63 = vshll.u32 %v4822_v14, 16 }
 0x26e   : > { %v4859_v26 = vsel %vm19572_vm14, %v4854_v36, %v4858_v1  ;;  %v4910_v36 = vrot.slane %v4909_v9, 4  ;;  %v21019_v1 = vrot.slane %v4926_v46, 5  ;;  %v5015_v24 = vshrl.u32 %v4826_v44, 16 }
 0x26f   : > { %v4923_v40 = vor.u32 %v4922_v35, %v4919_v32  ;;  %v16158_v10 = vcombine.low %v4845_v55, %v4859_v26  ;;  %v21024_v55 = vrot.slane %v4954_v0, 5  ;;  %v5001_v32 = vshrl.u32 %v4824_v54, 16 }
 0x270   : > { %v4992_v46 = vrot.slane %v4990_v63, 5  ;;  %v4996_v0 = vshll.u32 %v21027_v39, 16 }
 0x273   : > { %17771 = vmatmul.mubr.msk.bf16.gmra.mrb[12].mxu0 %vm860_vm15, %v16129_v11  ;;  %v20981_v11 = vrot.slane %v4870_v16, 5  ;;  %v4950_v16 = vrot.slane %v4948_v20, 5 }
 0x274   : > { %17778 = vmatprep.mubr.msk.bf16.mxu0 %vm860_vm15, %v19160_v2  ;;  %v4814_v2 = vld [vmem:[#allocation2 + $0x40] sm:$0xf] }
 0x275   : > { %v4931_v29 = vshrl.u32 %v4814_v2, 16  ;;  %v4934_v30 = vshll.u32 %v4814_v2, 16  ;;  %v4951_v27 = vor.u32 %v4950_v16, %v4947_v45  ;;  %v5017_v16 = vrot.slane %v5015_v24, 4 }
 0x277   : > { %v4933_v5 = vrot.slane %v4931_v29, 4  ;;  %v4936_v17 = vrot.slane %v4934_v30, 5  ;;  %v5004_v30 = vshll.u32 %v4824_v54, 16 }
 0x27b   : > { %17779 = vmatmul.mubr.msk.bf16.vlgmr.msra.gmra.mrb[0].mxu0 %vm860_vm15, %v19162_v61  ;;  %v4818_v61 = vld [vmem:[#allocation2 + $0x60] sm:$0xf] }
 0x27c   : > { %17795 = vmatpush3.bf16.msra.mxu0 %v19161_v42  ;;  %17782 = vmatprep.mubr.msk.bf16.mxu0 %vm860_vm15, %v19163_v57  ;;  %v4889_v42 = vshrl.u32 %v4808_v21, 16  ;;  %v20991_v21 = vrot.slane %v4884_v31, 5  ;;  %v4959_v47 = vshrl.u32 %v4818_v61, 16  ;;  %v4962_v38 = vshll.u32 %v4818_v61, 16 }
 0x27d   : > { %17796 = vmatprep.subr.bf16.mxu0 %v19166_v23  ;;  %v4968_v31 = vshll.u32 %v20993_v56, 16 }
 0x27e   : > { %v4891_v50 = vrot.slane %v4889_v42, 4  ;;  %v4964_v13 = vrot.slane %v4962_v38, 5  ;;  %v4887_v6 = vsel %vm19572_vm14, %v20995_v41, %v20991_v21  ;;  %v5018_v38 = vshll.u32 %v4826_v44, 16 }
 0x27f   : > { %v4970_v20 = vrot.slane %v4968_v31, 5 }
 0x280   : > { %17797 = vmatpush3.bf16.msra.mxu0 %v19166_v23  ;;  %v4895_v57 = vor.u32 %v4894_v53, %v4891_v50  ;;  %v4912_v23 = vshll.u32 %v20970_v7, 16  ;;  %v4873_v50 = vsel %vm19572_vm14, %v20979_v51, %v20981_v11  ;;  %v4961_v53 = vrot.slane %v4959_v47, 4  ;;  %v21040_v47 = vld [vmem:[#allocation2 + $0x84] sm:$0x1] }
 0x281   : > { %17814 = vmatprep.subr.bf16.mxu0 %v20955_v19  ;;  %v4937_v51 = vor.u32 %v4936_v17, %v4933_v5  ;;  %v4940_v11 = vshll.u32 %v21007_v33, 16  ;;  %v5003_v5 = vrot.slane %v5001_v32, 4  ;;  %v5006_v17 = vrot.slane %v5004_v30, 5 }
 0x282   : > { %v21001_v62 = vrot.slane %v4895_v57, 4  ;;  %v21003_v42 = vrot.slane %v4912_v23, 5  ;;  %v4965_v61 = vor.u32 %v4964_v13, %v4961_v53  ;;  %v4982_v57 = vshll.u32 %v21009_v49, 16  ;;  %v21030_v23 = vld [vmem:[#allocation2 + $0x7c] sm:$0x1] }
 0x283   : > { %17783 = vmatmul.mubr.msk.bf16.gmra.mrb[4].mxu0 %vm860_vm15, %v19164_v18  ;;  %v4820_v18 = vld [vmem:[#allocation2 + $0x68] sm:$0xf]  ;;  %v4938_v41 = vrot.slane %v4937_v51, 4  ;;  %v4942_v9 = vrot.slane %v4940_v11, 5  ;;  %v5010_v45 = vshll.u32 %v21030_v23, 16  ;;  %v16159_v54 = vcombine.low %v4873_v50, %v4887_v6 }
 0x284   : > { %17786 = vmatprep.mubr.msk.bf16.mxu0 %vm860_vm15, %v19165_v3  ;;  %v20997_v3 = vrot.slane %v4898_v58, 5  ;;  %v4973_v2 = vshrl.u32 %v4820_v18, 16  ;;  %v4987_v58 = vshrl.u32 %v4822_v14, 16  ;;  %v4915_v29 = vsel %vm19572_vm14, %v4910_v36, %v21003_v42  ;;  %v4830_v14 = vld [vmem:[#allocation2 + $0x90] sm:$0xf] }
 0x285   : > { %v4966_v42 = vrot.slane %v4965_v61, 4  ;;  %v5020_v53 = vrot.slane %v5018_v38, 5  ;;  %v5024_v13 = vshll.u32 %v21040_v47, 16  ;;  %v5046_v51 = vshll.u32 %v4830_v14, 16 }
 0x286   : > { %v4901_v35 = vsel %vm19572_vm14, %v21001_v62, %v20997_v3  ;;  %v4975_v26 = vrot.slane %v4973_v2, 4  ;;  %v4989_v3 = vrot.slane %v4987_v58, 4  ;;  %v4952_v62 = vrot.slane %v4951_v27, 4 }
 0x287   : > { %v16160_v44 = vcombine.low %v4901_v35, %v4915_v29  ;;  %v4943_v50 = vsel %vm19572_vm14, %v4938_v41, %v4942_v9  ;;  %v4971_v58 = vsel %vm19572_vm14, %v4966_v42, %v4970_v20  ;;  %v4998_v27 = vrot.slane %v4996_v0, 5  ;;  %v21062_v35 = vld [vmem:[%s20568_s0 + $0x60] sm:$0xff]  }
 0x288   : > { %v4993_v36 = vor.u32 %v4992_v46, %v4989_v3  ;;  %v4957_v6 = vsel %vm19572_vm14, %v4952_v62, %v21024_v55  ;;  %v5012_v61 = vrot.slane %v5010_v45, 5  ;;  %v5026_v32 = vrot.slane %v5024_v13, 5 }
 0x289   : > { %v5048_v24 = vrot.slane %v5046_v51, 5  ;;  %v16162_v38 = vcombine.low %v4957_v6, %v4971_v58  ;;  %v5279_v13 = vrot.slane %v20947_v22, 5 }
 0x28b   : > { %17787 = vmatmul.mubr.msk.bf16.gmra.mrb[8].mxu0 %vm860_vm15, %v19167_v37  ;;  %v21022_v37 = vrot.slane %v4923_v40, 4  ;;  %v4984_v40 = vrot.slane %v4982_v57, 5  ;;  %v5021_v57 = vor.u32 %v5020_v53, %v5017_v16 }
 0x28c   : > { %17790 = vmatprep.mubr.msk.bf16.mxu0 %vm860_vm15, %v19168_v4  ;;  %v4976_v4 = vshll.u32 %v4820_v18, 16  ;;  %v4828_v18 = vld [vmem:[#allocation2 + $0x88] sm:$0xf] }
 0x28d   : > { %v5029_v31 = vshrl.u32 %v4828_v18, 16  ;;  %v5032_v2 = vshll.u32 %v4828_v18, 16  ;;  %v4929_v11 = vsel %vm19572_vm14, %v21022_v37, %v21019_v1  ;;  %v4994_v1 = vrot.slane %v4993_v36, 4 }
 0x28e   : > { %v4978_v21 = vrot.slane %v4976_v4, 5  ;;  %v5043_v4 = vshrl.u32 %v4830_v14, 16  ;;  %v5007_v37 = vor.u32 %v5006_v17, %v5003_v5  ;;  %v16161_v20 = vcombine.low %v4929_v11, %v4943_v50  ;;  %v5229_v5 = vld [vmem:[#allocation2 + $0x8] sm:$0xe]  ;;  %v5230_v17 = vld [vmem:[#allocation2 + $0x10] sm:$0xe] }
 0x28f   : > { %v5031_v55 = vrot.slane %v5029_v31, 4  ;;  %v5034_v29 = vrot.slane %v5032_v2, 5  ;;  %v5022_v41 = vrot.slane %v5021_v57, 4  ;;  %v4999_v46 = vsel %vm19572_vm14, %v4994_v1, %v4998_v27  ;;  %v5232_v11 = vld [vmem:[#allocation2 + $0x20] sm:$0xe] }
 0x290   : > { %v5045_v30 = vrot.slane %v5043_v4, 4  ;;  %v16176_v53 = vrot.slane %v5229_v5, 9  ;;  %v5283_v36 = vrot.slane %v20951_v43, 5  ;;  %v5231_v4 = vld [vmem:[#allocation2 + $0x18] sm:$0xe]  ;;  %v5287_v27 = vrot.slane %v20957_v12, 5 }
 0x291   : > { %v5035_v18 = vor.u32 %v5034_v29, %v5031_v55  ;;  %v5027_v14 = vsel %vm19572_vm14, %v5022_v41, %v5026_v32  ;;  %v5233_v50 = vld [vmem:[#allocation2 + $0x28] sm:$0xe]  ;;  %v5234_v43 = vld [vmem:[#allocation2 + $0x30] sm:$0xe]  ;;  %v16178_v58 = vrot.slane %v5231_v4, 9  ;;  %v5291_v1 = vrot.slane %v20960_v28, 5 }
 0x292   : > { %v5049_v62 = vor.u32 %v5048_v24, %v5045_v30  ;;  %v5280_v51 = vsel %vm19788_vm8, %v16176_v53, %v5279_v13  ;;  %v5295_v57 = vrot.slane %v20968_v8, 5  ;;  %v16181_v32 = vrot.slane %v5234_v43, 9  ;;  %v5235_v12 = vld [vmem:[#allocation2 + $0x38] sm:$0xe]  ;;  %v5236_v24 = vld [vmem:[#allocation2 + $0x40] sm:$0xe] }
 0x293   : > { %17791 = vmatmul.mubr.msk.bf16.gmra.mrb[12].mxu0 %vm860_vm15, %v19169_v15  ;;  %v19171_v15 = vld [vmem:[%s20568_s0 + $0x58] sm:$0xff]   ;;  %v5299_v55 = vrot.slane %v20970_v7, 5  ;;  %v5288_v29 = vsel %vm19788_vm8, %v16178_v58, %v5287_v27  ;;  %v5239_v5 = vld [vmem:[#allocation2 + $0x68] sm:$0xe]  ;;  %v5323_v13 = vrot.slane %v21027_v39, 5 }
 0x294   : > { %17798 = vmatprep.mubr.msk.bf16.mxu0 %vm860_vm15, %v16158_v10  ;;  %v4979_v10 = vor.u32 %v4978_v21, %v4975_v26  ;;  %v21064_v26 = vld [vmem:[#allocation2 + $0x8c] sm:$0x1]  ;;  %v21066_v21 = vld [vmem:[#allocation2 + $0x94] sm:$0x1]  ;;  %v5237_v7 = vld [vmem:[#allocation2 + $0x58] sm:$0xe] }
 0x295   : > { %v5038_v3 = vshll.u32 %v21064_v26, 16  ;;  %v5052_v42 = vshll.u32 %v21066_v21, 16  ;;  %v5300_v8 = vsel %vm19788_vm8, %v16181_v32, %v5299_v55  ;;  %v5335_v43 = vrot.slane %v21064_v26, 5  ;;  %v5719_v26 = vld [vmem:[#allocation2 + $0x10] sm:$0xf] }
 0x296   : > { %v4980_v63 = vrot.slane %v4979_v10, 4  ;;  %v5339_v58 = vrot.slane %v21066_v21, 5  ;;  %v5752_v21 = vshrl.u32 %v5719_v26, 16  ;;  %v5755_v32 = vshll.u32 %v5719_v26, 16  ;;  %v19177_v55 = vld [vmem:[#allocation2 + $0x30] ss:$8 sps:$4 sm:$0xff]  }
 0x297   : > { %v5040_v45 = vrot.slane %v5038_v3, 5  ;;  %v5054_v10 = vrot.slane %v5052_v42, 5  ;;  %v16183_v3 = vrot.slane %v5236_v24, 9  ;;  %v5735_v26 = vld [vmem:[#allocation2 + $0x60] sm:$0xf] }
 0x298   : > { %v4985_v9 = vsel %vm19572_vm14, %v4980_v63, %v4984_v40  ;;  %v5754_v24 = vrot.slane %v5752_v21, 4 }
 0x299   : > { %v16163_v40 = vcombine.low %v4985_v9, %v4999_v46  ;;  %v5303_v9 = vrot.slane %v20985_v34, 5  ;;  %v5307_v46 = vrot.slane %v21007_v33, 5 }
 0x29b   : > { %17799 = vmatmul.mubr.msk.bf16.vlgmr.msra.gmra.mrb[0].mxu0 %vm860_vm15, %v16159_v54  ;;  %v5036_v54 = vrot.slane %v5035_v18, 4  ;;  %v16184_v18 = vrot.slane %v5237_v7, 9  ;;  %v5308_v33 = vsel %vm19788_vm8, %v16183_v3, %v5307_v46  ;;  %v5757_v7 = vrot.slane %v5755_v32, 5  ;;  %v19178_v46 = vld [vmem:[#allocation2 + $0x40] ss:$8 sps:$4 sm:$0xff]  }
 0x29c   : > { %17815 = vmatpush3.bf16.msra.mxu0 %v20955_v19  ;;  %17802 = vmatprep.mubr.msk.bf16.mxu0 %vm860_vm15, %v16160_v44  ;;  %v5008_v19 = vrot.slane %v5007_v37, 4  ;;  %v16177_v44 = vrot.slane %v5230_v17, 9  ;;  %v16180_v37 = vrot.slane %v5233_v50, 9  ;;  %v5240_v17 = vld [vmem:[#allocation2 + $0x70] sm:$0xe] }
 0x29d   : > { %17816 = vmatprep.subr.bf16.mxu0 %v19171_v15  ;;  %v5041_v31 = vsel %vm19572_vm14, %v5036_v54, %v5040_v45  ;;  %v5241_v45 = vld [vmem:[#allocation2 + $0x78] sm:$0xe]  ;;  %v16186_v54 = vrot.slane %v5239_v5, 9  ;;  %v16187_v53 = vrot.slane %v5240_v17, 9  ;;  %v19179_v5 = vld [vmem:[#allocation2 + $0x60] ss:$8 sps:$4 sm:$0xff]  }
 0x29e   : > { %v5013_v0 = vsel %vm19572_vm14, %v5008_v19, %v5012_v61  ;;  %v5284_v22 = vsel %vm19788_vm8, %v16177_v44, %v5283_v36  ;;  %v16179_v61 = vrot.slane %v5232_v11, 9  ;;  %v5296_v28 = vsel %vm19788_vm8, %v16180_v37, %v5295_v57  ;;  %v19176_v37 = vld [vmem:[#allocation2 + $0x20] ss:$8 sps:$4 sm:$0xff]   ;;  %v5721_v57 = vld [vmem:[#allocation2 + $0x18] sm:$0xf] }
 0x29f   : > { %v16164_v16 = vcombine.low %v5013_v0, %v5027_v14  ;;  %v16192_v63 = vcombine.low %v5280_v51, %v5284_v22  ;;  %v16182_v19 = vrot.slane %v5235_v12, 9  ;;  %v16194_v41 = vcombine.low %v5296_v28, %v5300_v8  ;;  %v19173_v14 = vld [vmem:[%s20568_s0 + $0x68] sm:$0xff]   ;;  %v5244_v22 = vld [vmem:[#allocation2 + $0x90] sm:$0xe]  ;;  %v5729_v17 = vld [vmem:[#allocation2 + $0x38] sm:$0xf] }
 0x2a0   : > { %17817 = vmatpush3.bf16.msra.mxu0 %v19171_v15  ;;  %v5050_v15 = vrot.slane %v5049_v62, 4  ;;  %v5292_v30 = vsel %vm19788_vm8, %v16179_v61, %v5291_v1  ;;  %v5311_v62 = vrot.slane %v20987_v25, 5  ;;  %v5315_v0 = vrot.slane %v20993_v56, 5  ;;  %v5243_v51 = vld [vmem:[#allocation2 + $0x88] sm:$0xe] }
 0x2a1   : > { %17834 = vmatprep.subr.bf16.mxu0 %v21062_v35  ;;  %v5304_v34 = vsel %vm19788_vm8, %v16182_v19, %v5303_v9  ;;  %v16188_v44 = vrot.slane %v5241_v45, 9  ;;  %v5327_v36 = vrot.slane %v21030_v23, 5  ;;  %v16190_v11 = vrot.slane %v5243_v51, 9  ;;  %v19174_v1 = vld [vmem:[#allocation2 + $0x10] ss:$8 sps:$4 sm:$0xff]  }
 0x2a2   : > { %v5055_v2 = vsel %vm19572_vm14, %v5050_v15, %v5054_v10  ;;  %v5312_v25 = vsel %vm19788_vm8, %v16184_v18, %v5311_v62  ;;  %v5319_v10 = vrot.slane %v21009_v49, 5  ;;  %v5324_v49 = vsel %vm19788_vm8, %v16187_v53, %v5323_v13  ;;  %v5725_v8 = vld [vmem:[#allocation2 + $0x28] sm:$0xf] }
 0x2a3   : > { %17803 = vmatmul.mubr.msk.bf16.gmra.mrb[4].mxu0 %vm860_vm15, %v16161_v20  ;;  %v16165_v6 = vcombine.low %v5041_v31, %v5055_v2  ;;  %v5238_v20 = vld [vmem:[#allocation2 + $0x60] sm:$0xe]  ;;  %v5331_v2 = vrot.slane %v21040_v47, 5  ;;  %v5328_v39 = vsel %vm19788_vm8, %v16188_v44, %v5327_v36  ;;  %v5766_v12 = vshrl.u32 %v5721_v57, 16 }
 0x2a4   : > { %17806 = vmatprep.mubr.msk.bf16.mxu0 %vm860_vm15, %v16162_v38  ;;  %v16193_v38 = vcombine.low %v5288_v29, %v5292_v30  ;;  %v16185_v42 = vrot.slane %v5238_v20, 9  ;;  %v5320_v4 = vsel %vm19788_vm8, %v16186_v54, %v5319_v10  ;;  %v19180_v29 = vld [vmem:[%s20568_s0 + $0x78] sm:$0xff]   ;;  %v5723_v30 = vld [vmem:[#allocation2 + $0x20] sm:$0xf]  ;;  %v5769_v28 = vshll.u32 %v5721_v57, 16 }
 0x2a5   : > { %v16197_v47 = vcombine.low %v5320_v4, %v5324_v49  ;;  %v21151_v20 = vld [vmem:[#allocation2 + $0x14] sm:$0x1]  ;;  %v5783_v19 = vshll.u32 %v5723_v30, 16  ;;  %v5794_v9 = vshrl.u32 %v5725_v8, 16  ;;  %v5797_v3 = vshll.u32 %v5725_v8, 16 }
 0x2a6   : > { %v5316_v56 = vsel %vm19788_vm8, %v16185_v42, %v5315_v0  ;;  %v5768_v18 = vrot.slane %v5766_v12, 4  ;;  %v5771_v62 = vrot.slane %v5769_v28, 5  ;;  %v5727_v42 = vld [vmem:[#allocation2 + $0x30] sm:$0xf]  ;;  %v21156_v0 = vld [vmem:[#allocation2 + $0x1c] sm:$0x1] }
 0x2a7   : > { %v16196_v15 = vcombine.low %v5312_v25, %v5316_v56  ;;  %v5785_v56 = vrot.slane %v5783_v19, 5  ;;  %v5796_v45 = vrot.slane %v5794_v9, 4  ;;  %v5811_v54 = vshll.u32 %v5727_v42, 16  ;;  %v19181_v4 = vld [vmem:[#allocation2 + $0x70] ss:$8 sps:$4 sm:$0xff]  }
 0x2a8   : > { %v5775_v10 = vshll.u32 %v21156_v0, 16  ;;  %v5822_v36 = vshrl.u32 %v5729_v17, 16  ;;  %v5867_v19 = vshll.u32 %v5735_v26, 16 }
 0x2ab   : > { %17807 = vmatmul.mubr.msk.bf16.gmra.mrb[8].mxu0 %vm860_vm15, %v16163_v40  ;;  %v19175_v40 = vld [vmem:[%s20568_s0 + $0x70] sm:$0xff]  }
 0x2ac   : > { %17810 = vmatprep.mubr.msk.bf16.mxu0 %vm860_vm15, %v16164_v16  ;;  %v16195_v16 = vcombine.low %v5304_v34, %v5308_v33  ;;  %v5761_v34 = vshll.u32 %v21151_v20, 16  ;;  %v21159_v33 = vld [vmem:[#allocation2 + $0x24] sm:$0x1] }
 0x2ad   : > { %v5789_v53 = vshll.u32 %v21159_v33, 16 }
 0x2ae   : > { %v5763_v44 = vrot.slane %v5761_v34, 5 }
 0x2b3   : > { %17811 = vmatmul.mubr.msk.bf16.gmra.mrb[12].mxu0 %vm860_vm15, %v16165_v6  ;;  %v16191_v6 = vrot.slane %v5244_v22, 9  ;;  %v5731_v22 = vld [vmem:[#allocation2 + $0x40] sm:$0xf] }
 0x2b4   : > { %17818 = vmatprep.mubr.msk.bf16.mxu0 %vm860_vm15, %v16192_v63  ;;  %v5336_v63 = vsel %vm19788_vm8, %v16190_v11, %v5335_v43  ;;  %v19182_v11 = vld [vmem:[#allocation2 + $0x80] ss:$8 sps:$4 sm:$0xff]   ;;  %v5777_v43 = vrot.slane %v5775_v10, 5  ;;  %v5839_v57 = vshll.u32 %v5731_v22, 16 }
 0x2b5   : > { %v5340_v27 = vsel %vm19788_vm8, %v16191_v6, %v5339_v58  ;;  %v5791_v6 = vrot.slane %v5789_v53, 5  ;;  %v21169_v58 = vld [vmem:[#allocation2 + $0x34] sm:$0x1]  ;;  %v5869_v53 = vrot.slane %v5867_v19, 5 }
 0x2b6   : > { %v16199_v61 = vcombine.low %v5336_v63, %v5340_v27  ;;  %v21173_v27 = vld [vmem:[#allocation2 + $0x3c] sm:$0x1]  ;;  %v5817_v8 = vshll.u32 %v21169_v58, 16 }
 0x2bb   : > { %17819 = vmatmul.mubr.msk.bf16.vlgmr.msra.gmra.mrb[0].mxu0 %vm860_vm15, %v16193_v38  ;;  %v5780_v38 = vshrl.u32 %v5723_v30, 16 }
 0x2bc   : > { %17835 = vmatpush3.bf16.msra.mxu0 %v21062_v35  ;;  %17822 = vmatprep.mubr.msk.bf16.mxu0 %vm860_vm15, %v16194_v41  ;;  %v5242_v35 = vld [vmem:[#allocation2 + $0x80] sm:$0xe] }
 0x2bd   : > { %17836 = vmatprep.subr.bf16.mxu0 %v19173_v14  ;;  %v16189_v31 = vrot.slane %v5242_v35, 9  ;;  %v21154_v41 = vld [vmem:[%s20568_s0 + $0x80] sm:$0xff]   ;;  %v5782_v25 = vrot.slane %v5780_v38, 4  ;;  %v5799_v35 = vrot.slane %v5797_v3, 5  ;;  %v5864_v38 = vshrl.u32 %v5735_v26, 16 }
 0x2bf   : > { %v5332_v23 = vsel %vm19788_vm8, %v16189_v31, %v5331_v2  ;;  %v5825_v31 = vshll.u32 %v5729_v17, 16  ;;  %v5786_v49 = vor.u32 %v5785_v56, %v5782_v25  ;;  %v5800_v51 = vor.u32 %v5799_v35, %v5796_v45  ;;  %v21187_v45 = vld [vmem:[#allocation2 + $0x4c] sm:$0x1] }
 0x2c0   : > { %17837 = vmatpush3.bf16.msra.mxu0 %v19173_v14  ;;  %v16198_v50 = vcombine.low %v5328_v39, %v5332_v23  ;;  %v5758_v14 = vor.u32 %v5757_v7, %v5754_v24  ;;  %v5813_v23 = vrot.slane %v5811_v54, 5  ;;  %v5831_v24 = vshll.u32 %v21173_v27, 16  ;;  %v21177_v7 = vld [vmem:[#allocation2 + $0x44] sm:$0x1] }
 0x2c1   : > { %17854 = vmatprep.subr.bf16.mxu0 %v19175_v40  ;;  %v5801_v30 = vrot.slane %v5800_v51, 4  ;;  %v5845_v35 = vshll.u32 %v21177_v7, 16  ;;  %v5866_v10 = vrot.slane %v5864_v38, 4 }
 0x2c2   : > { %v5759_v13 = vrot.slane %v5758_v14, 4  ;;  %v5833_v54 = vrot.slane %v5831_v24, 5 }
 0x2c3   : > { %17823 = vmatmul.mubr.msk.bf16.gmra.mrb[4].mxu0 %vm860_vm15, %v16195_v16  ;;  %v5808_v16 = vshrl.u32 %v5727_v42, 16  ;;  %v5841_v42 = vrot.slane %v5839_v57, 5 }
 0x2c4   : > { %17826 = vmatprep.mubr.msk.bf16.mxu0 %vm860_vm15, %v16196_v15  ;;  %v5772_v15 = vor.u32 %v5771_v62, %v5768_v18  ;;  %v5764_v63 = vsel %vm19572_vm14, %v5759_v13, %v5763_v44  ;;  %v21192_v44 = vld [vmem:[#allocation2 + $0x6c] sm:$0x1] }
 0x2c5   : > { %v5810_v39 = vrot.slane %v5808_v16, 4  ;;  %v5819_v16 = vrot.slane %v5817_v8, 5 }
 0x2c7   : > { %v5814_v28 = vor.u32 %v5813_v23, %v5810_v39  ;;  %v5859_v39 = vshll.u32 %v21187_v45, 16  ;;  %v5741_v23 = vld [vmem:[#allocation2 + $0x78] sm:$0xf] }
 0x2c8   : > { %v5906_v57 = vshrl.u32 %v5741_v23, 16 }
 0x2c9   : > { %v5815_v17 = vrot.slane %v5814_v28, 4 }
 0x2cb   : > { %17827 = vmatmul.mubr.msk.bf16.gmra.mrb[8].mxu0 %vm860_vm15, %v16197_v47  ;;  %v5733_v47 = vld [vmem:[#allocation2 + $0x48] sm:$0xf] }
 0x2cc   : > { %17830 = vmatprep.mubr.msk.bf16.mxu0 %vm860_vm15, %v16198_v50  ;;  %v5773_v50 = vrot.slane %v5772_v15, 4  ;;  %v5850_v21 = vshrl.u32 %v5733_v47, 16  ;;  %v5853_v32 = vshll.u32 %v5733_v47, 16  ;;  %v21190_v15 = vld [vmem:[#allocation2 + $0x64] sm:$0x1]  ;;  %v21195_v47 = vrot.slane %v5845_v35, 5 }
 0x2ce   : > { %v5778_v9 = vsel %vm19572_vm14, %v5773_v50, %v5777_v43  ;;  %v5852_v14 = vrot.slane %v5850_v21, 4  ;;  %v5855_v34 = vrot.slane %v5853_v32, 5  ;;  %v5820_v50 = vsel %vm19572_vm14, %v5815_v17, %v5819_v16 }
 0x2cf   : > { %v16228_v13 = vcombine.low %v5764_v63, %v5778_v9  ;;  %v5870_v43 = vor.u32 %v5869_v53, %v5866_v10  ;;  %v5909_v21 = vshll.u32 %v5741_v23, 16  ;;  %v5749_v10 = vld [vmem:[#allocation2 + $0x98] sm:$0xf] }
 0x2d0   : > { %v5856_v51 = vor.u32 %v5855_v34, %v5852_v14 }
 0x2d1   : > { %v5871_v38 = vrot.slane %v5870_v43, 4  ;;  %v5911_v14 = vrot.slane %v5909_v21, 5  ;;  %v5965_v43 = vshll.u32 %v5749_v10, 16 }
 0x2d3   : > { %17831 = vmatmul.mubr.msk.bf16.gmra.mrb[12].mxu0 %vm860_vm15, %v16199_v61  ;;  %v5824_v61 = vrot.slane %v5822_v36, 4 }
 0x2d4   : > { %17838 = vmatprep.mubr.msk.bf16.mxu0 %vm860_vm15, %v19174_v1  ;;  %v5827_v1 = vrot.slane %v5825_v31, 5 }
 0x2d6   : > { %v5828_v3 = vor.u32 %v5827_v1, %v5824_v61  ;;  %v5743_v61 = vld [vmem:[#allocation2 + $0x80] sm:$0xf]  ;;  %v5745_v1 = vld [vmem:[#allocation2 + $0x88] sm:$0xf] }
 0x2d7   : > { %v5923_v28 = vshll.u32 %v5743_v61, 16  ;;  %v5934_v8 = vshrl.u32 %v5745_v1, 16  ;;  %v5937_v24 = vshll.u32 %v5745_v1, 16 }
 0x2d9   : > { %v5925_v35 = vrot.slane %v5923_v28, 5  ;;  %v5936_v16 = vrot.slane %v5934_v8, 4 }
 0x2db   : > { %17839 = vmatmul.mubr.msk.bf16.vlgmr.msra.gmra.mrb[0].mxu0 %vm860_vm15, %v19176_v37  ;;  %v5836_v37 = vshrl.u32 %v5731_v22, 16 }
 0x2dc   : > { %17855 = vmatpush3.bf16.msra.mxu0 %v19175_v40  ;;  %17842 = vmatprep.mubr.msk.bf16.mxu0 %vm860_vm15, %v19177_v55  ;;  %v21162_v40 = vld [vmem:[#allocation2 + $0x2c] sm:$0x1]  ;;  %v5737_v55 = vld [vmem:[#allocation2 + $0x68] sm:$0xf] }
 0x2dd   : > { %17856 = vmatprep.subr.bf16.mxu0 %v19180_v29  ;;  %v5803_v2 = vshll.u32 %v21162_v40, 16  ;;  %v5881_v18 = vshll.u32 %v5737_v55, 16  ;;  %v5838_v62 = vrot.slane %v5836_v37, 4 }
 0x2df   : > { %v5805_v12 = vrot.slane %v5803_v2, 5  ;;  %v5883_v31 = vrot.slane %v5881_v18, 5  ;;  %v5739_v2 = vld [vmem:[#allocation2 + $0x70] sm:$0xf]  ;;  %v21205_v18 = vld [vmem:[#allocation2 + $0x74] sm:$0x1] }
 0x2e0   : > { %17857 = vmatpush3.bf16.msra.mxu0 %v19180_v29  ;;  %v5787_v29 = vrot.slane %v5786_v49, 4  ;;  %v5842_v49 = vor.u32 %v5841_v42, %v5838_v62  ;;  %v5892_v63 = vshrl.u32 %v5739_v2, 16  ;;  %v5895_v37 = vshll.u32 %v5739_v2, 16  ;;  %v21218_v2 = vld [vmem:[#allocation2 + $0x84] sm:$0x1] }
 0x2e1   : > { %17874 = vmatprep.subr.bf16.mxu0 %v21154_v41  ;;  %v5806_v56 = vsel %vm19572_vm14, %v5801_v30, %v5805_v12  ;;  %v5861_v30 = vrot.slane %v5859_v39, 5  ;;  %v5920_v12 = vshrl.u32 %v5743_v61, 16  ;;  %v5908_v42 = vrot.slane %v5906_v57, 4 }
 0x2e2   : > { %v5792_v25 = vsel %vm19572_vm14, %v5787_v29, %v5791_v6  ;;  %v5887_v6 = vshll.u32 %v21192_v44, 16  ;;  %v5857_v29 = vrot.slane %v5856_v51, 4  ;;  %v5897_v62 = vrot.slane %v5895_v37, 5 }
 0x2e3   : > { %17843 = vmatmul.mubr.msk.bf16.gmra.mrb[4].mxu0 %vm860_vm15, %v19178_v46  ;;  %v5878_v46 = vshrl.u32 %v5737_v55, 16  ;;  %v16229_v22 = vcombine.low %v5792_v25, %v5806_v56  ;;  %v5843_v55 = vrot.slane %v5842_v49, 4  ;;  %v21208_v25 = vld [vmem:[#allocation2 + $0x7c] sm:$0x1]  ;;  %v5747_v56 = vld [vmem:[#allocation2 + $0x90] sm:$0xf]  ;;  %v5912_v39 = vor.u32 %v5911_v14, %v5908_v42 }
 0x2e4   : > { %17846 = vmatprep.mubr.msk.bf16.mxu0 %vm860_vm15, %v19179_v5  ;;  %v19183_v5 = vld [vmem:[#allocation2 + $0x90] ss:$8 sps:$4 sm:$0xff]   ;;  %v5889_v9 = vrot.slane %v5887_v6, 5  ;;  %v5922_v17 = vrot.slane %v5920_v12, 4  ;;  %v5915_v23 = vshll.u32 %v21208_v25, 16  ;;  %v5967_v12 = vrot.slane %v5965_v43, 5 }
 0x2e5   : > { %v5880_v36 = vrot.slane %v5878_v46, 4  ;;  %v5848_v53 = vsel %vm19572_vm14, %v5843_v55, %v21195_v47  ;;  %v5948_v47 = vshrl.u32 %v5747_v56, 16  ;;  %v5913_v21 = vrot.slane %v5912_v39, 4  ;;  %v6152_v43 = vld [vmem:[#allocation2 + $0x30] sm:$0xe] }
 0x2e6   : > { %v5926_v6 = vor.u32 %v5925_v35, %v5922_v17  ;;  %v6149_v17 = vld [vmem:[#allocation2 + $0x18] sm:$0xe] }
 0x2e7   : > { %v5884_v26 = vor.u32 %v5883_v31, %v5880_v36  ;;  %v5901_v31 = vshll.u32 %v21205_v18, 16  ;;  %v5950_v55 = vrot.slane %v5948_v47, 4  ;;  %v6150_v47 = vld [vmem:[#allocation2 + $0x20] sm:$0xe] }
 0x2e8   : > { %v5927_v28 = vrot.slane %v5926_v6, 4 }
 0x2e9   : > { %v5885_v46 = vrot.slane %v5884_v26, 4  ;;  %v5903_v26 = vrot.slane %v5901_v31, 5  ;;  %v6198_v31 = vrot.slane %v21151_v20, 5 }
 0x2eb   : > { %17847 = vmatmul.mubr.msk.bf16.gmra.mrb[8].mxu0 %vm860_vm15, %v19181_v4  ;;  %v5829_v4 = vrot.slane %v5828_v3, 4  ;;  %v5894_v3 = vrot.slane %v5892_v63, 4  ;;  %v5890_v49 = vsel %vm19572_vm14, %v5885_v46, %v5889_v9  ;;  %v5929_v63 = vshll.u32 %v21218_v2, 16 }
 0x2ec   : > { %17850 = vmatprep.mubr.msk.bf16.mxu0 %vm860_vm15, %v19182_v11  ;;  %v5873_v11 = vshll.u32 %v21190_v15, 16 }
 0x2ed   : > { %v5834_v32 = vsel %vm19572_vm14, %v5829_v4, %v5833_v54  ;;  %v5939_v54 = vrot.slane %v5937_v24, 5  ;;  %v21220_v4 = vld [vmem:[#allocation2 + $0x8c] sm:$0x1]  ;;  %v5898_v51 = vor.u32 %v5897_v62, %v5894_v3  ;;  %v5931_v8 = vrot.slane %v5929_v63, 5 }
 0x2ee   : > { %v5875_v19 = vrot.slane %v5873_v11, 5  ;;  %v16230_v34 = vcombine.low %v5820_v50, %v5834_v32  ;;  %v5951_v11 = vshll.u32 %v5747_v56, 16  ;;  %v5962_v50 = vshrl.u32 %v5749_v10, 16  ;;  %v6148_v56 = vld [vmem:[#allocation2 + $0x10] sm:$0xe] }
 0x2ef   : > { %v5943_v61 = vshll.u32 %v21220_v4, 16  ;;  %v5899_v57 = vrot.slane %v5898_v51, 4  ;;  %v5917_v32 = vrot.slane %v5915_v23, 5  ;;  %v6202_v51 = vrot.slane %v21156_v0, 5  ;;  %v6153_v0 = vld [vmem:[#allocation2 + $0x38] sm:$0xe] }
 0x2f0   : > { %v5876_v36 = vsel %vm19572_vm14, %v5871_v38, %v5875_v19  ;;  %v21232_v19 = vld [vmem:[#allocation2 + $0x9c] sm:$0x1]  ;;  %v16248_v63 = vrot.slane %v6150_v47, 9  ;;  %v6163_v47 = vld [vmem:[#allocation2 + $0x98] sm:$0xe] }
 0x2f1   : > { %v16232_v37 = vcombine.low %v5876_v36, %v5890_v49  ;;  %v5945_v38 = vrot.slane %v5943_v61, 5  ;;  %v5904_v9 = vsel %vm19572_vm14, %v5899_v57, %v5903_v26  ;;  %v5918_v46 = vsel %vm19572_vm14, %v5913_v21, %v5917_v32 }
 0x2f2   : > { %v5971_v14 = vshll.u32 %v21232_v19, 16  ;;  %v16233_v35 = vcombine.low %v5904_v9, %v5918_v46  ;;  %v16246_v36 = vrot.slane %v6148_v56, 9  ;;  %v16247_v49 = vrot.slane %v6149_v17, 9  ;;  %v6159_v56 = vld [vmem:[#allocation2 + $0x78] sm:$0xe] }
 0x2f3   : > { %17851 = vmatmul.mubr.msk.bf16.gmra.mrb[12].mxu0 %vm860_vm15, %v19183_v5  ;;  %v19185_v5 = vld [vmem:[%s20568_s0 + $0x88] sm:$0xff]   ;;  %v6206_v61 = vrot.slane %v21159_v33, 5  ;;  %v6210_v26 = vrot.slane %v21162_v40, 5  ;;  %v6214_v57 = vrot.slane %v21169_v58, 5  ;;  %v16251_v21 = vrot.slane %v6153_v0, 9 }
 0x2f4   : > { %17858 = vmatprep.mubr.msk.bf16.mxu0 %vm860_vm15, %v16228_v13  ;;  %v5862_v13 = vsel %vm19572_vm14, %v5857_v29, %v5861_v30  ;;  %v5953_v29 = vrot.slane %v5951_v11, 5  ;;  %v5964_v30 = vrot.slane %v5962_v50, 4  ;;  %v6199_v11 = vsel %vm19788_vm8, %v16246_v36, %v6198_v31  ;;  %v6151_v50 = vld [vmem:[#allocation2 + $0x28] sm:$0xe]  ;;  %v6154_v33 = vld [vmem:[#allocation2 + $0x40] sm:$0xe] }
 0x2f5   : > { %v16231_v1 = vcombine.low %v5848_v53, %v5862_v13  ;;  %v5973_v13 = vrot.slane %v5971_v14, 5  ;;  %v6203_v20 = vsel %vm19788_vm8, %v16247_v49, %v6202_v51  ;;  %v6218_v32 = vrot.slane %v21173_v27, 5  ;;  %v6157_v27 = vld [vmem:[#allocation2 + $0x68] sm:$0xe]  ;;  %v6160_v17 = vld [vmem:[#allocation2 + $0x80] sm:$0xe] }
 0x2f6   : > { %v5954_v62 = vor.u32 %v5953_v29, %v5950_v55  ;;  %v5968_v42 = vor.u32 %v5967_v12, %v5964_v30  ;;  %v6207_v55 = vsel %vm19788_vm8, %v16248_v63, %v6206_v61  ;;  %v6155_v30 = vld [vmem:[#allocation2 + $0x48] sm:$0xe]  ;;  %v6156_v12 = vld [vmem:[#allocation2 + $0x60] sm:$0xe]  ;;  %v6234_v14 = vrot.slane %v21192_v44, 5 }
 0x2f7   : > { %v6219_v58 = vsel %vm19788_vm8, %v16251_v21, %v6218_v32  ;;  %v16253_v9 = vrot.slane %v6155_v30, 9  ;;  %v16254_v46 = vrot.slane %v6156_v12, 9  ;;  %v6161_v44 = vld [vmem:[#allocation2 + $0x88] sm:$0xe]  ;;  %v16258_v36 = vrot.slane %v6160_v17, 9  ;;  %v19186_v61 = vld [vmem:[%s20568_s0 + $0xa0] sm:$0xff]  }
 0x2f8   : > { %v5955_v10 = vrot.slane %v5954_v62, 4  ;;  %v5969_v53 = vrot.slane %v5968_v42, 4  ;;  %v6230_v62 = vrot.slane %v21190_v15, 5  ;;  %v16255_v42 = vrot.slane %v6157_v27, 9  ;;  %17894 = vmatprep.subr.bf16.mxu1 %v19186_v61  ;;  %v6840_v32 = vld [vmem:[#allocation2 + $0x50] sm:$0xf] }
 0x2f9   : > { %v6246_v31 = vrot.slane %v21218_v2, 5  ;;  %v16259_v49 = vrot.slane %v6161_v44, 9  ;;  %v6250_v51 = vrot.slane %v21220_v4, 5  ;;  %v6258_v0 = vrot.slane %v21232_v19, 5  ;;  %17895 = vmatpush3.bf16.msra.mxu1 %v19186_v61  ;;  %v21312_v19 = vld [vmem:[%s20568_s0 + $0x90] sm:$0xff]  }
 0x2fa   : > { %v5974_v23 = vsel %vm19572_vm14, %v5969_v53, %v5973_v13  ;;  %v6235_v15 = vsel %vm19788_vm8, %v16255_v42, %v6234_v14  ;;  %v16257_v53 = vrot.slane %v6159_v56, 9  ;;  %v6242_v13 = vrot.slane %v21208_v25, 5 }
 0x2fb   : > { %17859 = vmatmul.mubr.msk.bf16.vlgmr.msra.gmra.mrb[0].mxu0 %vm860_vm15, %v16229_v22  ;;  %v5940_v22 = vor.u32 %v5939_v54, %v5936_v16  ;;  %v6247_v25 = vsel %vm19788_vm8, %v16258_v36, %v6246_v31  ;;  %v6251_v2 = vsel %vm19788_vm8, %v16259_v49, %v6250_v51  ;;  %v6980_v30 = vshll.u32 %v6840_v32, 16  ;;  %v6706_v31 = vld [vmem:[#allocation2 + $0x18] sm:$0xf] }
 0x2fc   : > { %17875 = vmatpush3.bf16.msra.mxu0 %v21154_v41  ;;  %17862 = vmatprep.mubr.msk.bf16.mxu0 %vm860_vm15, %v16230_v34  ;;  %v21230_v41 = vld [vmem:[#allocation2 + $0x94] sm:$0x1]  ;;  %v5932_v34 = vsel %vm19572_vm14, %v5927_v28, %v5931_v8  ;;  %v16252_v8 = vrot.slane %v6154_v33, 9 }
 0x2fd   : > { %17876 = vmatprep.subr.bf16.mxu0 %v19185_v5  ;;  %v5941_v24 = vrot.slane %v5940_v22, 4  ;;  %v5957_v3 = vshll.u32 %v21230_v41, 16  ;;  %v16262_v22 = vcombine.low %v6199_v11, %v6203_v20  ;;  %v16268_v20 = vcombine.low %v6247_v25, %v6251_v2  ;;  %v6709_v25 = vld [vmem:[#allocation2 + $0x1c] sm:$0x1] }
 0x2ff   : > { %v5959_v16 = vrot.slane %v5957_v3, 5  ;;  %v6226_v3 = vrot.slane %v21187_v45, 5  ;;  %v6231_v45 = vsel %vm19788_vm8, %v16254_v46, %v6230_v62 }
 0x300   : > { %17877 = vmatpush3.bf16.msra.mxu0 %v19185_v5  ;;  %v5946_v5 = vsel %vm19572_vm14, %v5941_v24, %v5945_v38  ;;  %v6222_v38 = vrot.slane %v21177_v7, 5  ;;  %v6158_v7 = vld [vmem:[#allocation2 + $0x70] sm:$0xe] }
 0x301   : > { %v16234_v54 = vcombine.low %v5932_v34, %v5946_v5  ;;  %v5960_v39 = vsel %vm19572_vm14, %v5955_v10, %v5959_v16  ;;  %v6227_v5 = vsel %vm19788_vm8, %v16253_v9, %v6226_v3  ;;  %v16256_v16 = vrot.slane %v6158_v7, 9 }
 0x302   : > { %v16235_v6 = vcombine.low %v5960_v39, %v5974_v23  ;;  %v6223_v34 = vsel %vm19788_vm8, %v16252_v8, %v6222_v38  ;;  %v6238_v10 = vrot.slane %v21205_v18, 5  ;;  %v6243_v23 = vsel %vm19788_vm8, %v16257_v53, %v6242_v13  ;;  %v6162_v18 = vld [vmem:[#allocation2 + $0x90] sm:$0xe]  ;;  %v21332_v8 = vld [vmem:[#allocation2 + $0x54] sm:$0x1] }
 0x303   : > { %17863 = vmatmul.mubr.msk.bf16.gmra.mrb[4].mxu0 %vm860_vm15, %v16231_v1  ;;  %v16249_v1 = vrot.slane %v6151_v50, 9  ;;  %v16260_v11 = vrot.slane %v6162_v18, 9  ;;  %v6254_v50 = vrot.slane %v21230_v41, 5  ;;  %v19187_v41 = vld [vmem:[%s20568_s0 + $0xa8] sm:$0xff]   ;;  %v6986_v46 = vshll.u32 %v21332_v8, 16 }
 0x304   : > { %17866 = vmatprep.mubr.msk.bf16.mxu0 %vm860_vm15, %v16232_v37  ;;  %v16250_v37 = vrot.slane %v6152_v43, 9  ;;  %v6239_v39 = vsel %vm19788_vm8, %v16256_v16, %v6238_v10  ;;  %v16261_v43 = vrot.slane %v6163_v47, 9  ;;  %17896 = vmatprep.subr.bf16.mxu1 %v19187_v41 }
 0x305   : > { %v6211_v29 = vsel %vm19788_vm8, %v16249_v1, %v6210_v26  ;;  %v16267_v4 = vcombine.low %v6239_v39, %v6243_v23  ;;  %17897 = vmatpush3.bf16.msra.mxu1 %v19187_v41  ;;  %v21315_v1 = vld [vmem:[#allocation2] sm:$0xf]  ;;  %v21353_v13 = vrot.slane %v6986_v46, 5  ;;  %v19228_v46 = vld [vmem:[#allocation2 + $0x8] sm:$0xf] }
 0x306   : > { %v6215_v40 = vsel %vm19788_vm8, %v16250_v37, %v6214_v57  ;;  %v16263_v28 = vcombine.low %v6207_v55, %v6211_v29  ;;  %v6259_v63 = vsel %vm19788_vm8, %v16261_v43, %v6258_v0  ;;  %17914 = vmatprep.subr.bf16.mxu1 %v21312_v19  ;;  %v6865_v26 = vshrl.u32 %v21315_v1, 16  ;;  %v21325_v55 = vld [vmem:[#allocation2 + $0x4] sm:$0x1]  ;;  %v21328_v29 = vld [vmem:[%s21323_s10] ss:$0 sm:$0xff] }
 0x307   : > { %v16264_v24 = vcombine.low %v6215_v40, %v6219_v58  ;;  %v6868_v37 = vshll.u32 %v21315_v1, 16  ;;  %v6874_v40 = vshll.u32 %v21325_v55, 16  ;;  %v6977_v58 = vshrl.u32 %v6840_v32, 16 }
 0x308   : > { %v6867_v57 = vrot.slane %v6865_v26, 4  ;;  %v7468_v16 = vrot.slane %v21325_v55, 5  ;;  %v6712_v26 = vld [vmem:[#allocation2 + $0x20] sm:$0xf] }
 0x309   : > { %v6870_v21 = vrot.slane %v6868_v37, 5  ;;  %v21337_v3 = vrot.slane %v6874_v40, 5 }
 0x30b   : > { %17867 = vmatmul.mubr.msk.bf16.gmra.mrb[8].mxu0 %vm860_vm15, %v16233_v35  ;;  %v16265_v35 = vcombine.low %v6223_v34, %v6227_v5  ;;  %v6871_v33 = vor.u32 %v6870_v21, %v6867_v57  ;;  %v21341_v34 = vrot.slane %v6977_v58, 4  ;;  %v21343_v5 = vrot.slane %v6980_v30, 5 }
 0x30c   : > { %17870 = vmatprep.mubr.msk.bf16.mxu0 %vm860_vm15, %v16234_v54  ;;  %v16266_v54 = vcombine.low %v6231_v45, %v6235_v15 }
 0x30d   : > { %v21335_v9 = vrot.slane %v6871_v33, 4  ;;  %v6983_v53 = vor.u32 %v21343_v5, %v21341_v34  ;;  %v6715_v33 = vld [vmem:[#allocation2 + $0x24] sm:$0x1] }
 0x313   : > { %17871 = vmatmul.mubr.msk.bf16.gmra.mrb[12].mxu0 %vm860_vm15, %v16235_v6  ;;  %v6255_v6 = vsel %vm19788_vm8, %v16260_v11, %v6254_v50  ;;  %v6697_v50 = vld [vmem:[#allocation2 + $0xc] sm:$0x1] }
 0x314   : > { %17878 = vmatprep.mubr.msk.bf16.mxu0 %vm860_vm15, %v16262_v22  ;;  %v16269_v22 = vcombine.low %v6255_v6, %v6259_v63 }
 0x31b   : > { %17879 = vmatmul.mubr.msk.bf16.vlgmr.msra.gmra.mrb[0].mxu0 %vm860_vm15, %v16263_v28 }
 0x31c   : > { %17882 = vmatprep.mubr.msk.bf16.mxu0 %vm860_vm15, %v16264_v24 }
 0x323   : > { %17883 = vmatmul.mubr.msk.bf16.gmra.mrb[4].mxu0 %vm860_vm15, %v16265_v35  ;;  %v6877_v35 = vsel %vm19572_vm14, %v21335_v9, %v21337_v3 }
 0x324   : > { %17886 = vmatprep.mubr.msk.bf16.mxu0 %vm860_vm15, %v16266_v54 }
 0x32b   : > { %17887 = vmatmul.mubr.msk.bf16.gmra.mrb[8].mxu0 %vm860_vm15, %v16267_v4 }
 0x32c   : > { %17890 = vmatprep.mubr.msk.bf16.mxu0 %vm860_vm15, %v16268_v20 }
 0x333   : > { %17891 = vmatmul.mubr.msk.bf16.gmra.mrb[12].mxu0 %vm860_vm15, %v16269_v22 }
 0x3ee   : > { %v17880_v12 = vpop.f32.mrb[0].mxu0 }
 0x3ef   : > { %v6441_v27 = vadd.f32 %v17880_v12, %v21328_v29  ;;  %v6354_v28 = vpop.f32.mrb[1].mxu0 }
 0x3f0   : > { %v6439_v24 = vadd.f32 %v21328_v29, %v6354_v28  ;;  %v17881_v38 = vpop.f32.mrb[2].mxu0 }
 0x3f1   : > { %v6457_v62 = vmax.f32 %v6441_v27, 0.0  ;;  %v6442_v42 = vadd.f32 %v17881_v38, %v21328_v29  ;;  %v6357_v14 = vpop.f32.mrb[3].mxu0  ;;  %v6703_v38 = vld [vmem:[#allocation2 + $0x14] sm:$0x1] }
 0x3f2   : > { %v6455_v7 = vmax.f32 %v6439_v24, 0.0  ;;  %v6440_v45 = vadd.f32 %v21328_v29, %v6357_v14  ;;  %v6700_v24 = vld [vmem:[#allocation2 + $0x10] sm:$0xf] }
 0x3f3   : > { %v17038_v15 = vpack.c.bf16 %v6457_v62, %v6457_v62  ;;  %v6458_v56 = vmax.f32 %v6442_v42, 0.0 }
 0x3f4   : > { %v17036_v17 = vpack.c.bf16 %v6455_v7, %v6455_v7  ;;  %v6456_v44 = vmax.f32 %v6440_v45, 0.0 }
 0x3f5   : > { %v6552_v54 = vshrl.u32 %v17038_v15, 16  ;;  %v17039_v10 = vpack.c.bf16 %v6458_v56, %v6458_v56  ;;  %v6555_v36 = vshll.u32 %v17038_v15, 16 }
 0x3f6   : > { %v6536_v49 = vshrl.u32 %v17036_v17, 16  ;;  %v6539_v51 = vshll.u32 %v17036_v17, 16  ;;  %v17037_v39 = vpack.c.bf16 %v6456_v44, %v6456_v44  ;;  %v17884_v23 = vpop.f32.mrb[4].mxu0 }
 0x3f7   : > { %v6554_v18 = vrot.slane %v6552_v54, 7  ;;  %v6560_v2 = vshrl.u32 %v17039_v10, 16  ;;  %v6563_v47 = vshll.u32 %v17039_v10, 16  ;;  %v6445_v4 = vadd.f32 %v17884_v23, %v21328_v29  ;;  %v6370_v11 = vpop.f32.mrb[5].mxu0  ;;  %v6730_v23 = vld [vmem:[#allocation2 + $0x38] sm:$0xf] }
 0x3f8   : > { %v6538_v20 = vrot.slane %v6536_v49, 7  ;;  %v6544_v43 = vshrl.u32 %v17037_v39, 16  ;;  %v6547_v0 = vshll.u32 %v17037_v39, 16  ;;  %v6443_v6 = vadd.f32 %v21328_v29, %v6370_v11  ;;  %v17885_v63 = vpop.f32.mrb[6].mxu0 }
 0x3f9   : > { %v6557_v22 = vor.u32 %v6555_v36, %v6554_v18  ;;  %v6558_v61 = vrot.slane %v6554_v18, 4  ;;  %v6562_v41 = vrot.slane %v6560_v2, 7  ;;  %v6461_v37 = vmax.f32 %v6445_v4, 0.0  ;;  %v6373_v57 = vpop.f32.mrb[7].mxu0 }
 0x3fa   : > { %v6541_v21 = vor.u32 %v6539_v51, %v6538_v20  ;;  %v6542_v32 = vrot.slane %v6538_v20, 4  ;;  %v6546_v40 = vrot.slane %v6544_v43, 7  ;;  %v6459_v58 = vmax.f32 %v6443_v6, 0.0  ;;  %v6733_v20 = vld [vmem:[#allocation2 + $0x3c] sm:$0x1] }
 0x3fb   : > { %v6707_v30 = vsel %vm20560_vm6, %v6557_v22, %v6706_v31  ;;  %v6710_v12 = vsel %vm20572_vm7, %v6558_v61, %v6709_v25  ;;  %v6565_v27 = vor.u32 %v6563_v47, %v6562_v41  ;;  %v6566_v28 = vrot.slane %v6562_v41, 4  ;;  %v6721_v22 = vld [vmem:[#allocation2 + $0x2c] sm:$0x1] }
 0x3fc   : > { %6711 = vst [vmem:[#allocation2 + $0x1c] sm:$0x1] %v6710_v12  ;;  %6708 = vst [vmem:[#allocation2 + $0x18] sm:$0xf] %v6707_v30  ;;  %v6695_v62 = vsel %vm20560_vm6, %v6541_v21, %v19228_v46  ;;  %v6698_v42 = vsel %vm20572_vm7, %v6542_v32, %v6697_v50  ;;  %v6549_v14 = vor.u32 %v6547_v0, %v6546_v40  ;;  %v6550_v34 = vrot.slane %v6546_v40, 4 }
 0x3fd   : > { %6696 = vst [vmem:[#allocation2 + $0x8] sm:$0xf] %v6695_v62  ;;  %6699 = vst [vmem:[#allocation2 + $0xc] sm:$0x1] %v6698_v42  ;;  %v6713_v5 = vsel %vm20560_vm6, %v6565_v27, %v6712_v26  ;;  %v6716_v7 = vsel %vm20572_vm7, %v6566_v28, %v6715_v33  ;;  %v17042_v45 = vpack.c.bf16 %v6461_v37, %v6461_v37  ;;  %v21375_v39 = vrot.slane %v6983_v53, 4 }
 0x3fe   : > { %v17040_v15 = vpack.c.bf16 %v6459_v58, %v6459_v58  ;;  %6717 = vst [vmem:[#allocation2 + $0x24] sm:$0x1] %v6716_v7  ;;  %6714 = vst [vmem:[#allocation2 + $0x20] sm:$0xf] %v6713_v5  ;;  %v6701_v56 = vsel %vm20560_vm6, %v6549_v14, %v6700_v24  ;;  %v6704_v17 = vsel %vm20572_vm7, %v6550_v34, %v6703_v38  ;;  %v17888_v10 = vpop.f32.mrb[8].mxu0 }
 0x3ff   : > { %v6446_v44 = vadd.f32 %v17885_v63, %v21328_v29  ;;  %v6444_v54 = vadd.f32 %v21328_v29, %v6373_v57  ;;  %6705 = vst [vmem:[#allocation2 + $0x14] sm:$0x1] %v6704_v17  ;;  %6702 = vst [vmem:[#allocation2 + $0x10] sm:$0xf] %v6701_v56  ;;  %v6584_v36 = vshrl.u32 %v17042_v45, 16  ;;  %v6587_v31 = vshll.u32 %v17042_v45, 16 }
 0x400   : > { %v6568_v49 = vshrl.u32 %v17040_v15, 16  ;;  %v6386_v51 = vpop.f32.mrb[9].mxu0  ;;  %v6449_v2 = vadd.f32 %v17888_v10, %v21328_v29  ;;  %v6571_v43 = vshll.u32 %v17040_v15, 16  ;;  %v6718_v63 = vld [vmem:[#allocation2 + $0x28] sm:$0xf] }
 0x401   : > { %v6462_v18 = vmax.f32 %v6446_v44, 0.0  ;;  %v6460_v25 = vmax.f32 %v6444_v54, 0.0  ;;  %v6447_v47 = vadd.f32 %v21328_v29, %v6386_v51  ;;  %v17889_v4 = vpop.f32.mrb[10].mxu0  ;;  %v6586_v11 = vrot.slane %v6584_v36, 7  ;;  %v21382_v12 = vld [vmem:[#allocation2] sm:$0xe] }
 0x402   : > { %v6570_v50 = vrot.slane %v6568_v49, 7  ;;  %v21380_v0 = vadd.f32 %v17889_v4, %v21328_v29  ;;  %v6389_v6 = vpop.f32.mrb[11].mxu0  ;;  %v6465_v41 = vmax.f32 %v6449_v2, 0.0  ;;  %v6736_v46 = vld [vmem:[#allocation2 + $0x40] sm:$0xf]  ;;  %v16373_v10 = vrot.slane %v21382_v12, 9 }
 0x403   : > { %v17043_v53 = vpack.c.bf16 %v6462_v18, %v6462_v18  ;;  %v17041_v61 = vpack.c.bf16 %v6460_v25, %v6460_v25  ;;  %v6463_v26 = vmax.f32 %v6447_v47, 0.0  ;;  %v6589_v37 = vor.u32 %v6587_v31, %v6586_v11  ;;  %v6739_v62 = vld [vmem:[#allocation2 + $0x44] sm:$0x1]  ;;  %v6724_v34 = vld [vmem:[#allocation2 + $0x30] sm:$0xf] }
 0x404   : > { %v6590_v57 = vrot.slane %v6586_v11, 4  ;;  %v6573_v21 = vor.u32 %v6571_v43, %v6570_v50  ;;  %v6574_v32 = vrot.slane %v6570_v50, 4  ;;  %v17046_v5 = vpack.c.bf16 %v6465_v41, %v6465_v41  ;;  %v6727_v15 = vld [vmem:[#allocation2 + $0x34] sm:$0x1] }
 0x405   : > { %v6592_v33 = vshrl.u32 %v17043_v53, 16  ;;  %v6595_v40 = vshll.u32 %v17043_v53, 16  ;;  %v6576_v58 = vshrl.u32 %v17041_v61, 16  ;;  %v6579_v30 = vshll.u32 %v17041_v61, 16 }
 0x406   : > { %v6731_v27 = vsel %vm20560_vm6, %v6589_v37, %v6730_v23  ;;  %v6734_v28 = vsel %vm20572_vm7, %v6590_v57, %v6733_v20  ;;  %v6719_v24 = vsel %vm20560_vm6, %v6573_v21, %v6718_v63  ;;  %v6722_v38 = vsel %vm20572_vm7, %v6574_v32, %v6721_v22  ;;  %v17892_v45 = vpop.f32.mrb[12].mxu0  ;;  %v6742_v63 = vld [vmem:[#allocation2 + $0x58] sm:$0xf]  ;;  %v21404_v22 = vld [vmem:[#allocation2 + $0x8] sm:$0xf] }
 0x407   : > { %6735 = vst [vmem:[#allocation2 + $0x3c] sm:$0x1] %v6734_v28  ;;  %6732 = vst [vmem:[#allocation2 + $0x38] sm:$0xf] %v6731_v27  ;;  %v6594_v42 = vrot.slane %v6592_v33, 7  ;;  %v6578_v14 = vrot.slane %v6576_v58, 7  ;;  %v17044_v7 = vpack.c.bf16 %v6463_v26, %v6463_v26  ;;  %v6448_v17 = vadd.f32 %v21328_v29, %v6389_v6 }
 0x408   : > { %6723 = vst [vmem:[#allocation2 + $0x2c] sm:$0x1] %v6722_v38  ;;  %6720 = vst [vmem:[#allocation2 + $0x28] sm:$0xf] %v6719_v24  ;;  %v6466_v56 = vmax.f32 %v21380_v0, 0.0  ;;  %v6453_v44 = vadd.f32 %v17892_v45, %v21328_v29  ;;  %v6402_v54 = vpop.f32.mrb[13].mxu0 }
 0x409   : > { %v6597_v36 = vor.u32 %v6595_v40, %v6594_v42  ;;  %v6598_v31 = vrot.slane %v6594_v42, 4  ;;  %v6581_v49 = vor.u32 %v6579_v30, %v6578_v14  ;;  %v6582_v51 = vrot.slane %v6578_v14, 4  ;;  %v17893_v23 = vpop.f32.mrb[14].mxu0  ;;  %v6754_v0 = vld [vmem:[#allocation2 + $0x68] sm:$0xf] }
 0x40a   : > { %v6616_v18 = vshrl.u32 %v17046_v5, 16  ;;  %v6619_v25 = vshll.u32 %v17046_v5, 16  ;;  %v6600_v2 = vshrl.u32 %v17044_v7, 16  ;;  %v6603_v47 = vshll.u32 %v17044_v7, 16  ;;  %v6405_v4 = vpop.f32.mrb[15].mxu0 }
 0x40b   : > { %v6737_v11 = vsel %vm20560_vm6, %v6597_v36, %v6736_v46  ;;  %v6740_v20 = vsel %vm20572_vm7, %v6598_v31, %v6739_v62  ;;  %v6725_v50 = vsel %vm20560_vm6, %v6581_v49, %v6724_v34  ;;  %v6728_v43 = vsel %vm20572_vm7, %v6582_v51, %v6727_v15  ;;  %v6757_v6 = vld [vmem:[#allocation2 + $0x6c] sm:$0x1]  ;;  %v6745_v37 = vld [vmem:[#allocation2 + $0x5c] sm:$0x1]  ;;  %v6760_v34 = vld [vmem:[#allocation2 + $0x70] sm:$0xf] }
 0x40c   : > { %6738 = vst [vmem:[#allocation2 + $0x40] sm:$0xf] %v6737_v11  ;;  %6741 = vst [vmem:[#allocation2 + $0x44] sm:$0x1] %v6740_v20  ;;  %v6618_v53 = vrot.slane %v6616_v18, 7  ;;  %v6602_v61 = vrot.slane %v6600_v2, 7  ;;  %v17047_v41 = vpack.c.bf16 %v6466_v56, %v6466_v56  ;;  %v6451_v21 = vadd.f32 %v21328_v29, %v6402_v54 }
 0x40d   : > { %6729 = vst [vmem:[#allocation2 + $0x34] sm:$0x1] %v6728_v43  ;;  %6726 = vst [vmem:[#allocation2 + $0x30] sm:$0xf] %v6725_v50  ;;  %v6464_v26 = vmax.f32 %v6448_v17, 0.0  ;;  %v6469_v57 = vmax.f32 %v6453_v44, 0.0  ;;  %v6454_v32 = vadd.f32 %v17893_v23, %v21328_v29  ;;  %v6452_v33 = vadd.f32 %v21328_v29, %v6405_v4 }
 0x40e   : > { %v6621_v40 = vor.u32 %v6619_v25, %v6618_v53  ;;  %v6622_v58 = vrot.slane %v6618_v53, 4  ;;  %v6605_v30 = vor.u32 %v6603_v47, %v6602_v61  ;;  %v6606_v27 = vrot.slane %v6602_v61, 4  ;;  %v6763_v5 = vld [vmem:[#allocation2 + $0x74] sm:$0x1]  ;;  %v6748_v44 = vld [vmem:[#allocation2 + $0x60] sm:$0xf] }
 0x40f   : > { %v6624_v28 = vshrl.u32 %v17047_v41, 16  ;;  %v17045_v24 = vpack.c.bf16 %v6464_v26, %v6464_v26  ;;  %v17050_v38 = vpack.c.bf16 %v6469_v57, %v6469_v57  ;;  %v6879_v46 = vshrl.u32 %v21404_v22, 16  ;;  %v6751_v18 = vld [vmem:[#allocation2 + $0x64] sm:$0x1]  ;;  %v6778_v47 = vld [vmem:[#allocation2 + $0x88] sm:$0xf] }
 0x410   : > { %v6755_v62 = vsel %vm20560_vm6, %v6621_v40, %v6754_v0  ;;  %v6758_v42 = vsel %vm20572_vm7, %v6622_v58, %v6757_v6  ;;  %v6743_v14 = vsel %vm20560_vm6, %v6605_v30, %v6742_v63  ;;  %v6746_v29 = vsel %vm20572_vm7, %v6606_v27, %v6745_v37  ;;  %v6781_v4 = vld [vmem:[#allocation2 + $0x8c] sm:$0x1]  ;;  %v6769_v40 = vld [vmem:[#allocation2 + $0x7c] sm:$0x1] }
 0x411   : > { %6759 = vst [vmem:[#allocation2 + $0x6c] sm:$0x1] %v6758_v42  ;;  %6756 = vst [vmem:[#allocation2 + $0x68] sm:$0xf] %v6755_v62  ;;  %v6626_v7 = vrot.slane %v6624_v28, 7  ;;  %v6627_v45 = vshll.u32 %v17047_v41, 16 }
 0x412   : > { %6744 = vst [vmem:[#allocation2 + $0x58] sm:$0xf] %v6743_v14  ;;  %6747 = vst [vmem:[#allocation2 + $0x5c] sm:$0x1] %v6746_v29  ;;  %v6608_v15 = vshrl.u32 %v17045_v24, 16  ;;  %v6648_v56 = vshrl.u32 %v17050_v38, 16 }
 0x413   : > { %v6611_v17 = vshll.u32 %v17045_v24, 16  ;;  %v6467_v54 = vmax.f32 %v6451_v21, 0.0  ;;  %v6470_v36 = vmax.f32 %v6454_v32, 0.0  ;;  %v6468_v31 = vmax.f32 %v6452_v33, 0.0  ;;  %v21422_v26 = vld [vmem:[#allocation2 + $0xc] sm:$0x1] }
 0x414   : > { %v6629_v49 = vor.u32 %v6627_v45, %v6626_v7  ;;  %v6630_v51 = vrot.slane %v6626_v7, 4  ;;  %v6610_v23 = vrot.slane %v6608_v15, 7  ;;  %v6650_v25 = vrot.slane %v6648_v56, 7  ;;  %v6766_v33 = vld [vmem:[#allocation2 + $0x78] sm:$0xf] }
 0x415   : > { %v6651_v2 = vshll.u32 %v17050_v38, 16  ;;  %v17048_v11 = vpack.c.bf16 %v6467_v54, %v6467_v54  ;;  %v17051_v20 = vpack.c.bf16 %v6470_v36, %v6470_v36  ;;  %v17049_v50 = vpack.c.bf16 %v6468_v31, %v6468_v31  ;;  %v6784_v24 = vld [vmem:[#allocation2 + $0x90] sm:$0xf]  ;;  %v6787_v38 = vld [vmem:[#allocation2 + $0x94] sm:$0x1] }
 0x416   : > { %v6761_v43 = vsel %vm20560_vm6, %v6629_v49, %v6760_v34  ;;  %v6764_v0 = vsel %vm20572_vm7, %v6630_v51, %v6763_v5  ;;  %v6613_v6 = vor.u32 %v6611_v17, %v6610_v23  ;;  %v6614_v63 = vrot.slane %v6610_v23, 4  ;;  %v6772_v14 = vld [vmem:[#allocation2 + $0x80] sm:$0xf]  ;;  %v6775_v29 = vld [vmem:[#allocation2 + $0x84] sm:$0x1] }
 0x417   : > { %6765 = vst [vmem:[#allocation2 + $0x74] sm:$0x1] %v6764_v0  ;;  %6762 = vst [vmem:[#allocation2 + $0x70] sm:$0xf] %v6761_v43  ;;  %v6653_v53 = vor.u32 %v6651_v2, %v6650_v25  ;;  %v6654_v61 = vrot.slane %v6650_v25, 4  ;;  %v6632_v41 = vshrl.u32 %v17048_v11, 16 }
 0x418   : > { %v6881_v37 = vrot.slane %v6879_v46, 4  ;;  %v6749_v57 = vsel %vm20560_vm6, %v6613_v6, %v6748_v44  ;;  %v6752_v21 = vsel %vm20572_vm7, %v6614_v63, %v6751_v18  ;;  %v6635_v32 = vshll.u32 %v17048_v11, 16  ;;  %v21434_v17 = vld [vmem:[#allocation2 + $0x10] sm:$0xf]  ;;  %v21436_v49 = vld [vmem:[#allocation2 + $0x14] sm:$0x1] }
 0x419   : > { %v6656_v58 = vshrl.u32 %v17051_v20, 16  ;;  %6753 = vst [vmem:[#allocation2 + $0x64] sm:$0x1] %v6752_v21  ;;  %6750 = vst [vmem:[#allocation2 + $0x60] sm:$0xf] %v6749_v57  ;;  %v6779_v30 = vsel %vm20560_vm6, %v6653_v53, %v6778_v47  ;;  %v6782_v27 = vsel %vm20572_vm7, %v6654_v61, %v6781_v4  ;;  %v6634_v28 = vrot.slane %v6632_v41, 7 }
 0x41a   : > { %v6640_v46 = vshrl.u32 %v17049_v50, 16  ;;  %6783 = vst [vmem:[#allocation2 + $0x8c] sm:$0x1] %v6782_v27  ;;  %6780 = vst [vmem:[#allocation2 + $0x88] sm:$0xf] %v6779_v30  ;;  %v6659_v42 = vshll.u32 %v17051_v20, 16 }
 0x41b   : > { %v6658_v62 = vrot.slane %v6656_v58, 7  ;;  %v6882_v34 = vshll.u32 %v21404_v22, 16  ;;  %v6888_v5 = vshll.u32 %v21422_v26, 16  ;;  %v6637_v7 = vor.u32 %v6635_v32, %v6634_v28  ;;  %v21442_v2 = vld [vmem:[#allocation2 + $0x18] sm:$0xf] }
 0x41c   : > { %v6638_v45 = vrot.slane %v6634_v28, 4  ;;  %v6642_v15 = vrot.slane %v6640_v46, 7  ;;  %v6643_v56 = vshll.u32 %v17049_v50, 16  ;;  %v21448_v20 = vld [vmem:[#allocation2 + $0x1c] sm:$0x1]  ;;  %v6893_v50 = vshrl.u32 %v21434_v17, 16 }
 0x41d   : > { %v6661_v44 = vor.u32 %v6659_v42, %v6658_v62  ;;  %v6662_v54 = vrot.slane %v6658_v62, 4  ;;  %v6884_v36 = vrot.slane %v6882_v34, 5  ;;  %v6890_v31 = vrot.slane %v6888_v5, 5  ;;  %v21459_v57 = vld [vmem:[#allocation2 + $0x50] sm:$0xe] }
 0x41e   : > { %v6767_v51 = vsel %vm20560_vm6, %v6637_v7, %v6766_v33  ;;  %v6770_v23 = vsel %vm20572_vm7, %v6638_v45, %v6769_v40  ;;  %v6645_v18 = vor.u32 %v6643_v56, %v6642_v15  ;;  %v6646_v25 = vrot.slane %v6642_v15, 4  ;;  %v21462_v33 = vld [vmem:[#allocation2 + $0x10] sm:$0xe]  ;;  %v21464_v40 = vld [vmem:[#allocation2 + $0x20] sm:$0xf] }
 0x41f   : > { %6771 = vst [vmem:[#allocation2 + $0x7c] sm:$0x1] %v6770_v23  ;;  %6768 = vst [vmem:[#allocation2 + $0x78] sm:$0xf] %v6767_v51  ;;  %v6785_v47 = vsel %vm20560_vm6, %v6661_v44, %v6784_v24  ;;  %v6788_v4 = vsel %vm20572_vm7, %v6662_v54, %v6787_v38  ;;  %v6885_v11 = vor.u32 %v6884_v36, %v6881_v37  ;;  %v6896_v6 = vshll.u32 %v21434_v17, 16 }
 0x420   : > { %6786 = vst [vmem:[#allocation2 + $0x90] sm:$0xf] %v6785_v47  ;;  %6789 = vst [vmem:[#allocation2 + $0x94] sm:$0x1] %v6788_v4  ;;  %v6773_v43 = vsel %vm20560_vm6, %v6645_v18, %v6772_v14  ;;  %v6776_v0 = vsel %vm20572_vm7, %v6646_v25, %v6775_v29  ;;  %v6902_v63 = vshll.u32 %v21436_v49, 16  ;;  %v6895_v61 = vrot.slane %v6893_v50, 4 }
 0x421   : > { %6777 = vst [vmem:[#allocation2 + $0x84] sm:$0x1] %v6776_v0  ;;  %6774 = vst [vmem:[#allocation2 + $0x80] sm:$0xf] %v6773_v43  ;;  %v6886_v53 = vrot.slane %v6885_v11, 4  ;;  %v6907_v41 = vshrl.u32 %v21442_v2, 16  ;;  %v6989_v58 = vsel %vm19572_vm14, %v21375_v39, %v21353_v13  ;;  %v21480_v38 = vsel %vm19788_vm8, %v16373_v10, %v7468_v16 }
 0x422   : > { %v6910_v37 = vshll.u32 %v21442_v2, 16  ;;  %v6898_v21 = vrot.slane %v6896_v6, 5  ;;  %v6916_v32 = vshll.u32 %v21448_v20, 16  ;;  %v21472_v24 = vld [vmem:[#allocation2 + $0x28] sm:$0xf]  ;;  %v6904_v12 = vrot.slane %v6902_v63, 5 }
 0x423   : > { %v6891_v30 = vsel %vm19572_vm14, %v6886_v53, %v6890_v31  ;;  %v6909_v27 = vrot.slane %v6907_v41, 4  ;;  %v21487_v42 = vld [vmem:[#allocation2 + $0x24] sm:$0x1]  ;;  %v21489_v14 = vld [vmem:[#allocation2 + $0x2c] sm:$0x1]  ;;  %v6921_v10 = vshrl.u32 %v21464_v40, 16 }
 0x424   : > { %v6912_v28 = vrot.slane %v6910_v37, 5  ;;  %v16337_v46 = vcombine.low %v6877_v35, %v6891_v30  ;;  %v6899_v62 = vor.u32 %v6898_v21, %v6895_v61  ;;  %v6918_v9 = vrot.slane %v6916_v32, 5  ;;  %v21498_v7 = vld [vmem:[#allocation2 + $0x30] sm:$0xf]  ;;  %v21502_v54 = vld [vmem:[#allocation2 + $0x34] sm:$0x1] }
 0x425   : > { %v6924_v3 = vshll.u32 %v21464_v40, 16  ;;  %v6935_v35 = vshrl.u32 %v21472_v24, 16  ;;  %v6923_v15 = vrot.slane %v6921_v10, 4  ;;  %v6930_v56 = vshll.u32 %v21487_v42, 16  ;;  %v21507_v18 = vld [vmem:[#allocation2 + $0x38] sm:$0xf] }
 0x426   : > { %v6913_v34 = vor.u32 %v6912_v28, %v6909_v27  ;;  %17898 = vmatprep.mubr.msk.bf16.mxu1 %vm860_vm15, %v16337_v46  ;;  %v6900_v5 = vrot.slane %v6899_v62, 4  ;;  %v6938_v44 = vshll.u32 %v21472_v24, 16  ;;  %v7476_v31 = vrot.slane %v21436_v49, 5  ;;  %v19189_v50 = vld [vmem:[%s20568_s0 + $0x98] sm:$0xff]   ;;  %v7422_v49 = vld [vmem:[#allocation2 + $0x20] sm:$0xe] }
 0x427   : > { %v6926_v51 = vrot.slane %v6924_v3, 5  ;;  %v6937_v23 = vrot.slane %v6935_v35, 4  ;;  %v6944_v4 = vshll.u32 %v21489_v14, 16  ;;  %v6949_v11 = vshrl.u32 %v21498_v7, 16  ;;  %v21514_v6 = vld [vmem:[#allocation2 + $0x3c] sm:$0x1] }
 0x428   : > { %v6914_v45 = vrot.slane %v6913_v34, 4  ;;  %v6905_v36 = vsel %vm19572_vm14, %v6900_v5, %v6904_v12  ;;  %v6940_v47 = vrot.slane %v6938_v44, 5  ;;  %v6952_v63 = vshll.u32 %v21498_v7, 16  ;;  %v21518_v61 = vld [vmem:[#allocation2 + $0x58] sm:$0xf]  ;;  %v21534_v44 = vld [vmem:[%s20568_s0 + $0xb0] sm:$0xff]  }
 0x429   : > { %v6927_v0 = vor.u32 %v6926_v51, %v6923_v15  ;;  %v6958_v53 = vshll.u32 %v21502_v54, 16  ;;  %v6932_v41 = vrot.slane %v6930_v56, 5  ;;  %v6951_v21 = vrot.slane %v6949_v11, 4  ;;  %v21521_v30 = vld [vmem:[#allocation2 + $0x5c] sm:$0x1] }
 0x42a   : > { %v6919_v25 = vsel %vm19572_vm14, %v6914_v45, %v6918_v9  ;;  %v6941_v37 = vor.u32 %v6940_v47, %v6937_v23  ;;  %v6963_v32 = vshrl.u32 %v21507_v18, 16  ;;  %v6946_v28 = vrot.slane %v6944_v4, 5  ;;  %v21525_v12 = vld [vmem:[#allocation2 + $0x60] sm:$0xf]  ;;  %v21527_v34 = vld [vmem:[#allocation2 + $0x64] sm:$0x1] }
 0x42b   : > { %v16338_v43 = vcombine.low %v6905_v36, %v6919_v25  ;;  %v6928_v27 = vrot.slane %v6927_v0, 4  ;;  %v6954_v46 = vrot.slane %v6952_v63, 5  ;;  %v6966_v62 = vshll.u32 %v21507_v18, 16  ;;  %v21541_v25 = vld [vmem:[#allocation2 + $0x68] sm:$0xf] }
 0x42c   : > { %v6942_v10 = vrot.slane %v6941_v37, 4  ;;  %v6965_v5 = vrot.slane %v6963_v32, 4  ;;  %v6972_v9 = vshll.u32 %v21514_v6, 16  ;;  %v6991_v3 = vshrl.u32 %v21518_v61, 16  ;;  %v21543_v0 = vld [vmem:[#allocation2 + $0x6c] sm:$0x1] }
 0x42d   : > { %17899 = vmatmul.mubr.msk.bf16.vlgmr.msra.gmra.mrb[0].mxu1 %vm860_vm15, %v16338_v43  ;;  %v6955_v35 = vor.u32 %v6954_v46, %v6951_v21  ;;  %v6960_v45 = vrot.slane %v6958_v53, 5  ;;  %v6968_v15 = vrot.slane %v6966_v62, 5  ;;  %v6994_v56 = vshll.u32 %v21518_v61, 16  ;;  %v21552_v46 = vld [vmem:[#allocation2 + $0x70] sm:$0xf] }
 0x42e   : > { %17915 = vmatpush3.bf16.msra.mxu1 %v21312_v19  ;;  %v6933_v36 = vsel %vm19572_vm14, %v6928_v27, %v6932_v41  ;;  %v6947_v19 = vsel %vm19572_vm14, %v6942_v10, %v6946_v28  ;;  %v6993_v51 = vrot.slane %v6991_v3, 4  ;;  %v7000_v23 = vshll.u32 %v21521_v30, 16 }
 0x42f   : > { %17916 = vmatprep.subr.bf16.mxu1 %v19189_v50  ;;  %v16339_v47 = vcombine.low %v6933_v36, %v6947_v19  ;;  %v6956_v4 = vrot.slane %v6955_v35, 4  ;;  %v6969_v11 = vor.u32 %v6968_v15, %v6965_v5  ;;  %v6996_v43 = vrot.slane %v6994_v56, 5  ;;  %v21559_v15 = vld [vmem:[#allocation2 + $0x74] sm:$0x1] }
 0x430   : > { %v6974_v63 = vrot.slane %v6972_v9, 5  ;;  %v7005_v53 = vshrl.u32 %v21525_v12, 16  ;;  %v7008_v37 = vshll.u32 %v21525_v12, 16  ;;  %v7014_v41 = vshll.u32 %v21527_v34, 16 }
 0x431   : > { %17902 = vmatprep.mubr.msk.bf16.mxu1 %vm860_vm15, %v16339_v47  ;;  %v6961_v21 = vsel %vm19572_vm14, %v6956_v4, %v6960_v45  ;;  %v6970_v32 = vrot.slane %v6969_v11, 4  ;;  %v6997_v27 = vor.u32 %v6996_v43, %v6993_v51  ;;  %v7019_v28 = vshrl.u32 %v21541_v25, 16  ;;  %v21561_v51 = vld [vmem:[#allocation2 + $0x78] sm:$0xf]  ;;  %v21563_v47 = vld [vmem:[#allocation2 + $0x7c] sm:$0x1] }
 0x432   : > { %17917 = vmatpush3.bf16.msra.mxu1 %v19189_v50  ;;  %v7002_v62 = vrot.slane %v7000_v23, 5  ;;  %v7007_v10 = vrot.slane %v7005_v53, 4  ;;  %v7010_v5 = vrot.slane %v7008_v37, 5  ;;  %v7022_v9 = vshll.u32 %v21541_v25, 16  ;;  %v21569_v53 = vld [vmem:[#allocation2 + $0x80] sm:$0xf] }
 0x433   : > { %17934 = vmatprep.subr.bf16.mxu1 %v21534_v44  ;;  %v6975_v50 = vsel %vm19572_vm14, %v6970_v32, %v6974_v63  ;;  %v6998_v3 = vrot.slane %v6997_v27, 4  ;;  %v7021_v35 = vrot.slane %v7019_v28, 4  ;;  %v7028_v45 = vshll.u32 %v21543_v0, 16  ;;  %v7421_v37 = vld [vmem:[#allocation2 + $0x18] sm:$0xe] }
 0x434   : > { %v16340_v56 = vcombine.low %v6961_v21, %v6975_v50  ;;  %v7011_v36 = vor.u32 %v7010_v5, %v7007_v10  ;;  %v7024_v19 = vrot.slane %v7022_v9, 5  ;;  %v7033_v23 = vshrl.u32 %v21552_v46, 16  ;;  %v21580_v9 = vld [vmem:[#allocation2 + $0x84] sm:$0x1] }
 0x435   : > { %v7003_v4 = vsel %vm19572_vm14, %v6998_v3, %v7002_v62  ;;  %v7016_v11 = vrot.slane %v7014_v41, 5  ;;  %v7030_v43 = vrot.slane %v7028_v45, 5  ;;  %v7036_v63 = vshll.u32 %v21552_v46, 16 }
 0x436   : > { %17903 = vmatmul.mubr.msk.bf16.gmra.mrb[4].mxu1 %vm860_vm15, %v16340_v56  ;;  %v16341_v21 = vcombine.low %v6989_v58, %v7003_v4  ;;  %v7012_v32 = vrot.slane %v7011_v36, 4  ;;  %v7025_v27 = vor.u32 %v7024_v19, %v7021_v35  ;;  %v7035_v28 = vrot.slane %v7033_v23, 4  ;;  %v21587_v56 = vld [vmem:[#allocation2 + $0x88] sm:$0xf]  ;;  %v21592_v4 = vld [vmem:[#allocation2 + $0x8c] sm:$0x1] }
 0x437   : > { %v7038_v10 = vrot.slane %v7036_v63, 5  ;;  %v7042_v41 = vshll.u32 %v21559_v15, 16  ;;  %v7047_v62 = vshrl.u32 %v21561_v51, 16  ;;  %v7050_v5 = vshll.u32 %v21561_v51, 16 }
 0x438   : > { %17906 = vmatprep.mubr.msk.bf16.mxu1 %vm860_vm15, %v16341_v21  ;;  %v7017_v50 = vsel %vm19572_vm14, %v7012_v32, %v7016_v11  ;;  %v7026_v3 = vrot.slane %v7025_v27, 4  ;;  %v7056_v13 = vshll.u32 %v21563_v47, 16  ;;  %v7061_v39 = vshrl.u32 %v21569_v53, 16 }
 0x439   : > { %v7039_v58 = vor.u32 %v7038_v10, %v7035_v28  ;;  %v7049_v35 = vrot.slane %v7047_v62, 4  ;;  %v7052_v45 = vrot.slane %v7050_v5, 5  ;;  %v7064_v36 = vshll.u32 %v21569_v53, 16 }
 0x43a   : > { %v16376_v19 = vrot.slane %v7421_v37, 9  ;;  %v7031_v23 = vsel %vm19572_vm14, %v7026_v3, %v7030_v43  ;;  %v7063_v63 = vrot.slane %v7061_v39, 4  ;;  %v7070_v11 = vshll.u32 %v21580_v9, 16 }
 0x43b   : > { %v16342_v21 = vcombine.low %v7017_v50, %v7031_v23  ;;  %v7040_v32 = vrot.slane %v7039_v58, 4  ;;  %v7053_v27 = vor.u32 %v7052_v45, %v7049_v35  ;;  %v7066_v29 = vrot.slane %v7064_v36, 5  ;;  %v7419_v58 = vld [vmem:[#allocation2 + $0x8] sm:$0xe]  ;;  %v7424_v23 = vld [vmem:[#allocation2 + $0x30] sm:$0xe] }
 0x43c   : > { %v7480_v28 = vrot.slane %v21448_v20, 5  ;;  %v7044_v10 = vrot.slane %v7042_v41, 5  ;;  %v7075_v62 = vshrl.u32 %v21587_v56, 16  ;;  %v7078_v5 = vshll.u32 %v21587_v56, 16  ;;  %v7423_v36 = vld [vmem:[#allocation2 + $0x28] sm:$0xe] }
 0x43d   : > { %v7054_v37 = vrot.slane %v7053_v27, 4  ;;  %v7058_v55 = vrot.slane %v7056_v13, 5  ;;  %v7067_v16 = vor.u32 %v7066_v29, %v7063_v63  ;;  %v7084_v43 = vshll.u32 %v21592_v4, 16 }
 0x43e   : > { %v7472_v3 = vrot.slane %v21422_v26, 5  ;;  %v24445_v50 = vrot.slane %v21462_v33, 9  ;;  %17907 = vmatmul.mubr.msk.bf16.gmra.mrb[8].mxu1 %vm860_vm15, %v16342_v21  ;;  %v7077_v20 = vrot.slane %v7075_v62, 4  ;;  %v7080_v41 = vrot.slane %v7078_v5, 5 }
 0x43f   : > { %v7045_v29 = vsel %vm19572_vm14, %v7040_v32, %v7044_v10  ;;  %v7059_v13 = vsel %vm19572_vm14, %v7054_v37, %v7058_v55  ;;  %v7068_v26 = vrot.slane %v7067_v16, 4  ;;  %v7072_v35 = vrot.slane %v7070_v11, 5  ;;  %v7425_v10 = vld [vmem:[#allocation2 + $0x38] sm:$0xe] }
 0x440   : > { %v21606_v39 = vsel %vm19788_vm8, %v24445_v50, %v7476_v31  ;;  %v21615_v33 = vsel %vm19788_vm8, %v16376_v19, %v7480_v28  ;;  %v16343_v31 = vcombine.low %v7045_v29, %v7059_v13  ;;  %v7081_v45 = vor.u32 %v7080_v41, %v7077_v20  ;;  %v7428_v41 = vld [vmem:[#allocation2 + $0x60] sm:$0xe] }
 0x441   : > { %v24446_v63 = vrot.slane %v21332_v8, 5  ;;  %v24447_v21 = vrot.slane %v21459_v57, 9  ;;  %v7073_v55 = vsel %vm19572_vm14, %v7068_v26, %v7072_v35  ;;  %v7086_v16 = vrot.slane %v7084_v43, 5  ;;  %v7430_v26 = vld [vmem:[#allocation2 + $0x70] sm:$0xe] }
 0x442   : > { %v16355_v19 = vcombine.low %v21315_v1, %v21404_v22  ;;  %v16374_v11 = vrot.slane %v7419_v58, 9  ;;  %17910 = vmatprep.mubr.msk.bf16.mxu1 %vm860_vm15, %v16343_v31  ;;  %v7082_v27 = vrot.slane %v7081_v45, 4  ;;  %v16390_v8 = vcombine.low %v21606_v39, %v21615_v33  ;;  %v7427_v1 = vld [vmem:[#allocation2 + $0x58] sm:$0xe] }
 0x443   : > { %v21623_v32 = vsel %vm19788_vm8, %v24447_v21, %v24446_v63  ;;  %v16377_v28 = vrot.slane %v7422_v49, 9  ;;  %v7484_v57 = vrot.slane %v21487_v42, 5  ;;  %v16378_v5 = vrot.slane %v7423_v36, 9  ;;  %v7431_v45 = vld [vmem:[#allocation2 + $0x78] sm:$0xe] }
 0x444   : > { %v21635_v62 = vsel %vm19788_vm8, %v16374_v11, %v7472_v3  ;;  %v7488_v37 = vrot.slane %v21489_v14, 5  ;;  %v16379_v43 = vrot.slane %v7424_v23, 9  ;;  %v7087_v22 = vsel %vm19572_vm14, %v7082_v27, %v7086_v16  ;;  %v7429_v3 = vld [vmem:[#allocation2 + $0x68] sm:$0xe]  ;;  %v7432_v21 = vld [vmem:[#allocation2 + $0x80] sm:$0xe] }
 0x445   : > { %v16389_v50 = vcombine.low %v21480_v38, %v21635_v62  ;;  %v21644_v20 = vsel %vm19788_vm8, %v16377_v28, %v7484_v57  ;;  %v7492_v42 = vrot.slane %v21502_v54, 5  ;;  %v16344_v58 = vcombine.low %v7073_v55, %v7087_v22  ;;  %v7433_v27 = vld [vmem:[#allocation2 + $0x88] sm:$0xe]  ;;  %v7914_v62 = vld [vmem:[#allocation2 + $0x20] sm:$0xf] }
 0x446   : > { %v21649_v14 = vsel %vm19788_vm8, %v16378_v5, %v7488_v37  ;;  %v16380_v29 = vrot.slane %v7425_v10, 9  ;;  %v7496_v13 = vrot.slane %v21514_v6, 5  ;;  %v16382_v31 = vrot.slane %v7427_v1, 9  ;;  %v19202_v38 = vld [vmem:[#allocation2 + $0x8] ss:$8 sps:$4 sm:$0xff]  }
 0x447   : > { %v16391_v35 = vcombine.low %v21644_v20, %v21649_v14  ;;  %v21656_v49 = vsel %vm19788_vm8, %v16379_v43, %v7492_v42  ;;  %v7504_v54 = vrot.slane %v21521_v30, 5  ;;  %17911 = vmatmul.mubr.msk.bf16.gmra.mrb[12].mxu1 %vm860_vm15, %v16344_v58  ;;  %v16383_v23 = vrot.slane %v7428_v41, 9  ;;  %v19196_v42 = vld [vmem:[%s20568_s0 + $0xb8] sm:$0xff]   ;;  %v19200_v58 = vld [vmem:[%s20568_s0 + $0xc0] sm:$0xff]  }
 0x448   : > { %v7497_v36 = vsel %vm19788_vm8, %v16380_v29, %v7496_v13  ;;  %v7508_v6 = vrot.slane %v21527_v34, 5  ;;  %v16384_v63 = vrot.slane %v7429_v3, 9  ;;  %17918 = vmatprep.mubr.msk.bf16.mxu1 %vm860_vm15, %v16355_v19  ;;  %v7512_v30 = vrot.slane %v21543_v0, 5  ;;  %v7912_v13 = vld [vmem:[#allocation2 + $0x18] sm:$0xf] }
 0x449   : > { %v16392_v55 = vcombine.low %v21656_v49, %v7497_v36  ;;  %v7505_v16 = vsel %vm19788_vm8, %v16382_v31, %v7504_v54  ;;  %v16385_v11 = vrot.slane %v7430_v26, 9  ;;  %v7516_v34 = vrot.slane %v21559_v15, 5  ;;  %v19206_v49 = vld [vmem:[#allocation2 + $0x38] ss:$8 sps:$4 sm:$0xff]   ;;  %v7916_v36 = vld [vmem:[#allocation2 + $0x28] sm:$0xf] }
 0x44a   : > { %v16393_v28 = vcombine.low %v21623_v32, %v7505_v16  ;;  %v7509_v57 = vsel %vm19788_vm8, %v16383_v23, %v7508_v6  ;;  %v16386_v10 = vrot.slane %v7431_v45, 9  ;;  %v7513_v19 = vsel %vm19788_vm8, %v16384_v63, %v7512_v30  ;;  %v19207_v45 = vld [vmem:[#allocation2 + $0x58] ss:$8 sps:$4 sm:$0xff]   ;;  %v21733_v23 = vld [vmem:[#allocation2 + $0xc] sm:$0x1] }
 0x44b   : > { %v7520_v5 = vrot.slane %v21563_v47, 5  ;;  %v16387_v37 = vrot.slane %v7432_v21, 9  ;;  %v7524_v43 = vrot.slane %v21580_v9, 5  ;;  %v16394_v0 = vcombine.low %v7509_v57, %v7513_v19  ;;  %v21735_v6 = vld [vmem:[#allocation2 + $0x14] sm:$0x1] }
 0x44c   : > { %v16388_v1 = vrot.slane %v7433_v27, 9  ;;  %v7528_v22 = vrot.slane %v21592_v4, 5  ;;  %v7517_v32 = vsel %vm19788_vm8, %v16385_v11, %v7516_v34  ;;  %v16356_v47 = vcombine.low %v21434_v17, %v21442_v2  ;;  %v19229_v2 = vld [vmem:[#allocation2 + $0x50] sm:$0xf] }
 0x44d   : > { %v7521_v15 = vsel %vm19788_vm8, %v16386_v10, %v7520_v5  ;;  %v7525_v20 = vsel %vm19788_vm8, %v16387_v37, %v7524_v43  ;;  %v16357_v4 = vcombine.low %v21464_v40, %v21472_v24  ;;  %v16358_v17 = vcombine.low %v21498_v7, %v21507_v18  ;;  %v19201_v18 = vld [vmem:[%s20568_s0 + $0xc8] sm:$0xff]   ;;  %v7918_v11 = vld [vmem:[#allocation2 + $0x30] sm:$0xf]  ;;  %v21742_v5 = vld [vmem:[#allocation2 + $0x24] sm:$0x1] }
 0x44e   : > { %v16395_v41 = vcombine.low %v7517_v32, %v7521_v15  ;;  %v7529_v9 = vsel %vm19788_vm8, %v16388_v1, %v7528_v22  ;;  %v16359_v14 = vcombine.low %v19229_v2, %v21518_v61  ;;  %v16360_v40 = vcombine.low %v21525_v12, %v21541_v25  ;;  %v19203_v61 = vld [vmem:[%s20568_s0 + $0xd0] sm:$0xff]   ;;  %v19204_v12 = vld [vmem:[#allocation2 + $0x18] ss:$8 sps:$4 sm:$0xff]   ;;  %v7908_v25 = vld [vmem:[#allocation2 + $0x8] sm:$0xf] }
 0x44f   : > { %v16396_v3 = vcombine.low %v7525_v20, %v7529_v9  ;;  %17919 = vmatmul.mubr.msk.bf16.vlgmr.msra.gmra.mrb[0].mxu1 %vm860_vm15, %v16356_v47  ;;  %v16361_v24 = vcombine.low %v21552_v46, %v21561_v51  ;;  %v16362_v7 = vcombine.low %v21569_v53, %v21587_v56  ;;  %v19205_v46 = vld [vmem:[#allocation2 + $0x28] ss:$8 sps:$4 sm:$0xff]   ;;  %v7941_v53 = vshrl.u32 %v7908_v25, 16 }
 0x450   : > { %17935 = vmatpush3.bf16.msra.mxu1 %v21534_v44  ;;  %17922 = vmatprep.mubr.msk.bf16.mxu1 %vm860_vm15, %v16357_v4  ;;  %v19208_v44 = vld [vmem:[%s20568_s0 + $0xd8] sm:$0xff]   ;;  %v7910_v51 = vld [vmem:[#allocation2 + $0x10] sm:$0xf]  ;;  %v7944_v56 = vshll.u32 %v7908_v25, 16  ;;  %v7983_v26 = vshrl.u32 %v7914_v62, 16  ;;  %v7969_v63 = vshrl.u32 %v7912_v13, 16 }
 0x451   : > { %17936 = vmatprep.subr.bf16.mxu1 %v19196_v42  ;;  %v7955_v39 = vshrl.u32 %v7910_v51, 16  ;;  %v7958_v33 = vshll.u32 %v7910_v51, 16  ;;  %v7972_v21 = vshll.u32 %v7912_v13, 16  ;;  %v7997_v57 = vshrl.u32 %v7916_v36, 16  ;;  %v19209_v22 = vld [vmem:[#allocation2 + $0x68] ss:$8 sps:$4 sm:$0xff]  }
 0x452   : > { %v7946_v29 = vrot.slane %v7944_v56, 5  ;;  %v7985_v16 = vrot.slane %v7983_v26, 4  ;;  %v8000_v34 = vshll.u32 %v7916_v36, 16  ;;  %v7950_v10 = vshll.u32 %v21733_v23, 16  ;;  %v21755_v51 = vld [vmem:[#allocation2 + $0x34] sm:$0x1] }
 0x453   : > { %v7957_v31 = vrot.slane %v7955_v39, 4  ;;  %v7960_v54 = vrot.slane %v7958_v33, 5  ;;  %v7964_v19 = vshll.u32 %v21735_v6, 16  ;;  %v7971_v37 = vrot.slane %v7969_v63, 4  ;;  %v21757_v56 = vld [vmem:[#allocation2 + $0x3c] sm:$0x1] }
 0x454   : > { %17937 = vmatpush3.bf16.msra.mxu1 %v19196_v42  ;;  %v7974_v43 = vrot.slane %v7972_v21, 5  ;;  %v8014_v1 = vshll.u32 %v7918_v11, 16  ;;  %v7992_v42 = vshll.u32 %v21742_v5, 16  ;;  %v7999_v9 = vrot.slane %v7997_v57, 4  ;;  %v19211_v63 = vld [vmem:[#allocation2 + $0x88] ss:$8 sps:$4 sm:$0xff]  }
 0x455   : > { %17954 = vmatprep.subr.bf16.mxu1 %v19200_v58  ;;  %v7961_v27 = vor.u32 %v7960_v54, %v7957_v31  ;;  %v8002_v4 = vrot.slane %v8000_v34, 5  ;;  %v7966_v2 = vrot.slane %v7964_v19, 5  ;;  %v8020_v36 = vshll.u32 %v21755_v51, 16 }
 0x457   : > { %17923 = vmatmul.mubr.msk.bf16.gmra.mrb[4].mxu1 %vm860_vm15, %v16358_v17  ;;  %v7962_v47 = vrot.slane %v7961_v27, 4  ;;  %v7920_v17 = vld [vmem:[#allocation2 + $0x38] sm:$0xf] }
 0x458   : > { %17926 = vmatprep.mubr.msk.bf16.mxu1 %vm860_vm15, %v16359_v14  ;;  %v7975_v14 = vor.u32 %v7974_v43, %v7971_v37  ;;  %v8025_v39 = vshrl.u32 %v7920_v17, 16  ;;  %v8028_v33 = vshll.u32 %v7920_v17, 16  ;;  %v21766_v37 = vld [vmem:[#allocation2 + $0x44] sm:$0x1] }
 0x459   : > { %v7967_v25 = vsel %vm19572_vm14, %v7962_v47, %v7966_v2  ;;  %v21775_v2 = vld [vmem:[#allocation2 + $0x64] sm:$0x1] }
 0x45a   : > { %v7976_v13 = vrot.slane %v7975_v14, 4  ;;  %v8030_v27 = vrot.slane %v8028_v33, 5  ;;  %v19213_v33 = vld [vmem:[%s20568_s0 + $0xe8] sm:$0xff]  }
 0x45f   : > { %17927 = vmatmul.mubr.msk.bf16.gmra.mrb[8].mxu1 %vm860_vm15, %v16360_v40 }
 0x460   : > { %17930 = vmatprep.mubr.msk.bf16.mxu1 %vm860_vm15, %v16361_v24  ;;  %v8016_v24 = vrot.slane %v8014_v1, 5  ;;  %v7930_v1 = vld [vmem:[#allocation2 + $0x70] sm:$0xf] }
 0x461   : > { %v8095_v14 = vshrl.u32 %v7930_v1, 16 }
 0x467   : > { %17931 = vmatmul.mubr.msk.bf16.gmra.mrb[12].mxu1 %vm860_vm15, %v16362_v7  ;;  %v7922_v7 = vld [vmem:[#allocation2 + $0x40] sm:$0xf] }
 0x468   : > { %17938 = vmatprep.mubr.msk.bf16.mxu1 %vm860_vm15, %v16389_v50  ;;  %v7943_v50 = vrot.slane %v7941_v53, 4  ;;  %v8003_v53 = vor.u32 %v8002_v4, %v7999_v9 }
 0x46a   : > { %v8004_v21 = vrot.slane %v8003_v53, 4 }
 0x46f   : > { %17939 = vmatmul.mubr.msk.bf16.vlgmr.msra.gmra.mrb[0].mxu1 %vm860_vm15, %v16390_v8  ;;  %v21729_v8 = vld [vmem:[%s20568_s0 + $0xe0] sm:$0xff]  }
 0x470   : > { %17955 = vmatpush3.bf16.msra.mxu1 %v19200_v58  ;;  %17942 = vmatprep.mubr.msk.bf16.mxu1 %vm860_vm15, %v16391_v35  ;;  %v7986_v35 = vshll.u32 %v7914_v62, 16  ;;  %v7952_v58 = vrot.slane %v7950_v10, 5  ;;  %v8039_v62 = vshrl.u32 %v7922_v7, 16 }
 0x471   : > { %17956 = vmatprep.subr.bf16.mxu1 %v19201_v18 }
 0x472   : > { %v7988_v30 = vrot.slane %v7986_v35, 5  ;;  %v8041_v57 = vrot.slane %v8039_v62, 4 }
 0x474   : > { %17957 = vmatpush3.bf16.msra.mxu1 %v19201_v18  ;;  %v7989_v20 = vor.u32 %v7988_v30, %v7985_v16 }
 0x475   : > { %17974 = vmatprep.subr.bf16.mxu1 %v19203_v61 }
 0x477   : > { %17943 = vmatmul.mubr.msk.bf16.gmra.mrb[4].mxu1 %vm860_vm15, %v16392_v55  ;;  %v7947_v55 = vor.u32 %v7946_v29, %v7943_v50  ;;  %v8042_v50 = vshll.u32 %v7922_v7, 16  ;;  %v7924_v29 = vld [vmem:[#allocation2 + $0x58] sm:$0xf] }
 0x478   : > { %17946 = vmatprep.mubr.msk.bf16.mxu1 %vm860_vm15, %v16393_v28  ;;  %v21738_v28 = vld [vmem:[#allocation2 + $0x1c] sm:$0x1]  ;;  %v8053_v16 = vshrl.u32 %v7924_v29, 16  ;;  %v8056_v30 = vshll.u32 %v7924_v29, 16 }
 0x479   : > { %v7948_v32 = vrot.slane %v7947_v55, 4  ;;  %v7978_v15 = vshll.u32 %v21738_v28, 16  ;;  %v8034_v55 = vshll.u32 %v21757_v56, 16  ;;  %v8044_v34 = vrot.slane %v8042_v50, 5 }
 0x47a   : > { %v8055_v9 = vrot.slane %v8053_v16, 4  ;;  %v8058_v4 = vrot.slane %v8056_v30, 5 }
 0x47b   : > { %v7980_v18 = vrot.slane %v7978_v15, 5  ;;  %v21769_v15 = vld [vmem:[#allocation2 + $0x5c] sm:$0x1]  ;;  %v8045_v17 = vor.u32 %v8044_v34, %v8041_v57 }
 0x47c   : > { %v8059_v53 = vor.u32 %v8058_v4, %v8055_v9 }
 0x47d   : > { %v7981_v10 = vsel %vm19572_vm14, %v7976_v13, %v7980_v18  ;;  %v8046_v13 = vrot.slane %v8045_v17, 4  ;;  %v21804_v17 = vld [vmem:[#allocation2 + $0x7c] sm:$0x1] }
 0x47e   : > { %v8060_v57 = vrot.slane %v8059_v53, 4 }
 0x47f   : > { %17947 = vmatmul.mubr.msk.bf16.gmra.mrb[8].mxu1 %vm860_vm15, %v16394_v0  ;;  %v8011_v0 = vshrl.u32 %v7918_v11, 16  ;;  %v8027_v11 = vrot.slane %v8025_v39, 4  ;;  %v8076_v39 = vshll.u32 %v21775_v2, 16 }
 0x480   : > { %17950 = vmatprep.mubr.msk.bf16.mxu1 %vm860_vm15, %v16395_v41  ;;  %v21746_v41 = vld [vmem:[#allocation2 + $0x2c] sm:$0x1] }
 0x481   : > { %v8013_v40 = vrot.slane %v8011_v0, 4  ;;  %v8078_v34 = vrot.slane %v8076_v39, 5 }
 0x483   : > { %v8017_v26 = vor.u32 %v8016_v24, %v8013_v40  ;;  %v8098_v40 = vshll.u32 %v7930_v1, 16  ;;  %v7932_v24 = vld [vmem:[#allocation2 + $0x78] sm:$0xf] }
 0x484   : > { %v8109_v62 = vshrl.u32 %v7932_v24, 16  ;;  %v8112_v50 = vshll.u32 %v7932_v24, 16 }
 0x485   : > { %v8018_v19 = vrot.slane %v8017_v26, 4  ;;  %v21783_v26 = vld [vmem:[#allocation2 + $0x6c] sm:$0x1] }
 0x486   : > { %v8090_v9 = vshll.u32 %v21783_v26, 16 }
 0x487   : > { %17951 = vmatmul.mubr.msk.bf16.gmra.mrb[12].mxu1 %vm860_vm15, %v16396_v3  ;;  %v19210_v3 = vld [vmem:[#allocation2 + $0x78] ss:$8 sps:$4 sm:$0xff]  }
 0x488   : > { %17958 = vmatprep.mubr.msk.bf16.mxu1 %vm860_vm15, %v19202_v38  ;;  %v8006_v38 = vshll.u32 %v21746_v41, 16 }
 0x48f   : > { %17959 = vmatmul.mubr.msk.bf16.vlgmr.msra.gmra.mrb[0].mxu1 %vm860_vm15, %v19204_v12  ;;  %v7926_v12 = vld [vmem:[#allocation2 + $0x60] sm:$0xf] }
 0x490   : > { %17975 = vmatpush3.bf16.msra.mxu1 %v19203_v61  ;;  %17962 = vmatprep.mubr.msk.bf16.mxu1 %vm860_vm15, %v19205_v46  ;;  %v7990_v61 = vrot.slane %v7989_v20, 4  ;;  %v7994_v46 = vrot.slane %v7992_v42, 5  ;;  %v8067_v35 = vshrl.u32 %v7926_v12, 16  ;;  %v7934_v20 = vld [vmem:[#allocation2 + $0x80] sm:$0xf]  ;;  %v21773_v42 = vrot.slane %v8034_v55, 5 }
 0x491   : > { %17976 = vmatprep.subr.bf16.mxu1 %v19208_v44 }
 0x492   : > { %v7995_v54 = vsel %vm19572_vm14, %v7990_v61, %v7994_v46  ;;  %v8069_v43 = vrot.slane %v8067_v35, 4  ;;  %v8123_v61 = vshrl.u32 %v7934_v20, 16  ;;  %v8097_v35 = vrot.slane %v8095_v14, 4 }
 0x494   : > { %17977 = vmatpush3.bf16.msra.mxu1 %v19208_v44  ;;  %v7953_v44 = vsel %vm19572_vm14, %v7948_v32, %v7952_v58  ;;  %v8022_v32 = vrot.slane %v8020_v36, 5  ;;  %v8031_v58 = vor.u32 %v8030_v27, %v8027_v11  ;;  %v8125_v36 = vrot.slane %v8123_v61, 4  ;;  %v7936_v27 = vld [vmem:[#allocation2 + $0x88] sm:$0xf] }
 0x495   : > { %17994 = vmatprep.subr.bf16.mxu1 %v21729_v8  ;;  %v16425_v31 = vcombine.low %v7953_v44, %v7967_v25  ;;  %v8062_v44 = vshll.u32 %v21769_v15, 16  ;;  %v8137_v14 = vshrl.u32 %v7936_v27, 16 }
 0x496   : > { %v8023_v7 = vsel %vm19572_vm14, %v8018_v19, %v8022_v32  ;;  %v8114_v19 = vrot.slane %v8112_v50, 5 }
 0x497   : > { %17963 = vmatmul.mubr.msk.bf16.gmra.mrb[4].mxu1 %vm860_vm15, %v19206_v49  ;;  %v8070_v49 = vshll.u32 %v7926_v12, 16  ;;  %v8048_v12 = vshll.u32 %v21766_v37, 16  ;;  %v8064_v16 = vrot.slane %v8062_v44, 5 }
 0x498   : > { %17966 = vmatprep.mubr.msk.bf16.mxu1 %vm860_vm15, %v19207_v45  ;;  %v8008_v45 = vrot.slane %v8006_v38, 5  ;;  %v8126_v38 = vshll.u32 %v7934_v20, 16 }
 0x499   : > { %v8072_v0 = vrot.slane %v8070_v49, 5  ;;  %v8100_v49 = vrot.slane %v8098_v40, 5  ;;  %v8050_v55 = vrot.slane %v8048_v12, 5  ;;  %v8140_v40 = vshll.u32 %v7936_v27, 16 }
 0x49a   : > { %v8009_v47 = vsel %vm19572_vm14, %v8004_v21, %v8008_v45  ;;  %v21786_v45 = vld [vmem:[#allocation2 + $0x74] sm:$0x1]  ;;  %v7938_v21 = vld [vmem:[#allocation2 + $0x90] sm:$0xf] }
 0x49b   : > { %v8073_v18 = vor.u32 %v8072_v0, %v8069_v43  ;;  %v16427_v29 = vcombine.low %v8009_v47, %v8023_v7  ;;  %v21791_v43 = vld [vmem:[%s20568_s0 + $0xf0] sm:$0xff]   ;;  %v8051_v0 = vsel %vm19572_vm14, %v8046_v13, %v8050_v55  ;;  %v8101_v1 = vor.u32 %v8100_v49, %v8097_v35 }
 0x49c   : > { %v8154_v32 = vshll.u32 %v7938_v21, 16  ;;  %v8065_v7 = vsel %vm19572_vm14, %v8060_v57, %v8064_v16  ;;  %v21813_v13 = vld [vmem:[#allocation2 + $0x94] sm:$0x1]  ;;  %v8092_v35 = vrot.slane %v8090_v9, 5 }
 0x49d   : > { %v8160_v16 = vshll.u32 %v21813_v13, 16 }
 0x49e   : > { %v8156_v44 = vrot.slane %v8154_v32, 5 }
 0x49f   : > { %17967 = vmatmul.mubr.msk.bf16.gmra.mrb[8].mxu1 %vm860_vm15, %v19209_v22  ;;  %v16426_v22 = vcombine.low %v7981_v10, %v7995_v54  ;;  %v8074_v54 = vrot.slane %v8073_v18, 4  ;;  %v8111_v10 = vrot.slane %v8109_v62, 4  ;;  %v8142_v62 = vrot.slane %v8140_v40, 5  ;;  %v8342_v40 = vld [vmem:[#allocation2 + $0x30] sm:$0xe] }
 0x4a0   : > { %17970 = vmatprep.mubr.msk.bf16.mxu1 %vm860_vm15, %v19210_v3  ;;  %v7928_v3 = vld [vmem:[#allocation2 + $0x68] sm:$0xf]  ;;  %v8162_v32 = vrot.slane %v8160_v16, 5  ;;  %v8411_v16 = vrot.slane %v21757_v56, 5 }
 0x4a1   : > { %v8081_v25 = vshrl.u32 %v7928_v3, 16  ;;  %v8084_v46 = vshll.u32 %v7928_v3, 16  ;;  %v8079_v47 = vsel %vm19572_vm14, %v8074_v54, %v8078_v34  ;;  %v8115_v18 = vor.u32 %v8114_v19, %v8111_v10  ;;  %v8337_v19 = vld [vmem:[#allocation2 + $0x8] sm:$0xe] }
 0x4a2   : > { %v16429_v61 = vcombine.low %v8065_v7, %v8079_v47  ;;  %v8387_v47 = vrot.slane %v21733_v23, 5  ;;  %v8339_v7 = vld [vmem:[#allocation2 + $0x18] sm:$0xe]  ;;  %v8399_v23 = vrot.slane %v21742_v5, 5 }
 0x4a3   : > { %v8083_v30 = vrot.slane %v8081_v25, 4  ;;  %v8086_v11 = vrot.slane %v8084_v46, 5  ;;  %v8118_v25 = vshll.u32 %v21804_v17, 16  ;;  %v8116_v50 = vrot.slane %v8115_v18, 4 }
 0x4a5   : > { %v8087_v3 = vor.u32 %v8086_v11, %v8083_v30  ;;  %v8120_v54 = vrot.slane %v8118_v25, 5  ;;  %v8338_v30 = vld [vmem:[#allocation2 + $0x10] sm:$0xe]  ;;  %v8395_v25 = vrot.slane %v21738_v28, 5  ;;  %v19215_v28 = vld [vmem:[%s20568_s0 + $0xf8] sm:$0xff]  }
 0x4a7   : > { %17971 = vmatmul.mubr.msk.bf16.gmra.mrb[12].mxu1 %vm860_vm15, %v19211_v63  ;;  %v8128_v63 = vrot.slane %v8126_v38, 5  ;;  %v8102_v38 = vrot.slane %v8101_v1, 4  ;;  %v8088_v53 = vrot.slane %v8087_v3, 4  ;;  %v8121_v27 = vsel %vm19572_vm14, %v8116_v50, %v8120_v54  ;;  %v8346_v50 = vld [vmem:[#allocation2 + $0x60] sm:$0xe] }
 0x4a8   : > { %17978 = vmatprep.mubr.msk.bf16.mxu1 %vm860_vm15, %v16425_v31  ;;  %v8032_v31 = vrot.slane %v8031_v58, 4  ;;  %v8104_v58 = vshll.u32 %v21786_v45, 16  ;;  %v8391_v1 = vrot.slane %v21735_v6, 5  ;;  %v8345_v54 = vld [vmem:[#allocation2 + $0x58] sm:$0xe] }
 0x4a9   : > { %v8129_v4 = vor.u32 %v8128_v63, %v8125_v36  ;;  %v21819_v63 = vld [vmem:[#allocation2 + $0x8c] sm:$0x1] }
 0x4aa   : > { %v8037_v20 = vsel %vm19572_vm14, %v8032_v31, %v21773_v42  ;;  %v8106_v39 = vrot.slane %v8104_v58, 5  ;;  %v8146_v34 = vshll.u32 %v21819_v63, 16  ;;  %v8340_v58 = vld [vmem:[#allocation2 + $0x20] sm:$0xe] }
 0x4ab   : > { %v16428_v24 = vcombine.low %v8037_v20, %v8051_v0  ;;  %v8130_v46 = vrot.slane %v8129_v4, 4  ;;  %v16444_v0 = vrot.slane %v8338_v30, 9  ;;  %v16443_v20 = vrot.slane %v8337_v19, 9  ;;  %v8347_v19 = vld [vmem:[#allocation2 + $0x68] sm:$0xe] }
 0x4ac   : > { %v8107_v49 = vsel %vm19572_vm14, %v8102_v38, %v8106_v39  ;;  %v8148_v9 = vrot.slane %v8146_v34, 5  ;;  %v16448_v38 = vrot.slane %v8342_v40, 9  ;;  %v16451_v30 = vrot.slane %v8345_v54, 9  ;;  %v8348_v34 = vld [vmem:[#allocation2 + $0x70] sm:$0xe] }
 0x4ad   : > { %v8392_v3 = vsel %vm19788_vm8, %v16444_v0, %v8391_v1  ;;  %v16454_v0 = vrot.slane %v8348_v34, 9  ;;  %v8431_v1 = vrot.slane %v21786_v45, 5  ;;  %v19221_v54 = vld [vmem:[#allocation2 + $0x60] ss:$8 sps:$4 sm:$0xff]   ;;  %v21908_v34 = vld [vmem:[#allocation2 + $0x24] sm:$0x1] }
 0x4af   : > { %17979 = vmatmul.mubr.msk.bf16.vlgmr.msra.gmra.mrb[0].mxu1 %vm860_vm15, %v16426_v22  ;;  %v21795_v22 = vld [vmem:[#allocation2 + $0x84] sm:$0x1] }
 0x4b0   : > { %17995 = vmatpush3.bf16.msra.mxu1 %v21729_v8  ;;  %17982 = vmatprep.mubr.msk.bf16.mxu1 %vm860_vm15, %v16427_v29  ;;  %v8151_v8 = vshrl.u32 %v7938_v21, 16  ;;  %v8132_v42 = vshll.u32 %v21795_v22, 16  ;;  %v8093_v21 = vsel %vm19572_vm14, %v8088_v53, %v8092_v35  ;;  %v8403_v53 = vrot.slane %v21746_v41, 5  ;;  %v8343_v35 = vld [vmem:[#allocation2 + $0x38] sm:$0xe] }
 0x4b1   : > { %17996 = vmatprep.subr.bf16.mxu1 %v19213_v33  ;;  %v16430_v11 = vcombine.low %v8093_v21, %v8107_v49  ;;  %v8423_v21 = vrot.slane %v21775_v2, 5 }
 0x4b2   : > { %v8153_v12 = vrot.slane %v8151_v8, 4  ;;  %v8134_v29 = vrot.slane %v8132_v42, 5  ;;  %v16446_v42 = vrot.slane %v8340_v58, 9  ;;  %v8432_v58 = vsel %vm19788_vm8, %v16454_v0, %v8431_v1  ;;  %v19223_v1 = vld [vmem:[#allocation2 + $0x70] ss:$8 sps:$4 sm:$0xff]  }
 0x4b4   : > { %17997 = vmatpush3.bf16.msra.mxu1 %v19213_v33  ;;  %v8139_v33 = vrot.slane %v8137_v14, 4  ;;  %v8157_v31 = vor.u32 %v8156_v44, %v8153_v12  ;;  %v8135_v36 = vsel %vm19572_vm14, %v8130_v46, %v8134_v29  ;;  %v8407_v12 = vrot.slane %v21755_v51, 5 }
 0x4b5   : > { %18014 = vmatprep.subr.bf16.mxu1 %v21791_v43  ;;  %v16431_v57 = vcombine.low %v8121_v27, %v8135_v36  ;;  %v16445_v44 = vrot.slane %v8339_v7, 9  ;;  %v8400_v39 = vsel %vm19788_vm8, %v16446_v42, %v8399_v23  ;;  %v16452_v36 = vrot.slane %v8346_v50, 9  ;;  %v19217_v27 = vld [vmem:[%s20568_s0 + $0x100] sm:$0xff]  }
 0x4b6   : > { %v8143_v55 = vor.u32 %v8142_v62, %v8139_v33  ;;  %v8158_v10 = vrot.slane %v8157_v31, 4  ;;  %v8408_v5 = vsel %vm19788_vm8, %v16448_v38, %v8407_v12  ;;  %v8344_v33 = vld [vmem:[#allocation2 + $0x40] sm:$0xe]  ;;  %v8415_v31 = vrot.slane %v21766_v37, 5  ;;  %v19216_v12 = vld [vmem:[#allocation2 + $0x10] ss:$8 sps:$4 sm:$0xff]  }
 0x4b7   : > { %17983 = vmatmul.mubr.msk.bf16.gmra.mrb[4].mxu1 %vm860_vm15, %v16428_v24  ;;  %v8388_v24 = vsel %vm19788_vm8, %v16443_v20, %v8387_v47  ;;  %v8396_v62 = vsel %vm19788_vm8, %v16445_v44, %v8395_v25  ;;  %v16450_v41 = vrot.slane %v8344_v33, 9  ;;  %v8439_v20 = vrot.slane %v21795_v22, 5  ;;  %v19222_v44 = vld [vmem:[%s20568_s0 + $0x108] sm:$0xff]   ;;  %v8827_v25 = vld [vmem:[#allocation2 + $0x10] sm:$0xf] }
 0x4b8   : > { %17986 = vmatprep.mubr.msk.bf16.mxu1 %vm860_vm15, %v16429_v61  ;;  %v8144_v8 = vrot.slane %v8143_v55, 4  ;;  %v8163_v4 = vsel %vm19572_vm14, %v8158_v10, %v8162_v32  ;;  %v16459_v18 = vcombine.low %v8388_v24, %v8392_v3  ;;  %v8341_v61 = vld [vmem:[#allocation2 + $0x28] sm:$0xe]  ;;  %v16460_v51 = vcombine.low %v8396_v62, %v8400_v39  ;;  %v8829_v39 = vld [vmem:[#allocation2 + $0x18] sm:$0xf] }
 0x4b9   : > { %v16447_v46 = vrot.slane %v8341_v61, 9  ;;  %v16449_v55 = vrot.slane %v8343_v35, 9  ;;  %v8416_v37 = vsel %vm19788_vm8, %v16450_v41, %v8415_v31  ;;  %v16453_v47 = vrot.slane %v8347_v19, 9  ;;  %v8351_v24 = vld [vmem:[#allocation2 + $0x88] sm:$0xe] }
 0x4ba   : > { %v8149_v14 = vsel %vm19572_vm14, %v8144_v8, %v8148_v9  ;;  %v8349_v8 = vld [vmem:[#allocation2 + $0x78] sm:$0xe]  ;;  %v8427_v9 = vrot.slane %v21783_v26, 5  ;;  %v8435_v3 = vrot.slane %v21804_v17, 5  ;;  %v8447_v17 = vrot.slane %v21813_v13, 5 }
 0x4bb   : > { %v16432_v6 = vcombine.low %v8149_v14, %v8163_v4  ;;  %v8404_v29 = vsel %vm19788_vm8, %v16447_v46, %v8403_v53  ;;  %v8412_v2 = vsel %vm19788_vm8, %v16449_v55, %v8411_v16  ;;  %v16455_v4 = vrot.slane %v8349_v8, 9  ;;  %v8352_v14 = vld [vmem:[#allocation2 + $0x90] sm:$0xe]  ;;  %v19218_v13 = vld [vmem:[#allocation2 + $0x20] ss:$8 sps:$4 sm:$0xff]  }
 0x4bc   : > { %v16461_v49 = vcombine.low %v8404_v29, %v8408_v5  ;;  %v16462_v10 = vcombine.low %v8412_v2, %v8416_v37  ;;  %v8428_v40 = vsel %vm19788_vm8, %v16453_v47, %v8427_v9  ;;  %v16458_v7 = vrot.slane %v8352_v14, 9  ;;  %v19219_v46 = vld [vmem:[#allocation2 + $0x30] ss:$8 sps:$4 sm:$0xff]   ;;  %v8833_v33 = vld [vmem:[#allocation2 + $0x28] sm:$0xf] }
 0x4bd   : > { %v8436_v22 = vsel %vm19788_vm8, %v16455_v4, %v8435_v3  ;;  %v8443_v42 = vrot.slane %v21819_v63, 5  ;;  %v8860_v63 = vshrl.u32 %v8827_v25, 16  ;;  %v8863_v53 = vshll.u32 %v8827_v25, 16  ;;  %v21898_v5 = vld [vmem:[%s20568_s0 + $0x110] sm:$0xff]   ;;  %v8831_v35 = vld [vmem:[#allocation2 + $0x20] sm:$0xf] }
 0x4be   : > { %v8448_v23 = vsel %vm19788_vm8, %v16458_v7, %v8447_v17  ;;  %v8877_v29 = vshll.u32 %v8829_v39, 16  ;;  %v8902_v41 = vshrl.u32 %v8833_v33, 16  ;;  %v8905_v31 = vshll.u32 %v8833_v33, 16  ;;  %v8837_v16 = vld [vmem:[#allocation2 + $0x38] sm:$0xf] }
 0x4bf   : > { %17987 = vmatmul.mubr.msk.bf16.gmra.mrb[8].mxu1 %vm860_vm15, %v16430_v11  ;;  %v8419_v11 = vrot.slane %v21769_v15, 5  ;;  %v8862_v62 = vrot.slane %v8860_v63, 4  ;;  %v8865_v50 = vrot.slane %v8863_v53, 5  ;;  %v8891_v55 = vshll.u32 %v8831_v35, 16  ;;  %v21910_v19 = vld [vmem:[#allocation2 + $0x2c] sm:$0x1] }
 0x4c0   : > { %17990 = vmatprep.mubr.msk.bf16.mxu1 %vm860_vm15, %v16431_v57  ;;  %v8424_v57 = vsel %vm19788_vm8, %v16452_v36, %v8423_v21  ;;  %v8835_v36 = vld [vmem:[#allocation2 + $0x30] sm:$0xf]  ;;  %v8888_v21 = vshrl.u32 %v8831_v35, 16  ;;  %v8904_v2 = vrot.slane %v8902_v41, 4  ;;  %v8933_v0 = vshll.u32 %v8837_v16, 16 }
 0x4c1   : > { %v8420_v56 = vsel %vm19788_vm8, %v16451_v30, %v8419_v11  ;;  %v21905_v30 = vld [vmem:[#allocation2 + $0x1c] sm:$0x1]  ;;  %v8866_v11 = vor.u32 %v8865_v50, %v8862_v62  ;;  %v8839_v47 = vld [vmem:[#allocation2 + $0x40] sm:$0xf]  ;;  %v8841_v14 = vld [vmem:[#allocation2 + $0x48] sm:$0xf] }
 0x4c2   : > { %v16463_v15 = vcombine.low %v8420_v56, %v8424_v57  ;;  %v8879_v57 = vrot.slane %v8877_v29, 5  ;;  %v8919_v56 = vshll.u32 %v8835_v36, 16  ;;  %v8883_v8 = vshll.u32 %v21905_v30, 16  ;;  %v19224_v9 = vld [vmem:[#allocation2 + $0x80] ss:$8 sps:$4 sm:$0xff]  }
 0x4c3   : > { %v8867_v4 = vrot.slane %v8866_v11, 4  ;;  %v21915_v7 = vld [vmem:[#allocation2 + $0x34] sm:$0x1] }
 0x4c4   : > { %v8925_v50 = vshll.u32 %v21915_v7, 16 }
 0x4c7   : > { %17991 = vmatmul.mubr.msk.bf16.gmra.mrb[12].mxu1 %vm860_vm15, %v16432_v6  ;;  %v16464_v6 = vcombine.low %v8428_v40, %v8432_v58 }
 0x4c8   : > { %17998 = vmatprep.mubr.msk.bf16.mxu1 %vm860_vm15, %v16459_v18  ;;  %v16457_v18 = vrot.slane %v8351_v24, 9  ;;  %v8921_v24 = vrot.slane %v8919_v56, 5  ;;  %v21931_v56 = vld [vmem:[#allocation2 + $0x4c] sm:$0x1] }
 0x4ca   : > { %v8444_v61 = vsel %vm19788_vm8, %v16457_v18, %v8443_v42  ;;  %v8935_v18 = vrot.slane %v8933_v0, 5  ;;  %v8944_v42 = vshrl.u32 %v8839_v47, 16 }
 0x4cb   : > { %v16466_v38 = vcombine.low %v8444_v61, %v8448_v23  ;;  %v8947_v23 = vshll.u32 %v8839_v47, 16  ;;  %v8885_v61 = vrot.slane %v8883_v8, 5 }
 0x4cc   : > { %v8946_v41 = vrot.slane %v8944_v42, 4 }
 0x4cf   : > { %17999 = vmatmul.mubr.msk.bf16.vlgmr.msra.gmra.mrb[0].mxu1 %vm860_vm15, %v16460_v51  ;;  %v8874_v51 = vshrl.u32 %v8829_v39, 16 }
 0x4d0   : > { %18015 = vmatpush3.bf16.msra.mxu1 %v21791_v43  ;;  %18002 = vmatprep.mubr.msk.bf16.mxu1 %vm860_vm15, %v16461_v49  ;;  %v8350_v43 = vld [vmem:[#allocation2 + $0x80] sm:$0xe]  ;;  %v21900_v49 = vld [vmem:[#allocation2 + $0x14] sm:$0x1] }
 0x4d1   : > { %18016 = vmatprep.subr.bf16.mxu1 %v19215_v28  ;;  %v16456_v32 = vrot.slane %v8350_v43, 9  ;;  %v8876_v37 = vrot.slane %v8874_v51, 4  ;;  %v8907_v43 = vrot.slane %v8905_v31, 5  ;;  %v8845_v51 = vld [vmem:[#allocation2 + $0x68] sm:$0xf]  ;;  %v8949_v31 = vrot.slane %v8947_v23, 5 }
 0x4d3   : > { %v8440_v45 = vsel %vm19788_vm8, %v16456_v32, %v8439_v20  ;;  %v8890_v32 = vrot.slane %v8888_v21, 4  ;;  %v8893_v20 = vrot.slane %v8891_v55, 5  ;;  %v8880_v58 = vor.u32 %v8879_v57, %v8876_v37  ;;  %v19225_v57 = vld [vmem:[#allocation2 + $0x90] ss:$8 sps:$4 sm:$0xff]  }
 0x4d4   : > { %18017 = vmatpush3.bf16.msra.mxu1 %v19215_v28  ;;  %v16465_v26 = vcombine.low %v8436_v22, %v8440_v45  ;;  %v19220_v28 = vld [vmem:[#allocation2 + $0x40] ss:$8 sps:$4 sm:$0xff]   ;;  %v8897_v45 = vshll.u32 %v21908_v34, 16  ;;  %v8908_v40 = vor.u32 %v8907_v43, %v8904_v2  ;;  %v8989_v37 = vshll.u32 %v8845_v51, 16 }
 0x4d5   : > { %18034 = vmatprep.subr.bf16.mxu1 %v19217_v27  ;;  %v8881_v39 = vrot.slane %v8880_v58, 4  ;;  %v8950_v8 = vor.u32 %v8949_v31, %v8946_v41  ;;  %v21938_v58 = vld [vmem:[#allocation2 + $0x64] sm:$0x1] }
 0x4d6   : > { %v8899_v25 = vrot.slane %v8897_v45, 5  ;;  %v8909_v33 = vrot.slane %v8908_v40, 4 }
 0x4d7   : > { %18003 = vmatmul.mubr.msk.bf16.gmra.mrb[4].mxu1 %vm860_vm15, %v16462_v10  ;;  %v8916_v10 = vshrl.u32 %v8835_v36, 16  ;;  %v8886_v2 = vsel %vm19572_vm14, %v8881_v39, %v8885_v61 }
 0x4d8   : > { %18006 = vmatprep.mubr.msk.bf16.mxu1 %vm860_vm15, %v16463_v15  ;;  %v8930_v15 = vshrl.u32 %v8837_v16, 16 }
 0x4d9   : > { %v8918_v22 = vrot.slane %v8916_v10, 4 }
 0x4da   : > { %v8932_v17 = vrot.slane %v8930_v15, 4 }
 0x4db   : > { %v8922_v62 = vor.u32 %v8921_v24, %v8918_v22  ;;  %v8991_v22 = vrot.slane %v8989_v37, 5  ;;  %v8851_v24 = vld [vmem:[#allocation2 + $0x80] sm:$0xf]  ;;  %v8855_v37 = vld [vmem:[#allocation2 + $0x90] sm:$0xf] }
 0x4dc   : > { %v8936_v35 = vor.u32 %v8935_v18, %v8932_v17  ;;  %v8847_v18 = vld [vmem:[#allocation2 + $0x70] sm:$0xf]  ;;  %v9031_v39 = vshll.u32 %v8851_v24, 16 }
 0x4dd   : > { %v8923_v10 = vrot.slane %v8922_v62, 4 }
 0x4df   : > { %18007 = vmatmul.mubr.msk.bf16.gmra.mrb[8].mxu1 %vm860_vm15, %v16464_v6  ;;  %v8911_v6 = vshll.u32 %v21910_v19, 16 }
 0x4e0   : > { %18010 = vmatprep.mubr.msk.bf16.mxu1 %vm860_vm15, %v16465_v26  ;;  %v8843_v26 = vld [vmem:[#allocation2 + $0x60] sm:$0xf] }
 0x4e1   : > { %v8972_v63 = vshrl.u32 %v8843_v26, 16  ;;  %v8975_v53 = vshll.u32 %v8843_v26, 16  ;;  %v8913_v29 = vrot.slane %v8911_v6, 5 }
 0x4e3   : > { %v8974_v16 = vrot.slane %v8972_v63, 4  ;;  %v8977_v11 = vrot.slane %v8975_v53, 5  ;;  %v8914_v43 = vsel %vm19572_vm14, %v8909_v33, %v8913_v29  ;;  %v9028_v53 = vshrl.u32 %v8851_v24, 16  ;;  %v19227_v29 = vld [vmem:[%s20568_s0 + $0x118] sm:$0xff]  }
 0x4e5   : > { %v8978_v40 = vor.u32 %v8977_v11, %v8974_v16  ;;  %v9030_v11 = vrot.slane %v9028_v53, 4 }
 0x4e7   : > { %18011 = vmatmul.mubr.msk.bf16.gmra.mrb[12].mxu1 %vm860_vm15, %v16466_v38  ;;  %v8894_v38 = vor.u32 %v8893_v20, %v8890_v32  ;;  %v8967_v32 = vshll.u32 %v21931_v56, 16  ;;  %v8849_v20 = vld [vmem:[#allocation2 + $0x78] sm:$0xf]  ;;  %v8979_v33 = vrot.slane %v8978_v40, 4 }
 0x4e8   : > { %18018 = vmatprep.mubr.msk.bf16.mxu1 %vm860_vm15, %v19216_v12  ;;  %v8958_v12 = vshrl.u32 %v8841_v14, 16  ;;  %v9014_v42 = vshrl.u32 %v8849_v20, 16  ;;  %v9017_v23 = vshll.u32 %v8849_v20, 16 }
 0x4ea   : > { %v8960_v21 = vrot.slane %v8958_v12, 4  ;;  %v8969_v12 = vrot.slane %v8967_v32, 5  ;;  %v9019_v41 = vrot.slane %v9017_v23, 5 }
 0x4ef   : > { %18019 = vmatmul.mubr.msk.bf16.vlgmr.msra.gmra.mrb[0].mxu1 %vm860_vm15, %v19218_v13  ;;  %v8961_v13 = vshll.u32 %v8841_v14, 16  ;;  %v21941_v14 = vld [vmem:[#allocation2 + $0x6c] sm:$0x1] }
 0x4f0   : > { %18035 = vmatpush3.bf16.msra.mxu1 %v19217_v27  ;;  %18022 = vmatprep.mubr.msk.bf16.mxu1 %vm860_vm15, %v19219_v46  ;;  %v8869_v27 = vshll.u32 %v21900_v49, 16  ;;  %v21921_v46 = vld [vmem:[#allocation2 + $0x3c] sm:$0x1]  ;;  %v8995_v63 = vshll.u32 %v21941_v14, 16 }
 0x4f1   : > { %18036 = vmatprep.subr.bf16.mxu1 %v19222_v44  ;;  %v8939_v36 = vshll.u32 %v21921_v46, 16  ;;  %v8963_v55 = vrot.slane %v8961_v13, 5  ;;  %v8981_v13 = vshll.u32 %v21938_v58, 16 }
 0x4f2   : > { %v8871_v3 = vrot.slane %v8869_v27, 5  ;;  %v8986_v27 = vshrl.u32 %v8845_v51, 16  ;;  %v9003_v51 = vshll.u32 %v8847_v18, 16 }
 0x4f4   : > { %18037 = vmatpush3.bf16.msra.mxu1 %v19222_v44  ;;  %v8872_v44 = vsel %vm19572_vm14, %v8867_v4, %v8871_v3  ;;  %v8941_v4 = vrot.slane %v8939_v36, 5  ;;  %v8964_v3 = vor.u32 %v8963_v55, %v8960_v21  ;;  %v8988_v6 = vrot.slane %v8986_v27, 4 }
 0x4f5   : > { %18054 = vmatprep.subr.bf16.mxu1 %v21898_v5  ;;  %v16495_v0 = vcombine.low %v8872_v44, %v8886_v2  ;;  %v8853_v44 = vld [vmem:[#allocation2 + $0x88] sm:$0xf]  ;;  %v8983_v21 = vrot.slane %v8981_v13, 5  ;;  %v9033_v27 = vrot.slane %v9031_v39, 5 }
 0x4f6   : > { %v8992_v62 = vor.u32 %v8991_v22, %v8988_v6  ;;  %v9042_v31 = vshrl.u32 %v8853_v44, 16 }
 0x4f7   : > { %18023 = vmatmul.mubr.msk.bf16.gmra.mrb[4].mxu1 %vm860_vm15, %v19220_v28  ;;  %v21924_v28 = vld [vmem:[#allocation2 + $0x44] sm:$0x1]  ;;  %v9034_v6 = vor.u32 %v9033_v27, %v9030_v11  ;;  %v9256_v27 = vld [vmem:[#allocation2 + $0x10] sm:$0xe] }
 0x4f8   : > { %18026 = vmatprep.mubr.msk.bf16.mxu1 %vm860_vm15, %v19221_v54  ;;  %v8895_v54 = vrot.slane %v8894_v38, 4  ;;  %v8953_v15 = vshll.u32 %v21924_v28, 16  ;;  %v8951_v38 = vrot.slane %v8950_v8, 4  ;;  %v8993_v2 = vrot.slane %v8992_v62, 4  ;;  %v21961_v8 = vld [vmem:[#allocation2 + $0x7c] sm:$0x1] }
 0x4f9   : > { %v9044_v20 = vrot.slane %v9042_v31, 4  ;;  %v21975_v62 = vld [vmem:[#allocation2 + $0x94] sm:$0x1] }
 0x4fa   : > { %v8900_v47 = vsel %vm19572_vm14, %v8895_v54, %v8899_v25  ;;  %v8955_v17 = vrot.slane %v8953_v15, 5  ;;  %v8965_v25 = vrot.slane %v8964_v3, 4  ;;  %v9045_v54 = vshll.u32 %v8853_v44, 16 }
 0x4fb   : > { %v16496_v45 = vcombine.low %v8900_v47, %v8914_v43  ;;  %v8997_v43 = vrot.slane %v8995_v63, 5  ;;  %v9035_v63 = vrot.slane %v9034_v6, 4  ;;  %v9065_v11 = vshll.u32 %v21975_v62, 16  ;;  %v9259_v6 = vld [vmem:[#allocation2 + $0x28] sm:$0xe] }
 0x4fc   : > { %v8956_v55 = vsel %vm19572_vm14, %v8951_v38, %v8955_v17  ;;  %v8970_v16 = vsel %vm19572_vm14, %v8965_v25, %v8969_v12  ;;  %v9047_v47 = vrot.slane %v9045_v54, 5  ;;  %v9023_v17 = vshll.u32 %v21961_v8, 16 }
 0x4fd   : > { %v16498_v22 = vcombine.low %v8956_v55, %v8970_v16  ;;  %v8998_v24 = vsel %vm19572_vm14, %v8993_v2, %v8997_v43 }
 0x4fe   : > { %v9048_v38 = vor.u32 %v9047_v47, %v9044_v20  ;;  %v9306_v20 = vrot.slane %v21900_v49, 5  ;;  %v9067_v47 = vrot.slane %v9065_v11, 5 }
 0x4ff   : > { %18027 = vmatmul.mubr.msk.bf16.gmra.mrb[8].mxu1 %vm860_vm15, %v19223_v1  ;;  %v8937_v1 = vrot.slane %v8936_v35, 4  ;;  %v9016_v35 = vrot.slane %v9014_v42, 4 }
 0x500   : > { %18030 = vmatprep.mubr.msk.bf16.mxu1 %vm860_vm15, %v19224_v9  ;;  %v8927_v9 = vrot.slane %v8925_v50, 5  ;;  %v9000_v50 = vshrl.u32 %v8847_v18, 16  ;;  %v21969_v18 = vld [vmem:[#allocation2 + $0x8c] sm:$0x1] }
 0x501   : > { %v8942_v61 = vsel %vm19572_vm14, %v8937_v1, %v8941_v4  ;;  %v8984_v1 = vsel %vm19572_vm14, %v8979_v33, %v8983_v21  ;;  %v9020_v32 = vor.u32 %v9019_v41, %v9016_v35  ;;  %v9059_v4 = vshll.u32 %v8855_v37, 16  ;;  %v21977_v35 = vld [vmem:[#allocation2 + $0x9c] sm:$0x1] }
 0x502   : > { %v8928_v26 = vsel %vm19572_vm14, %v8923_v10, %v8927_v9  ;;  %v21957_v10 = vld [vmem:[#allocation2 + $0x74] sm:$0x1]  ;;  %v9002_v15 = vrot.slane %v9000_v50, 4  ;;  %v21963_v9 = vld [vmem:[#allocation2 + $0x84] sm:$0x1]  ;;  %v16499_v42 = vcombine.low %v8984_v1, %v8998_v24  ;;  %v9051_v53 = vshll.u32 %v21969_v18, 16 }
 0x503   : > { %v16497_v36 = vcombine.low %v8928_v26, %v8942_v61  ;;  %v9009_v40 = vshll.u32 %v21957_v10, 16  ;;  %v9021_v23 = vrot.slane %v9020_v32, 4  ;;  %v9037_v61 = vshll.u32 %v21963_v9, 16  ;;  %v9257_v1 = vld [vmem:[#allocation2 + $0x18] sm:$0xe] }
 0x504   : > { %v9061_v13 = vrot.slane %v9059_v4, 5  ;;  %v9025_v33 = vrot.slane %v9023_v17, 5  ;;  %v9053_v55 = vrot.slane %v9051_v53, 5  ;;  %v16513_v32 = vrot.slane %v9256_v27, 9  ;;  %v9262_v53 = vld [vmem:[#allocation2 + $0x40] sm:$0xe] }
 0x505   : > { %v9011_v50 = vrot.slane %v9009_v40, 5  ;;  %v9310_v4 = vrot.slane %v21905_v30, 5  ;;  %v9318_v30 = vrot.slane %v21910_v19, 5  ;;  %v9267_v27 = vld [vmem:[#allocation2 + $0x78] sm:$0xe] }
 0x506   : > { %v9026_v41 = vsel %vm19572_vm14, %v9021_v23, %v9025_v33  ;;  %v9307_v40 = vsel %vm19788_vm8, %v16513_v32, %v9306_v20  ;;  %v9261_v23 = vld [vmem:[#allocation2 + $0x38] sm:$0xe]  ;;  %v9354_v32 = vrot.slane %v21963_v9, 5 }
 0x507   : > { %18031 = vmatmul.mubr.msk.bf16.gmra.mrb[12].mxu1 %vm860_vm15, %v19225_v57  ;;  %v8857_v57 = vld [vmem:[#allocation2 + $0x98] sm:$0xf] }
 0x508   : > { %18038 = vmatprep.mubr.msk.bf16.mxu1 %vm860_vm15, %v16495_v0  ;;  %v9005_v0 = vrot.slane %v9003_v51, 5  ;;  %v9070_v3 = vshrl.u32 %v8857_v57, 16  ;;  %v9039_v51 = vrot.slane %v9037_v61, 5 }
 0x50a   : > { %v9006_v26 = vor.u32 %v9005_v0, %v9002_v15  ;;  %v9072_v44 = vrot.slane %v9070_v3, 4  ;;  %v9040_v21 = vsel %vm19572_vm14, %v9035_v63, %v9039_v51 }
 0x50c   : > { %v9007_v39 = vrot.slane %v9006_v26, 4  ;;  %v9258_v26 = vld [vmem:[#allocation2 + $0x20] sm:$0xe] }
 0x50e   : > { %v9012_v16 = vsel %vm19572_vm14, %v9007_v39, %v9011_v50  ;;  %v9263_v39 = vld [vmem:[#allocation2 + $0x48] sm:$0xe] }
 0x50f   : > { %18039 = vmatmul.mubr.msk.bf16.vlgmr.msra.gmra.mrb[0].mxu1 %vm860_vm15, %v16496_v45  ;;  %v9073_v45 = vshll.u32 %v8857_v57, 16 }
 0x510   : > { %18055 = vmatpush3.bf16.msra.mxu1 %v21898_v5  ;;  %18042 = vmatprep.mubr.msk.bf16.mxu1 %vm860_vm15, %v16497_v36  ;;  %v9056_v5 = vshrl.u32 %v8855_v37, 16  ;;  %v9079_v36 = vshll.u32 %v21977_v35, 16  ;;  %v16500_v37 = vcombine.low %v9012_v16, %v9026_v41  ;;  %v16520_v41 = vrot.slane %v9263_v39, 9 }
 0x511   : > { %18056 = vmatprep.subr.bf16.mxu1 %v19227_v29  ;;  %v9075_v25 = vrot.slane %v9073_v45, 5  ;;  %v9342_v16 = vrot.slane %v21941_v14, 5  ;;  %v9350_v14 = vrot.slane %v21961_v8, 5 }
 0x512   : > { %v9058_v12 = vrot.slane %v9056_v5, 4  ;;  %v9081_v0 = vrot.slane %v9079_v36, 5  ;;  %v16514_v5 = vrot.slane %v9257_v1, 9 }
 0x513   : > { %v9076_v54 = vor.u32 %v9075_v25, %v9072_v44  ;;  %v16518_v44 = vrot.slane %v9261_v23, 9  ;;  %v9326_v25 = vrot.slane %v21921_v46, 5  ;;  %v9330_v46 = vrot.slane %v21924_v28, 5  ;;  %v22053_v23 = vld [vmem:[%s21323_s10 + $0x1] ss:$0 sm:$0xff] }
 0x514   : > { %18057 = vmatpush3.bf16.msra.mxu1 %v19227_v29  ;;  %v9049_v29 = vrot.slane %v9048_v38, 4  ;;  %v9062_v31 = vor.u32 %v9061_v13, %v9058_v12  ;;  %v9311_v49 = vsel %vm19788_vm8, %v16514_v5, %v9310_v4  ;;  %v9322_v38 = vrot.slane %v21915_v7, 5  ;;  %v9264_v7 = vld [vmem:[#allocation2 + $0x60] sm:$0xe] }
 0x515   : > { %v9077_v15 = vrot.slane %v9076_v54, 4  ;;  %v16529_v17 = vcombine.low %v9307_v40, %v9311_v49  ;;  %v16515_v12 = vrot.slane %v9258_v26, 9  ;;  %v9314_v13 = vrot.slane %v21908_v34, 5  ;;  %v9265_v54 = vld [vmem:[#allocation2 + $0x68] sm:$0xe] }
 0x516   : > { %v9054_v57 = vsel %vm19572_vm14, %v9049_v29, %v9053_v55  ;;  %v9063_v43 = vrot.slane %v9062_v31, 4  ;;  %v9327_v51 = vsel %vm19788_vm8, %v16518_v44, %v9326_v25  ;;  %v16519_v34 = vrot.slane %v9262_v53, 9  ;;  %v9271_v40 = vld [vmem:[#allocation2 + $0x98] sm:$0xe]  ;;  %v19231_v53 = vld [vmem:[#allocation3] sm:$0xff] }
 0x517   : > { %18043 = vmatmul.mubr.msk.bf16.gmra.mrb[4].mxu1 %vm860_vm15, %v16498_v22  ;;  %v16501_v2 = vcombine.low %v9040_v21, %v9054_v57  ;;  %v9082_v45 = vsel %vm19572_vm14, %v9077_v15, %v9081_v0  ;;  %v9260_v22 = vld [vmem:[#allocation2 + $0x30] sm:$0xe]  ;;  %v9315_v33 = vsel %vm19788_vm8, %v16515_v12, %v9314_v13  ;;  %v9334_v31 = vrot.slane %v21931_v56, 5  ;;  %v9269_v0 = vld [vmem:[#allocation2 + $0x88] sm:$0xe] }
 0x518   : > { %18046 = vmatprep.mubr.msk.bf16.mxu1 %vm860_vm15, %v16499_v42  ;;  %v9068_v3 = vsel %vm19572_vm14, %v9063_v43, %v9067_v47  ;;  %v16516_v42 = vrot.slane %v9259_v6, 9  ;;  %v16517_v61 = vrot.slane %v9260_v22, 9  ;;  %v16521_v36 = vrot.slane %v9264_v7, 9  ;;  %v19230_v13 = vld [vmem:[#allocation3 + $0x10] sm:$0xff]  ;;  %v19232_v7 = vld [vmem:[#allocation3 + $0x18] sm:$0xff] }
 0x519   : > { %v16502_v24 = vcombine.low %v9068_v3, %v9082_v45  ;;  %v9338_v21 = vrot.slane %v21938_v58, 5  ;;  %v16522_v55 = vrot.slane %v9265_v54, 9  ;;  %v9331_v11 = vsel %vm19788_vm8, %v16519_v34, %v9330_v46  ;;  %v9270_v45 = vld [vmem:[#allocation2 + $0x90] sm:$0xe]  ;;  %v19233_v34 = vld [vmem:[#allocation3 + $0x8] sm:$0xff] }
 0x51a   : > { %v9319_v63 = vsel %vm19788_vm8, %v16516_v42, %v9318_v30  ;;  %v9323_v19 = vsel %vm19788_vm8, %v16517_v61, %v9322_v38  ;;  %v9335_v28 = vsel %vm19788_vm8, %v16520_v41, %v9334_v31  ;;  %v16524_v15 = vrot.slane %v9267_v27, 9  ;;  %v19235_v27 = vld [vmem:[#allocation3 + $0x20] sm:$0xff] }
 0x51b   : > { %v16530_v50 = vcombine.low %v9315_v33, %v9319_v63  ;;  %v16531_v29 = vcombine.low %v9323_v19, %v9327_v51  ;;  %v9339_v56 = vsel %vm19788_vm8, %v16521_v36, %v9338_v21  ;;  %v16532_v57 = vcombine.low %v9331_v11, %v9335_v28 }
 0x51c   : > { %v9343_v58 = vsel %vm19788_vm8, %v16522_v55, %v9342_v16  ;;  %v9346_v47 = vrot.slane %v21957_v10, 5  ;;  %v16526_v5 = vrot.slane %v9269_v0, 9  ;;  %v9358_v4 = vrot.slane %v21969_v18, 5  ;;  %v19234_v16 = vld [vmem:[#allocation3 + $0x30] sm:$0xff] }
 0x51d   : > { %v16533_v43 = vcombine.low %v9339_v56, %v9343_v58  ;;  %v9351_v3 = vsel %vm19788_vm8, %v16524_v15, %v9350_v14  ;;  %v16527_v10 = vrot.slane %v9270_v45, 9  ;;  %v9362_v18 = vrot.slane %v21975_v62, 5  ;;  %v19237_v14 = vld [vmem:[#allocation3 + $0x28] sm:$0xff]  ;;  %v19238_v45 = vld [vmem:[#allocation3 + $0x50] sm:$0xff] }
 0x51e   : > { %v9359_v22 = vsel %vm19788_vm8, %v16526_v5, %v9358_v4  ;;  %v16528_v49 = vrot.slane %v9271_v40, 9  ;;  %v9366_v26 = vrot.slane %v21977_v35, 5 }
 0x51f   : > { %18047 = vmatmul.mubr.msk.bf16.gmra.mrb[8].mxu1 %vm860_vm15, %v16500_v37  ;;  %v9268_v37 = vld [vmem:[#allocation2 + $0x80] sm:$0xe] }
 0x520   : > { %18050 = vmatprep.mubr.msk.bf16.mxu1 %vm860_vm15, %v16501_v2  ;;  %v9266_v2 = vld [vmem:[#allocation2 + $0x70] sm:$0xe]  ;;  %v16525_v1 = vrot.slane %v9268_v37, 9  ;;  %v9367_v42 = vsel %vm19788_vm8, %v16528_v49, %v9366_v26 }
 0x521   : > { %v16523_v20 = vrot.slane %v9266_v2, 9  ;;  %v19236_v2 = vld [vmem:[#allocation3 + $0x38] sm:$0xff] }
 0x522   : > { %v9355_v8 = vsel %vm19788_vm8, %v16525_v1, %v9354_v32 }
 0x523   : > { %v9347_v9 = vsel %vm19788_vm8, %v16523_v20, %v9346_v47 }
 0x524   : > { %v16534_v6 = vcombine.low %v9347_v9, %v9351_v3 }
 0x527   : > { %18051 = vmatmul.mubr.msk.bf16.gmra.mrb[12].mxu1 %vm860_vm15, %v16502_v24  ;;  %v16535_v24 = vcombine.low %v9355_v8, %v9359_v22 }
 0x528   : > { %18058 = vmatprep.mubr.msk.bf16.mxu1 %vm860_vm15, %v16529_v17  ;;  %v9363_v17 = vsel %vm19788_vm8, %v16527_v10, %v9362_v18  ;;  %v19240_v18 = vld [vmem:[#allocation3 + $0x58] sm:$0xff] }
 0x529   : > { %v16536_v30 = vcombine.low %v9363_v17, %v9367_v42  ;;  %v19241_v17 = vld [vmem:[#allocation3 + $0x48] sm:$0xff] }
 0x52f   : > { %18059 = vmatmul.mubr.msk.bf16.vlgmr.msra.gmra.mrb[0].mxu1 %vm860_vm15, %v16530_v50 }
 0x530   : > { %18062 = vmatprep.mubr.msk.bf16.mxu1 %vm860_vm15, %v16531_v29 }
 0x537   : > { %18063 = vmatmul.mubr.msk.bf16.gmra.mrb[4].mxu1 %vm860_vm15, %v16532_v57 }
 0x538   : > { %18066 = vmatprep.mubr.msk.bf16.mxu1 %vm860_vm15, %v16533_v43 }
 0x53f   : > { %18067 = vmatmul.mubr.msk.bf16.gmra.mrb[8].mxu1 %vm860_vm15, %v16534_v6  ;;  %v19239_v6 = vld [vmem:[#allocation3 + $0x40] sm:$0xff] }
 0x540   : > { %18070 = vmatprep.mubr.msk.bf16.mxu1 %vm860_vm15, %v16535_v24 }
 0x547   : > { %18071 = vmatmul.mubr.msk.bf16.gmra.mrb[12].mxu1 %vm860_vm15, %v16536_v30 }
 0x602   : > { %v18060_v61 = vpop.f32.mrb[0].mxu1 }
 0x603   : > { %v9549_v62 = vadd.f32 %v18060_v61, %v22053_v23  ;;  %v9462_v38 = vpop.f32.mrb[1].mxu1 }
 0x604   : > { %v9547_v35 = vadd.f32 %v22053_v23, %v9462_v38  ;;  %v18061_v12 = vpop.f32.mrb[2].mxu1 }
 0x605   : > { %v9565_v44 = vadd.f32 %v19230_v13, %v9549_v62  ;;  %v9550_v25 = vadd.f32 %v18061_v12, %v22053_v23  ;;  %v9465_v63 = vpop.f32.mrb[3].mxu1 }
 0x606   : > { %v9563_v19 = vadd.f32 %v19231_v53, %v9547_v35  ;;  %v9548_v39 = vadd.f32 %v22053_v23, %v9465_v63 }
 0x607   : > { %v9581_v33 = vmax.f32 %v9565_v44, 0.0  ;;  %v9566_v50 = vadd.f32 %v19232_v7, %v9550_v25  ;;  %v19242_v44 = vld [vmem:[#allocation3 + $0x70] sm:$0xff] }
 0x608   : > { %v9579_v51 = vmax.f32 %v9563_v19, 0.0  ;;  %v9564_v29 = vadd.f32 %v19233_v34, %v9548_v39  ;;  %v19243_v19 = vld [vmem:[#allocation3 + $0x60] sm:$0xff] }
 0x609   : > { %9597 = vst.msk [vmem:[#allocation3 + $0x10] sm:$0xff] %vm860_vm15, %v9581_v33  ;;  %v9582_v46 = vmax.f32 %v9566_v50, 0.0  ;;  %v19244_v50 = vld [vmem:[#allocation3 + $0x78] sm:$0xff] }
 0x60a   : > { %9595 = vst.msk [vmem:[#allocation3] sm:$0xff] %vm860_vm15, %v9579_v51  ;;  %v9580_v41 = vmax.f32 %v9564_v29, 0.0  ;;  %v18064_v31 = vpop.f32.mrb[4].mxu1  ;;  %v19245_v29 = vld [vmem:[#allocation3 + $0x68] sm:$0xff] }
 0x60b   : > { %9598 = vst.msk [vmem:[#allocation3 + $0x18] sm:$0xff] %vm860_vm15, %v9582_v46  ;;  %v9553_v54 = vadd.f32 %v18064_v31, %v22053_v23  ;;  %v9478_v36 = vpop.f32.mrb[5].mxu1 }
 0x60c   : > { %9596 = vst.msk [vmem:[#allocation3 + $0x8] sm:$0xff] %vm860_vm15, %v9580_v41  ;;  %v9551_v21 = vadd.f32 %v22053_v23, %v9478_v36  ;;  %v18065_v55 = vpop.f32.mrb[6].mxu1 }
 0x60d   : > { %v9569_v11 = vadd.f32 %v19234_v16, %v9553_v54  ;;  %v9554_v28 = vadd.f32 %v18065_v55, %v22053_v23  ;;  %v9481_v56 = vpop.f32.mrb[7].mxu1  ;;  %v19247_v54 = vld [vmem:[%s24385_s7 + $0x18] sm:$0xff] (%p3338_p0)   ;;  %v22096_v55 = vld [vmem:[#allocation2] sm:$0xf] (%p3338_p0)  ;;  %v22098_v16 = vld [vmem:[#allocation2 + $0x4] sm:$0x1] (%p3338_p0) }
 0x60e   : > { %v9567_v37 = vadd.f32 %v19235_v27, %v9551_v21  ;;  %v9552_v57 = vadd.f32 %v22053_v23, %v9481_v56 }
 0x60f   : > { %v9585_v58 = vmax.f32 %v9569_v11, 0.0  ;;  %v9570_v43 = vadd.f32 %v19236_v2, %v9554_v28  ;;  %v12885_v11 = vshrl.u32 (%p3338_p0), %v22096_v55, 16  ;;  %v12888_v28 = vshll.u32 (%p3338_p0), %v22096_v55, 16 }
 0x610   : > { %v9583_v15 = vmax.f32 %v9567_v37, 0.0  ;;  %v9568_v0 = vadd.f32 %v19237_v14, %v9552_v57  ;;  %v22105_v37 = vld [vmem:[%s24385_s7] sm:$0xff] (%p3338_p0)   ;;  %v12894_v2 = vshll.u32 (%p3338_p0), %v22098_v16, 16 }
 0x611   : > { %9601 = vst.msk [vmem:[#allocation3 + $0x30] sm:$0xff] %vm860_vm15, %v9585_v58  ;;  %v9586_v1 = vmax.f32 %v9570_v43, 0.0  ;;  %v9611_v36 = vld [vmem:[#allocation3] sm:$0xff] (%p3338_p0)  ;;  %v9613_v58 = vld [vmem:[#allocation3 + $0x10] sm:$0xff] (%p3338_p0) }
 0x612   : > { %9599 = vst.msk [vmem:[#allocation3 + $0x20] sm:$0xff] %vm860_vm15, %v9583_v15  ;;  %v9584_v32 = vmax.f32 %v9568_v0, 0.0  ;;  %v18068_v20 = vpop.f32.mrb[8].mxu1  ;;  %v17052_v21 = vpack.c.bf16 (%p3338_p0), %v9611_v36, %v9611_v36  ;;  %v9614_v14 = vld [vmem:[#allocation3 + $0x18] sm:$0xff] (%p3338_p0) }
 0x613   : > { %9602 = vst.msk [vmem:[#allocation3 + $0x38] sm:$0xff] %vm860_vm15, %v9586_v1  ;;  %v9557_v47 = vadd.f32 %v18068_v20, %v22053_v23  ;;  %v9494_v5 = vpop.f32.mrb[9].mxu1  ;;  %v9612_v57 = vld [vmem:[#allocation3 + $0x8] sm:$0xff] (%p3338_p0)  ;;  %v17054_v20 = vpack.c.bf16 (%p3338_p0), %v9613_v58, %v9613_v58 }
 0x614   : > { %9600 = vst.msk [vmem:[#allocation3 + $0x28] sm:$0xff] %vm860_vm15, %v9584_v32  ;;  %v9555_v4 = vadd.f32 %v22053_v23, %v9494_v5  ;;  %v18069_v3 = vpop.f32.mrb[10].mxu1  ;;  %v9692_v56 = vshrl.u32 (%p3338_p0), %v17052_v21, 16  ;;  %v9695_v27 = vshll.u32 (%p3338_p0), %v17052_v21, 16  ;;  %v17053_v15 = vpack.c.bf16 (%p3338_p0), %v9612_v57, %v9612_v57  ;;  %v9853_v1 = vld [vmem:[#allocation2 + $0x8] sm:$0xf] (%p3338_p0) }
 0x615   : > { %v9573_v8 = vadd.f32 %v19238_v45, %v9557_v47  ;;  %v9558_v40 = vadd.f32 %v18069_v3, %v22053_v23  ;;  %v9497_v9 = vpop.f32.mrb[11].mxu1  ;;  %v12887_v32 = vrot.slane (%p3338_p0), %v12885_v11, 4  ;;  %v17055_v5 = vpack.c.bf16 (%p3338_p0), %v9614_v14, %v9614_v14 }
 0x616   : > { %v9571_v22 = vadd.f32 %v19239_v6, %v9555_v4  ;;  %v9556_v10 = vadd.f32 %v22053_v23, %v9497_v9  ;;  %v9694_v0 = vrot.slane (%p3338_p0), %v9692_v56, 7  ;;  %v9858_v4 = vld [vmem:[#allocation2 + $0xc] sm:$0x1] (%p3338_p0)  ;;  %v12890_v3 = vrot.slane (%p3338_p0), %v12888_v28, 5 }
 0x617   : > { %v9589_v24 = vmax.f32 %v9573_v8, 0.0  ;;  %v9574_v49 = vadd.f32 %v19240_v18, %v9558_v40  ;;  %v9700_v45 = vshrl.u32 (%p3338_p0), %v17053_v15, 16  ;;  %v9703_v8 = vshll.u32 (%p3338_p0), %v17053_v15, 16 }
 0x618   : > { %v9587_v26 = vmax.f32 %v9571_v22, 0.0  ;;  %v9572_v42 = vadd.f32 %v19241_v17, %v9556_v10  ;;  %v9697_v9 = vor.u32 (%p3338_p0), %v9695_v27, %v9694_v0  ;;  %v9698_v6 = vrot.slane (%p3338_p0), %v9694_v0, 4  ;;  %v22124_v27 = vld [vmem:[#allocation2 + $0x50] sm:$0xf] (%p3338_p0) }
 0x619   : > { %9605 = vst.msk [vmem:[#allocation3 + $0x50] sm:$0xff] %vm860_vm15, %v9589_v24  ;;  %v9590_v30 = vmax.f32 %v9574_v49, 0.0  ;;  %v9615_v47 = vld [vmem:[#allocation3 + $0x20] sm:$0xff] (%p3338_p0)  ;;  %v9708_v22 = vshrl.u32 (%p3338_p0), %v17054_v20, 16  ;;  %v9711_v10 = vshll.u32 (%p3338_p0), %v17054_v20, 16  ;;  %v22110_v18 = vrot.slane (%p3338_p0), %v12894_v2, 5 }
 0x61a   : > { %9603 = vst.msk [vmem:[#allocation3 + $0x40] sm:$0xff] %vm860_vm15, %v9587_v26  ;;  %v9588_v61 = vmax.f32 %v9572_v42, 0.0  ;;  %v18072_v62 = vpop.f32.mrb[12].mxu1  ;;  %v17056_v40 = vpack.c.bf16 (%p3338_p0), %v9615_v47, %v9615_v47  ;;  %v9861_v24 = vld [vmem:[#allocation2 + $0x10] sm:$0xf] (%p3338_p0)  ;;  %v9702_v49 = vrot.slane (%p3338_p0), %v9700_v45, 7 }
 0x61b   : > { %9606 = vst.msk [vmem:[#allocation3 + $0x58] sm:$0xff] %vm860_vm15, %v9590_v30  ;;  %v9561_v38 = vadd.f32 %v18072_v62, %v22053_v23  ;;  %v9510_v35 = vpop.f32.mrb[13].mxu1  ;;  %v9864_v26 = vld [vmem:[#allocation2 + $0x14] sm:$0x1] (%p3338_p0)  ;;  %v9716_v17 = vshrl.u32 (%p3338_p0), %v17055_v5, 16  ;;  %v9719_v42 = vshll.u32 (%p3338_p0), %v17055_v5, 16  ;;  %v9854_v30 = vsel (%p3338_p0), %vm20560_vm6, %v9697_v9, %v9853_v1 }
 0x61c   : > { %9604 = vst.msk [vmem:[#allocation3 + $0x48] sm:$0xff] %vm860_vm15, %v9588_v61  ;;  %v9559_v12 = vadd.f32 %v22053_v23, %v9510_v35  ;;  %v18073_v13 = vpop.f32.mrb[14].mxu1  ;;  %v9859_v61 = vsel (%p3338_p0), %vm20572_vm7, %v9698_v6, %v9858_v4  ;;  %v9710_v62 = vrot.slane (%p3338_p0), %v9708_v22, 7  ;;  %v9870_v35 = vld [vmem:[#allocation2 + $0x1c] sm:$0x1] (%p3338_p0)  ;;  %v12997_v4 = vshrl.u32 (%p3338_p0), %v22124_v27, 16 }
 0x61d   : > { %v9577_v25 = vadd.f32 %v19242_v44, %v9561_v38  ;;  %v9562_v63 = vadd.f32 %v18073_v13, %v22053_v23  ;;  %v9513_v53 = vpop.f32.mrb[15].mxu1  ;;  %v9867_v38 = vld [vmem:[#allocation2 + $0x18] sm:$0xf] (%p3338_p0)  ;;  %9855 = vst [vmem:[#allocation2 + $0x8] sm:$0xf] (%p3338_p0), %v9854_v30  ;;  %v12891_v13 = vor.u32 (%p3338_p0), %v12890_v3, %v12887_v32  ;;  %v9705_v44 = vor.u32 (%p3338_p0), %v9703_v8, %v9702_v49 }
 0x61e   : > { %v9575_v39 = vadd.f32 %v19243_v19, %v9559_v12  ;;  %v9560_v33 = vadd.f32 %v22053_v23, %v9513_v53  ;;  %3340 = sbr.rel (!%p3338_p0) target bundleno = 482 (0x1e2), region = 85  ;;  %v19246_v23 = vld [vmem:[%s24385_s7 + $0x10] sm:$0xff] (%p3338_p0)   ;;  %v9724_v12 = vshrl.u32 (%p3338_p0), %v17056_v40, 16  ;;  %9860 = vst [vmem:[#allocation2 + $0xc] sm:$0x1] (%p3338_p0), %v9859_v61 }
 0x61f   : > { %v9593_v7 = vmax.f32 %v9577_v25, 0.0  ;;  %v9578_v51 = vadd.f32 %v19244_v50, %v9562_v63  ;;  %18254 = vmatprep.subr.bf16.mxu1 (%p3338_p0), %v19246_v23  ;;  %v9706_v25 = vrot.slane (%p3338_p0), %v9702_v49, 4  ;;  %v9718_v63 = vrot.slane (%p3338_p0), %v9716_v17, 7  ;;  %v9873_v53 = vld [vmem:[#allocation2 + $0x20] sm:$0xf] (%p3338_p0) }
 0x620   : > { %v9591_v34 = vmax.f32 %v9575_v39, 0.0  ;;  %v9576_v46 = vadd.f32 %v19245_v29, %v9560_v33  ;;  %18255 = vmatpush3.bf16.msra.mxu1 (%p3338_p0), %v19246_v23  ;;  %v9876_v19 = vld [vmem:[#allocation2 + $0x24] sm:$0x1] (%p3338_p0)  ;;  %v9713_v39 = vor.u32 (%p3338_p0), %v9711_v10, %v9710_v62  ;;  %v9714_v33 = vrot.slane (%p3338_p0), %v9710_v62, 4  ;;  %v9879_v23 = vld [vmem:[#allocation2 + $0x28] sm:$0xf] (%p3338_p0) }
 0x621   : > { %9609 = vst.msk [vmem:[#allocation3 + $0x70] sm:$0xff] %vm860_vm15, %v9593_v7  ;;  %v9594_v41 = vmax.f32 %v9578_v51, 0.0  ;;  %18256 = vmatprep.subr.bf16.mxu1 (%p3338_p0), %v19247_v54  ;;  %v9726_v7 = vrot.slane (%p3338_p0), %v9724_v12, 7  ;;  %v9727_v50 = vshll.u32 (%p3338_p0), %v17056_v40, 16  ;;  %v9616_v51 = vld [vmem:[#allocation3 + $0x28] sm:$0xff] (%p3338_p0)  ;;  %v9862_v29 = vsel (%p3338_p0), %vm20560_vm6, %v9705_v44, %v9861_v24  ;;  %v9619_v36 = vld [vmem:[#allocation3 + $0x40] sm:$0xff] (%p3338_p0) }
 0x622   : > { %9607 = vst.msk [vmem:[#allocation3 + $0x60] sm:$0xff] %vm860_vm15, %v9591_v34  ;;  %v9592_v31 = vmax.f32 %v9576_v46, 0.0  ;;  %v9617_v34 = vld [vmem:[#allocation3 + $0x30] sm:$0xff] (%p3338_p0)  ;;  %v9865_v46 = vsel (%p3338_p0), %vm20572_vm7, %v9706_v25, %v9864_v26  ;;  %9863 = vst [vmem:[#allocation2 + $0x10] sm:$0xf] (%p3338_p0), %v9862_v29  ;;  %v9868_v21 = vsel (%p3338_p0), %vm20560_vm6, %v9713_v39, %v9867_v38  ;;  %v9871_v11 = vsel (%p3338_p0), %vm20572_vm7, %v9714_v33, %v9870_v35 }
 0x623   : > { %9610 = vst.msk [vmem:[#allocation3 + $0x78] sm:$0xff] %vm860_vm15, %v9594_v41  ;;  %v9721_v41 = vor.u32 (%p3338_p0), %v9719_v42, %v9718_v63  ;;  %9866 = vst [vmem:[#allocation2 + $0x14] sm:$0x1] (%p3338_p0), %v9865_v46  ;;  %v9729_v28 = vor.u32 (%p3338_p0), %v9727_v50, %v9726_v7  ;;  %v9730_v56 = vrot.slane (%p3338_p0), %v9726_v7, 4  ;;  %v17057_v2 = vpack.c.bf16 (%p3338_p0), %v9616_v51, %v9616_v51  ;;  %v9620_v24 = vld [vmem:[#allocation3 + $0x48] sm:$0xff] (%p3338_p0)  ;;  %v9621_v49 = vld [vmem:[#allocation3 + $0x50] sm:$0xff] (%p3338_p0) }
 0x624   : > { %9608 = vst.msk [vmem:[#allocation3 + $0x68] sm:$0xff] %vm860_vm15, %v9592_v31  ;;  %18257 = vmatpush3.bf16.msra.mxu1 (%p3338_p0), %v19247_v54  ;;  %v9722_v31 = vrot.slane (%p3338_p0), %v9718_v63, 4  ;;  %v9882_v54 = vld [vmem:[#allocation2 + $0x2c] sm:$0x1] (%p3338_p0)  ;;  %9869 = vst [vmem:[#allocation2 + $0x18] sm:$0xf] (%p3338_p0), %v9868_v21  ;;  %v17058_v15 = vpack.c.bf16 (%p3338_p0), %v9617_v34, %v9617_v34  ;;  %v17060_v32 = vpack.c.bf16 (%p3338_p0), %v9619_v36, %v9619_v36 }
 0x625   :  { %18274 = vmatprep.subr.bf16.mxu1 %v22105_v37  ;;  %9872 = vst [vmem:[#allocation2 + $0x1c] sm:$0x1] %v9871_v11  ;;  %v9874_v57 = vsel %vm20560_vm6, %v9721_v41, %v9873_v53  ;;  %v22130_v14 = vrot.slane %v12891_v13, 4  ;;  %v9880_v0 = vsel %vm20560_vm6, %v9729_v28, %v9879_v23  ;;  %v9883_v1 = vsel %vm20572_vm7, %v9730_v56, %v9882_v54  ;;  %v22137_v3 = vld [vmem:[#allocation2 + $0x8] sm:$0xf]  ;;  %v9622_v46 = vld [vmem:[#allocation3 + $0x58] sm:$0xff] }
 0x626   :  { %v9877_v58 = vsel %vm20572_vm7, %v9722_v31, %v9876_v19  ;;  %9875 = vst [vmem:[#allocation2 + $0x20] sm:$0xf] %v9874_v57  ;;  %9881 = vst [vmem:[#allocation2 + $0x28] sm:$0xf] %v9880_v0  ;;  %v9732_v20 = vshrl.u32 %v17057_v2, 16  ;;  %v9735_v47 = vshll.u32 %v17057_v2, 16  ;;  %v22165_v53 = vpack.c.bf16 %v9620_v24, %v9620_v24 }
 0x627   :  { %9878 = vst [vmem:[#allocation2 + $0x24] sm:$0x1] %v9877_v58  ;;  %9884 = vst [vmem:[#allocation2 + $0x2c] sm:$0x1] %v9883_v1  ;;  %v9740_v5 = vshrl.u32 %v17058_v15, 16  ;;  %v9743_v8 = vshll.u32 %v17058_v15, 16  ;;  %v12897_v13 = vsel %vm19572_vm14, %v22130_v14, %v22110_v18  ;;  %v22167_v19 = vpack.c.bf16 %v9621_v49, %v9621_v49 }
 0x628   :  { %v22139_v45 = vld [vmem:[#allocation2 + $0xc] sm:$0x1]  ;;  %v9756_v40 = vshrl.u32 %v17060_v32, 16  ;;  %v12899_v9 = vshrl.u32 %v22137_v3, 16  ;;  %v12902_v6 = vshll.u32 %v22137_v3, 16  ;;  %v9759_v10 = vshll.u32 %v17060_v32, 16 }
 0x629   :  { %v12908_v22 = vshll.u32 %v22139_v45, 16  ;;  %v22145_v17 = vrot.slane %v9732_v20, 7  ;;  %v22147_v42 = vrot.slane %v9740_v5, 7  ;;  %v22151_v35 = vld [vmem:[#allocation2 + $0x10] sm:$0xf]  ;;  %v22153_v12 = vrot.slane %v12997_v4, 4 }
 0x62a   :  { %v22149_v30 = vrot.slane %v9756_v40, 7  ;;  %v12901_v61 = vrot.slane %v12899_v9, 4  ;;  %v12904_v62 = vrot.slane %v12902_v6, 5  ;;  %v22161_v25 = vld [vmem:[#allocation2 + $0x14] sm:$0x1]  ;;  %v12913_v33 = vshrl.u32 %v22151_v35, 16 }
 0x62b   :  { %v12910_v38 = vrot.slane %v12908_v22, 5  ;;  %v22159_v44 = vld [vmem:[#allocation2 + $0x18] sm:$0xf]  ;;  %v12916_v7 = vshll.u32 %v22151_v35, 16  ;;  %v12922_v50 = vshll.u32 %v22161_v25, 16  ;;  %v13000_v29 = vshll.u32 %v22124_v27, 16 }
 0x62c   :  { %v22163_v63 = vld [vmem:[#allocation2 + $0x1c] sm:$0x1]  ;;  %v12905_v39 = vor.u32 %v12904_v62, %v12901_v61  ;;  %v12927_v51 = vshrl.u32 %v22159_v44, 16  ;;  %v12930_v18 = vshll.u32 %v22159_v44, 16  ;;  %v12915_v31 = vrot.slane %v12913_v33, 4 }
 0x62d   :  { %v12936_v34 = vshll.u32 %v22163_v63, 16  ;;  %v12918_v23 = vrot.slane %v12916_v7, 5  ;;  %v22176_v54 = vld [vmem:[#allocation2 + $0x20] sm:$0xf]  ;;  %v9737_v36 = vor.u32 %v9735_v47, %v22145_v17  ;;  %v22179_v28 = vld [vmem:[#allocation2 + $0x10] sm:$0xe]  ;;  %v9745_v56 = vor.u32 %v9743_v8, %v22147_v42 }
 0x62e   :  { %v12906_v41 = vrot.slane %v12905_v39, 4  ;;  %v12929_v21 = vrot.slane %v12927_v51, 4  ;;  %v12932_v11 = vrot.slane %v12930_v18, 5  ;;  %v22183_v57 = vor.u32 %v9759_v10, %v22149_v30  ;;  %v22187_v14 = vld [vmem:[#allocation2 + $0x28] sm:$0xf]  ;;  %v19258_v18 = vld [vmem:[%s24383_s5 + $0x10] sm:$0xff]  }
 0x62f   :  { %v12919_v2 = vor.u32 %v12918_v23, %v12915_v31  ;;  %v12924_v15 = vrot.slane %v12922_v50, 5  ;;  %v22189_v0 = vld [vmem:[#allocation2 + $0x24] sm:$0x1]  ;;  %v22191_v1 = vpack.c.bf16 %v9622_v46, %v9622_v46  ;;  %v12938_v47 = vrot.slane %v12936_v34, 5  ;;  %v22193_v5 = vld [vmem:[#allocation2 + $0x2c] sm:$0x1]  ;;  %18074 = vmatprep.subr.bf16.mxu0 %v19258_v18 }
 0x630   :  { %v12911_v58 = vsel %vm19572_vm14, %v12906_v41, %v12910_v38  ;;  %v12933_v20 = vor.u32 %v12932_v11, %v12929_v21  ;;  %v12941_v4 = vshrl.u32 %v22176_v54, 16  ;;  %v16829_v40 = vrot.slane %v22179_v28, 9  ;;  %v9885_v22 = vld [vmem:[#allocation2 + $0x30] sm:$0xf]  ;;  %v9888_v10 = vld [vmem:[#allocation2 + $0x34] sm:$0x1]  ;;  %18075 = vmatpush3.bf16.msra.mxu0 %v19258_v18 }
 0x631   :  { %v16791_v32 = vcombine.low %v12897_v13, %v12911_v58  ;;  %v12920_v8 = vrot.slane %v12919_v2, 4  ;;  %v12944_v9 = vshll.u32 %v22176_v54, 16  ;;  %v12950_v6 = vshll.u32 %v22189_v0, 16  ;;  %v9891_v38 = vld [vmem:[#allocation2 + $0x38] sm:$0xf]  ;;  %v19249_v51 = vld [vmem:[%s24385_s7 + $0x8] sm:$0xff]  }
 0x632   :  { %v12934_v24 = vrot.slane %v12933_v20, 4  ;;  %v12943_v49 = vrot.slane %v12941_v4, 4  ;;  %v12955_v61 = vshrl.u32 %v22187_v14, 16  ;;  %v12958_v62 = vshll.u32 %v22187_v14, 16  ;;  %v9894_v50 = vld [vmem:[#allocation2 + $0x3c] sm:$0x1] }
 0x633   :  { %18258 = vmatprep.mubr.msk.bf16.mxu1 %vm860_vm15, %v16791_v32  ;;  %v12925_v13 = vsel %vm19572_vm14, %v12920_v8, %v12924_v15  ;;  %v12946_v39 = vrot.slane %v12944_v9, 5  ;;  %v12952_v33 = vrot.slane %v12950_v6, 5  ;;  %v12964_v7 = vshll.u32 %v22193_v5, 16  ;;  %v9903_v23 = vld [vmem:[#allocation2 + $0x58] sm:$0xf]  ;;  %v9623_v9 = vld [vmem:[#allocation3 + $0x60] sm:$0xff] }
 0x634   :  { %v12939_v34 = vsel %vm19572_vm14, %v12934_v24, %v12938_v47  ;;  %v12957_v46 = vrot.slane %v12955_v61, 4  ;;  %v12960_v41 = vrot.slane %v12958_v62, 5  ;;  %v9738_v31 = vrot.slane %v22145_v17, 4  ;;  %v19261_v21 = vld [vmem:[%s24383_s5 + $0x18] sm:$0xff]   ;;  %v22218_v20 = vld [vmem:[#allocation2 + $0x54] sm:$0x1] }
 0x635   :  { %v16792_v11 = vcombine.low %v12925_v13, %v12939_v34  ;;  %v12947_v58 = vor.u32 %v12946_v39, %v12943_v49  ;;  %v12966_v2 = vrot.slane %v12964_v7, 5  ;;  %v9746_v15 = vrot.slane %v22147_v42, 4  ;;  %v9906_v32 = vld [vmem:[#allocation2 + $0x5c] sm:$0x1]  ;;  %18076 = vmatprep.subr.bf16.mxu0 %v19261_v21  ;;  %v9909_v7 = vld [vmem:[#allocation2 + $0x60] sm:$0xf] }
 0x636   :  { %v12961_v4 = vor.u32 %v12960_v41, %v12957_v46  ;;  %v9886_v47 = vsel %vm20560_vm6, %v9737_v36, %v9885_v22  ;;  %v9889_v17 = vsel %vm20572_vm7, %v9738_v31, %v9888_v10  ;;  %v9892_v8 = vsel %vm20560_vm6, %v9745_v56, %v9891_v38  ;;  %v22236_v56 = vld [vmem:[%s24385_s7 + $0x20] sm:$0xff]   ;;  %18077 = vmatpush3.bf16.msra.mxu0 %v19261_v21  ;;  %v22441_v59 = vld [vmem:[#allocation2 + $0x1c] sm:$0x1] }
 0x637   :  { %18259 = vmatmul.mubr.msk.bf16.vlgmr.msra.gmra.mrb[0].mxu1 %vm860_vm15, %v16792_v11  ;;  %v12948_v6 = vrot.slane %v12947_v58, 4  ;;  %9887 = vst [vmem:[#allocation2 + $0x30] sm:$0xf] %v9886_v47  ;;  %9890 = vst [vmem:[#allocation2 + $0x34] sm:$0x1] %v9889_v17  ;;  %v9895_v42 = vsel %vm20572_vm7, %v9746_v15, %v9894_v50  ;;  %v9762_v24 = vrot.slane %v22149_v30, 4  ;;  %v9904_v36 = vsel %vm20560_vm6, %v22183_v57, %v9903_v23 }
 0x638   :  { %9893 = vst [vmem:[#allocation2 + $0x38] sm:$0xf] %v9892_v8  ;;  %18275 = vmatpush3.bf16.msra.mxu1 %v22105_v37  ;;  %v12962_v22 = vrot.slane %v12961_v4, 4  ;;  %9896 = vst [vmem:[#allocation2 + $0x3c] sm:$0x1] %v9895_v42  ;;  %v13002_v10 = vrot.slane %v13000_v29, 5  ;;  %v22255_v46 = vpack.c.bf16 %v9623_v9, %v9623_v9 }
 0x639   :  { %9905 = vst [vmem:[#allocation2 + $0x58] sm:$0xf] %v9904_v36  ;;  %v13006_v30 = vshll.u32 %v22218_v20, 16  ;;  %v9764_v49 = vshrl.u32 %v22165_v53, 16  ;;  %v12953_v57 = vsel %vm19572_vm14, %v12948_v6, %v12952_v33  ;;  %v9907_v61 = vsel %vm20572_vm7, %v9762_v24, %v9906_v32  ;;  %18276 = vmatprep.subr.bf16.mxu1 %v19249_v51  ;;  %v9912_v34 = vld [vmem:[#allocation2 + $0x64] sm:$0x1] }
 0x63a   :  { %v9767_v62 = vshll.u32 %v22165_v53, 16  ;;  %v9772_v37 = vshrl.u32 %v22167_v19, 16  ;;  %v12967_v38 = vsel %vm19572_vm14, %v12962_v22, %v12966_v2  ;;  %9908 = vst [vmem:[#allocation2 + $0x5c] sm:$0x1] %v9907_v61  ;;  %v13003_v29 = vor.u32 %v13002_v10, %v22153_v12  ;;  %v9624_v53 = vld [vmem:[#allocation3 + $0x68] sm:$0xff] }
 0x63b   :  { %v22252_v13 = vrot.slane %v13006_v30, 5  ;;  %v9766_v39 = vrot.slane %v9764_v49, 7  ;;  %v16793_v33 = vcombine.low %v12953_v57, %v12967_v38  ;;  %v9775_v18 = vshll.u32 %v22167_v19, 16  ;;  %v9915_v11 = vld [vmem:[#allocation2 + $0x68] sm:$0xf] }
 0x63c   :  { %v9774_v50 = vrot.slane %v9772_v37, 7  ;;  %v22257_v41 = vrot.slane %v13003_v29, 4  ;;  %18277 = vmatpush3.bf16.msra.mxu1 %v19249_v51  ;;  %v9780_v12 = vshrl.u32 %v22191_v1, 16  ;;  %v9918_v2 = vld [vmem:[#allocation2 + $0x6c] sm:$0x1]  ;;  %v9783_v15 = vshll.u32 %v22191_v1, 16 }
 0x63d   :  { %v9769_v31 = vor.u32 %v9767_v62, %v9766_v39  ;;  %v9770_v23 = vrot.slane %v9766_v39, 4  ;;  %18262 = vmatprep.mubr.msk.bf16.mxu1 %vm860_vm15, %v16793_v33  ;;  %v9788_v19 = vshrl.u32 %v22255_v46, 16  ;;  %18294 = vmatprep.subr.bf16.mxu1 %v22236_v56  ;;  %v22278_v8 = vpack.c.bf16 %v9624_v53, %v9624_v53 }
 0x63e   :  { %v9777_v58 = vor.u32 %v9775_v18, %v9774_v50  ;;  %v9778_v21 = vrot.slane %v9774_v50, 4  ;;  %v22264_v32 = vld [vmem:[#allocation2 + $0x30] sm:$0xf]  ;;  %v22268_v47 = vld [vmem:[#allocation2 + $0x34] sm:$0x1]  ;;  %v13009_v51 = vsel %vm19572_vm14, %v22257_v41, %v22252_v13  ;;  %v9782_v53 = vrot.slane %v9780_v12, 7 }
 0x63f   :  { %v22266_v4 = vld [vmem:[#allocation2 + $0x38] sm:$0xf]  ;;  %v9910_v17 = vsel %vm20560_vm6, %v9769_v31, %v9909_v7  ;;  %v9913_v1 = vsel %vm20572_vm7, %v9770_v23, %v9912_v34  ;;  %v22280_v9 = vld [vmem:[#allocation2 + $0x3c] sm:$0x1]  ;;  %v12969_v6 = vshrl.u32 %v22264_v32, 16  ;;  %v12972_v42 = vshll.u32 %v22264_v32, 16 }
 0x640   :  { %v12978_v24 = vshll.u32 %v22268_v47, 16  ;;  %v12983_v36 = vshrl.u32 %v22266_v4, 16  ;;  %9911 = vst [vmem:[#allocation2 + $0x60] sm:$0xf] %v9910_v17  ;;  %9914 = vst [vmem:[#allocation2 + $0x64] sm:$0x1] %v9913_v1  ;;  %v9916_v49 = vsel %vm20560_vm6, %v9777_v58, %v9915_v11  ;;  %v9919_v57 = vsel %vm20572_vm7, %v9778_v21, %v9918_v2 }
 0x641   :  { %v12986_v22 = vshll.u32 %v22266_v4, 16  ;;  %v12992_v10 = vshll.u32 %v22280_v9, 16  ;;  %v22288_v30 = vld [vmem:[#allocation2 + $0x58] sm:$0xf]  ;;  %v12971_v61 = vrot.slane %v12969_v6, 4  ;;  %v12974_v62 = vrot.slane %v12972_v42, 5 }
 0x642   :  { %v12980_v37 = vrot.slane %v12978_v24, 5  ;;  %v12985_v38 = vrot.slane %v12983_v36, 4  ;;  %v22294_v29 = vld [vmem:[#allocation2 + $0x5c] sm:$0x1]  ;;  %9917 = vst [vmem:[#allocation2 + $0x68] sm:$0xf] %v9916_v49  ;;  %v9785_v42 = vor.u32 %v9783_v15, %v9782_v53 }
 0x643   :  { %9920 = vst [vmem:[#allocation2 + $0x6c] sm:$0x1] %v9919_v57  ;;  %v12988_v39 = vrot.slane %v12986_v22, 5  ;;  %v12994_v7 = vrot.slane %v12992_v10, 5  ;;  %v13011_v33 = vshrl.u32 %v22288_v30, 16  ;;  %v13014_v50 = vshll.u32 %v22288_v30, 16 }
 0x644   :  { %v12975_v18 = vor.u32 %v12974_v62, %v12971_v61  ;;  %v13020_v34 = vshll.u32 %v22294_v29, 16  ;;  %v9790_v31 = vrot.slane %v9788_v19, 7  ;;  %v22302_v23 = vld [vmem:[%s24383_s5] sm:$0xff]   ;;  %v9791_v2 = vshll.u32 %v22255_v46, 16  ;;  %v9921_v17 = vld [vmem:[#allocation2 + $0x70] sm:$0xf] }
 0x645   :  { %v12989_v11 = vor.u32 %v12988_v39, %v12985_v38  ;;  %v13013_v58 = vrot.slane %v13011_v33, 4  ;;  %v13016_v21 = vrot.slane %v13014_v50, 5  ;;  %v9786_v24 = vrot.slane %v9782_v53, 4  ;;  %v9924_v36 = vld [vmem:[#allocation2 + $0x74] sm:$0x1]  ;;  %18094 = vmatprep.subr.bf16.mxu0 %v22302_v23 }
 0x646   :  { %v12976_v1 = vrot.slane %v12975_v18, 4  ;;  %v13022_v6 = vrot.slane %v13020_v34, 5  ;;  %v9793_v49 = vor.u32 %v9791_v2, %v9790_v31  ;;  %v9794_v57 = vrot.slane %v9790_v31, 4  ;;  %v9927_v61 = vld [vmem:[#allocation2 + $0x78] sm:$0xf]  ;;  %v9625_v2 = vld [vmem:[#allocation3 + $0x70] sm:$0xff] }
 0x647   :  { %v12990_v12 = vrot.slane %v12989_v11, 4  ;;  %v13017_v19 = vor.u32 %v13016_v21, %v13013_v58  ;;  %v22306_v22 = vld [vmem:[#allocation2 + $0x60] sm:$0xf]  ;;  %v22308_v10 = vld [vmem:[#allocation2 + $0x64] sm:$0x1]  ;;  %v9922_v53 = vsel %vm20560_vm6, %v9785_v42, %v9921_v17  ;;  %v9796_v13 = vshrl.u32 %v22278_v8, 16 }
 0x648   :  { %v12981_v46 = vsel %vm19572_vm14, %v12976_v1, %v12980_v37  ;;  %v13025_v62 = vshrl.u32 %v22306_v22, 16  ;;  %v13028_v15 = vshll.u32 %v22306_v22, 16  ;;  %v13034_v38 = vshll.u32 %v22308_v10, 16  ;;  %v9930_v39 = vld [vmem:[#allocation2 + $0x7c] sm:$0x1] }
 0x649   :  { %v12995_v33 = vsel %vm19572_vm14, %v12990_v12, %v12994_v7  ;;  %v13018_v50 = vrot.slane %v13017_v19, 4  ;;  %v22317_v18 = vld [vmem:[#allocation2 + $0x68] sm:$0xf]  ;;  %v9925_v37 = vsel %vm20572_vm7, %v9786_v24, %v9924_v36  ;;  %9923 = vst [vmem:[#allocation2 + $0x70] sm:$0xf] %v9922_v53  ;;  %v9928_v24 = vsel %vm20560_vm6, %v9793_v49, %v9927_v61 }
 0x64a   :  { %v22319_v34 = vld [vmem:[#allocation2 + $0x6c] sm:$0x1]  ;;  %v16794_v31 = vcombine.low %v12981_v46, %v12995_v33  ;;  %v13027_v11 = vrot.slane %v13025_v62, 4  ;;  %v13030_v58 = vrot.slane %v13028_v15, 5  ;;  %v13036_v21 = vrot.slane %v13034_v38, 5 }
 0x64b   :  { %9926 = vst [vmem:[#allocation2 + $0x74] sm:$0x1] %v9925_v37  ;;  %v13023_v7 = vsel %vm19572_vm14, %v13018_v50, %v13022_v6  ;;  %v13039_v1 = vshrl.u32 %v22317_v18, 16  ;;  %v13042_v12 = vshll.u32 %v22317_v18, 16  ;;  %v13048_v19 = vshll.u32 %v22319_v34, 16 }
 0x64c   :  { %18263 = vmatmul.mubr.msk.bf16.gmra.mrb[4].mxu1 %vm860_vm15, %v16794_v31  ;;  %v16795_v17 = vcombine.low %v13009_v51, %v13023_v7  ;;  %v13031_v42 = vor.u32 %v13030_v58, %v13027_v11  ;;  %v9931_v6 = vsel %vm20572_vm7, %v9794_v57, %v9930_v39  ;;  %v22340_v36 = vld [vmem:[#allocation2 + $0x18] sm:$0xe]  ;;  %9929 = vst [vmem:[#allocation2 + $0x78] sm:$0xf] %v9928_v24  ;;  %v9799_v41 = vshll.u32 %v22278_v8, 16 }
 0x64d   :  { %v13041_v46 = vrot.slane %v13039_v1, 4  ;;  %v13044_v62 = vrot.slane %v13042_v12, 5  ;;  %v13050_v15 = vrot.slane %v13048_v19, 5  ;;  %9932 = vst [vmem:[#allocation2 + $0x7c] sm:$0x1] %v9931_v6  ;;  %v17066_v38 = vpack.c.bf16 %v9625_v2, %v9625_v2 }
 0x64e   :  { %18266 = vmatprep.mubr.msk.bf16.mxu1 %vm860_vm15, %v16795_v17  ;;  %v13032_v33 = vrot.slane %v13031_v42, 4  ;;  %v13496_v50 = vrot.slane %v22161_v25, 5  ;;  %v16830_v53 = vrot.slane %v22340_v36, 9  ;;  %v13500_v37 = vrot.slane %v22163_v63, 5  ;;  %v9933_v11 = vld [vmem:[#allocation2 + $0x80] sm:$0xf] }
 0x64f   :  { %v13045_v49 = vor.u32 %v13044_v62, %v13041_v46  ;;  %v9804_v57 = vshrl.u32 %v17066_v38, 16  ;;  %v9807_v61 = vshll.u32 %v17066_v38, 16  ;;  %v9798_v31 = vrot.slane %v9796_v13, 7  ;;  %v9936_v12 = vld [vmem:[#allocation2 + $0x84] sm:$0x1] }
 0x650   :  { %v13037_v8 = vsel %vm19572_vm14, %v13032_v33, %v13036_v21  ;;  %v22354_v2 = vld [vmem:[#allocation2 + $0x70] sm:$0xf]  ;;  %v9939_v63 = vld [vmem:[#allocation2 + $0x88] sm:$0xf]  ;;  %v9942_v46 = vld [vmem:[#allocation2 + $0x8c] sm:$0x1] }
 0x651   :  { %v13046_v58 = vrot.slane %v13045_v49, 4  ;;  %v9806_v1 = vrot.slane %v9804_v57, 7  ;;  %v13053_v19 = vshrl.u32 %v22354_v2, 16  ;;  %v13056_v25 = vshll.u32 %v22354_v2, 16  ;;  %v22363_v62 = vld [vmem:[#allocation2] sm:$0xf] }
 0x652   :  { %v22356_v7 = vld [vmem:[#allocation2 + $0x74] sm:$0x1]  ;;  %v9801_v42 = vor.u32 %v9799_v41, %v9798_v31  ;;  %v9802_v6 = vrot.slane %v9798_v31, 4 }
 0x653   :  { %v13062_v17 = vshll.u32 %v22356_v7, 16  ;;  %v13051_v24 = vsel %vm19572_vm14, %v13046_v58, %v13050_v15  ;;  %v9809_v21 = vor.u32 %v9807_v61, %v9806_v1  ;;  %v9810_v36 = vrot.slane %v9806_v1, 4  ;;  %v22365_v33 = vld [vmem:[#allocation2 + $0x78] sm:$0xf]  ;;  %v22380_v58 = vld [vmem:[#allocation2 + $0x4] sm:$0x1] }
 0x654   :  { %v16796_v38 = vcombine.low %v13037_v8, %v13051_v24  ;;  %v22367_v13 = vld [vmem:[#allocation2 + $0x7c] sm:$0x1]  ;;  %v13055_v49 = vrot.slane %v13053_v19, 4  ;;  %v13058_v57 = vrot.slane %v13056_v25, 5  ;;  %v9934_v41 = vsel %vm20560_vm6, %v9801_v42, %v9933_v11  ;;  %24449 = vst [vmem:[#allocation8_spill] sm:$0xff] %v22380_v58 }
 0x655   :  { %v22375_v15 = vsel %vm19788_vm8, %v16829_v40, %v13496_v50  ;;  %v13067_v61 = vshrl.u32 %v22365_v33, 16  ;;  %v13070_v31 = vshll.u32 %v22365_v33, 16  ;;  %v13076_v8 = vshll.u32 %v22367_v13, 16  ;;  %9935 = vst [vmem:[#allocation2 + $0x80] sm:$0xf] %v9934_v41 }
 0x656   :  { %24448 = vst [vmem:[#allocation7_spill] sm:$0xff] %v22375_v15  ;;  %18267 = vmatmul.mubr.msk.bf16.gmra.mrb[8].mxu1 %vm860_vm15, %v16796_v38  ;;  %v13059_v1 = vor.u32 %v13058_v57, %v13055_v49  ;;  %v9937_v11 = vsel %vm20572_vm7, %v9802_v6, %v9936_v12  ;;  %v9940_v28 = vsel %vm20560_vm6, %v9809_v21, %v9939_v63  ;;  %v22389_v50 = vld [vmem:[#allocation2 + $0x8] sm:$0xf]  ;;  %v22391_v19 = vld [vmem:[#allocation2 + $0xc] sm:$0x1]  ;;  %v13064_v25 = vrot.slane %v13062_v17, 5 }
 0x657   :  { %v9943_v40 = vsel %vm20572_vm7, %v9810_v36, %v9942_v46  ;;  %24450 = vst [vmem:[#allocation9_spill] sm:$0xff] %v22389_v50  ;;  %24451 = vst [vmem:[#allocation10_spill] sm:$0xff] %v22391_v19  ;;  %v13069_v42 = vrot.slane %v13067_v61, 4  ;;  %v13072_v24 = vrot.slane %v13070_v31, 5  ;;  %v13078_v41 = vrot.slane %v13076_v8, 5 }
 0x658   :  { %9938 = vst [vmem:[#allocation2 + $0x84] sm:$0x1] %v9937_v11  ;;  %9941 = vst [vmem:[#allocation2 + $0x88] sm:$0xf] %v9940_v28  ;;  %v13060_v38 = vrot.slane %v13059_v1, 4  ;;  %v10021_v12 = vshrl.u32 %v22363_v62, 16  ;;  %v22403_v57 = vsel %vm19788_vm8, %v16830_v53, %v13500_v37 }
 0x659   :  { %9944 = vst [vmem:[#allocation2 + $0x8c] sm:$0x1] %v9943_v40  ;;  %v10024_v6 = vshll.u32 %v22363_v62, 16  ;;  %v10030_v63 = vshll.u32 %v22380_v58, 16  ;;  %v13073_v21 = vor.u32 %v13072_v24, %v13069_v42  ;;  %v10035_v36 = vshrl.u32 %v22389_v50, 16  ;;  %24453 = vst [vmem:[#allocation12_spill] sm:$0xff] %v22403_v57 }
 0x65a   :  { %v10038_v46 = vshll.u32 %v22389_v50, 16  ;;  %v10044_v17 = vshll.u32 %v22391_v19, 16  ;;  %v22399_v49 = vld [vmem:[#allocation2 + $0x10] sm:$0xf]  ;;  %v10023_v31 = vrot.slane %v10021_v12, 4  ;;  %v13065_v1 = vsel %vm19572_vm14, %v13060_v38, %v13064_v25 }
 0x65b   :  { %24452 = vst [vmem:[#allocation11_spill] sm:$0xff] %v22399_v49  ;;  %v10026_v8 = vrot.slane %v10024_v6, 5  ;;  %v13074_v11 = vrot.slane %v13073_v21, 4  ;;  %v10037_v28 = vrot.slane %v10035_v36, 4  ;;  %v10032_v39 = vrot.slane %v10030_v63, 5 }
 0x65c   :  { %v10040_v40 = vrot.slane %v10038_v46, 5  ;;  %v22409_v42 = vld [vmem:[#allocation2 + $0x80] sm:$0xf]  ;;  %v10046_v51 = vrot.slane %v10044_v17, 5  ;;  %v10049_v26 = vshrl.u32 %v22399_v49, 16  ;;  %v24459_v50 = vrot.slane %v22098_v16, 5 }
 0x65d   :  { %v10027_v24 = vor.u32 %v10026_v8, %v10023_v31  ;;  %v13079_v53 = vsel %vm19572_vm14, %v13074_v11, %v13078_v41  ;;  %v13081_v37 = vshrl.u32 %v22409_v42, 16  ;;  %v13084_v12 = vshll.u32 %v22409_v42, 16  ;;  %v22437_v63 = vld [vmem:[#allocation2 + $0x18] sm:$0xf] }
 0x65e   :  { %v10041_v6 = vor.u32 %v10040_v40, %v10037_v28  ;;  %v16797_v61 = vcombine.low %v13065_v1, %v13079_v53  ;;  %v22435_v53 = vld [vmem:[#allocation2 + $0x14] sm:$0x1]  ;;  %24454 = vst [vmem:[#allocation13_spill] sm:$0xff] %v22437_v63  ;;  %v10051_v57 = vrot.slane %v10049_v26, 4  ;;  %v10052_v28 = vshll.u32 %v22399_v49, 16 }
 0x65f   :  { %v22416_v25 = vld [vmem:[#allocation2 + $0x88] sm:$0xf]  ;;  %v22418_v38 = vld [vmem:[#allocation2 + $0x84] sm:$0x1]  ;;  %v13083_v46 = vrot.slane %v13081_v37, 4  ;;  %v13086_v17 = vrot.slane %v13084_v12, 5 }
 0x660   :  { %v22420_v21 = vld [vmem:[#allocation2 + $0x8c] sm:$0x1]  ;;  %v13090_v31 = vshll.u32 %v22418_v38, 16  ;;  %v13095_v8 = vshrl.u32 %v22416_v25, 16  ;;  %18270 = vmatprep.mubr.msk.bf16.mxu1 %vm860_vm15, %v16797_v61  ;;  %v13098_v1 = vshll.u32 %v22416_v25, 16  ;;  %v10028_v40 = vrot.slane %v10027_v24, 4 }
 0x661   :  { %v13104_v11 = vshll.u32 %v22420_v21, 16  ;;  %v13087_v36 = vor.u32 %v13086_v17, %v13083_v46  ;;  %v10042_v12 = vrot.slane %v10041_v6, 4  ;;  %v10058_v46 = vshll.u32 %v22435_v53, 16  ;;  %v22461_v26 = vld [vmem:[#allocation2 + $0x28] sm:$0xf] }
 0x662   :  { %v13092_v41 = vrot.slane %v13090_v31, 5  ;;  %v13097_v37 = vrot.slane %v13095_v8, 4  ;;  %v13100_v43 = vrot.slane %v13098_v1, 5  ;;  %v10033_v61 = vsel %vm19572_vm14, %v10028_v40, %v10032_v39  ;;  %v22449_v1 = vld [vmem:[#allocation2 + $0x10] sm:$0xe] }
 0x663   :  { %v13106_v52 = vrot.slane %v13104_v11, 5  ;;  %v13088_v15 = vrot.slane %v13087_v36, 4  ;;  %v10047_v24 = vsel %vm19572_vm14, %v10042_v12, %v10046_v51  ;;  %v10063_v31 = vshrl.u32 %v22437_v63, 16  ;;  %v13438_v11 = vld [vmem:[#allocation2] sm:$0xe] }
 0x664   :  { %v13101_v17 = vor.u32 %v13100_v43, %v13097_v37  ;;  %v16564_v6 = vcombine.low %v10033_v61, %v10047_v24  ;;  %v10066_v8 = vshll.u32 %v22437_v63, 16  ;;  %v10054_v36 = vrot.slane %v10052_v28, 5  ;;  %v13439_v61 = vld [vmem:[#allocation2 + $0x8] sm:$0xe]  ;;  %v22459_v39 = vld [vmem:[#allocation2 + $0x20] sm:$0xf] }
 0x665   :  { %v10072_v51 = vshll.u32 %v22441_v59, 16  ;;  %v13093_v40 = vsel %vm19572_vm14, %v13088_v15, %v13092_v41  ;;  %v10065_v37 = vrot.slane %v10063_v31, 4  ;;  %v10060_v63 = vrot.slane %v10058_v46, 5  ;;  %24455 = vst [vmem:[#allocation14_spill] sm:$0xff] %v22459_v39  ;;  %v22467_v31 = vld [vmem:[#allocation2 + $0x24] sm:$0x1] }
 0x666   :  { %v13102_v43 = vrot.slane %v13101_v17, 4  ;;  %18078 = vmatprep.mubr.msk.bf16.mxu0 %vm860_vm15, %v16564_v6  ;;  %v10068_v12 = vrot.slane %v10066_v8, 5  ;;  %v10055_v49 = vor.u32 %v10054_v36, %v10051_v57  ;;  %v16827_v6 = vrot.slane %v13438_v11, 9  ;;  %24456 = vst [vmem:[#allocation15_spill] sm:$0xff] %v22467_v31  ;;  %v22470_v36 = vld [vmem:[#allocation2 + $0x2c] sm:$0x1] }
 0x667   :  { %v10074_v17 = vrot.slane %v10072_v51, 5  ;;  %v16828_v46 = vrot.slane %v13439_v61, 9  ;;  %24457 = vst [vmem:[#allocation16_spill] sm:$0xff] %v22470_v36  ;;  %v22472_v24 = vld [vmem:[#allocation2 + $0x30] sm:$0xf]  ;;  %v10077_v51 = vshrl.u32 %v22459_v39, 16  ;;  %v24463_v61 = vcombine.low %v22096_v55, %v22137_v3 }
 0x668   :  { %v13107_v15 = vsel %vm19572_vm14, %v13102_v43, %v13106_v52  ;;  %v10069_v41 = vor.u32 %v10068_v12, %v10065_v37  ;;  %v10056_v58 = vrot.slane %v10055_v49, 4  ;;  %24458 = vst [vmem:[#allocation17_spill] sm:$0xff] %v22472_v24  ;;  %v22479_v52 = vsel %vm19788_vm8, %v16827_v6, %v24459_v50  ;;  %v22482_v11 = vld [vmem:[#allocation2 + $0x38] sm:$0xf]  ;;  %v22497_v12 = vld [vmem:[#allocation2 + $0x34] sm:$0x1] }
 0x669   :  { %v16798_v8 = vcombine.low %v13093_v40, %v13107_v15  ;;  %24460 = vst [vmem:[#allocation18_spill] sm:$0xff] %v22482_v11  ;;  %v22487_v40 = vld [vmem:[#allocation2 + $0x18] sm:$0xe]  ;;  %v24461_v43 = vrot.slane %v22139_v45, 5  ;;  %v10080_v50 = vshll.u32 %v22459_v39, 16  ;;  %v10086_v37 = vshll.u32 %v22467_v31, 16 }
 0x66a   :  { %v10070_v19 = vrot.slane %v10069_v41, 4  ;;  %v10061_v49 = vsel %vm19572_vm14, %v10056_v58, %v10060_v63  ;;  %24462 = vst [vmem:[#allocation19_spill] sm:$0xff] %v22497_v12  ;;  %v10079_v63 = vrot.slane %v10077_v51, 4  ;;  %v10091_v15 = vshrl.u32 %v22461_v26, 16  ;;  %v19265_v55 = vld [vmem:[%s24383_s5 + $0x8] sm:$0xff]   ;;  %v22534_v39 = vld [vmem:[%s24383_s5 + $0x20] sm:$0xff]  }
 0x66b   :  { %18271 = vmatmul.mubr.msk.bf16.gmra.mrb[12].mxu1 %vm860_vm15, %v16798_v8  ;;  %v22493_v16 = vsel %vm19788_vm8, %v16828_v46, %v24461_v43  ;;  %v10082_v6 = vrot.slane %v10080_v50, 5  ;;  %v10088_v8 = vrot.slane %v10086_v37, 5  ;;  %v10094_v46 = vshll.u32 %v22461_v26, 16  ;;  %v22509_v43 = vld [vmem:[#allocation2 + $0x3c] sm:$0x1] }
 0x66c   :  { %18278 = vmatprep.mubr.msk.bf16.mxu1 %vm860_vm15, %v24463_v61  ;;  %v10075_v58 = vsel %vm19572_vm14, %v10070_v19, %v10074_v17  ;;  %v10093_v3 = vrot.slane %v10091_v15, 4  ;;  %v10100_v19 = vshll.u32 %v22470_v36, 16  ;;  %v10105_v17 = vshrl.u32 %v22472_v24, 16  ;;  %v22517_v61 = vld [vmem:[#allocation2 + $0x20] sm:$0xe] }
 0x66d   :  { %v16565_v41 = vcombine.low %v10061_v49, %v10075_v58  ;;  %v10108_v51 = vshll.u32 %v22472_v24, 16  ;;  %v10083_v49 = vor.u32 %v10082_v6, %v10079_v63  ;;  %v10096_v50 = vrot.slane %v10094_v46, 5  ;;  %v22524_v36 = vld [vmem:[#allocation2 + $0x28] sm:$0xe]  ;;  %v13444_v31 = vld [vmem:[#allocation2 + $0x30] sm:$0xe] }
 0x66e   :  { %v10114_v37 = vshll.u32 %v22497_v12, 16  ;;  %v10119_v58 = vshrl.u32 %v22482_v11, 16  ;;  %v10107_v28 = vrot.slane %v10105_v17, 4  ;;  %v10122_v45 = vshll.u32 %v22482_v11, 16  ;;  %v19256_v63 = vld [vmem:[%s24385_s7 + $0x28] sm:$0xff]  }
 0x66f   :  { %18079 = vmatmul.mubr.msk.bf16.vlgmr.msra.gmra.mrb[0].mxu0 %vm860_vm15, %v16565_v41  ;;  %v10110_v15 = vrot.slane %v10108_v51, 5  ;;  %v10084_v41 = vrot.slane %v10083_v49, 4  ;;  %v10097_v6 = vor.u32 %v10096_v50, %v10093_v3  ;;  %v10102_v46 = vrot.slane %v10100_v19, 5  ;;  %v13445_v11 = vld [vmem:[#allocation2 + $0x38] sm:$0xe] }
 0x670   :  { %18095 = vmatpush3.bf16.msra.mxu0 %v22302_v23  ;;  %v10121_v12 = vrot.slane %v10119_v58, 4  ;;  %v10116_v57 = vrot.slane %v10114_v37, 5  ;;  %v10124_v17 = vrot.slane %v10122_v45, 5  ;;  %v10128_v51 = vshll.u32 %v22509_v43, 16  ;;  %v22544_v49 = vld [vmem:[#allocation2 + $0x50] sm:$0xf] }
 0x671   :  { %18096 = vmatprep.subr.bf16.mxu0 %v19265_v55  ;;  %v10111_v24 = vor.u32 %v10110_v15, %v10107_v28  ;;  %v24464_v23 = vcombine.low %v22151_v35, %v22159_v44  ;;  %v10089_v28 = vsel %vm19572_vm14, %v10084_v41, %v10088_v8  ;;  %v10098_v19 = vrot.slane %v10097_v6, 4  ;;  %v22546_v50 = vld [vmem:[#allocation2 + $0x54] sm:$0x1]  ;;  %v22554_v8 = vld [vmem:[#allocation2 + $0x58] sm:$0xf] }
 0x672   :  { %v16831_v45 = vrot.slane %v22517_v61, 9  ;;  %v24465_v37 = vcombine.low %v22176_v54, %v22187_v14  ;;  %v10125_v44 = vor.u32 %v10124_v17, %v10121_v12  ;;  %v10130_v58 = vrot.slane %v10128_v51, 5  ;;  %v22559_v41 = vld [vmem:[%s24385_s7 + $0x30] sm:$0xff]   ;;  %v22568_v51 = vld [vmem:[#allocation2 + $0x5c] sm:$0x1] }
 0x673   :  { %18279 = vmatmul.mubr.msk.bf16.vlgmr.msra.gmra.mrb[0].mxu1 %vm860_vm15, %v24464_v23  ;;  %v10112_v35 = vrot.slane %v10111_v24, 4  ;;  %v13504_v15 = vrot.slane %v22189_v0, 5  ;;  %v16832_v54 = vrot.slane %v22524_v36, 9  ;;  %v16833_v14 = vrot.slane %v13444_v31, 9  ;;  %v22570_v23 = vld [vmem:[#allocation2 + $0x60] sm:$0xf] }
 0x674   :  { %18295 = vmatpush3.bf16.msra.mxu1 %v22236_v56  ;;  %18282 = vmatprep.mubr.msk.bf16.mxu1 %vm860_vm15, %v24465_v37  ;;  %v10103_v56 = vsel %vm19572_vm14, %v10098_v19, %v10102_v46  ;;  %v13512_v24 = vrot.slane %v22268_v47, 5  ;;  %v10126_v6 = vrot.slane %v10125_v44, 4  ;;  %v13508_v17 = vrot.slane %v22193_v5, 5  ;;  %v22588_v37 = vld [vmem:[#allocation2 + $0x64] sm:$0x1] }
 0x675   :  { %18296 = vmatprep.subr.bf16.mxu1 %v19256_v63  ;;  %18097 = vmatpush3.bf16.msra.mxu0 %v19265_v55  ;;  %v16566_v12 = vcombine.low %v10089_v28, %v10103_v56  ;;  %v10117_v0 = vsel %vm19572_vm14, %v10112_v35, %v10116_v57  ;;  %v16834_v31 = vrot.slane %v13445_v11, 9  ;;  %v13516_v55 = vrot.slane %v22280_v9, 5  ;;  %v22580_v57 = vld [vmem:[#allocation2 + $0x68] sm:$0xf]  ;;  %24466 = vst [vmem:[#allocation20_spill] sm:$0xff] %v22588_v37 }
 0x676   :  { %18114 = vmatprep.subr.bf16.mxu0 %v22534_v39  ;;  %v22577_v47 = vsel %vm19788_vm8, %v16833_v14, %v13512_v24  ;;  %v10131_v5 = vsel %vm19572_vm14, %v10126_v6, %v10130_v58  ;;  %v10133_v46 = vshrl.u32 %v22544_v49, 16  ;;  %v10136_v28 = vshll.u32 %v22544_v49, 16  ;;  %v22599_v24 = vld [vmem:[#allocation2 + $0x6c] sm:$0x1]  ;;  %v13448_v44 = vld [vmem:[#allocation2 + $0x60] sm:$0xe] }
 0x677   :  { %18082 = vmatprep.mubr.msk.bf16.mxu0 %vm860_vm15, %v16566_v12  ;;  %v10142_v19 = vshll.u32 %v22546_v50, 16  ;;  %v16567_v11 = vcombine.low %v10117_v0, %v10131_v5  ;;  %v22593_v9 = vsel %vm19788_vm8, %v16834_v31, %v13516_v55  ;;  %v10150_v35 = vshll.u32 %v22554_v8, 16  ;;  %v13449_v3 = vld [vmem:[#allocation2 + $0x68] sm:$0xe] }
 0x678   :  { %18297 = vmatpush3.bf16.msra.mxu1 %v19256_v63  ;;  %v10147_v63 = vshrl.u32 %v22554_v8, 16  ;;  %v10135_v58 = vrot.slane %v10133_v46, 4  ;;  %v10138_v56 = vrot.slane %v10136_v28, 5  ;;  %v24467_v12 = vcombine.low %v22264_v32, %v22266_v4 }
 0x679   :  { %18314 = vmatprep.subr.bf16.mxu1 %v22559_v41  ;;  %v10144_v14 = vrot.slane %v10142_v19, 5  ;;  %18083 = vmatmul.mubr.msk.bf16.gmra.mrb[4].mxu0 %vm860_vm15, %v16567_v11  ;;  %v10152_v6 = vrot.slane %v10150_v35, 5  ;;  %v10156_v31 = vshll.u32 %v22568_v51, 16  ;;  %v10161_v55 = vshrl.u32 %v22570_v23, 16  ;;  %v22615_v19 = vld [vmem:[#allocation2 + $0x50] sm:$0xe] }
 0x67a   :  { %v10149_v0 = vrot.slane %v10147_v63, 4  ;;  %v24468_v5 = vcombine.low %v22124_v27, %v22288_v30  ;;  %v10139_v46 = vor.u32 %v10138_v56, %v10135_v58  ;;  %v10164_v28 = vshll.u32 %v22570_v23, 16 }
 0x67b   :  { %18283 = vmatmul.mubr.msk.bf16.gmra.mrb[4].mxu1 %vm860_vm15, %v24467_v12  ;;  %v10170_v32 = vshll.u32 %v22588_v37, 16  ;;  %v10175_v4 = vshrl.u32 %v22580_v57, 16  ;;  %v10158_v63 = vrot.slane %v10156_v31, 5  ;;  %v10163_v35 = vrot.slane %v10161_v55, 4 }
 0x67c   :  { %18286 = vmatprep.mubr.msk.bf16.mxu1 %vm860_vm15, %v24468_v5  ;;  %v10153_v11 = vor.u32 %v10152_v6, %v10149_v0  ;;  %v10178_v12 = vshll.u32 %v22580_v57, 16  ;;  %v22622_v27 = vsel %vm19788_vm8, %v16831_v45, %v13504_v15  ;;  %v10140_v30 = vrot.slane %v10139_v46, 4  ;;  %v22624_v5 = vld [vmem:[#allocation2 + $0x58] sm:$0xe]  ;;  %v22634_v46 = vld [vmem:[#allocation2 + $0x70] sm:$0xf] }
 0x67d   :  { %v10166_v58 = vrot.slane %v10164_v28, 5  ;;  %v10177_v56 = vrot.slane %v10175_v4, 4  ;;  %v22628_v0 = vsel %vm19788_vm8, %v16832_v54, %v13508_v17  ;;  %v10184_v55 = vshll.u32 %v22599_v24, 16  ;;  %v22639_v17 = vld [vmem:[#allocation2 + $0x74] sm:$0x1] }
 0x67e   :  { %v10154_v6 = vrot.slane %v10153_v11, 4  ;;  %v10180_v31 = vrot.slane %v10178_v12, 5  ;;  %v10145_v61 = vsel %vm19572_vm14, %v10140_v30, %v10144_v14  ;;  %v10172_v45 = vrot.slane %v10170_v32, 5  ;;  %24469 = vst [vmem:[#allocation21_spill] sm:$0xff] %v22639_v17 }
 0x67f   :  { %v10167_v36 = vor.u32 %v10166_v58, %v10163_v35  ;;  %v10186_v37 = vrot.slane %v10184_v55, 5  ;;  %v16837_v35 = vrot.slane %v13448_v44, 9  ;;  %v24470_v32 = vcombine.low %v22306_v22, %v22317_v18  ;;  %v22660_v44 = vld [vmem:[#allocation2 + $0x7c] sm:$0x1] }
 0x680   :  { %v10159_v28 = vsel %vm19572_vm14, %v10154_v6, %v10158_v63  ;;  %v10181_v4 = vor.u32 %v10180_v31, %v10177_v56  ;;  %v13528_v58 = vrot.slane %v22308_v10, 5  ;;  %v16838_v56 = vrot.slane %v13449_v3, 9  ;;  %v22649_v6 = vld [vmem:[#allocation2 + $0x78] sm:$0xf]  ;;  %24472 = vst [vmem:[#allocation22_spill] sm:$0xff] %v22660_v44 }
 0x681   :  { %v16568_v12 = vcombine.low %v10145_v61, %v10159_v28  ;;  %v10168_v14 = vrot.slane %v10167_v36, 4  ;;  %v24471_v31 = vcombine.low %v22354_v2, %v22365_v33  ;;  %v13532_v36 = vrot.slane %v22319_v34, 5  ;;  %v22671_v61 = vld [vmem:[#allocation2 + $0x80] sm:$0xf] }
 0x682   :  { %v10182_v30 = vrot.slane %v10181_v4, 4  ;;  %v10189_v10 = vshrl.u32 %v22634_v46, 16  ;;  %v22667_v2 = vsel %vm19788_vm8, %v16837_v35, %v13528_v58  ;;  %v10192_v33 = vshll.u32 %v22634_v46, 16 }
 0x683   :  { %18287 = vmatmul.mubr.msk.bf16.gmra.mrb[8].mxu1 %vm860_vm15, %v24470_v32  ;;  %18086 = vmatprep.mubr.msk.bf16.mxu0 %vm860_vm15, %v16568_v12  ;;  %v10173_v22 = vsel %vm19572_vm14, %v10168_v14, %v10172_v45  ;;  %v10198_v55 = vshll.u32 %v22639_v17, 16  ;;  %v22673_v45 = vld [vmem:[#allocation2 + $0x88] sm:$0xf]  ;;  %v22677_v28 = vsel %vm19788_vm8, %v16838_v56, %v13532_v36  ;;  %v22680_v12 = vld [vmem:[#allocation2 + $0x84] sm:$0x1]  ;;  %v10217_v56 = vshrl.u32 %v22671_v61, 16 }
 0x684   :  { %18290 = vmatprep.mubr.msk.bf16.mxu1 %vm860_vm15, %v24471_v31  ;;  %v10187_v3 = vsel %vm19572_vm14, %v10182_v30, %v10186_v37  ;;  %v10191_v4 = vrot.slane %v10189_v10, 4  ;;  %v10203_v37 = vshrl.u32 %v22649_v6, 16  ;;  %24473 = vst [vmem:[#allocation23_spill] sm:$0xff] %v22680_v12  ;;  %v10194_v35 = vrot.slane %v10192_v33, 5  ;;  %v13452_v17 = vld [vmem:[#allocation2 + $0x80] sm:$0xe] }
 0x685   :  { %v16569_v34 = vcombine.low %v10173_v22, %v10187_v3  ;;  %v10200_v32 = vrot.slane %v10198_v55, 5  ;;  %v10206_v30 = vshll.u32 %v22649_v6, 16  ;;  %v10212_v31 = vshll.u32 %v22660_v44, 16  ;;  %v22687_v22 = vld [vmem:[#allocation2 + $0x8c] sm:$0x1] }
 0x686   :  { %v10205_v58 = vrot.slane %v10203_v37, 4  ;;  %v10220_v36 = vshll.u32 %v22671_v61, 16  ;;  %v10195_v10 = vor.u32 %v10194_v35, %v10191_v4  ;;  %v10226_v11 = vshll.u32 %v22680_v12, 16  ;;  %v13450_v55 = vld [vmem:[#allocation2 + $0x70] sm:$0xe] }
 0x687   :  { %18087 = vmatmul.mubr.msk.bf16.gmra.mrb[8].mxu0 %vm860_vm15, %v16569_v34  ;;  %v10208_v3 = vrot.slane %v10206_v30, 5  ;;  %v10231_v33 = vshrl.u32 %v22673_v45, 16  ;;  %v10214_v14 = vrot.slane %v10212_v31, 5  ;;  %v10219_v63 = vrot.slane %v10217_v56, 4  ;;  %v13451_v37 = vld [vmem:[#allocation2 + $0x78] sm:$0xe] }
 0x688   :  { %v10222_v18 = vrot.slane %v10220_v36, 5  ;;  %v10234_v34 = vshll.u32 %v22673_v45, 16  ;;  %v24474_v15 = vcombine.low %v22409_v42, %v22416_v25  ;;  %v10196_v54 = vrot.slane %v10195_v10, 4 }
 0x689   :  { %v10209_v44 = vor.u32 %v10208_v3, %v10205_v58  ;;  %v10228_v4 = vrot.slane %v10226_v11, 5  ;;  %v10233_v35 = vrot.slane %v10231_v33, 4  ;;  %v24475_v30 = vcombine.low %v22479_v52, %v22493_v16  ;;  %v13453_v16 = vld [vmem:[#allocation2 + $0x88] sm:$0xe] }
 0x68a   :  { %v10223_v31 = vor.u32 %v10222_v18, %v10219_v63  ;;  %v10236_v56 = vrot.slane %v10234_v34, 5  ;;  %v10240_v36 = vshll.u32 %v22687_v22, 16  ;;  %v16839_v12 = vrot.slane %v13450_v55, 9 }
 0x68b   :  { %18291 = vmatmul.mubr.msk.bf16.gmra.mrb[12].mxu1 %vm860_vm15, %v24474_v15  ;;  %v10201_v42 = vsel %vm19572_vm14, %v10196_v54, %v10200_v32  ;;  %v10210_v25 = vrot.slane %v10209_v44, 4  ;;  %v13536_v15 = vrot.slane %v22356_v7, 5  ;;  %v16840_v58 = vrot.slane %v13451_v37, 9  ;;  %v9618_v44 = vld [vmem:[#allocation3 + $0x38] sm:$0xff] }
 0x68c   :  { %18298 = vmatprep.mubr.msk.bf16.mxu1 %vm860_vm15, %v24475_v30  ;;  %v10224_v11 = vrot.slane %v10223_v31, 4  ;;  %v10237_v10 = vor.u32 %v10236_v56, %v10233_v35  ;;  %v10242_v3 = vrot.slane %v10240_v36, 5  ;;  %v13540_v52 = vrot.slane %v22367_v13, 5 }
 0x68d   :  { %v10215_v63 = vsel %vm19572_vm14, %v10210_v25, %v10214_v14  ;;  %v22711_v18 = vsel %vm19788_vm8, %v16839_v12, %v13536_v15  ;;  %v16841_v33 = vrot.slane %v13452_v17, 9  ;;  %v13544_v54 = vrot.slane %v22418_v38, 5  ;;  %v19263_v14 = vld [vmem:[%s24385_s7 + $0x38] sm:$0xff]  }
 0x68e   :  { %v16570_v32 = vcombine.low %v10201_v42, %v10215_v63  ;;  %v10229_v7 = vsel %vm19572_vm14, %v10224_v11, %v10228_v4  ;;  %v10238_v55 = vrot.slane %v10237_v10, 4  ;;  %v22718_v13 = vsel %vm19788_vm8, %v16840_v58, %v13540_v52  ;;  %v10574_v42 = vld [vmem:[#allocation2] sm:$0xe]  ;;  %v24484_v10 = vld [vmem:[#allocation7_spill] sm:$0xff] }
 0x68f   :  { %v16849_v12 = vcombine.low %v22711_v18, %v22718_v13  ;;  %v22727_v38 = vsel %vm19788_vm8, %v16841_v33, %v13544_v54  ;;  %v16842_v17 = vrot.slane %v13453_v16, 9  ;;  %v13548_v34 = vrot.slane %v22420_v21, 5  ;;  %v13928_v16 = vld [vmem:[#allocation2 + $0x8] sm:$0xf]  ;;  %v22781_v63 = vld [vmem:[%s24385_s7 + $0x40] sm:$0xff]  }
 0x690   :  { %v24476_v37 = vrot.slane %v22218_v20, 5  ;;  %v24477_v4 = vrot.slane %v22615_v19, 9  ;;  %v24478_v30 = vrot.slane %v22294_v29, 5  ;;  %v24479_v31 = vrot.slane %v22624_v5, 9  ;;  %18090 = vmatprep.mubr.msk.bf16.mxu0 %vm860_vm15, %v16570_v32  ;;  %v9626_v20 = vld [vmem:[#allocation3 + $0x78] sm:$0xff] }
 0x691   :  { %v10243_v21 = vsel %vm19572_vm14, %v10238_v55, %v10242_v3  ;;  %v17059_v36 = vpack.c.bf16 %v9618_v44, %v9618_v44  ;;  %v10575_v19 = vld [vmem:[#allocation2 + $0x8] sm:$0xe]  ;;  %v24480_v25 = vrot.slane %v22435_v53, 5  ;;  %v24481_v15 = vrot.slane %v22449_v1, 9  ;;  %v24485_v3 = vld [vmem:[#allocation12_spill] sm:$0xff]  ;;  %v24488_v55 = vld [vmem:[#allocation9_spill] sm:$0xff] }
 0x692   :  { %v22736_v35 = vsel %vm19788_vm8, %v24477_v4, %v24476_v37  ;;  %v13525_v56 = vsel %vm19788_vm8, %v24479_v31, %v24478_v30  ;;  %v24482_v5 = vrot.slane %v22441_v59, 5  ;;  %v24483_v58 = vrot.slane %v22487_v40, 9 }
 0x693   :  { %v22753_v29 = vsel %vm19788_vm8, %v24481_v15, %v24480_v25  ;;  %v24486_v52 = vcombine.low %v24484_v10, %v24485_v3  ;;  %v16571_v53 = vcombine.low %v10229_v7, %v10243_v21  ;;  %v22769_v1 = vsel %vm19788_vm8, %v16842_v17, %v13548_v34  ;;  %v13930_v7 = vld [vmem:[#allocation2 + $0x10] sm:$0xf]  ;;  %v24494_v3 = vld [vmem:[#allocation13_spill] sm:$0xff] }
 0x694   :  { %v22761_v11 = vsel %vm19788_vm8, %v24483_v58, %v24482_v5  ;;  %v24487_v59 = vcombine.low %v22622_v27, %v22628_v0  ;;  %v16850_v40 = vcombine.low %v22727_v38, %v22769_v1  ;;  %v9748_v33 = vshrl.u32 %v17059_v36, 16  ;;  %v22808_v5 = vld [vmem:[#allocation2 + $0xc] sm:$0x1]  ;;  %v19277_v15 = vld [vmem:[#allocation2 + $0x58] ss:$8 sps:$4 sm:$0xff]  }
 0x695   :  { %18299 = vmatmul.mubr.msk.bf16.vlgmr.msra.gmra.mrb[0].mxu1 %vm860_vm15, %v24486_v52  ;;  %v9751_v54 = vshll.u32 %v17059_v36, 16  ;;  %v16847_v44 = vcombine.low %v22736_v35, %v13525_v56  ;;  %18091 = vmatmul.mubr.msk.bf16.gmra.mrb[12].mxu0 %vm860_vm15, %v16571_v53  ;;  %v17067_v32 = vpack.c.bf16 %v9626_v20, %v9626_v20  ;;  %v16600_v27 = vrot.slane %v10574_v42, 9  ;;  %v24490_v56 = vld [vmem:[#allocation8_spill] sm:$0xff]  ;;  %v24492_v20 = vld [vmem:[#allocation10_spill] sm:$0xff]  ;;  %v24495_v52 = vld [vmem:[#allocation11_spill] sm:$0xff] }
 0x696   :  { %18315 = vmatpush3.bf16.msra.mxu1 %v22559_v41  ;;  %18302 = vmatprep.mubr.msk.bf16.mxu1 %vm860_vm15, %v24487_v59  ;;  %v9897_v41 = vld [vmem:[#allocation2 + $0x40] sm:$0xf]  ;;  %v16601_v0 = vrot.slane %v10575_v19, 9  ;;  %v24489_v17 = vcombine.low %v22363_v62, %v24488_v55  ;;  %v22789_v34 = vrot.slane %v9748_v33, 7  ;;  %v13961_v4 = vshrl.u32 %v13928_v16, 16 }
 0x697   :  { %18316 = vmatprep.subr.bf16.mxu1 %v19263_v14  ;;  %v13964_v35 = vshll.u32 %v13928_v16, 16  ;;  %v9812_v30 = vshrl.u32 %v17067_v32, 16  ;;  %v9815_v31 = vshll.u32 %v17067_v32, 16  ;;  %v24491_v21 = vrot.slane %v24490_v56, 5  ;;  %v13932_v19 = vld [vmem:[#allocation2 + $0x18] sm:$0xf] }
 0x698   :  { %18098 = vmatprep.mubr.msk.bf16.mxu0 %vm860_vm15, %v24489_v17  ;;  %v24493_v42 = vrot.slane %v24492_v20, 5  ;;  %v9753_v25 = vor.u32 %v9751_v54, %v22789_v34  ;;  %v13963_v58 = vrot.slane %v13961_v4, 4  ;;  %v16583_v53 = vcombine.low %v24495_v52, %v24494_v3  ;;  %v22815_v59 = vld [vmem:[#allocation2 + $0x14] sm:$0x1]  ;;  %v24496_v54 = vld [vmem:[#allocation14_spill] sm:$0xff] }
 0x699   :  { %v22797_v36 = vsel %vm19788_vm8, %v16600_v27, %v24491_v21  ;;  %v13966_v10 = vrot.slane %v13964_v35, 5  ;;  %v22813_v16 = vrot.slane %v9812_v30, 7  ;;  %v13975_v33 = vshrl.u32 %v13930_v7, 16  ;;  %v9945_v55 = vld [vmem:[#allocation2 + $0x90] sm:$0xf] }
 0x69a   :  { %v22803_v62 = vsel %vm19788_vm8, %v16601_v0, %v24493_v42  ;;  %18317 = vmatpush3.bf16.msra.mxu1 %v19263_v14  ;;  %v13978_v14 = vshll.u32 %v13930_v7, 16  ;;  %v16584_v32 = vcombine.low %v24496_v54, %v22461_v26  ;;  %v9898_v0 = vsel %vm20560_vm6, %v9753_v25, %v9897_v41  ;;  %v19285_v7 = vld [vmem:[%s24383_s5 + $0x28] sm:$0xff]   ;;  %v13934_v21 = vld [vmem:[#allocation2 + $0x20] sm:$0xf] }
 0x69b   :  { %18334 = vmatprep.subr.bf16.mxu1 %v22781_v63  ;;  %v13989_v17 = vshrl.u32 %v13932_v19, 16  ;;  %v24498_v4 = vcombine.low %v22577_v47, %v22593_v9  ;;  %9899 = vst [vmem:[#allocation2 + $0x40] sm:$0xf] %v9898_v0  ;;  %v9817_v35 = vor.u32 %v9815_v31, %v22813_v16  ;;  %v13970_v30 = vshll.u32 %v22808_v5, 16  ;;  %v22832_v47 = vld [vmem:[#allocation2 + $0x1c] sm:$0x1] }
 0x69c   :  { %v13977_v26 = vrot.slane %v13975_v33, 4  ;;  %v13980_v56 = vrot.slane %v13978_v14, 5  ;;  %v13967_v41 = vor.u32 %v13966_v10, %v13963_v58  ;;  %v13984_v20 = vshll.u32 %v22815_v59, 16  ;;  %v10578_v42 = vld [vmem:[#allocation2 + $0x20] sm:$0xe]  ;;  %v24499_v14 = vld [vmem:[#allocation18_spill] sm:$0xff] }
 0x69d   :  { %18303 = vmatmul.mubr.msk.bf16.gmra.mrb[4].mxu1 %vm860_vm15, %v24498_v4  ;;  %v13992_v9 = vshll.u32 %v13932_v19, 16  ;;  %18099 = vmatmul.mubr.msk.bf16.vlgmr.msra.gmra.mrb[0].mxu0 %vm860_vm15, %v16583_v53  ;;  %v9946_v31 = vsel %vm20560_vm6, %v9817_v35, %v9945_v55  ;;  %v10579_v3 = vld [vmem:[#allocation2 + $0x28] sm:$0xe]  ;;  %v14003_v10 = vshrl.u32 %v13934_v21, 16  ;;  %v14006_v52 = vshll.u32 %v13934_v21, 16  ;;  %v24500_v19 = vld [vmem:[#allocation17_spill] sm:$0xff] }
 0x69e   :  { %18306 = vmatprep.mubr.msk.bf16.mxu1 %vm860_vm15, %v16847_v44  ;;  %v13981_v25 = vor.u32 %v13980_v56, %v13977_v26  ;;  %18102 = vmatprep.mubr.msk.bf16.mxu0 %vm860_vm15, %v16584_v32  ;;  %9947 = vst [vmem:[#allocation2 + $0x90] sm:$0xf] %v9946_v31  ;;  %v13991_v44 = vrot.slane %v13989_v17, 4  ;;  %v10580_v33 = vld [vmem:[#allocation2 + $0x30] sm:$0xe]  ;;  %v16585_v54 = vcombine.low %v24500_v19, %v24499_v14  ;;  %v13972_v27 = vrot.slane %v13970_v30, 5 }
 0x69f   :  { %18115 = vmatpush3.bf16.msra.mxu0 %v22534_v39  ;;  %v13994_v58 = vrot.slane %v13992_v9, 5  ;;  %v16586_v53 = vcombine.low %v22544_v49, %v22554_v8  ;;  %v22843_v0 = vld [vmem:[#allocation2 + $0x24] sm:$0x1]  ;;  %v16604_v55 = vrot.slane %v10578_v42, 9  ;;  %v22848_v39 = vld [vmem:[%s24383_s5 + $0x30] sm:$0xff]   ;;  %v13968_v32 = vrot.slane %v13967_v41, 4 }
 0x6a0   :  { %18116 = vmatprep.subr.bf16.mxu0 %v19285_v7  ;;  %v13986_v17 = vrot.slane %v13984_v20, 5  ;;  %v13998_v4 = vshll.u32 %v22832_v47, 16  ;;  %v24501_v35 = vld [vmem:[#allocation15_spill] sm:$0xff]  ;;  %v10581_v56 = vld [vmem:[#allocation2 + $0x38] sm:$0xe]  ;;  %v13982_v21 = vrot.slane %v13981_v25, 4  ;;  %v24503_v41 = vcombine.low %v22667_v2, %v22677_v28 }
 0x6a1   :  { %v10640_v26 = vrot.slane %v24501_v35, 5  ;;  %v16605_v9 = vrot.slane %v10579_v3, 9  ;;  %v24502_v49 = vld [vmem:[#allocation16_spill] sm:$0xff]  ;;  %v16606_v30 = vrot.slane %v10580_v33, 9  ;;  %v13936_v31 = vld [vmem:[#allocation2 + $0x28] sm:$0xf]  ;;  %v13995_v42 = vor.u32 %v13994_v58, %v13991_v44 }
 0x6a2   :  { %v10644_v8 = vrot.slane %v24502_v49, 5  ;;  %v14005_v14 = vrot.slane %v14003_v10, 4  ;;  %v14008_v19 = vrot.slane %v14006_v52, 5  ;;  %v24504_v25 = vld [vmem:[#allocation19_spill] sm:$0xff]  ;;  %v16607_v33 = vrot.slane %v10581_v56, 9 }
 0x6a3   :  { %18117 = vmatpush3.bf16.msra.mxu0 %v19285_v7  ;;  %v22855_v37 = vsel %vm19788_vm8, %v16604_v55, %v10640_v26  ;;  %v10648_v3 = vrot.slane %v24504_v25, 5  ;;  %v10652_v7 = vrot.slane %v22509_v43, 5  ;;  %v13973_v2 = vsel %vm19572_vm14, %v13968_v32, %v13972_v27  ;;  %v22877_v58 = vld [vmem:[#allocation2 + $0x2c] sm:$0x1]  ;;  %v13938_v10 = vld [vmem:[#allocation2 + $0x30] sm:$0xf] }
 0x6a4   :  { %v22863_v20 = vsel %vm19788_vm8, %v16605_v9, %v10644_v8  ;;  %18134 = vmatprep.subr.bf16.mxu0 %v22848_v39  ;;  %v14012_v28 = vshll.u32 %v22843_v0, 16  ;;  %v14017_v52 = vshrl.u32 %v13936_v31, 16  ;;  %v22880_v43 = vrot.slane %v13998_v4, 5  ;;  %v19268_v55 = vld [vmem:[#allocation2 + $0x8] ss:$8 sps:$4 sm:$0xff]  }
 0x6a5   :  { %18307 = vmatmul.mubr.msk.bf16.gmra.mrb[8].mxu1 %vm860_vm15, %v24503_v41  ;;  %18103 = vmatmul.mubr.msk.bf16.gmra.mrb[4].mxu0 %vm860_vm15, %v16585_v54  ;;  %v22884_v18 = vsel %vm19788_vm8, %v16606_v30, %v10648_v3  ;;  %v22888_v13 = vsel %vm19788_vm8, %v16607_v33, %v10652_v7  ;;  %v14020_v27 = vshll.u32 %v13936_v31, 16  ;;  %v13987_v32 = vsel %vm19572_vm14, %v13982_v21, %v13986_v17  ;;  %v9900_v26 = vld [vmem:[#allocation2 + $0x44] sm:$0x1]  ;;  %v13940_v56 = vld [vmem:[#allocation2 + $0x38] sm:$0xf] }
 0x6a6   :  { %18310 = vmatprep.mubr.msk.bf16.mxu1 %vm860_vm15, %v16849_v12  ;;  %v22890_v12 = vld [vmem:[#allocation2 + $0x34] sm:$0x1]  ;;  %18106 = vmatprep.mubr.msk.bf16.mxu0 %vm860_vm15, %v16586_v53  ;;  %v22895_v54 = vrot.slane %v13995_v42, 4  ;;  %v14009_v4 = vor.u32 %v14008_v19, %v14005_v14  ;;  %v16587_v9 = vcombine.low %v22570_v23, %v22580_v57  ;;  %v16588_v49 = vcombine.low %v22634_v46, %v22649_v6  ;;  %v13942_v30 = vld [vmem:[#allocation2 + $0x40] sm:$0xf] }
 0x6a7   :  { %24505 = vst [vmem:[#allocation7_spill] sm:$0xff] %v22890_v12  ;;  %v14026_v8 = vshll.u32 %v22877_v58, 16  ;;  %v14031_v53 = vshrl.u32 %v13938_v10, 16  ;;  %v10582_v31 = vld [vmem:[#allocation2 + $0x50] sm:$0xe]  ;;  %v16589_v17 = vcombine.low %v22671_v61, %v22673_v45  ;;  %v14019_v21 = vrot.slane %v14017_v52, 4 }
 0x6a8   :  { %v14022_v42 = vrot.slane %v14020_v27, 5  ;;  %v9754_v14 = vrot.slane %v22789_v34, 4  ;;  %v22907_v19 = vld [vmem:[#allocation2 + $0x3c] sm:$0x1]  ;;  %v10583_v41 = vld [vmem:[#allocation2 + $0x58] sm:$0xe]  ;;  %v22909_v25 = vcombine.low %v13973_v2, %v13987_v32 }
 0x6a9   :  { %24506 = vst [vmem:[#allocation12_spill] sm:$0xff] %v22907_v19  ;;  %v22911_v23 = vrot.slane %v14012_v28, 5  ;;  %v14034_v57 = vshll.u32 %v13938_v10, 16  ;;  %v14040_v46 = vshll.u32 %v22890_v12, 16  ;;  %v22918_v3 = vrot.slane %v14009_v4, 4 }
 0x6aa   :  { %v9901_v34 = vsel %vm20572_vm7, %v9754_v14, %v9900_v26  ;;  %v14045_v7 = vshrl.u32 %v13940_v56, 16  ;;  %v10584_v52 = vld [vmem:[#allocation2 + $0x60] sm:$0xe]  ;;  %v22926_v2 = vrot.slane %v14026_v8, 5  ;;  %v22928_v28 = vrot.slane %v14031_v53, 4 }
 0x6ab   :  { %9902 = vst [vmem:[#allocation2 + $0x44] sm:$0x1] %v9901_v34  ;;  %v14048_v10 = vshll.u32 %v13940_v56, 16  ;;  %v14059_v27 = vshrl.u32 %v13942_v30, 16  ;;  %v10585_v32 = vld [vmem:[#allocation2 + $0x68] sm:$0xe]  ;;  %v14023_v4 = vor.u32 %v14022_v42, %v14019_v21  ;;  %v24523_v33 = vsel %vm19572_vm14, %v22918_v3, %v22911_v23 }
 0x6ac   :  { %v14062_v6 = vshll.u32 %v13942_v30, 16  ;;  %v16608_v26 = vrot.slane %v10582_v31, 9  ;;  %v10656_v14 = vrot.slane %v22546_v50, 5  ;;  %v19270_v35 = vld [vmem:[#allocation2 + $0x18] ss:$8 sps:$4 sm:$0xff]   ;;  %v14036_v38 = vrot.slane %v14034_v57, 5 }
 0x6ad   :  { %18311 = vmatmul.mubr.msk.bf16.gmra.mrb[12].mxu1 %vm860_vm15, %v16850_v40  ;;  %18107 = vmatmul.mubr.msk.bf16.gmra.mrb[8].mxu0 %vm860_vm15, %v16587_v9  ;;  %v22933_v1 = vrot.slane %v14040_v46, 5  ;;  %v14054_v40 = vshll.u32 %v22907_v19, 16  ;;  %v16609_v8 = vrot.slane %v10583_v41, 9  ;;  %v19273_v53 = vld [vmem:[#allocation2 + $0x28] ss:$8 sps:$4 sm:$0xff]   ;;  %v14047_v56 = vrot.slane %v14045_v7, 4 }
 0x6ae   :  { %18318 = vmatprep.mubr.msk.bf16.mxu1 %vm860_vm15, %v19268_v55  ;;  %18110 = vmatprep.mubr.msk.bf16.mxu0 %vm860_vm15, %v16588_v49  ;;  %v22939_v55 = vsel %vm19788_vm8, %v16608_v26, %v10656_v14  ;;  %v10660_v30 = vrot.slane %v22568_v51, 5  ;;  %v16610_v50 = vrot.slane %v10584_v52, 9  ;;  %v13944_v31 = vld [vmem:[#allocation2 + $0x58] sm:$0xf]  ;;  %v14050_v21 = vrot.slane %v14048_v10, 5  ;;  %v19278_v52 = vld [vmem:[%s24385_s7 + $0x48] sm:$0xff]  }
 0x6af   :  { %v14061_v9 = vrot.slane %v14059_v27, 4  ;;  %v24508_v42 = vld [vmem:[#allocation20_spill] sm:$0xff]  ;;  %v16611_v46 = vrot.slane %v10585_v32, 9  ;;  %v14064_v41 = vrot.slane %v14062_v6, 5  ;;  %v10668_v51 = vrot.slane %v22599_v24, 5 }
 0x6b0   :  { %v10664_v57 = vrot.slane %v24508_v42, 5  ;;  %v13946_v34 = vld [vmem:[#allocation2 + $0x60] sm:$0xf]  ;;  %v22949_v7 = vsel %vm19788_vm8, %v16609_v8, %v10660_v30  ;;  %v14037_v10 = vor.u32 %v14036_v38, %v22928_v28  ;;  %v22962_v6 = vld [vmem:[#allocation2 + $0x5c] sm:$0x1]  ;;  %v14073_v14 = vshrl.u32 %v13944_v31, 16 }
 0x6b1   :  { %24509 = vst [vmem:[#allocation9_spill] sm:$0xff] %v22962_v6  ;;  %v22964_v26 = vld [vmem:[#allocation2 + $0x64] sm:$0x1]  ;;  %v13948_v8 = vld [vmem:[#allocation2 + $0x68] sm:$0xf]  ;;  %v22966_v24 = vrot.slane %v14023_v4, 4  ;;  %v22974_v28 = vsel %vm19788_vm8, %v16611_v46, %v10668_v51 }
 0x6b2   :  { %v22960_v32 = vsel %vm19788_vm8, %v16610_v50, %v10664_v57  ;;  %24510 = vst [vmem:[#allocation8_spill] sm:$0xff] %v22964_v26  ;;  %v22968_v30 = vld [vmem:[#allocation2 + $0x44] sm:$0x1]  ;;  %v22970_v42 = vrot.slane %v14054_v40, 5  ;;  %v14076_v38 = vshll.u32 %v13944_v31, 16  ;;  %v14051_v50 = vor.u32 %v14050_v21, %v14047_v56  ;;  %v22986_v40 = vld [vmem:[%s24385_s7 + $0x50] sm:$0xff]  }
 0x6b3   :  { %24511 = vst [vmem:[#allocation10_spill] sm:$0xff] %v22968_v30  ;;  %v22976_v49 = vld [vmem:[#allocation2 + $0x6c] sm:$0x1]  ;;  %v14075_v27 = vrot.slane %v14073_v14, 4  ;;  %v14087_v4 = vshrl.u32 %v13946_v34, 16  ;;  %24513 = vst [vmem:[#allocation11_spill] sm:$0xff] %v22986_v40  ;;  %v14065_v31 = vor.u32 %v14064_v41, %v14061_v9  ;;  %v24515_v9 = vcombine.low %v22797_v36, %v22803_v62 }
 0x6b4   :  { %24512 = vst [vmem:[#allocation13_spill] sm:$0xff] %v22976_v49  ;;  %v13950_v44 = vld [vmem:[#allocation2 + $0x70] sm:$0xf]  ;;  %v14068_v46 = vshll.u32 %v22968_v30, 16  ;;  %v14090_v56 = vshll.u32 %v13946_v34, 16  ;;  %v14101_v14 = vshrl.u32 %v13948_v8, 16  ;;  %v24526_v23 = vsel %vm19572_vm14, %v22966_v24, %v22926_v2 }
 0x6b5   :  { %18319 = vmatmul.mubr.msk.bf16.vlgmr.msra.gmra.mrb[0].mxu1 %vm860_vm15, %v19270_v35  ;;  %v14078_v35 = vrot.slane %v14076_v38, 5  ;;  %v22989_v21 = vld [vmem:[#allocation2 + $0x74] sm:$0x1]  ;;  %v19274_v51 = vld [vmem:[#allocation2 + $0x38] ss:$8 sps:$4 sm:$0xff]   ;;  %18111 = vmatmul.mubr.msk.bf16.gmra.mrb[12].mxu0 %vm860_vm15, %v16589_v17  ;;  %v14104_v57 = vshll.u32 %v13948_v8, 16 }
 0x6b6   :  { %18335 = vmatpush3.bf16.msra.mxu1 %v22781_v63  ;;  %18322 = vmatprep.mubr.msk.bf16.mxu1 %vm860_vm15, %v19273_v53  ;;  %24514 = vst [vmem:[#allocation14_spill] sm:$0xff] %v22989_v21  ;;  %v22995_v63 = vrot.slane %v14037_v10, 4  ;;  %v14089_v53 = vrot.slane %v14087_v4, 4  ;;  %v14082_v41 = vshll.u32 %v22962_v6, 16  ;;  %v14092_v38 = vrot.slane %v14090_v56, 5 }
 0x6b7   :  { %18336 = vmatprep.subr.bf16.mxu1 %v19278_v52  ;;  %18118 = vmatprep.mubr.msk.bf16.mxu0 %vm860_vm15, %v24515_v9  ;;  %v14079_v34 = vor.u32 %v14078_v35, %v14075_v27  ;;  %v14096_v30 = vshll.u32 %v22964_v26, 16  ;;  %v14103_v61 = vrot.slane %v14101_v14, 4  ;;  %v14106_v45 = vrot.slane %v14104_v57, 5  ;;  %v10586_v62 = vld [vmem:[#allocation2 + $0x70] sm:$0xe] }
 0x6b8   :  { %v14110_v17 = vshll.u32 %v22976_v49, 16  ;;  %v14115_v10 = vshrl.u32 %v13950_v44, 16  ;;  %v23004_v4 = vrot.slane %v14051_v50, 4  ;;  %v23006_v8 = vrot.slane %v14065_v31, 4  ;;  %v10588_v50 = vld [vmem:[#allocation2 + $0x80] sm:$0xe] }
 0x6b9   :  { %v23008_v19 = vrot.slane %v14068_v46, 5  ;;  %v14093_v36 = vor.u32 %v14092_v38, %v14089_v53  ;;  %v14107_v57 = vor.u32 %v14106_v45, %v14103_v61  ;;  %v14118_v35 = vshll.u32 %v13950_v44, 16  ;;  %v10589_v31 = vld [vmem:[#allocation2 + $0x88] sm:$0xe]  ;;  %v13952_v38 = vld [vmem:[#allocation2 + $0x78] sm:$0xf] }
 0x6ba   :  { %18337 = vmatpush3.bf16.msra.mxu1 %v19278_v52  ;;  %v14124_v56 = vshll.u32 %v22989_v21, 16  ;;  %v23016_v52 = vld [vmem:[#allocation2 + $0x78] sm:$0xe]  ;;  %v23022_v53 = vrot.slane %v14079_v34, 4  ;;  %v23024_v14 = vrot.slane %v14082_v41, 5  ;;  %v23026_v9 = vrot.slane %v14096_v30, 5 }
 0x6bb   :  { %18354 = vmatprep.subr.bf16.mxu1 %v22986_v40  ;;  %v19289_v44 = vld [vmem:[%s24383_s5 + $0x38] sm:$0xff]   ;;  %v23032_v61 = vrot.slane %v14093_v36, 4  ;;  %v23034_v45 = vrot.slane %v14110_v17, 5  ;;  %v14117_v27 = vrot.slane %v14115_v10, 4  ;;  %v14120_v21 = vrot.slane %v14118_v35, 5  ;;  %v24517_v40 = vld [vmem:[#allocation21_spill] sm:$0xff] }
 0x6bc   :  { %v23036_v46 = vld [vmem:[#allocation2 + $0x7c] sm:$0x1]  ;;  %v13954_v34 = vld [vmem:[#allocation2 + $0x80] sm:$0xf]  ;;  %v16612_v41 = vrot.slane %v10586_v62, 9  ;;  %v16614_v17 = vrot.slane %v10588_v50, 9  ;;  %v24516_v10 = vcombine.low %v22753_v29, %v22761_v11  ;;  %v24519_v50 = vcombine.low %v22855_v37, %v22863_v20 }
 0x6bd   :  { %18323 = vmatmul.mubr.msk.bf16.gmra.mrb[4].mxu1 %vm860_vm15, %v19274_v51  ;;  %v19279_v36 = vld [vmem:[#allocation2 + $0x68] ss:$8 sps:$4 sm:$0xff]   ;;  %v23051_v35 = vrot.slane %v14107_v57, 4  ;;  %v10672_v49 = vrot.slane %v24517_v40, 5  ;;  %v23060_v51 = vld [vmem:[%s24383_s5 + $0x40] sm:$0xff]   ;;  %v16613_v29 = vrot.slane %v23016_v52, 9 }
 0x6be   :  { %18326 = vmatprep.mubr.msk.bf16.mxu1 %vm860_vm15, %v19277_v15  ;;  %18119 = vmatmul.mubr.msk.bf16.vlgmr.msra.gmra.mrb[0].mxu0 %vm860_vm15, %v24516_v10  ;;  %v23053_v15 = vrot.slane %v14124_v56, 5  ;;  %v24518_v30 = vld [vmem:[#allocation23_spill] sm:$0xff]  ;;  %v16615_v11 = vrot.slane %v10589_v31, 9  ;;  %v10684_v57 = vrot.slane %v22687_v22, 5  ;;  %v14129_v40 = vshrl.u32 %v13952_v38, 16 }
 0x6bf   :  { %v10680_v26 = vrot.slane %v24518_v30, 5  ;;  %v19283_v62 = vld [vmem:[#allocation2 + $0x78] ss:$8 sps:$4 sm:$0xff]   ;;  %18122 = vmatprep.mubr.msk.bf16.mxu0 %vm860_vm15, %v24519_v50  ;;  %18135 = vmatpush3.bf16.msra.mxu0 %v22848_v39  ;;  %v14121_v56 = vor.u32 %v14120_v21, %v14117_v27  ;;  %v24520_v30 = vld [vmem:[#allocation22_spill] sm:$0xff]  ;;  %v23074_v12 = vld [vmem:[#allocation2 + $0x84] sm:$0x1]  ;;  %v14099_v50 = vsel %vm19572_vm14, %v23032_v61, %v23026_v9  ;;  %v14113_v2 = vsel %vm19572_vm14, %v23051_v35, %v23034_v45 }
 0x6c0   :  { %v10676_v10 = vrot.slane %v24520_v30, 5  ;;  %v14132_v37 = vshll.u32 %v13952_v38, 16  ;;  %v13956_v20 = vld [vmem:[#allocation2 + $0x88] sm:$0xf]  ;;  %18136 = vmatprep.subr.bf16.mxu0 %v19289_v44  ;;  %v23078_v52 = vsel %vm19788_vm8, %v16615_v11, %v10684_v57  ;;  %v14131_v22 = vrot.slane %v14129_v40, 4 }
 0x6c1   :  { %v23072_v6 = vsel %vm19788_vm8, %v16614_v17, %v10680_v26  ;;  %v14138_v39 = vshll.u32 %v23036_v46, 16  ;;  %v14143_v31 = vshrl.u32 %v13954_v34, 16  ;;  %v13958_v21 = vld [vmem:[#allocation2 + $0x90] sm:$0xf]  ;;  %v14085_v26 = vsel %vm19572_vm14, %v23022_v53, %v23024_v14  ;;  %v9948_v30 = vld [vmem:[#allocation2 + $0x94] sm:$0x1] }
 0x6c2   :  { %v14134_v38 = vrot.slane %v14132_v37, 5  ;;  %v14146_v17 = vshll.u32 %v13954_v34, 16  ;;  %v23093_v11 = vsel %vm19788_vm8, %v16612_v41, %v10672_v49  ;;  %v14152_v40 = vshll.u32 %v23074_v12, 16  ;;  %v23098_v37 = vld [vmem:[#allocation2 + $0x8c] sm:$0x1] }
 0x6c3   :  { %v14145_v57 = vrot.slane %v14143_v31, 4  ;;  %18137 = vmatpush3.bf16.msra.mxu0 %v19289_v44  ;;  %v9818_v34 = vrot.slane %v22813_v16, 4  ;;  %v14157_v27 = vshrl.u32 %v13956_v20, 16  ;;  %v23102_v49 = vrot.slane %v14121_v56, 4  ;;  %v19284_v41 = vld [vmem:[#allocation2 + $0x88] ss:$8 sps:$4 sm:$0xff]  }
 0x6c4   :  { %v14135_v53 = vor.u32 %v14134_v38, %v14131_v22  ;;  %v14148_v14 = vrot.slane %v14146_v17, 5  ;;  %18154 = vmatprep.subr.bf16.mxu0 %v23060_v51  ;;  %v10677_v9 = vsel %vm19788_vm8, %v16613_v29, %v10676_v10  ;;  %v14160_v61 = vshll.u32 %v13956_v20, 16  ;;  %v14357_v56 = vld [vmem:[#allocation2 + $0x8] sm:$0xe]  ;;  %v14358_v20 = vld [vmem:[#allocation2 + $0x10] sm:$0xe] }
 0x6c5   :  { %18327 = vmatmul.mubr.msk.bf16.gmra.mrb[8].mxu1 %vm860_vm15, %v19279_v36  ;;  %v14171_v44 = vshrl.u32 %v13958_v21, 16  ;;  %v24521_v36 = vcombine.low %v22884_v18, %v22888_v13  ;;  %v23110_v16 = vrot.slane %v14138_v39, 5  ;;  %v9949_v31 = vsel %vm20572_vm7, %v9818_v34, %v9948_v30  ;;  %v14360_v30 = vld [vmem:[#allocation2 + $0x20] sm:$0xe]  ;;  %v14363_v34 = vld [vmem:[#allocation2 + $0x38] sm:$0xe] }
 0x6c6   :  { %18330 = vmatprep.mubr.msk.bf16.mxu1 %vm860_vm15, %v19283_v62  ;;  %v14149_v22 = vor.u32 %v14148_v14, %v14145_v57  ;;  %v14159_v62 = vrot.slane %v14157_v27, 4  ;;  %v24522_v38 = vcombine.low %v22939_v55, %v22949_v7  ;;  %v23118_v29 = vrot.slane %v14135_v53, 4  ;;  %9950 = vst [vmem:[#allocation2 + $0x94] sm:$0x1] %v9949_v31  ;;  %v14359_v57 = vld [vmem:[#allocation2 + $0x18] sm:$0xe] }
 0x6c7   :  { %18123 = vmatmul.mubr.msk.bf16.gmra.mrb[4].mxu0 %vm860_vm15, %v24521_v36  ;;  %v14162_v10 = vrot.slane %v14160_v61, 5  ;;  %v14166_v18 = vshll.u32 %v23098_v37, 16  ;;  %v14174_v13 = vshll.u32 %v13958_v21, 16  ;;  %v24524_v55 = vsel %vm19572_vm14, %v22895_v54, %v22880_v43  ;;  %v14361_v53 = vld [vmem:[#allocation2 + $0x28] sm:$0xe] }
 0x6c8   :  { %18126 = vmatprep.mubr.msk.bf16.mxu0 %vm860_vm15, %v24522_v38  ;;  %v23131_v7 = vcombine.low %v24524_v55, %v24523_v33  ;;  %v23133_v39 = vrot.slane %v14149_v22, 4  ;;  %v23135_v27 = vrot.slane %v14152_v40, 5  ;;  %v14173_v17 = vrot.slane %v14171_v44, 4  ;;  %v14364_v36 = vld [vmem:[#allocation2 + $0x40] sm:$0xe] }
 0x6c9   :  { %v24525_v21 = vsel %vm19572_vm14, %v22995_v63, %v22933_v1  ;;  %v24527_v43 = vsel %vm19572_vm14, %v23006_v8, %v23008_v19  ;;  %v24528_v54 = vsel %vm19572_vm14, %v23004_v4, %v22970_v42  ;;  %v14163_v1 = vor.u32 %v14162_v10, %v14159_v62  ;;  %v14362_v42 = vld [vmem:[#allocation2 + $0x30] sm:$0xe]  ;;  %v14365_v22 = vld [vmem:[#allocation2 + $0x58] sm:$0xe]  ;;  %v23294_v45 = vld [vmem:[#allocation2 + $0xc] sm:$0x1] }
 0x6ca   :  { %v23147_v3 = vcombine.low %v24526_v23, %v24525_v21  ;;  %v23159_v40 = vcombine.low %v24528_v54, %v24527_v43  ;;  %v14176_v63 = vrot.slane %v14174_v13, 5  ;;  %v23161_v14 = vcombine.low %v14085_v26, %v14099_v50  ;;  %v24533_v43 = vld [vmem:[#allocation9_spill] sm:$0xff]  ;;  %v11066_v35 = vld [vmem:[#allocation2 + $0x10] sm:$0xf] }
 0x6cb   :  { %v14127_v19 = vsel %vm19572_vm14, %v23102_v49, %v23053_v15  ;;  %v16622_v24 = vcombine.low %v23093_v11, %v10677_v9  ;;  %v14141_v4 = vsel %vm19572_vm14, %v23118_v29, %v23110_v16  ;;  %v23176_v8 = vrot.slane %v14166_v18, 5  ;;  %v23292_v49 = vld [vmem:[#allocation2 + $0x88] sm:$0xe]  ;;  %v23305_v29 = vld [vmem:[#allocation2 + $0x14] sm:$0x1] }
 0x6cc   :  { %v16897_v26 = vrot.slane %v14357_v56, 9  ;;  %v14407_v50 = vrot.slane %v22808_v5, 5  ;;  %v14155_v61 = vsel %vm19572_vm14, %v23133_v39, %v23135_v27  ;;  %v14177_v11 = vor.u32 %v14176_v63, %v14173_v17  ;;  %v24531_v39 = vld [vmem:[#allocation12_spill] sm:$0xff] }
 0x6cd   :  { %18331 = vmatmul.mubr.msk.bf16.gmra.mrb[12].mxu1 %vm860_vm15, %v19284_v41  ;;  %v16898_v9 = vrot.slane %v14358_v20, 9  ;;  %v14411_v44 = vrot.slane %v22815_v59, 5  ;;  %v14164_v31 = vrot.slane %v14163_v1, 4  ;;  %v16899_v62 = vrot.slane %v14359_v57, 9  ;;  %v14366_v41 = vld [vmem:[#allocation2 + $0x60] sm:$0xe] }
 0x6ce   :  { %18338 = vmatprep.mubr.msk.bf16.mxu1 %vm860_vm15, %v22909_v25  ;;  %v14415_v5 = vrot.slane %v22832_v47, 5  ;;  %v16900_v56 = vrot.slane %v14360_v30, 9  ;;  %v24529_v38 = vcombine.low %v22960_v32, %v22974_v28  ;;  %v23192_v10 = vld [vmem:[#allocation2 + $0x94] sm:$0x1]  ;;  %v14419_v59 = vrot.slane %v22843_v0, 5  ;;  %v24532_v0 = vld [vmem:[#allocation10_spill] sm:$0xff] }
 0x6cf   :  { %v16901_v18 = vrot.slane %v14361_v53, 9  ;;  %v14423_v13 = vrot.slane %v22877_v58, 5  ;;  %v16902_v20 = vrot.slane %v14362_v42, 9  ;;  %v14180_v25 = vshll.u32 %v23192_v10, 16  ;;  %v24530_v47 = vld [vmem:[#allocation7_spill] sm:$0xff]  ;;  %v24534_v42 = vld [vmem:[#allocation8_spill] sm:$0xff] }
 0x6d0   :  { %18127 = vmatmul.mubr.msk.bf16.gmra.mrb[8].mxu0 %vm860_vm15, %v24529_v38  ;;  %v14427_v33 = vrot.slane %v24530_v47, 5  ;;  %v16903_v55 = vrot.slane %v14363_v34, 9  ;;  %v14431_v27 = vrot.slane %v24531_v39, 5  ;;  %v14178_v32 = vrot.slane %v14177_v11, 4  ;;  %v14367_v1 = vld [vmem:[#allocation2 + $0x68] sm:$0xe] }
 0x6d1   :  { %18130 = vmatprep.mubr.msk.bf16.mxu0 %vm860_vm15, %v16622_v24  ;;  %v23202_v28 = vsel %vm19788_vm8, %v16897_v26, %v14407_v50  ;;  %v16904_v17 = vrot.slane %v14364_v36, 9  ;;  %v14435_v57 = vrot.slane %v24532_v0, 5  ;;  %v14182_v21 = vrot.slane %v14180_v25, 5  ;;  %v19287_v63 = vld [vmem:[%s24385_s7 + $0x58] sm:$0xff]   ;;  %v14368_v50 = vld [vmem:[#allocation2 + $0x70] sm:$0xe] }
 0x6d2   :  { %v23207_v58 = vsel %vm19788_vm8, %v16898_v9, %v14411_v44  ;;  %v16905_v23 = vrot.slane %v14365_v22, 9  ;;  %v14439_v54 = vrot.slane %v24533_v43, 5  ;;  %v14169_v30 = vsel %vm19572_vm14, %v14164_v31, %v23176_v8  ;;  %v19290_v34 = vld [vmem:[#allocation2 + $0x8] ss:$8 sps:$4 sm:$0xff]   ;;  %v23244_v22 = vld [vmem:[%s24385_s7 + $0x60] sm:$0xff]  }
 0x6d3   :  { %v23218_v53 = vsel %vm19788_vm8, %v16899_v62, %v14415_v5  ;;  %v16906_v24 = vrot.slane %v14366_v41, 9  ;;  %v14443_v26 = vrot.slane %v24534_v42, 5  ;;  %v23223_v11 = vsel %vm19788_vm8, %v16900_v56, %v14419_v59  ;;  %v24535_v5 = vld [vmem:[#allocation13_spill] sm:$0xff]  ;;  %v23251_v41 = vld [vmem:[#allocation2 + $0x78] sm:$0xe]  ;;  %v24536_v38 = vld [vmem:[#allocation11_spill] sm:$0xff] }
 0x6d4   :  { %v23227_v9 = vsel %vm19788_vm8, %v16901_v18, %v14423_v13  ;;  %v23231_v8 = vsel %vm19788_vm8, %v16902_v20, %v14427_v33  ;;  %v23235_v44 = vsel %vm19788_vm8, %v16903_v55, %v14431_v27  ;;  %v14183_v36 = vsel %vm19572_vm14, %v14178_v32, %v14182_v21  ;;  %v24537_v13 = vld [vmem:[#allocation14_spill] sm:$0xff]  ;;  %v23265_v25 = vld [vmem:[#allocation2 + $0x80] sm:$0xe]  ;;  %v11068_v32 = vld [vmem:[#allocation2 + $0x18] sm:$0xf] }
 0x6d5   :  { %18339 = vmatmul.mubr.msk.bf16.vlgmr.msra.gmra.mrb[0].mxu1 %vm860_vm15, %v23131_v7  ;;  %v23248_v31 = vsel %vm19788_vm8, %v16904_v17, %v14435_v57  ;;  %v16907_v62 = vrot.slane %v14367_v1, 9  ;;  %v14447_v56 = vrot.slane %v24535_v5, 5  ;;  %v23258_v7 = vsel %vm19788_vm8, %v16905_v23, %v14439_v54  ;;  %v11064_v47 = vld [vmem:[#allocation2 + $0x8] sm:$0xf]  ;;  %v23319_v43 = vld [vmem:[#allocation2 + $0x1c] sm:$0x1] }
 0x6d6   :  { %18355 = vmatpush3.bf16.msra.mxu1 %v24536_v38  ;;  %18342 = vmatprep.mubr.msk.bf16.mxu1 %vm860_vm15, %v23147_v3  ;;  %v23262_v59 = vsel %vm19788_vm8, %v16906_v24, %v14443_v26  ;;  %v16908_v18 = vrot.slane %v14368_v50, 9  ;;  %v14451_v20 = vrot.slane %v24537_v13, 5  ;;  %v23277_v3 = vcombine.low %v14113_v2, %v14127_v19  ;;  %v19291_v19 = vld [vmem:[#allocation2 + $0x18] ss:$8 sps:$4 sm:$0xff]   ;;  %v19293_v17 = vld [vmem:[#allocation2 + $0x28] ss:$8 sps:$4 sm:$0xff]  }
 0x6d7   :  { %18356 = vmatprep.subr.bf16.mxu1 %v19287_v63  ;;  %v24538_v33 = vcombine.low %v23072_v6, %v23078_v52  ;;  %v23288_v55 = vcombine.low %v14141_v4, %v14155_v61  ;;  %v23296_v2 = vcombine.low %v14169_v30, %v14183_v36  ;;  %v23311_v61 = vsel %vm19788_vm8, %v16907_v62, %v14447_v56  ;;  %v19301_v1 = vld [vmem:[%s24383_s5 + $0x48] sm:$0xff]   ;;  %v11070_v42 = vld [vmem:[#allocation2 + $0x20] sm:$0xf]  ;;  %v23327_v50 = vld [vmem:[#allocation2 + $0x90] sm:$0xe] }
 0x6d8   :  { %v11097_v39 = vshrl.u32 %v11064_v47, 16  ;;  %v11100_v27 = vshll.u32 %v11064_v47, 16  ;;  %v23315_v0 = vsel %vm19788_vm8, %v16908_v18, %v14451_v20  ;;  %v16909_v57 = vrot.slane %v23251_v41, 9  ;;  %v23334_v56 = vld [vmem:[#allocation2 + $0x24] sm:$0x1] }
 0x6d9   :  { %18131 = vmatmul.mubr.msk.bf16.gmra.mrb[12].mxu0 %vm860_vm15, %v24538_v33  ;;  %v14455_v21 = vrot.slane %v23036_v46, 5  ;;  %v11111_v23 = vshrl.u32 %v11066_v35, 16  ;;  %v16910_v54 = vrot.slane %v23265_v25, 9  ;;  %v11114_v24 = vshll.u32 %v11066_v35, 16  ;;  %v11072_v25 = vld [vmem:[#allocation2 + $0x28] sm:$0xf] }
 0x6da   :  { %18138 = vmatprep.mubr.msk.bf16.mxu0 %vm860_vm15, %v19290_v34  ;;  %18357 = vmatpush3.bf16.msra.mxu1 %v19287_v63  ;;  %v11099_v63 = vrot.slane %v11097_v39, 4  ;;  %v11102_v30 = vrot.slane %v11100_v27, 5  ;;  %v14459_v26 = vrot.slane %v23074_v12, 5  ;;  %v11106_v34 = vshll.u32 %v23294_v45, 16  ;;  %v23342_v39 = vld [vmem:[#allocation2 + $0x2c] sm:$0x1] }
 0x6db   :  { %18374 = vmatprep.subr.bf16.mxu1 %v23244_v22  ;;  %v11113_v36 = vrot.slane %v11111_v23, 4  ;;  %v11116_v62 = vrot.slane %v11114_v24, 5  ;;  %v11120_v5 = vshll.u32 %v23305_v29, 16  ;;  %v11125_v41 = vshrl.u32 %v11068_v32, 16  ;;  %v19295_v4 = vld [vmem:[#allocation2 + $0x58] ss:$8 sps:$4 sm:$0xff]  }
 0x6dc   :  { %v11128_v38 = vshll.u32 %v11068_v32, 16  ;;  %v11103_v12 = vor.u32 %v11102_v30, %v11099_v63  ;;  %v11134_v18 = vshll.u32 %v23319_v43, 16  ;;  %v11139_v13 = vshrl.u32 %v11070_v42, 16  ;;  %v11074_v63 = vld [vmem:[#allocation2 + $0x30] sm:$0xf] }
 0x6dd   :  { %18343 = vmatmul.mubr.msk.bf16.gmra.mrb[4].mxu1 %vm860_vm15, %v23159_v40  ;;  %v11142_v20 = vshll.u32 %v11070_v42, 16  ;;  %v11127_v33 = vrot.slane %v11125_v41, 4  ;;  %v19294_v30 = vld [vmem:[#allocation2 + $0x38] ss:$8 sps:$4 sm:$0xff]   ;;  %v11117_v42 = vor.u32 %v11116_v62, %v11113_v36  ;;  %v11148_v41 = vshll.u32 %v23334_v56, 16 }
 0x6de   :  { %18346 = vmatprep.mubr.msk.bf16.mxu1 %vm860_vm15, %v23161_v14  ;;  %v11130_v35 = vrot.slane %v11128_v38, 5  ;;  %v23347_v14 = vld [vmem:[%s24383_s5 + $0x50] sm:$0xff]   ;;  %v11141_v32 = vrot.slane %v11139_v13, 4  ;;  %v23361_v16 = vrot.slane %v11120_v5, 5  ;;  %v11156_v13 = vshll.u32 %v11072_v25, 16 }
 0x6df   :  { %v11144_v23 = vrot.slane %v11142_v20, 5  ;;  %v23357_v38 = vld [vmem:[#allocation2 + $0x34] sm:$0x1]  ;;  %v11167_v47 = vshrl.u32 %v11074_v63, 16  ;;  %v11076_v24 = vld [vmem:[#allocation2 + $0x38] sm:$0xf]  ;;  %v23369_v36 = vsel %vm19788_vm8, %v16909_v57, %v14455_v21  ;;  %v23373_v62 = vsel %vm19788_vm8, %v16910_v54, %v14459_v26 }
 0x6e0   :  { %24539 = vst [vmem:[#allocation5_spill] sm:$0xff] %v23357_v38  ;;  %v11131_v20 = vor.u32 %v11130_v35, %v11127_v33  ;;  %v23365_v27 = vld [vmem:[#allocation2 + $0x3c] sm:$0x1]  ;;  %v11158_v5 = vrot.slane %v11156_v13, 5  ;;  %v23378_v33 = vrot.slane %v11148_v41, 5  ;;  %v11170_v35 = vshll.u32 %v11074_v63, 16 }
 0x6e1   :  { %18139 = vmatmul.mubr.msk.bf16.vlgmr.msra.gmra.mrb[0].mxu0 %vm860_vm15, %v19291_v19  ;;  %v23352_v19 = vrot.slane %v11106_v34, 5  ;;  %v23363_v34 = vrot.slane %v11134_v18, 5  ;;  %v11145_v52 = vor.u32 %v11144_v23, %v11141_v32  ;;  %24540 = vst [vmem:[#allocation18_spill] sm:$0xff] %v23365_v27  ;;  %v11078_v18 = vld [vmem:[#allocation2 + $0x40] sm:$0xf]  ;;  %v11176_v32 = vshll.u32 %v23357_v38, 16 }
 0x6e2   :  { %18142 = vmatprep.mubr.msk.bf16.mxu0 %vm860_vm15, %v19293_v17  ;;  %18155 = vmatpush3.bf16.msra.mxu0 %v23060_v51  ;;  %v11153_v17 = vshrl.u32 %v11072_v25, 16  ;;  %v23359_v51 = vrot.slane %v11103_v12, 4  ;;  %v11162_v12 = vshll.u32 %v23342_v39, 16  ;;  %v11118_v25 = vrot.slane %v11117_v42, 4  ;;  %v11080_v42 = vld [vmem:[#allocation2 + $0x58] sm:$0xf] }
 0x6e3   :  { %18156 = vmatprep.subr.bf16.mxu0 %v19301_v1  ;;  %v11169_v21 = vrot.slane %v11167_v47, 4  ;;  %v11181_v54 = vshrl.u32 %v11076_v24, 16  ;;  %v23385_v26 = vrot.slane %v11131_v20, 4  ;;  %v11172_v23 = vrot.slane %v11170_v35, 5  ;;  %v23404_v20 = vld [vmem:[#allocation2 + $0x5c] sm:$0x1] }
 0x6e4   :  { %v11155_v6 = vrot.slane %v11153_v17, 4  ;;  %v11190_v63 = vshll.u32 %v23365_v27, 16  ;;  %v23391_v41 = vrot.slane %v11162_v12, 5  ;;  %v23393_v17 = vld [vmem:[#allocation2 + $0x44] sm:$0x1]  ;;  %v11195_v47 = vshrl.u32 %v11078_v18, 16 }
 0x6e5   :  { %18347 = vmatmul.mubr.msk.bf16.gmra.mrb[8].mxu1 %vm860_vm15, %v23277_v3  ;;  %v23387_v3 = vrot.slane %v11145_v52, 4  ;;  %v11109_v52 = vsel %vm19572_vm14, %v23359_v51, %v23352_v19  ;;  %v23402_v13 = vrot.slane %v11176_v32, 5  ;;  %v19298_v12 = vld [vmem:[#allocation2 + $0x78] ss:$8 sps:$4 sm:$0xff]   ;;  %v11209_v15 = vshrl.u32 %v11080_v42, 16 }
 0x6e6   :  { %18157 = vmatpush3.bf16.msra.mxu0 %v19301_v1  ;;  %18350 = vmatprep.mubr.msk.bf16.mxu1 %vm860_vm15, %v23288_v55  ;;  %v11159_v57 = vor.u32 %v11158_v5, %v11155_v6  ;;  %v11184_v1 = vshll.u32 %v11076_v24, 16  ;;  %v11183_v55 = vrot.slane %v11181_v54, 4  ;;  %v19296_v24 = vld [vmem:[#allocation2 + $0x68] ss:$8 sps:$4 sm:$0xff]   ;;  %v11082_v5 = vld [vmem:[#allocation2 + $0x60] sm:$0xf]  ;;  %v11173_v54 = vor.u32 %v11172_v23, %v11169_v21 }
 0x6e7   :  { %18174 = vmatprep.subr.bf16.mxu0 %v23347_v14  ;;  %v11197_v46 = vrot.slane %v11195_v47, 4  ;;  %v11204_v19 = vshll.u32 %v23393_v17, 16  ;;  %v11212_v51 = vshll.u32 %v11080_v42, 16  ;;  %v11084_v27 = vld [vmem:[#allocation2 + $0x68] sm:$0xf]  ;;  %v11223_v32 = vshrl.u32 %v11082_v5, 16 }
 0x6e8   :  { %v11186_v6 = vrot.slane %v11184_v1, 5  ;;  %v23406_v35 = vrot.slane %v11159_v57, 4  ;;  %v23408_v1 = vrot.slane %v11190_v63, 5  ;;  %v11086_v38 = vld [vmem:[#allocation2 + $0x70] sm:$0xf]  ;;  %v24541_v21 = vrot.slane %v23098_v37, 5 }
 0x6e9   :  { %18143 = vmatmul.mubr.msk.bf16.gmra.mrb[4].mxu0 %vm860_vm15, %v19294_v30  ;;  %v11123_v30 = vsel %vm19572_vm14, %v11118_v25, %v23361_v16  ;;  %v11211_v25 = vrot.slane %v11209_v15, 4  ;;  %v24542_v23 = vrot.slane %v23292_v49, 9  ;;  %v11214_v42 = vrot.slane %v11212_v51, 5  ;;  %v23516_v57 = vld [vmem:[#allocation2 + $0x94] sm:$0x1] }
 0x6ea   :  { %18146 = vmatprep.mubr.msk.bf16.mxu0 %vm860_vm15, %v19295_v4  ;;  %v11198_v4 = vshll.u32 %v11078_v18, 16  ;;  %v11187_v16 = vor.u32 %v11186_v6, %v11183_v55  ;;  %v11218_v18 = vshll.u32 %v23404_v20, 16  ;;  %v11226_v15 = vshll.u32 %v11082_v5, 16 }
 0x6eb   :  { %v23422_v63 = vsel %vm19788_vm8, %v24542_v23, %v24541_v21  ;;  %v24543_v55 = vcombine.low %v23202_v28, %v23207_v58  ;;  %v24545_v6 = vrot.slane %v23327_v50, 9  ;;  %v16652_v49 = vcombine.low %v11109_v52, %v11123_v30 }
 0x6ec   :  { %v11200_v40 = vrot.slane %v11198_v4, 5  ;;  %v23436_v47 = vrot.slane %v11173_v54, 4  ;;  %v23438_v4 = vld [vmem:[#allocation2 + $0x64] sm:$0x1]  ;;  %v11225_v51 = vrot.slane %v11223_v32, 4  ;;  %v23441_v28 = vrot.slane %v11204_v19, 5 }
 0x6ed   :  { %18351 = vmatmul.mubr.msk.bf16.gmra.mrb[12].mxu1 %vm860_vm15, %v23296_v2  ;;  %v24544_v2 = vrot.slane %v23192_v10, 5  ;;  %v11215_v58 = vor.u32 %v11214_v42, %v11211_v25  ;;  %v11228_v21 = vrot.slane %v11226_v15, 5  ;;  %v23443_v10 = vld [vmem:[#allocation2 + $0x6c] sm:$0x1]  ;;  %v23446_v50 = vrot.slane %v11187_v16, 4 }
 0x6ee   :  { %18358 = vmatprep.mubr.msk.bf16.mxu1 %vm860_vm15, %v24543_v55  ;;  %v11201_v5 = vor.u32 %v11200_v40, %v11197_v46  ;;  %v11237_v23 = vshrl.u32 %v11084_v27, 16  ;;  %v11240_v52 = vshll.u32 %v11084_v27, 16  ;;  %v11251_v30 = vshrl.u32 %v11086_v38, 16  ;;  %v19297_v27 = vld [vmem:[%s24385_s7 + $0x68] sm:$0xff]  }
 0x6ef   :  { %v23434_v37 = vsel %vm19788_vm8, %v24545_v6, %v24544_v2  ;;  %v11137_v54 = vsel %vm19572_vm14, %v23385_v26, %v23363_v34  ;;  %v11151_v46 = vsel %vm19572_vm14, %v23387_v3, %v23378_v33  ;;  %v23456_v40 = vrot.slane %v11218_v18, 5  ;;  %v11088_v26 = vld [vmem:[#allocation2 + $0x78] sm:$0xf]  ;;  %v19299_v32 = vld [vmem:[#allocation2 + $0x88] ss:$8 sps:$4 sm:$0xff]  }
 0x6f0   :  { %v11229_v19 = vor.u32 %v11228_v21, %v11225_v51  ;;  %v11239_v16 = vrot.slane %v11237_v23, 4  ;;  %v11242_v25 = vrot.slane %v11240_v52, 5  ;;  %v11246_v34 = vshll.u32 %v23443_v10, 16  ;;  %v23472_v6 = vld [vmem:[#allocation2 + $0x7c] sm:$0x1] }
 0x6f1   :  { %18147 = vmatmul.mubr.msk.bf16.gmra.mrb[8].mxu0 %vm860_vm15, %v19296_v24  ;;  %v11232_v24 = vshll.u32 %v23438_v4, 16  ;;  %v23465_v42 = vrot.slane %v11201_v5, 4  ;;  %v23467_v33 = vrot.slane %v11215_v58, 4  ;;  %v11253_v3 = vrot.slane %v11251_v30, 4  ;;  %v11090_v51 = vld [vmem:[#allocation2 + $0x80] sm:$0xf] }
 0x6f2   :  { %18150 = vmatprep.mubr.msk.bf16.mxu0 %vm860_vm15, %v19298_v12  ;;  %v23459_v12 = vld [vmem:[#allocation2 + $0x74] sm:$0x1]  ;;  %v11254_v18 = vshll.u32 %v11086_v38, 16  ;;  %v23469_v15 = vcombine.low %v11137_v54, %v11151_v46  ;;  %v11243_v55 = vor.u32 %v11242_v25, %v11239_v16  ;;  %v11265_v21 = vshrl.u32 %v11088_v26, 16  ;;  %v23486_v52 = vld [vmem:[#allocation2 + $0x84] sm:$0x1] }
 0x6f3   :  { %v11260_v2 = vshll.u32 %v23459_v12, 16  ;;  %v24546_v23 = vcombine.low %v23218_v53, %v23223_v11  ;;  %v11165_v5 = vsel %vm19572_vm14, %v23406_v35, %v23391_v41  ;;  %v11179_v38 = vsel %vm19572_vm14, %v23436_v47, %v23402_v13  ;;  %v11092_v54 = vld [vmem:[#allocation2 + $0x88] sm:$0xf]  ;;  %v23496_v11 = vld [vmem:[%s24385_s7 + $0x70] sm:$0xff]   ;;  %v23508_v16 = vld [vmem:[#allocation2 + $0x8c] sm:$0x1] }
 0x6f4   :  { %v11256_v58 = vrot.slane %v11254_v18, 5  ;;  %v11268_v30 = vshll.u32 %v11088_v26, 16  ;;  %v24547_v53 = vcombine.low %v23227_v9, %v23231_v8  ;;  %v23498_v41 = vrot.slane %v11229_v19, 4 }
 0x6f5   :  { %18359 = vmatmul.mubr.msk.bf16.vlgmr.msra.gmra.mrb[0].mxu1 %vm860_vm15, %v24546_v23  ;;  %v23500_v13 = vrot.slane %v11232_v24, 5  ;;  %v23502_v35 = vrot.slane %v11246_v34, 5  ;;  %v11267_v47 = vrot.slane %v11265_v21, 4  ;;  %v11274_v8 = vshll.u32 %v23472_v6, 16  ;;  %v11094_v34 = vld [vmem:[#allocation2 + $0x90] sm:$0xf] }
 0x6f6   :  { %18375 = vmatpush3.bf16.msra.mxu1 %v23244_v22  ;;  %18362 = vmatprep.mubr.msk.bf16.mxu1 %vm860_vm15, %v24547_v53  ;;  %v23505_v22 = vrot.slane %v11243_v55, 4  ;;  %v11270_v9 = vrot.slane %v11268_v30, 5  ;;  %v11279_v46 = vshrl.u32 %v11090_v51, 16  ;;  %v11257_v19 = vor.u32 %v11256_v58, %v11253_v3 }
 0x6f7   :  { %18376 = vmatprep.subr.bf16.mxu1 %v19297_v27  ;;  %v11282_v25 = vshll.u32 %v11090_v51, 16  ;;  %v11288_v24 = vshll.u32 %v23486_v52, 16  ;;  %v11293_v26 = vshrl.u32 %v11092_v54, 16  ;;  %v11262_v18 = vrot.slane %v11260_v2, 5 }
 0x6f8   :  { %v11271_v21 = vor.u32 %v11270_v9, %v11267_v47  ;;  %v11281_v23 = vrot.slane %v11279_v46, 4  ;;  %v16654_v55 = vcombine.low %v11165_v5, %v11179_v38  ;;  %v11193_v30 = vsel %vm19572_vm14, %v23446_v50, %v23408_v1  ;;  %v19313_v38 = vld [vmem:[%s24383_s5 + $0x58] sm:$0xff]  }
 0x6f9   :  { %18151 = vmatmul.mubr.msk.bf16.gmra.mrb[12].mxu0 %vm860_vm15, %v19299_v32  ;;  %v11296_v32 = vshll.u32 %v11092_v54, 16  ;;  %v11284_v53 = vrot.slane %v11282_v25, 5  ;;  %v11276_v3 = vrot.slane %v11274_v8, 5  ;;  %v11302_v2 = vshll.u32 %v23508_v16, 16 }
 0x6fa   :  { %18158 = vmatprep.mubr.msk.bf16.mxu0 %vm860_vm15, %v16652_v49  ;;  %18377 = vmatpush3.bf16.msra.mxu1 %v19297_v27  ;;  %v11295_v49 = vrot.slane %v11293_v26, 4  ;;  %v11307_v58 = vshrl.u32 %v11094_v34, 16  ;;  %v11258_v47 = vrot.slane %v11257_v19, 4  ;;  %v11290_v27 = vrot.slane %v11288_v24, 5 }
 0x6fb   :  { %18394 = vmatprep.subr.bf16.mxu1 %v23496_v11  ;;  %v11298_v51 = vrot.slane %v11296_v32, 5  ;;  %v11285_v54 = vor.u32 %v11284_v53, %v11281_v23  ;;  %v11310_v5 = vshll.u32 %v11094_v34, 16  ;;  %v24548_v1 = vcombine.low %v23235_v44, %v23248_v31  ;;  %v23564_v34 = vld [vmem:[#allocation2 + $0x18] sm:$0xe] }
 0x6fc   :  { %v11207_v50 = vsel %vm19572_vm14, %v23465_v42, %v23441_v28  ;;  %v11272_v9 = vrot.slane %v11271_v21, 4  ;;  %v11309_v46 = vrot.slane %v11307_v58, 4  ;;  %v24549_v19 = vcombine.low %v23258_v7, %v23262_v59  ;;  %v11493_v42 = vld [vmem:[#allocation2 + $0x8] sm:$0xe] }
 0x6fd   :  { %18363 = vmatmul.mubr.msk.bf16.gmra.mrb[4].mxu1 %vm860_vm15, %v24548_v1  ;;  %v11299_v8 = vor.u32 %v11298_v51, %v11295_v49  ;;  %v11221_v44 = vsel %vm19572_vm14, %v23467_v33, %v23456_v40  ;;  %v11286_v31 = vrot.slane %v11285_v54, 4  ;;  %v11312_v25 = vrot.slane %v11310_v5, 5  ;;  %v23557_v33 = vld [vmem:[%s24383_s5 + $0x60] sm:$0xff]   ;;  %v23579_v51 = vld [vmem:[#allocation2 + $0x14] sm:$0x1] }
 0x6fe   :  { %18366 = vmatprep.mubr.msk.bf16.mxu1 %vm860_vm15, %v24549_v19  ;;  %v11316_v24 = vshll.u32 %v23516_v57, 16  ;;  %v11235_v28 = vsel %vm19572_vm14, %v23498_v41, %v23500_v13  ;;  %v11249_v7 = vsel %vm19572_vm14, %v23505_v22, %v23502_v35  ;;  %v23552_v40 = vrot.slane %v11302_v2, 5  ;;  %v11494_v13 = vld [vmem:[#allocation2 + $0x10] sm:$0xe]  ;;  %v23585_v54 = vld [vmem:[#allocation2 + $0x1c] sm:$0x1] }
 0x6ff   :  { %v23550_v59 = vrot.slane %v11299_v8, 4  ;;  %v11313_v41 = vor.u32 %v11312_v25, %v11309_v46  ;;  %v16670_v35 = vrot.slane %v11493_v42, 9  ;;  %v11543_v22 = vrot.slane %v23294_v45, 5  ;;  %v23607_v8 = vld [vmem:[#allocation2 + $0x24] sm:$0x1] }
 0x700   :  { %v11277_v26 = vsel %vm19572_vm14, %v11272_v9, %v11276_v3  ;;  %v11291_v21 = vsel %vm19572_vm14, %v11286_v31, %v11290_v27  ;;  %v16671_v23 = vrot.slane %v11494_v13, 9  ;;  %v11547_v32 = vrot.slane %v23305_v29, 5  ;;  %v14853_v31 = vld [vmem:[#allocation2 + $0x28] sm:$0xf] }
 0x701   :  { %18159 = vmatmul.mubr.msk.bf16.vlgmr.msra.gmra.mrb[0].mxu0 %vm860_vm15, %v23469_v15  ;;  %v11263_v15 = vsel %vm19572_vm14, %v11258_v47, %v11262_v18  ;;  %v23571_v18 = vld [vmem:[#allocation2 + $0x20] sm:$0xe]  ;;  %v16655_v53 = vcombine.low %v11193_v30, %v11207_v50  ;;  %v23575_v45 = vrot.slane %v11313_v41, 4  ;;  %v23577_v49 = vrot.slane %v11316_v24, 5  ;;  %v14849_v47 = vld [vmem:[#allocation2 + $0x18] sm:$0xf] }
 0x702   :  { %18162 = vmatprep.mubr.msk.bf16.mxu0 %vm860_vm15, %v16654_v55  ;;  %18175 = vmatpush3.bf16.msra.mxu0 %v23347_v14  ;;  %v14847_v55 = vld [vmem:[#allocation2 + $0x10] sm:$0xf]  ;;  %v16920_v14 = vcombine.low %v23422_v63, %v23434_v37  ;;  %v16656_v3 = vcombine.low %v11221_v44, %v11235_v28  ;;  %v23581_v2 = vcombine.low %v11249_v7, %v11263_v15  ;;  %v16672_v58 = vrot.slane %v23564_v34, 9  ;;  %v23621_v7 = vld [vmem:[#allocation2 + $0x2c] sm:$0x1] }
 0x703   :  { %18176 = vmatprep.subr.bf16.mxu0 %v19313_v38  ;;  %v11551_v29 = vrot.slane %v23319_v43, 5  ;;  %v23587_v27 = vcombine.low %v11277_v26, %v11291_v21  ;;  %v11305_v63 = vsel %vm19572_vm14, %v23550_v59, %v23552_v40  ;;  %v16673_v37 = vrot.slane %v23571_v18, 9  ;;  %v11497_v42 = vld [vmem:[#allocation2 + $0x28] sm:$0xe]  ;;  %v19302_v15 = vld [vmem:[#allocation2 + $0x10] ss:$8 sps:$4 sm:$0xff]  }
 0x704   :  { %v14880_v30 = vshrl.u32 %v14847_v55, 16  ;;  %v24550_v5 = vcombine.low %v23311_v61, %v23315_v0  ;;  %v23600_v43 = vsel %vm19788_vm8, %v16670_v35, %v11543_v22  ;;  %v23604_v1 = vsel %vm19788_vm8, %v16671_v23, %v11547_v32  ;;  %v11498_v32 = vld [vmem:[#allocation2 + $0x30] sm:$0xe] }
 0x705   :  { %v14883_v50 = vshll.u32 %v14847_v55, 16  ;;  %v14889_v9 = vshll.u32 %v23579_v51, 16  ;;  %v24551_v61 = vcombine.low %v23369_v36, %v23373_v62  ;;  %v11555_v0 = vrot.slane %v23334_v56, 5 }
 0x706   :  { %18177 = vmatpush3.bf16.msra.mxu0 %v19313_v38  ;;  %18367 = vmatmul.mubr.msk.bf16.gmra.mrb[8].mxu1 %vm860_vm15, %v24550_v5  ;;  %v14851_v38 = vld [vmem:[#allocation2 + $0x20] sm:$0xf]  ;;  %v14882_v46 = vrot.slane %v14880_v30, 4  ;;  %v14894_v19 = vshrl.u32 %v14849_v47, 16  ;;  %v14897_v44 = vshll.u32 %v14849_v47, 16  ;;  %v11319_v25 = vsel %vm19572_vm14, %v23575_v45, %v23577_v49 }
 0x707   :  { %18194 = vmatprep.subr.bf16.mxu0 %v23557_v33  ;;  %18370 = vmatprep.mubr.msk.bf16.mxu1 %vm860_vm15, %v24551_v61  ;;  %v14885_v24 = vrot.slane %v14883_v50, 5  ;;  %v14903_v28 = vshll.u32 %v23585_v54, 16  ;;  %v14908_v36 = vshrl.u32 %v14851_v38, 16  ;;  %v23624_v56 = vrot.slane %v14889_v9, 5  ;;  %v11499_v5 = vld [vmem:[#allocation2 + $0x38] sm:$0xe] }
 0x708   :  { %v14896_v62 = vrot.slane %v14894_v19, 4  ;;  %v14899_v59 = vrot.slane %v14897_v44, 5  ;;  %v14911_v40 = vshll.u32 %v14851_v38, 16  ;;  %v14917_v35 = vshll.u32 %v23607_v8, 16  ;;  %v24552_v61 = vld [vmem:[#allocation5_spill] sm:$0xff] }
 0x709   :  { %18163 = vmatmul.mubr.msk.bf16.gmra.mrb[4].mxu0 %vm860_vm15, %v16655_v53  ;;  %v14886_v41 = vor.u32 %v14885_v24, %v14882_v46  ;;  %v14910_v13 = vrot.slane %v14908_v36, 4  ;;  %v14922_v22 = vshrl.u32 %v14853_v31, 16  ;;  %v23627_v26 = vrot.slane %v14903_v28, 5  ;;  %v14855_v24 = vld [vmem:[#allocation2 + $0x30] sm:$0xf] }
 0x70a   :  { %18166 = vmatprep.mubr.msk.bf16.mxu0 %vm860_vm15, %v16656_v3  ;;  %v14900_v34 = vor.u32 %v14899_v59, %v14896_v62  ;;  %v14913_v21 = vrot.slane %v14911_v40, 5  ;;  %v14925_v23 = vshll.u32 %v14853_v31, 16  ;;  %v14931_v53 = vshll.u32 %v23621_v7, 16  ;;  %v11500_v31 = vld [vmem:[#allocation2 + $0x40] sm:$0xe] }
 0x70b   :  { %v23629_v18 = vrot.slane %v14886_v41, 4  ;;  %v14924_v55 = vrot.slane %v14922_v22, 4  ;;  %v16674_v45 = vrot.slane %v11497_v42, 9  ;;  %v11559_v30 = vrot.slane %v23342_v39, 5  ;;  %v23650_v28 = vld [vmem:[#allocation2 + $0x34] sm:$0x1] }
 0x70c   :  { %v23632_v49 = vrot.slane %v14900_v34, 4  ;;  %v14914_v3 = vor.u32 %v14913_v21, %v14910_v13  ;;  %v14927_v47 = vrot.slane %v14925_v23, 5  ;;  %v16686_v50 = vcombine.low %v23600_v43, %v23604_v1  ;;  %v19305_v62 = vld [vmem:[#allocation2 + $0x30] ss:$8 sps:$4 sm:$0xff]   ;;  %v23679_v13 = vld [vmem:[#allocation2 + $0x3c] sm:$0x1] }
 0x70d   :  { %v23638_v9 = vrot.slane %v14917_v35, 5  ;;  %v16675_v38 = vrot.slane %v11498_v32, 9  ;;  %v11563_v46 = vrot.slane %v24552_v61, 5  ;;  %v16659_v19 = vcombine.low %v11305_v63, %v11319_v25  ;;  %v14859_v32 = vld [vmem:[#allocation2 + $0x40] sm:$0xf] }
 0x70e   :  { %18371 = vmatmul.mubr.msk.bf16.gmra.mrb[12].mxu1 %vm860_vm15, %v16920_v14  ;;  %v23644_v44 = vsel %vm19788_vm8, %v16672_v58, %v11551_v29  ;;  %v23648_v39 = vsel %vm19788_vm8, %v16673_v37, %v11555_v0  ;;  %v14928_v14 = vor.u32 %v14927_v47, %v14924_v55  ;;  %v14892_v63 = vsel %vm19572_vm14, %v23629_v18, %v23624_v56  ;;  %v24553_v29 = vld [vmem:[#allocation18_spill] sm:$0xff]  ;;  %v14857_v37 = vld [vmem:[#allocation2 + $0x38] sm:$0xf] }
 0x70f   :  { %18378 = vmatprep.mubr.msk.bf16.mxu1 %vm860_vm15, %v19302_v15  ;;  %v23658_v25 = vrot.slane %v14914_v3, 4  ;;  %v16676_v58 = vrot.slane %v11499_v5, 9  ;;  %v11567_v36 = vrot.slane %v24553_v29, 5  ;;  %v19304_v0 = vld [vmem:[#allocation2 + $0x20] ss:$8 sps:$4 sm:$0xff]   ;;  %v23669_v40 = vrot.slane %v14931_v53, 5 }
 0x710   :  { %v23667_v59 = vrot.slane %v14928_v14, 4  ;;  %v23673_v42 = vsel %vm19788_vm8, %v16674_v45, %v11559_v30  ;;  %v23677_v15 = vsel %vm19788_vm8, %v16675_v38, %v11563_v46  ;;  %v16677_v41 = vrot.slane %v11500_v31, 9  ;;  %v19308_v55 = vld [vmem:[%s24385_s7 + $0x78] sm:$0xff]   ;;  %v14861_v47 = vld [vmem:[#allocation2 + $0x48] sm:$0xf] }
 0x711   :  { %18167 = vmatmul.mubr.msk.bf16.gmra.mrb[8].mxu0 %vm860_vm15, %v23581_v2  ;;  %v14906_v2 = vsel %vm19572_vm14, %v23632_v49, %v23627_v26  ;;  %v14939_v35 = vshll.u32 %v14855_v24, 16  ;;  %v11571_v22 = vrot.slane %v23393_v17, 5  ;;  %v14945_v34 = vshll.u32 %v23650_v28, 16  ;;  %v23705_v31 = vld [vmem:[#allocation2 + $0x44] sm:$0x1] }
 0x712   :  { %18170 = vmatprep.mubr.msk.bf16.mxu0 %vm860_vm15, %v23587_v27  ;;  %v14936_v27 = vshrl.u32 %v14855_v24, 16  ;;  %v14950_v21 = vshrl.u32 %v14857_v37, 16  ;;  %v14953_v23 = vshll.u32 %v14857_v37, 16  ;;  %v14920_v53 = vsel %vm19572_vm14, %v23658_v25, %v23638_v9  ;;  %v23702_v9 = vld [vmem:[%s24385_s7 + $0x80] sm:$0xff]  }
 0x713   :  { %v23692_v45 = vsel %vm19788_vm8, %v16676_v58, %v11567_v36  ;;  %v14941_v17 = vrot.slane %v14939_v35, 5  ;;  %v14934_v30 = vsel %vm19572_vm14, %v23667_v59, %v23669_v40  ;;  %v14947_v5 = vrot.slane %v14945_v34, 5  ;;  %v23713_v36 = vld [vmem:[#allocation2 + $0x4c] sm:$0x1]  ;;  %v11501_v59 = vld [vmem:[#allocation2 + $0x58] sm:$0xe] }
 0x714   :  { %v14938_v3 = vrot.slane %v14936_v27, 4  ;;  %v14952_v38 = vrot.slane %v14950_v21, 4  ;;  %v14955_v61 = vrot.slane %v14953_v23, 5  ;;  %v14959_v14 = vshll.u32 %v23679_v13, 16  ;;  %v19306_v23 = vld [vmem:[#allocation2 + $0x40] ss:$8 sps:$4 sm:$0xff]  }
 0x715   :  { %v14964_v24 = vshrl.u32 %v14859_v32, 16  ;;  %v14967_v25 = vshll.u32 %v14859_v32, 16  ;;  %v23711_v58 = vsel %vm19788_vm8, %v16677_v41, %v11571_v22  ;;  %v14978_v37 = vshrl.u32 %v14861_v47, 16 }
 0x716   :  { %18379 = vmatmul.mubr.msk.bf16.vlgmr.msra.gmra.mrb[0].mxu1 %vm860_vm15, %v19304_v0  ;;  %v14942_v46 = vor.u32 %v14941_v17, %v14938_v3  ;;  %v14956_v29 = vor.u32 %v14955_v61, %v14952_v38  ;;  %v14981_v0 = vshll.u32 %v14861_v47, 16  ;;  %v14961_v27 = vrot.slane %v14959_v14, 5  ;;  %v19307_v47 = vld [vmem:[#allocation2 + $0x60] ss:$8 sps:$4 sm:$0xff]  }
 0x717   :  { %18395 = vmatpush3.bf16.msra.mxu1 %v23496_v11  ;;  %18382 = vmatprep.mubr.msk.bf16.mxu1 %vm860_vm15, %v19305_v62  ;;  %v14966_v35 = vrot.slane %v14964_v24, 4  ;;  %v14969_v34 = vrot.slane %v14967_v25, 5  ;;  %v11502_v11 = vld [vmem:[#allocation2 + $0x60] sm:$0xe]  ;;  %v14973_v41 = vshll.u32 %v23705_v31, 16  ;;  %v14980_v22 = vrot.slane %v14978_v37, 4 }
 0x718   :  { %18396 = vmatprep.subr.bf16.mxu1 %v19308_v55  ;;  %v14943_v40 = vrot.slane %v14942_v46, 4  ;;  %v14957_v62 = vrot.slane %v14956_v29, 4  ;;  %v14983_v21 = vrot.slane %v14981_v0, 5  ;;  %v14987_v3 = vshll.u32 %v23713_v36, 16  ;;  %v11503_v46 = vld [vmem:[#allocation2 + $0x68] sm:$0xe] }
 0x719   :  { %18171 = vmatmul.mubr.msk.bf16.gmra.mrb[12].mxu0 %vm860_vm15, %v16659_v19  ;;  %v14970_v19 = vor.u32 %v14969_v34, %v14966_v35  ;;  %v16678_v17 = vrot.slane %v11501_v59, 9  ;;  %v16679_v38 = vrot.slane %v11502_v11, 9  ;;  %v16687_v61 = vcombine.low %v23644_v44, %v23648_v39  ;;  %v14863_v14 = vld [vmem:[#allocation2 + $0x60] sm:$0xf]  ;;  %v11504_v39 = vld [vmem:[#allocation2 + $0x70] sm:$0xe] }
 0x71a   :  { %18178 = vmatprep.mubr.msk.bf16.mxu0 %vm860_vm15, %v16686_v50  ;;  %v14948_v32 = vsel %vm19572_vm14, %v14943_v40, %v14947_v5  ;;  %v14962_v43 = vsel %vm19572_vm14, %v14957_v62, %v14961_v27  ;;  %v14984_v1 = vor.u32 %v14983_v21, %v14980_v22  ;;  %v11575_v50 = vrot.slane %v23404_v20, 5  ;;  %v23749_v24 = vld [vmem:[#allocation2 + $0x64] sm:$0x1]  ;;  %v14865_v25 = vld [vmem:[#allocation2 + $0x68] sm:$0xf] }
 0x71b   :  { %18397 = vmatpush3.bf16.msra.mxu1 %v19308_v55  ;;  %v11579_v5 = vrot.slane %v23438_v4, 5  ;;  %v23741_v20 = vcombine.low %v14892_v63, %v14906_v2  ;;  %v23743_v55 = vcombine.low %v14920_v53, %v14934_v30  ;;  %v16688_v44 = vcombine.low %v23673_v42, %v23677_v15  ;;  %v23760_v63 = vld [vmem:[#allocation2 + $0x6c] sm:$0x1]  ;;  %v14867_v2 = vld [vmem:[#allocation2 + $0x70] sm:$0xf] }
 0x71c   :  { %18414 = vmatprep.subr.bf16.mxu1 %v23702_v9  ;;  %v16689_v4 = vcombine.low %v23692_v45, %v23711_v58  ;;  %v23752_v26 = vcombine.low %v14948_v32, %v14962_v43  ;;  %v23754_v49 = vrot.slane %v14970_v19, 4  ;;  %v23756_v56 = vrot.slane %v14973_v41, 5  ;;  %v19317_v42 = vld [vmem:[%s24383_s5 + $0x68] sm:$0xff]   ;;  %v23774_v37 = vld [vmem:[#allocation2 + $0x74] sm:$0x1] }
 0x71d   :  { %v23758_v18 = vrot.slane %v14987_v3, 5  ;;  %v23766_v15 = vrot.slane %v14984_v1, 4  ;;  %v23770_v53 = vsel %vm19788_vm8, %v16678_v17, %v11575_v50  ;;  %v11580_v30 = vsel %vm19788_vm8, %v16679_v38, %v11579_v5  ;;  %v19309_v0 = vld [vmem:[#allocation2 + $0x70] ss:$8 sps:$4 sm:$0xff]   ;;  %v19311_v21 = vld [vmem:[#allocation2 + $0x80] ss:$8 sps:$4 sm:$0xff]  }
 0x71e   :  { %18383 = vmatmul.mubr.msk.bf16.gmra.mrb[4].mxu1 %vm860_vm15, %v19306_v23  ;;  %v14992_v29 = vshrl.u32 %v14863_v14, 16  ;;  %v16680_v59 = vrot.slane %v11503_v46, 9  ;;  %v11583_v40 = vrot.slane %v23443_v10, 5  ;;  %v16681_v27 = vrot.slane %v11504_v39, 9  ;;  %v14869_v22 = vld [vmem:[#allocation2 + $0x78] sm:$0xf] }
 0x71f   :  { %18386 = vmatprep.mubr.msk.bf16.mxu1 %vm860_vm15, %v19307_v47  ;;  %v14995_v35 = vshll.u32 %v14863_v14, 16  ;;  %v11587_v34 = vrot.slane %v23459_v12, 5  ;;  %v15006_v62 = vshrl.u32 %v14865_v25, 16  ;;  %v15009_v41 = vshll.u32 %v14865_v25, 16  ;;  %v23786_v10 = vld [vmem:[%s24383_s5 + $0x70] sm:$0xff]  }
 0x720   :  { %v14994_v11 = vrot.slane %v14992_v29, 4  ;;  %v16690_v23 = vcombine.low %v23770_v53, %v11580_v30  ;;  %v15001_v19 = vshll.u32 %v23749_v24, 16  ;;  %v15020_v3 = vshrl.u32 %v14867_v2, 16  ;;  %v11505_v1 = vld [vmem:[#allocation2 + $0x78] sm:$0xe] }
 0x721   :  { %18179 = vmatmul.mubr.msk.bf16.vlgmr.msra.gmra.mrb[0].mxu0 %vm860_vm15, %v16687_v61  ;;  %v14997_v32 = vrot.slane %v14995_v35, 5  ;;  %v15008_v12 = vrot.slane %v15006_v62, 4  ;;  %v15011_v17 = vrot.slane %v15009_v41, 5  ;;  %v15015_v47 = vshll.u32 %v23760_v63, 16  ;;  %v23793_v50 = vld [vmem:[#allocation2 + $0x7c] sm:$0x1] }
 0x722   :  { %18182 = vmatprep.mubr.msk.bf16.mxu0 %vm860_vm15, %v16688_v44  ;;  %18195 = vmatpush3.bf16.msra.mxu0 %v23557_v33  ;;  %v15023_v43 = vshll.u32 %v14867_v2, 16  ;;  %v23791_v33 = vsel %vm19788_vm8, %v16680_v59, %v11583_v40  ;;  %v15022_v38 = vrot.slane %v15020_v3, 4  ;;  %v15029_v61 = vshll.u32 %v23774_v37, 16  ;;  %v11506_v25 = vld [vmem:[#allocation2 + $0x80] sm:$0xe] }
 0x723   :  { %18196 = vmatprep.subr.bf16.mxu0 %v19317_v42  ;;  %v15034_v5 = vshrl.u32 %v14869_v22, 16  ;;  %v14998_v46 = vor.u32 %v14997_v32, %v14994_v11  ;;  %v15012_v14 = vor.u32 %v15011_v17, %v15008_v12  ;;  %v15037_v39 = vshll.u32 %v14869_v22, 16  ;;  %v11507_v53 = vld [vmem:[#allocation2 + $0x88] sm:$0xe]  ;;  %v11508_v40 = vld [vmem:[#allocation2 + $0x90] sm:$0xe] }
 0x724   :  { %v15025_v44 = vrot.slane %v15023_v43, 5  ;;  %v11588_v2 = vsel %vm19788_vm8, %v16681_v27, %v11587_v34  ;;  %v23799_v30 = vrot.slane %v15001_v19, 5  ;;  %v16682_v59 = vrot.slane %v11505_v1, 9  ;;  %v19312_v41 = vld [vmem:[#allocation2 + $0x90] ss:$8 sps:$4 sm:$0xff]  }
 0x725   :  { %v15036_v29 = vrot.slane %v15034_v5, 4  ;;  %v23803_v35 = vrot.slane %v15015_v47, 5  ;;  %v15039_v11 = vrot.slane %v15037_v39, 5  ;;  %v15043_v62 = vshll.u32 %v23793_v50, 16  ;;  %v23814_v32 = vld [vmem:[#allocation2 + $0x84] sm:$0x1] }
 0x726   :  { %18197 = vmatpush3.bf16.msra.mxu0 %v19317_v42  ;;  %18387 = vmatmul.mubr.msk.bf16.gmra.mrb[8].mxu1 %vm860_vm15, %v19309_v0  ;;  %v11591_v42 = vrot.slane %v23472_v6, 5  ;;  %v14871_v0 = vld [vmem:[#allocation2 + $0x80] sm:$0xf]  ;;  %v15026_v27 = vor.u32 %v15025_v44, %v15022_v38  ;;  %v23811_v34 = vrot.slane %v15029_v61, 5  ;;  %v16683_v22 = vrot.slane %v11506_v25, 9 }
 0x727   :  { %18214 = vmatprep.subr.bf16.mxu0 %v23786_v10  ;;  %18390 = vmatprep.mubr.msk.bf16.mxu1 %vm860_vm15, %v19311_v21  ;;  %v11595_v21 = vrot.slane %v23486_v52, 5  ;;  %v14976_v6 = vsel %vm19572_vm14, %v23754_v49, %v23756_v56  ;;  %v23821_v19 = vrot.slane %v14998_v46, 4  ;;  %v23823_v45 = vrot.slane %v15012_v14, 4  ;;  %v14873_v17 = vld [vmem:[#allocation2 + $0x88] sm:$0xf] }
 0x728   :  { %v15040_v58 = vor.u32 %v15039_v11, %v15036_v29  ;;  %v16684_v3 = vrot.slane %v11507_v53, 9  ;;  %v11599_v12 = vrot.slane %v23508_v16, 5  ;;  %v16691_v47 = vcombine.low %v23791_v33, %v11588_v2  ;;  %v23837_v38 = vld [vmem:[#allocation2 + $0x8c] sm:$0x1]  ;;  %v14875_v16 = vld [vmem:[#allocation2 + $0x90] sm:$0xf] }
 0x729   :  { %18183 = vmatmul.mubr.msk.bf16.gmra.mrb[4].mxu0 %vm860_vm15, %v16689_v4  ;;  %v11592_v4 = vsel %vm19788_vm8, %v16682_v59, %v11591_v42  ;;  %v11596_v52 = vsel %vm19788_vm8, %v16683_v22, %v11595_v21  ;;  %v23835_v43 = vrot.slane %v15043_v62, 5  ;;  %v16685_v1 = vrot.slane %v11508_v40, 9  ;;  %v23843_v29 = vld [vmem:[#allocation2 + $0x94] sm:$0x1]  ;;  %v14877_v11 = vld [vmem:[#allocation2 + $0x98] sm:$0xf] }
 0x72a   :  { %18186 = vmatprep.mubr.msk.bf16.mxu0 %vm860_vm15, %v16690_v23  ;;  %v14990_v23 = vsel %vm19572_vm14, %v23766_v15, %v23758_v18  ;;  %v23839_v61 = vrot.slane %v15026_v27, 4  ;;  %v11603_v5 = vrot.slane %v23516_v57, 5  ;;  %v15048_v46 = vshrl.u32 %v14871_v0, 16  ;;  %v23852_v27 = vld [vmem:[#allocation2 + $0x9c] sm:$0x1] }
 0x72b   :  { %v15051_v14 = vshll.u32 %v14871_v0, 16  ;;  %v16692_v44 = vcombine.low %v11592_v4, %v11596_v52  ;;  %v15057_v39 = vshll.u32 %v23814_v32, 16  ;;  %v15062_v25 = vshrl.u32 %v14873_v17, 16  ;;  %v15283_v15 = vld [vmem:[#allocation2 + $0x48] sm:$0xe] }
 0x72c   :  { %v15065_v53 = vshll.u32 %v14873_v17, 16  ;;  %v15041_v33 = vrot.slane %v15040_v58, 4  ;;  %v11600_v2 = vsel %vm19788_vm8, %v16684_v3, %v11599_v12  ;;  %v15050_v59 = vrot.slane %v15048_v46, 4  ;;  %v23858_v46 = vld [vmem:[#allocation2 + $0x10] sm:$0xe] }
 0x72d   :  { %v15053_v40 = vrot.slane %v15051_v14, 5  ;;  %v11604_v57 = vsel %vm19788_vm8, %v16685_v1, %v11603_v5  ;;  %v15059_v62 = vrot.slane %v15057_v39, 5  ;;  %v15064_v42 = vrot.slane %v15062_v25, 4  ;;  %v19315_v25 = vld [vmem:[%s24385_s7 + $0x88] sm:$0xff]  }
 0x72e   :  { %18391 = vmatmul.mubr.msk.bf16.gmra.mrb[12].mxu1 %vm860_vm15, %v19312_v41  ;;  %v15067_v0 = vrot.slane %v15065_v53, 5  ;;  %v15071_v22 = vshll.u32 %v23837_v38, 16  ;;  %v15076_v21 = vshrl.u32 %v14875_v16, 16  ;;  %v15079_v58 = vshll.u32 %v14875_v16, 16 }
 0x72f   :  { %18398 = vmatprep.mubr.msk.bf16.mxu1 %vm860_vm15, %v23741_v20  ;;  %v15054_v41 = vor.u32 %v15053_v40, %v15050_v59  ;;  %v15085_v20 = vshll.u32 %v23843_v29, 16  ;;  %v15090_v52 = vshrl.u32 %v14877_v11, 16  ;;  %v15093_v3 = vshll.u32 %v14877_v11, 16  ;;  %v15277_v11 = vld [vmem:[#allocation2 + $0x18] sm:$0xe] }
 0x730   :  { %v15068_v4 = vor.u32 %v15067_v0, %v15064_v42  ;;  %v15073_v17 = vrot.slane %v15071_v22, 5  ;;  %v15078_v1 = vrot.slane %v15076_v21, 4  ;;  %v15081_v5 = vrot.slane %v15079_v58, 5  ;;  %v15278_v0 = vld [vmem:[#allocation2 + $0x20] sm:$0xe] }
 0x731   :  { %18187 = vmatmul.mubr.msk.bf16.gmra.mrb[8].mxu0 %vm860_vm15, %v16691_v47  ;;  %v15055_v12 = vrot.slane %v15054_v41, 4  ;;  %v15004_v47 = vsel %vm19572_vm14, %v23821_v19, %v23799_v30  ;;  %v15092_v16 = vrot.slane %v15090_v52, 4  ;;  %v15095_v39 = vrot.slane %v15093_v3, 5  ;;  %v15279_v41 = vld [vmem:[#allocation2 + $0x28] sm:$0xe] }
 0x732   :  { %18190 = vmatprep.mubr.msk.bf16.mxu0 %vm860_vm15, %v16692_v44  ;;  %v15069_v14 = vrot.slane %v15068_v4, 4  ;;  %v15018_v44 = vsel %vm19572_vm14, %v23823_v45, %v23803_v35  ;;  %v16693_v53 = vcombine.low %v11600_v2, %v11604_v57  ;;  %v15082_v59 = vor.u32 %v15081_v5, %v15078_v1  ;;  %v19318_v45 = vld [vmem:[#allocation2 + $0x10] ss:$8 sps:$4 sm:$0xff]   ;;  %v15284_v5 = vld [vmem:[#allocation2 + $0x60] sm:$0xe] }
 0x733   :  { %v15099_v40 = vshll.u32 %v23852_v27, 16  ;;  %v15032_v30 = vsel %vm19572_vm14, %v23839_v61, %v23811_v34  ;;  %v15046_v19 = vsel %vm19572_vm14, %v15041_v33, %v23835_v43  ;;  %v23879_v42 = vrot.slane %v15085_v20, 5  ;;  %v15280_v43 = vld [vmem:[#allocation2 + $0x30] sm:$0xe]  ;;  %v15281_v21 = vld [vmem:[#allocation2 + $0x38] sm:$0xe] }
 0x734   :  { %v15096_v35 = vor.u32 %v15095_v39, %v15092_v16  ;;  %v15060_v2 = vsel %vm19572_vm14, %v15055_v12, %v15059_v62  ;;  %v15074_v57 = vsel %vm19572_vm14, %v15069_v14, %v15073_v17  ;;  %v16967_v34 = vrot.slane %v23858_v46, 9  ;;  %v19319_v20 = vld [vmem:[#allocation2 + $0x20] ss:$8 sps:$4 sm:$0xff]  }
 0x735   :  { %v15326_v61 = vrot.slane %v23579_v51, 5  ;;  %v23892_v33 = vrot.slane %v15082_v59, 4  ;;  %v16968_v22 = vrot.slane %v15277_v11, 9  ;;  %v15330_v62 = vrot.slane %v23585_v54, 5  ;;  %v15285_v16 = vld [vmem:[#allocation2 + $0x68] sm:$0xe] }
 0x736   :  { %18399 = vmatmul.mubr.msk.bf16.vlgmr.msra.gmra.mrb[0].mxu1 %vm860_vm15, %v23743_v55  ;;  %v23894_v55 = vrot.slane %v15099_v40, 5  ;;  %v16952_v51 = vcombine.low %v14976_v6, %v14990_v23  ;;  %v23908_v58 = vcombine.low %v15032_v30, %v15046_v19  ;;  %v23910_v54 = vcombine.low %v15060_v2, %v15074_v57  ;;  %v19320_v23 = vld [vmem:[#allocation2 + $0x30] ss:$8 sps:$4 sm:$0xff]  }
 0x737   :  { %18415 = vmatpush3.bf16.msra.mxu1 %v23702_v9  ;;  %18402 = vmatprep.mubr.msk.bf16.mxu1 %vm860_vm15, %v23752_v26  ;;  %v16953_v9 = vcombine.low %v15004_v47, %v15018_v44  ;;  %v15282_v26 = vld [vmem:[#allocation2 + $0x40] sm:$0xe]  ;;  %v23912_v4 = vrot.slane %v15096_v35, 4  ;;  %v16969_v18 = vrot.slane %v15278_v0, 9  ;;  %v15334_v52 = vrot.slane %v23607_v8, 5 }
 0x738   :  { %18416 = vmatprep.subr.bf16.mxu1 %v19315_v25  ;;  %v16970_v49 = vrot.slane %v15279_v41, 9  ;;  %v15338_v56 = vrot.slane %v23621_v7, 5  ;;  %v16971_v6 = vrot.slane %v15280_v43, 9  ;;  %v15342_v3 = vrot.slane %v23650_v28, 5  ;;  %v19327_v7 = vld [vmem:[%s24383_s5 + $0x78] sm:$0xff]  }
 0x739   :  { %18191 = vmatmul.mubr.msk.bf16.gmra.mrb[12].mxu0 %vm860_vm15, %v16693_v53  ;;  %v16972_v12 = vrot.slane %v15281_v21, 9  ;;  %v15346_v17 = vrot.slane %v23679_v13, 5  ;;  %v16973_v1 = vrot.slane %v15282_v26, 9  ;;  %v15350_v46 = vrot.slane %v23705_v31, 5  ;;  %v15286_v44 = vld [vmem:[#allocation2 + $0x70] sm:$0xe] }
 0x73a   :  { %18198 = vmatprep.mubr.msk.bf16.mxu0 %vm860_vm15, %v19318_v45  ;;  %v16974_v47 = vrot.slane %v15283_v15, 9  ;;  %v15354_v14 = vrot.slane %v23713_v36, 5  ;;  %v16975_v8 = vrot.slane %v15284_v5, 9  ;;  %v15088_v28 = vsel %vm19572_vm14, %v23892_v33, %v23879_v42  ;;  %v15287_v36 = vld [vmem:[#allocation2 + $0x78] sm:$0xe] }
 0x73b   :  { %18417 = vmatpush3.bf16.msra.mxu1 %v19315_v25  ;;  %v23930_v13 = vsel %vm19788_vm8, %v16967_v34, %v15326_v61  ;;  %v15358_v31 = vrot.slane %v23749_v24, 5  ;;  %v16976_v39 = vrot.slane %v15285_v16, 9  ;;  %v15102_v25 = vsel %vm19572_vm14, %v23912_v4, %v23894_v55  ;;  %v19321_v34 = vld [vmem:[#allocation2 + $0x40] ss:$8 sps:$4 sm:$0xff]  }
 0x73c   :  { %v23940_v53 = vsel %vm19788_vm8, %v16968_v22, %v15330_v62  ;;  %v15362_v59 = vrot.slane %v23760_v63, 5  ;;  %v16977_v40 = vrot.slane %v15286_v44, 9  ;;  %v23946_v24 = vsel %vm19788_vm8, %v16969_v18, %v15334_v52  ;;  %v15289_v43 = vld [vmem:[#allocation2 + $0x88] sm:$0xe]  ;;  %v23995_v22 = vld [vmem:[#allocation2 + $0x90] sm:$0xe] }
 0x73d   :  { %v23950_v11 = vsel %vm19788_vm8, %v16970_v49, %v15338_v56  ;;  %v15366_v30 = vrot.slane %v23774_v37, 5  ;;  %v16978_v19 = vrot.slane %v15287_v36, 9  ;;  %v23956_v42 = vsel %vm19788_vm8, %v16971_v6, %v15342_v3  ;;  %v23970_v37 = vld [vmem:[%s24383_s5 + $0x80] sm:$0xff]   ;;  %v11983_v56 = vld [vmem:[#allocation2 + $0x10] sm:$0xf] }
 0x73e   :  { %18403 = vmatmul.mubr.msk.bf16.gmra.mrb[4].mxu1 %vm860_vm15, %v16952_v51  ;;  %v23960_v63 = vsel %vm19788_vm8, %v16972_v12, %v15346_v17  ;;  %v23964_v35 = vsel %vm19788_vm8, %v16973_v1, %v15350_v46  ;;  %v15370_v45 = vrot.slane %v23793_v50, 5  ;;  %v23975_v0 = vsel %vm19788_vm8, %v16974_v47, %v15354_v14  ;;  %v15288_v50 = vld [vmem:[#allocation2 + $0x80] sm:$0xe]  ;;  %v23998_v51 = vld [vmem:[#allocation2 + $0x98] sm:$0xe] }
 0x73f   :  { %18406 = vmatprep.mubr.msk.bf16.mxu1 %vm860_vm15, %v16953_v9  ;;  %v23979_v2 = vsel %vm19788_vm8, %v16975_v8, %v15358_v31  ;;  %v23983_v57 = vsel %vm19788_vm8, %v16976_v39, %v15362_v59  ;;  %v23988_v61 = vsel %vm19788_vm8, %v16977_v40, %v15366_v30  ;;  %v16979_v33 = vrot.slane %v15288_v50, 9  ;;  %v19322_v62 = vld [vmem:[#allocation2 + $0x60] ss:$8 sps:$4 sm:$0xff]   ;;  %v24014_v6 = vld [vmem:[#allocation2 + $0x14] sm:$0x1] }
 0x740   :  { %v23992_v41 = vsel %vm19788_vm8, %v16978_v19, %v15370_v45  ;;  %v15374_v55 = vrot.slane %v23814_v32, 5  ;;  %v16980_v21 = vrot.slane %v15289_v43, 9  ;;  %v16981_v9 = vrot.slane %v23995_v22, 9  ;;  %v24024_v17 = vld [vmem:[#allocation2 + $0x1c] sm:$0x1] }
 0x741   :  { %18199 = vmatmul.mubr.msk.bf16.vlgmr.msra.gmra.mrb[0].mxu0 %vm860_vm15, %v19319_v20  ;;  %v15382_v26 = vrot.slane %v23843_v29, 5  ;;  %v16956_v4 = vcombine.low %v15088_v28, %v15102_v25  ;;  %v16983_v18 = vcombine.low %v23930_v13, %v23940_v53  ;;  %v16982_v15 = vrot.slane %v23998_v51, 9  ;;  %v11987_v46 = vld [vmem:[#allocation2 + $0x20] sm:$0xf]  ;;  %v24034_v8 = vld [vmem:[#allocation2 + $0x24] sm:$0x1] }
 0x742   :  { %18202 = vmatprep.mubr.msk.bf16.mxu0 %vm860_vm15, %v19320_v23  ;;  %18215 = vmatpush3.bf16.msra.mxu0 %v23786_v10  ;;  %v15378_v10 = vrot.slane %v23837_v38, 5  ;;  %v15386_v32 = vrot.slane %v23852_v27, 5  ;;  %v16984_v20 = vcombine.low %v23946_v24, %v23950_v11  ;;  %v16985_v38 = vcombine.low %v23956_v42, %v23960_v63  ;;  %v11985_v23 = vld [vmem:[#allocation2 + $0x18] sm:$0xf]  ;;  %v11989_v39 = vld [vmem:[#allocation2 + $0x28] sm:$0xf] }
 0x743   :  { %18216 = vmatprep.subr.bf16.mxu0 %v19327_v7  ;;  %v16986_v52 = vcombine.low %v23964_v35, %v23975_v0  ;;  %v16987_v49 = vcombine.low %v23979_v2, %v23983_v57  ;;  %v16988_v3 = vcombine.low %v23988_v61, %v23992_v41  ;;  %v24022_v12 = vsel %vm19788_vm8, %v16979_v33, %v15374_v55  ;;  %v24039_v59 = vld [vmem:[#allocation2 + $0x2c] sm:$0x1]  ;;  %v19323_v30 = vld [vmem:[#allocation2 + $0x70] ss:$8 sps:$4 sm:$0xff]   ;;  %v19324_v33 = vld [vmem:[#allocation2 + $0x80] ss:$8 sps:$4 sm:$0xff]  }
 0x744   :  { %v12016_v1 = vshrl.u32 %v11983_v56, 16  ;;  %v12019_v5 = vshll.u32 %v11983_v56, 16  ;;  %v12025_v47 = vshll.u32 %v24014_v6, 16  ;;  %v12030_v14 = vshrl.u32 %v11985_v23, 16  ;;  %v11991_v43 = vld [vmem:[#allocation2 + $0x30] sm:$0xf] }
 0x745   :  { %v12033_v16 = vshll.u32 %v11985_v23, 16  ;;  %v12039_v31 = vshll.u32 %v24024_v17, 16  ;;  %v12044_v44 = vshrl.u32 %v11987_v46, 16  ;;  %v12047_v40 = vshll.u32 %v11987_v46, 16  ;;  %v12009_v22 = vld [vmem:[#allocation2 + $0x88] sm:$0xf] }
 0x746   :  { %18217 = vmatpush3.bf16.msra.mxu0 %v19327_v7  ;;  %18407 = vmatmul.mubr.msk.bf16.gmra.mrb[8].mxu1 %vm860_vm15, %v23908_v58  ;;  %v24031_v58 = vsel %vm19788_vm8, %v16980_v21, %v15378_v10  ;;  %v12018_v7 = vrot.slane %v12016_v1, 4  ;;  %v12021_v28 = vrot.slane %v12019_v5, 5  ;;  %v12032_v36 = vrot.slane %v12030_v14, 4  ;;  %v24043_v5 = vld [vmem:[#allocation2 + $0x34] sm:$0x1] }
 0x747   :  { %18234 = vmatprep.subr.bf16.mxu0 %v23970_v37  ;;  %18410 = vmatprep.mubr.msk.bf16.mxu1 %vm860_vm15, %v23910_v54  ;;  %v12027_v54 = vrot.slane %v12025_v47, 5  ;;  %v12035_v25 = vrot.slane %v12033_v16, 5  ;;  %v12041_v45 = vrot.slane %v12039_v31, 5  ;;  %v12046_v50 = vrot.slane %v12044_v44, 4 }
 0x748   :  { %v12022_v19 = vor.u32 %v12021_v28, %v12018_v7  ;;  %v12049_v21 = vrot.slane %v12047_v40, 5  ;;  %v12058_v10 = vshrl.u32 %v11989_v39, 16  ;;  %v12061_v56 = vshll.u32 %v11989_v39, 16  ;;  %v11993_v28 = vld [vmem:[#allocation2 + $0x38] sm:$0xf] }
 0x749   :  { %18203 = vmatmul.mubr.msk.bf16.gmra.mrb[4].mxu0 %vm860_vm15, %v19321_v34  ;;  %v12053_v34 = vshll.u32 %v24034_v8, 16  ;;  %v12036_v55 = vor.u32 %v12035_v25, %v12032_v36  ;;  %v12067_v1 = vshll.u32 %v24039_v59, 16  ;;  %v12072_v47 = vshrl.u32 %v11991_v43, 16  ;;  %v24048_v36 = vld [vmem:[#allocation2 + $0x3c] sm:$0x1] }
 0x74a   :  { %18206 = vmatprep.mubr.msk.bf16.mxu0 %vm860_vm15, %v19322_v62  ;;  %v12023_v23 = vrot.slane %v12022_v19, 4  ;;  %v12050_v14 = vor.u32 %v12049_v21, %v12046_v50  ;;  %v12060_v16 = vrot.slane %v12058_v10, 4  ;;  %v12063_v7 = vrot.slane %v12061_v56, 5  ;;  %v11997_v56 = vld [vmem:[#allocation2 + $0x48] sm:$0xf] }
 0x74b   :  { %v12055_v62 = vrot.slane %v12053_v34, 5  ;;  %v12037_v46 = vrot.slane %v12036_v55, 4  ;;  %v12069_v44 = vrot.slane %v12067_v1, 5  ;;  %v12074_v39 = vrot.slane %v12072_v47, 4  ;;  %v11995_v34 = vld [vmem:[#allocation2 + $0x40] sm:$0xf] }
 0x74c   :  { %v12028_v31 = vsel %vm19572_vm14, %v12023_v23, %v12027_v54  ;;  %v12075_v25 = vshll.u32 %v11991_v43, 16  ;;  %v12051_v19 = vrot.slane %v12050_v14, 4  ;;  %v12064_v50 = vor.u32 %v12063_v7, %v12060_v16  ;;  %v24058_v43 = vld [vmem:[#allocation2 + $0x44] sm:$0x1] }
 0x74d   :  { %v12042_v40 = vsel %vm19572_vm14, %v12037_v46, %v12041_v45  ;;  %v12086_v21 = vshrl.u32 %v11993_v28, 16  ;;  %v12089_v10 = vshll.u32 %v11993_v28, 16  ;;  %v12095_v45 = vshll.u32 %v24048_v36, 16  ;;  %v11999_v28 = vld [vmem:[#allocation2 + $0x60] sm:$0xf] }
 0x74e   :  { %18411 = vmatmul.mubr.msk.bf16.gmra.mrb[12].mxu1 %vm860_vm15, %v16956_v4  ;;  %v12081_v4 = vshll.u32 %v24043_v5, 16  ;;  %v16722_v54 = vcombine.low %v12028_v31, %v12042_v40  ;;  %v12077_v55 = vrot.slane %v12075_v25, 5  ;;  %v12056_v13 = vsel %vm19572_vm14, %v12051_v19, %v12055_v62  ;;  %v19325_v62 = vld [vmem:[#allocation2 + $0x90] ss:$8 sps:$4 sm:$0xff]  }
 0x74f   :  { %18418 = vmatprep.mubr.msk.bf16.mxu1 %vm860_vm15, %v16983_v18  ;;  %v12065_v53 = vrot.slane %v12064_v50, 4  ;;  %v12088_v1 = vrot.slane %v12086_v21, 4  ;;  %v12091_v47 = vrot.slane %v12089_v10, 5  ;;  %v12100_v46 = vshrl.u32 %v11995_v34, 16  ;;  %v24071_v21 = vld [vmem:[#allocation2 + $0x64] sm:$0x1] }
 0x750   :  { %v12083_v18 = vrot.slane %v12081_v4, 5  ;;  %v12078_v23 = vor.u32 %v12077_v55, %v12074_v39  ;;  %v12097_v16 = vrot.slane %v12095_v45, 5  ;;  %v12103_v7 = vshll.u32 %v11995_v34, 16 }
 0x751   :  { %18207 = vmatmul.mubr.msk.bf16.gmra.mrb[8].mxu0 %vm860_vm15, %v19323_v30  ;;  %v24064_v30 = vld [vmem:[#allocation2 + $0x4c] sm:$0x1]  ;;  %v12070_v14 = vsel %vm19572_vm14, %v12065_v53, %v12069_v44  ;;  %v12092_v40 = vor.u32 %v12091_v47, %v12088_v1  ;;  %v12102_v19 = vrot.slane %v12100_v46, 4  ;;  %v12114_v4 = vshrl.u32 %v11997_v56, 16  ;;  %v12003_v46 = vld [vmem:[#allocation2 + $0x70] sm:$0xf] }
 0x752   :  { %18210 = vmatprep.mubr.msk.bf16.mxu0 %vm860_vm15, %v19324_v33  ;;  %v12109_v33 = vshll.u32 %v24058_v43, 16  ;;  %v24069_v31 = vcombine.low %v12056_v13, %v12070_v14  ;;  %v12079_v25 = vrot.slane %v12078_v23, 4  ;;  %v12105_v39 = vrot.slane %v12103_v7, 5  ;;  %v12001_v13 = vld [vmem:[#allocation2 + $0x68] sm:$0xf] }
 0x753   :  { %v12117_v55 = vshll.u32 %v11997_v56, 16  ;;  %v12093_v34 = vrot.slane %v12092_v40, 4  ;;  %v12123_v10 = vshll.u32 %v24064_v30, 16  ;;  %v12128_v53 = vshrl.u32 %v11999_v28, 16  ;;  %v24084_v1 = vld [vmem:[#allocation2 + $0x6c] sm:$0x1] }
 0x754   :  { %v12111_v50 = vrot.slane %v12109_v33, 5  ;;  %v12084_v44 = vsel %vm19572_vm14, %v12079_v25, %v12083_v18  ;;  %v12106_v45 = vor.u32 %v12105_v39, %v12102_v19  ;;  %v12116_v56 = vrot.slane %v12114_v4, 4  ;;  %v12005_v39 = vld [vmem:[#allocation2 + $0x78] sm:$0xf]  ;;  %v24096_v4 = vld [vmem:[#allocation2 + $0x7c] sm:$0x1] }
 0x755   :  { %v12119_v23 = vrot.slane %v12117_v55, 5  ;;  %v12131_v24 = vshll.u32 %v11999_v28, 16  ;;  %v12098_v11 = vsel %vm19572_vm14, %v12093_v34, %v12097_v16  ;;  %v12130_v18 = vrot.slane %v12128_v53, 4  ;;  %v12007_v53 = vld [vmem:[#allocation2 + $0x80] sm:$0xf] }
 0x756   :  { %18419 = vmatmul.mubr.msk.bf16.vlgmr.msra.gmra.mrb[0].mxu1 %vm860_vm15, %v16984_v20  ;;  %v12125_v20 = vrot.slane %v12123_v10, 5  ;;  %v12137_v47 = vshll.u32 %v24071_v21, 16  ;;  %v16724_v42 = vcombine.low %v12084_v44, %v12098_v11  ;;  %v12107_v63 = vrot.slane %v12106_v45, 4 }
 0x757   :  { %18422 = vmatprep.mubr.msk.bf16.mxu1 %vm860_vm15, %v16985_v38  ;;  %v12120_v38 = vor.u32 %v12119_v23, %v12116_v56  ;;  %v12133_v14 = vrot.slane %v12131_v24, 5  ;;  %v12142_v33 = vshrl.u32 %v12001_v13, 16  ;;  %v12145_v25 = vshll.u32 %v12001_v13, 16  ;;  %v24101_v24 = vld [vmem:[#allocation2 + $0x84] sm:$0x1] }
 0x758   :  { %v12139_v7 = vrot.slane %v12137_v47, 5  ;;  %v12151_v28 = vshll.u32 %v24084_v1, 16  ;;  %v12112_v16 = vsel %vm19572_vm14, %v12107_v63, %v12111_v50  ;;  %v12159_v10 = vshll.u32 %v12003_v46, 16  ;;  %v19329_v50 = vld [vmem:[%s24383_s5 + $0x88] sm:$0xff]  }
 0x759   :  { %18211 = vmatmul.mubr.msk.bf16.gmra.mrb[12].mxu0 %vm860_vm15, %v19325_v62  ;;  %v24092_v62 = vld [vmem:[#allocation2 + $0x74] sm:$0x1]  ;;  %v12121_v40 = vrot.slane %v12120_v38, 4  ;;  %v12134_v19 = vor.u32 %v12133_v14, %v12130_v18  ;;  %v12144_v55 = vrot.slane %v12142_v33, 4  ;;  %v12147_v44 = vrot.slane %v12145_v25, 5 }
 0x75a   :  { %18218 = vmatprep.mubr.msk.bf16.mxu0 %vm860_vm15, %v16722_v54  ;;  %v12156_v54 = vshrl.u32 %v12003_v46, 16  ;;  %v12153_v34 = vrot.slane %v12151_v28, 5  ;;  %v12165_v23 = vshll.u32 %v24092_v62, 16  ;;  %v24116_v11 = vsel %vm19788_vm8, %v16981_v9, %v15382_v26  ;;  %v12011_v25 = vld [vmem:[#allocation2 + $0x90] sm:$0xf] }
 0x75b   :  { %v12126_v13 = vsel %vm19572_vm14, %v12121_v40, %v12125_v20  ;;  %v12135_v45 = vrot.slane %v12134_v19, 4  ;;  %v12148_v20 = vor.u32 %v12147_v44, %v12144_v55  ;;  %v12161_v18 = vrot.slane %v12159_v10, 5  ;;  %v12013_v40 = vld [vmem:[#allocation2 + $0x98] sm:$0xf]  ;;  %v24137_v10 = vld [vmem:[#allocation2 + $0x94] sm:$0x1] }
 0x75c   :  { %v12158_v56 = vrot.slane %v12156_v54, 4  ;;  %v12170_v47 = vshrl.u32 %v12005_v39, 16  ;;  %v16989_v35 = vcombine.low %v24022_v12, %v24031_v58  ;;  %v16725_v0 = vcombine.low %v12112_v16, %v12126_v13  ;;  %v24130_v12 = vld [vmem:[#allocation2 + $0x8c] sm:$0x1] }
 0x75d   :  { %v12179_v29 = vshll.u32 %v24096_v4, 16  ;;  %v12149_v9 = vrot.slane %v12148_v20, 4  ;;  %v12184_v63 = vshrl.u32 %v12007_v53, 16  ;;  %v12140_v2 = vsel %vm19572_vm14, %v12135_v45, %v12139_v7 }
 0x75e   :  { %18423 = vmatmul.mubr.msk.bf16.gmra.mrb[4].mxu1 %vm860_vm15, %v16986_v52  ;;  %v12173_v52 = vshll.u32 %v12005_v39, 16  ;;  %v12162_v26 = vor.u32 %v12161_v18, %v12158_v56  ;;  %v12172_v46 = vrot.slane %v12170_v47, 4  ;;  %v12167_v57 = vrot.slane %v12165_v23, 5  ;;  %v24149_v23 = vld [vmem:[#allocation2 + $0x9c] sm:$0x1] }
 0x75f   :  { %18426 = vmatprep.mubr.msk.bf16.mxu1 %vm860_vm15, %v16987_v49  ;;  %v12187_v58 = vshll.u32 %v12007_v53, 16  ;;  %v12154_v38 = vsel %vm19572_vm14, %v12149_v9, %v12153_v34  ;;  %v12193_v14 = vshll.u32 %v24101_v24, 16  ;;  %v12198_v33 = vshrl.u32 %v12009_v22, 16 }
 0x760   :  { %v12175_v49 = vrot.slane %v12173_v52, 5  ;;  %v12181_v16 = vrot.slane %v12179_v29, 5  ;;  %v16726_v19 = vcombine.low %v12140_v2, %v12154_v38  ;;  %v12201_v54 = vshll.u32 %v12009_v22, 16 }
 0x761   :  { %18219 = vmatmul.mubr.msk.bf16.vlgmr.msra.gmra.mrb[0].mxu0 %vm860_vm15, %v24069_v31  ;;  %v12186_v31 = vrot.slane %v12184_v63, 4  ;;  %v12189_v7 = vrot.slane %v12187_v58, 5  ;;  %v12200_v39 = vrot.slane %v12198_v33, 4  ;;  %v12207_v55 = vshll.u32 %v24130_v12, 16 }
 0x762   :  { %18222 = vmatprep.mubr.msk.bf16.mxu0 %vm860_vm15, %v16724_v42  ;;  %18235 = vmatpush3.bf16.msra.mxu0 %v23970_v37  ;;  %v12163_v42 = vrot.slane %v12162_v26, 4  ;;  %v12176_v28 = vor.u32 %v12175_v49, %v12172_v46  ;;  %v12212_v34 = vshrl.u32 %v12011_v25, 16  ;;  %v12215_v53 = vshll.u32 %v12011_v25, 16  ;;  %v12412_v26 = vld [vmem:[#allocation2 + $0x10] sm:$0xe] }
 0x763   :  { %18236 = vmatprep.subr.bf16.mxu0 %v19329_v50  ;;  %v12190_v44 = vor.u32 %v12189_v7, %v12186_v31  ;;  %v15387_v13 = vsel %vm19788_vm8, %v16982_v15, %v15386_v32  ;;  %v12195_v45 = vrot.slane %v12193_v14, 5  ;;  %v12203_v56 = vrot.slane %v12201_v54, 5  ;;  %v12413_v46 = vld [vmem:[#allocation2 + $0x18] sm:$0xe]  ;;  %v12414_v7 = vld [vmem:[#allocation2 + $0x20] sm:$0xe] }
 0x764   :  { %v12177_v37 = vrot.slane %v12176_v28, 4  ;;  %v12226_v20 = vshrl.u32 %v12013_v40, 16  ;;  %v12214_v41 = vrot.slane %v12212_v34, 4  ;;  %v12209_v15 = vrot.slane %v12207_v55, 5 }
 0x765   :  { %v12191_v61 = vrot.slane %v12190_v44, 4  ;;  %v12204_v51 = vor.u32 %v12203_v56, %v12200_v39  ;;  %v12221_v32 = vshll.u32 %v24137_v10, 16  ;;  %v12235_v52 = vshll.u32 %v24149_v23, 16  ;;  %v12417_v39 = vld [vmem:[#allocation2 + $0x38] sm:$0xe] }
 0x766   :  { %18237 = vmatpush3.bf16.msra.mxu0 %v19329_v50  ;;  %18427 = vmatmul.mubr.msk.bf16.gmra.mrb[8].mxu1 %vm860_vm15, %v16988_v3  ;;  %v12168_v50 = vsel %vm19572_vm14, %v12163_v42, %v12167_v57  ;;  %v12217_v3 = vrot.slane %v12215_v53, 5  ;;  %v12182_v27 = vsel %vm19572_vm14, %v12177_v37, %v12181_v16  ;;  %v12228_v47 = vrot.slane %v12226_v20, 4 }
 0x767   :  { %18430 = vmatprep.mubr.msk.bf16.mxu1 %vm860_vm15, %v16989_v35  ;;  %v12229_v35 = vshll.u32 %v12013_v40, 16  ;;  %v16990_v29 = vcombine.low %v24116_v11, %v15387_v13  ;;  %v12196_v22 = vsel %vm19572_vm14, %v12191_v61, %v12195_v45  ;;  %v16727_v63 = vcombine.low %v12168_v50, %v12182_v27  ;;  %v12419_v61 = vld [vmem:[#allocation2 + $0x48] sm:$0xe] }
 0x768   :  { %v12218_v18 = vor.u32 %v12217_v3, %v12214_v41  ;;  %v12223_v57 = vrot.slane %v12221_v32, 5  ;;  %v12237_v31 = vrot.slane %v12235_v52, 5  ;;  %v16740_v14 = vrot.slane %v12412_v26, 9  ;;  %v12420_v41 = vld [vmem:[#allocation2 + $0x60] sm:$0xe] }
 0x769   :  { %18223 = vmatmul.mubr.msk.bf16.gmra.mrb[4].mxu0 %vm860_vm15, %v16725_v0  ;;  %v12205_v0 = vrot.slane %v12204_v51, 4  ;;  %v12231_v9 = vrot.slane %v12229_v35, 5  ;;  %v12462_v11 = vrot.slane %v24014_v6, 5  ;;  %v16741_v33 = vrot.slane %v12413_v46, 9  ;;  %v12424_v26 = vld [vmem:[#allocation2 + $0x80] sm:$0xe] }
 0x76a   :  { %18226 = vmatprep.mubr.msk.bf16.mxu0 %vm860_vm15, %v16726_v19  ;;  %v12219_v58 = vrot.slane %v12218_v18, 4  ;;  %v12466_v25 = vrot.slane %v24024_v17, 5  ;;  %v12415_v19 = vld [vmem:[#allocation2 + $0x28] sm:$0xe]  ;;  %v12416_v17 = vld [vmem:[#allocation2 + $0x30] sm:$0xe] }
 0x76b   :  { %v12210_v2 = vsel %vm19572_vm14, %v12205_v0, %v12209_v15  ;;  %v12232_v38 = vor.u32 %v12231_v9, %v12228_v47  ;;  %v12463_v40 = vsel %vm19788_vm8, %v16740_v14, %v12462_v11  ;;  %v16742_v55 = vrot.slane %v12414_v7, 9  ;;  %v12423_v9 = vld [vmem:[#allocation2 + $0x78] sm:$0xe] }
 0x76c   :  { %v16728_v49 = vcombine.low %v12196_v22, %v12210_v2  ;;  %v12224_v28 = vsel %vm19572_vm14, %v12219_v58, %v12223_v57  ;;  %v12467_v6 = vsel %vm19788_vm8, %v16741_v33, %v12466_v25  ;;  %v12470_v44 = vrot.slane %v24034_v8, 5  ;;  %v12418_v8 = vld [vmem:[#allocation2 + $0x40] sm:$0xe] }
 0x76d   :  { %v12233_v42 = vrot.slane %v12232_v38, 4  ;;  %v16756_v37 = vcombine.low %v12463_v40, %v12467_v6  ;;  %v16743_v34 = vrot.slane %v12415_v19, 9  ;;  %v12474_v53 = vrot.slane %v24039_v59, 5 }
 0x76e   :  { %18431 = vmatmul.mubr.msk.bf16.gmra.mrb[12].mxu1 %vm860_vm15, %v16990_v29  ;;  %v16744_v48 = vrot.slane %v12416_v17, 9  ;;  %v12478_v13 = vrot.slane %v24043_v5, 5  ;;  %v16745_v45 = vrot.slane %v12417_v39, 9  ;;  %v12482_v56 = vrot.slane %v24048_v36, 5  ;;  %v12421_v36 = vld [vmem:[#allocation2 + $0x68] sm:$0xe] }
 0x76f   :  { %v12238_v16 = vsel %vm19572_vm14, %v12233_v42, %v12237_v31  ;;  %v12471_v20 = vsel %vm19788_vm8, %v16742_v55, %v12470_v44  ;;  %v12475_v50 = vsel %vm19788_vm8, %v16743_v34, %v12474_v53  ;;  %v16746_v27 = vrot.slane %v12418_v8, 9  ;;  %v12427_v42 = vld [vmem:[#allocation2 + $0x98] sm:$0xe] }
 0x770   :  { %v16729_v54 = vcombine.low %v12224_v28, %v12238_v16  ;;  %v12479_v59 = vsel %vm19788_vm8, %v16744_v48, %v12478_v13  ;;  %v12483_v5 = vsel %vm19788_vm8, %v16745_v45, %v12482_v56  ;;  %v16757_v3 = vcombine.low %v12471_v20, %v12475_v50  ;;  %v15599_v45 = vld [vmem:[%s24387_s9] sm:$0xff] }
 0x771   :  { %18227 = vmatmul.mubr.msk.bf16.gmra.mrb[8].mxu0 %vm860_vm15, %v16727_v63  ;;  %v16758_v51 = vcombine.low %v12479_v59, %v12483_v5  ;;  %v12486_v15 = vrot.slane %v24058_v43, 5  ;;  %v16747_v32 = vrot.slane %v12419_v61, 9  ;;  %v12490_v18 = vrot.slane %v24064_v30, 5  ;;  %v12422_v43 = vld [vmem:[#allocation2 + $0x70] sm:$0xe]  ;;  %v15602_v61 = vld [vmem:[%s24387_s9 + $0x18] sm:$0xff] }
 0x772   :  { %18230 = vmatprep.mubr.msk.bf16.mxu0 %vm860_vm15, %v16728_v49  ;;  %v16748_v47 = vrot.slane %v12420_v41, 9  ;;  %v12494_v35 = vrot.slane %v24071_v21, 5  ;;  %v16749_v52 = vrot.slane %v12421_v36, 9  ;;  %v12498_v29 = vrot.slane %v24084_v1, 5  ;;  %v12425_v1 = vld [vmem:[#allocation2 + $0x88] sm:$0xe] }
 0x773   :  { %v12487_v22 = vsel %vm19788_vm8, %v16746_v27, %v12486_v15  ;;  %v12491_v0 = vsel %vm19788_vm8, %v16747_v32, %v12490_v18  ;;  %v16750_v63 = vrot.slane %v12422_v43, 9  ;;  %v12502_v57 = vrot.slane %v24092_v62, 5  ;;  %v12426_v62 = vld [vmem:[#allocation2 + $0x90] sm:$0xe]  ;;  %v15600_v18 = vld [vmem:[%s24387_s9 + $0x8] sm:$0xff] }
 0x774   :  { %v12495_v30 = vsel %vm19788_vm8, %v16748_v47, %v12494_v35  ;;  %v12499_v21 = vsel %vm19788_vm8, %v16749_v52, %v12498_v29  ;;  %v16759_v46 = vcombine.low %v12487_v22, %v12491_v0  ;;  %v16751_v49 = vrot.slane %v12423_v9, 9  ;;  %v15605_v22 = vld [vmem:[%s24387_s9 + $0x30] sm:$0xff] }
 0x775   :  { %v16760_v2 = vcombine.low %v12495_v30, %v12499_v21  ;;  %v12506_v58 = vrot.slane %v24096_v4, 5  ;;  %v16752_v38 = vrot.slane %v12424_v26, 9  ;;  %v12510_v31 = vrot.slane %v24101_v24, 5 }
 0x776   :  { %v16753_v14 = vrot.slane %v12425_v1, 9  ;;  %v12514_v11 = vrot.slane %v24130_v12, 5  ;;  %v12503_v33 = vsel %vm19788_vm8, %v16750_v63, %v12502_v57  ;;  %v16754_v12 = vrot.slane %v12426_v62, 9 }
 0x777   :  { %v12507_v25 = vsel %vm19788_vm8, %v16751_v49, %v12506_v58  ;;  %v12511_v4 = vsel %vm19788_vm8, %v16752_v38, %v12510_v31  ;;  %v12518_v7 = vrot.slane %v24137_v10, 5  ;;  %v16755_v40 = vrot.slane %v12427_v42, 9  ;;  %v24232_v10 = vld [vmem:[%s24386_s8] ss:$0 sm:$0xff] }
 0x778   :  { %v12515_v24 = vsel %vm19788_vm8, %v16753_v14, %v12514_v11  ;;  %v16761_v28 = vcombine.low %v12503_v33, %v12507_v25  ;;  %v12522_v6 = vrot.slane %v24149_v23, 5  ;;  %v15603_v58 = vld [vmem:[%s24387_s9 + $0x20] sm:$0xff]  ;;  %vm15785_vm14 = vcmask 517120  }
 0x779   :  { %18231 = vmatmul.mubr.msk.bf16.gmra.mrb[12].mxu0 %vm860_vm15, %v16729_v54  ;;  %v16762_v16 = vcombine.low %v12511_v4, %v12515_v24  ;;  %v12519_v19 = vsel %vm19788_vm8, %v16754_v12, %v12518_v7 }
 0x77a   :  { %18238 = vmatprep.mubr.msk.bf16.mxu0 %vm860_vm15, %v16756_v37  ;;  %v12523_v17 = vsel %vm19788_vm8, %v16755_v40, %v12522_v6 }
 0x77b   :  { %v16763_v39 = vcombine.low %v12519_v19, %v12523_v17 }
 0x781   :  { %18239 = vmatmul.mubr.msk.bf16.vlgmr.msra.gmra.mrb[0].mxu0 %vm860_vm15, %v16757_v3 }
 0x782   :  { %18242 = vmatprep.mubr.msk.bf16.mxu0 %vm860_vm15, %v16758_v51 }
 0x789   :  { %18243 = vmatmul.mubr.msk.bf16.gmra.mrb[4].mxu0 %vm860_vm15, %v16759_v46 }
 0x78a   :  { %18246 = vmatprep.mubr.msk.bf16.mxu0 %vm860_vm15, %v16760_v2 }
 0x791   :  { %18247 = vmatmul.mubr.msk.bf16.gmra.mrb[8].mxu0 %vm860_vm15, %v16761_v28  ;;  %v15604_v28 = vld [vmem:[%s24387_s9 + $0x28] sm:$0xff] }
 0x792   :  { %18250 = vmatprep.mubr.msk.bf16.mxu0 %vm860_vm15, %v16762_v16 }
 0x799   :  { %18251 = vmatmul.mubr.msk.bf16.gmra.mrb[12].mxu0 %vm860_vm15, %v16763_v39  ;;  %vm15798_vm15 = vcmask 1024  }
 0x829   :  { %v18420_v54 = vpop.f32.mrb[0].mxu1 }
 0x82a   :  { %v15569_v23 = vadd.f32 %v18420_v54, %v24232_v10  ;;  %v15482_v55 = vpop.f32.mrb[1].mxu1 }
 0x82b   :  { %v15567_v37 = vadd.f32 %v24232_v10, %v15482_v55  ;;  %v18421_v44 = vpop.f32.mrb[2].mxu1 }
 0x82c   :  { %v15585_v34 = vmax.f32 %v15569_v23, 0.0  ;;  %v15570_v53 = vadd.f32 %v18421_v44, %v24232_v10  ;;  %v15485_v48 = vpop.f32.mrb[3].mxu1 }
 0x82d   :  { %v15583_v13 = vmax.f32 %v15567_v37, 0.0  ;;  %v15568_v50 = vadd.f32 %v24232_v10, %v15485_v48  ;;  %v15606_v37 = vld [vmem:[%s24387_s9 + $0x38] sm:$0xff] }
 0x82e   :  { %v15609_v56 = vmul.f32 %v15601_v60, %v15585_v34  ;;  %v15586_v20 = vmax.f32 %v15570_v53, 0.0 }
 0x82f   :  { %v15607_v59 = vmul.f32 %v15599_v45, %v15583_v13  ;;  %v15584_v27 = vmax.f32 %v15568_v50, 0.0 }
 0x830   :  { %v15630_v8 = vsel %vm15623_vm1, %v15609_v56, 0.0  ;;  %v15610_v32 = vmul.f32 %v15602_v61, %v15586_v20 }
 0x831   :  { %15631 = vadd.xlane.f32.xlu0 %v15630_v8  ;;  %v18424_v5 = vpop.f32.mrb[4].mxu1  ;;  %v15624_v15 = vsel %vm15623_vm1, %v15607_v59, 0.0  ;;  %v15608_v29 = vmul.f32 %v15600_v18, %v15584_v27 }
 0x832   :  { %v15498_v41 = vpop.f32.mrb[5].mxu1  ;;  %v15573_v36 = vadd.f32 %v18424_v5, %v24232_v10  ;;  %v15633_v52 = vsel %vm15623_vm1, %v15610_v32, 0.0 }
 0x833   :  { %v18425_v3 = vpop.f32.mrb[6].mxu1  ;;  %v15571_v35 = vadd.f32 %v24232_v10, %v15498_v41  ;;  %v15627_v49 = vsel %vm15623_vm1, %v15608_v29, 0.0 }
 0x834   :  { %v15501_v51 = vpop.f32.mrb[7].mxu1  ;;  %v15589_v47 = vmax.f32 %v15573_v36, 0.0  ;;  %v15574_v14 = vadd.f32 %v18425_v3, %v24232_v10  ;;  %v24290_v36 = vld [vmem:[%s24384_s6] ss:$0 sm:$0xff] }
 0x835   :  { %15625 = vadd.xlane.f32.xlu0 %v15624_v15  ;;  %v15587_v21 = vmax.f32 %v15571_v35, 0.0  ;;  %v15572_v9 = vadd.f32 %v24232_v10, %v15501_v51 }
 0x836   :  { %v15613_v46 = vmul.f32 %v15605_v22, %v15589_v47  ;;  %v15590_v7 = vmax.f32 %v15574_v14, 0.0 }
 0x837   :  { %v15588_v11 = vmax.f32 %v15572_v9, 0.0  ;;  %v15611_v25 = vmul.f32 %v15603_v58, %v15587_v21 }
 0x838   :  { %v15642_v33 = vsel %vm15623_vm1, %v15613_v46, 0.0 }
 0x839   :  { %15634 = vadd.xlane.f32.xlu0 %v15633_v52  ;;  %v18428_v0 = vpop.f32.mrb[8].mxu1  ;;  %v15636_v6 = vsel %vm15623_vm1, %v15611_v25, 0.0  ;;  %v15612_v19 = vmul.f32 %v15604_v28, %v15588_v11 }
 0x83a   :  { %v15577_v43 = vadd.f32 %v18428_v0, %v24232_v10  ;;  %v15514_v30 = vpop.f32.mrb[9].mxu1 }
 0x83b   :  { %v15575_v26 = vadd.f32 %v24232_v10, %v15514_v30  ;;  %v18429_v1 = vpop.f32.mrb[10].mxu1  ;;  %v15639_v44 = vsel %vm15623_vm1, %v15612_v19, 0.0 }
 0x83c   :  { %v15593_v63 = vmax.f32 %v15577_v43, 0.0  ;;  %v15578_v2 = vadd.f32 %v18429_v1, %v24232_v10  ;;  %v15517_v57 = vpop.f32.mrb[11].mxu1 }
 0x83d   :  { %v15591_v38 = vmax.f32 %v15575_v26, 0.0  ;;  %15628 = vadd.xlane.f32.xlu0 %v15627_v49  ;;  %v15576_v4 = vadd.f32 %v24232_v10, %v15517_v57 }
 0x83e   :  { %v15617_v31 = vmul.f32 %v15601_v60, %v15593_v63  ;;  %v15594_v62 = vmax.f32 %v15578_v2, 0.0  ;;  %v15614_v60 = vmul.f32 %v15606_v37, %v15590_v7 }
 0x83f   :  { %v15615_v42 = vmul.f32 %v15599_v45, %v15591_v38  ;;  %v15592_v17 = vmax.f32 %v15576_v4, 0.0 }
 0x840   :  { %v15654_v24 = vsel %vm15623_vm1, %v15617_v31, 0.0  ;;  %v15618_v55 = vmul.f32 %v15602_v61, %v15594_v62  ;;  %v15645_v45 = vsel %vm15623_vm1, %v15614_v60, 0.0 }
 0x841   :  { %15643 = vadd.xlane.f32.xlu0 %v15642_v33  ;;  %15655 = vadd.xlane.f32.xlu1 %v15654_v24  ;;  %v18432_v12 = vpop.f32.mrb[12].mxu1  ;;  %v15648_v23 = vsel %vm15623_vm1, %v15615_v42, 0.0  ;;  %v15616_v13 = vmul.f32 %v15600_v18, %v15592_v17 }
 0x842   :  { %v15530_v16 = vpop.f32.mrb[13].mxu1  ;;  %v15581_v39 = vadd.f32 %v18432_v12, %v24232_v10  ;;  %v15657_v48 = vsel %vm15623_vm1, %v15618_v55, 0.0 }
 0x843   :  { %v18433_v40 = vpop.f32.mrb[14].mxu1  ;;  %v15579_v53 = vadd.f32 %v24232_v10, %v15530_v16  ;;  %v15651_v50 = vsel %vm15623_vm1, %v15616_v13, 0.0 }
 0x844   :  { %v15533_v54 = vpop.f32.mrb[15].mxu1  ;;  %v15597_v34 = vmax.f32 %v15581_v39, 0.0  ;;  %v15582_v59 = vadd.f32 %v18433_v40, %v24232_v10 }
 0x845   :  { %15637 = vadd.xlane.f32.xlu0 %v15636_v6  ;;  %15649 = vadd.xlane.f32.xlu1 %v15648_v23  ;;  %v15595_v56 = vmax.f32 %v15579_v53, 0.0  ;;  %v15580_v20 = vadd.f32 %v24232_v10, %v15533_v54 }
 0x846   :  { %v15621_v8 = vmul.f32 %v15605_v22, %v15597_v34  ;;  %v15598_v27 = vmax.f32 %v15582_v59, 0.0 }
 0x847   :  { %v15596_v5 = vmax.f32 %v15580_v20, 0.0  ;;  %v15619_v41 = vmul.f32 %v15603_v58, %v15595_v56 }
 0x848   :  { %v15666_v61 = vsel %vm15623_vm1, %v15621_v8, 0.0  ;;  %v15622_v30 = vmul.f32 %v15606_v37, %v15598_v27 }
 0x849   :  { %15640 = vadd.xlane.f32.xlu0 %v15639_v44  ;;  %15658 = vadd.xlane.f32.xlu1 %v15657_v48  ;;  %v15660_v51 = vsel %vm15623_vm1, %v15619_v41, 0.0  ;;  %v15620_v15 = vmul.f32 %v15604_v28, %v15596_v5 }
 0x84a   :  { %v15669_v57 = vsel %vm15623_vm1, %v15622_v30, 0.0 }
 0x84b   :  { %v15663_v43 = vsel %vm15623_vm1, %v15620_v15, 0.0 }
 0x84d   :  { %15646 = vadd.xlane.f32.xlu0 %v15645_v45  ;;  %15652 = vadd.xlane.f32.xlu1 %v15651_v50 }
 0x851   :  { %15667 = vadd.xlane.f32.xlu1 %v15666_v61 }
 0x854   :  { %v18240_v3 = vpop.f32.mrb[0].mxu0 }
 0x855   :  { %v12705_v32 = vadd.f32 %v18240_v3, %v24290_v36  ;;  %v12618_v18 = vpop.f32.mrb[1].mxu0  ;;  %15661 = vadd.xlane.f32.xlu1 %v15660_v51 }
 0x856   :  { %v12703_v10 = vadd.f32 %v24290_v36, %v12618_v18  ;;  %v18241_v47 = vpop.f32.mrb[2].mxu0 }
 0x857   :  { %v12721_v35 = vmax.f32 %v12705_v32, 0.0  ;;  %v12706_v52 = vadd.f32 %v18241_v47, %v24290_v36  ;;  %v12621_v29 = vpop.f32.mrb[3].mxu0 }
 0x858   :  { %v12719_v22 = vmax.f32 %v12703_v10, 0.0  ;;  %v12704_v0 = vadd.f32 %v24290_v36, %v12621_v29 }
 0x859   :  { %v17070_v21 = vpack.c.bf16 %v12721_v35, %v12721_v35  ;;  %v12722_v9 = vmax.f32 %v12706_v52, 0.0  ;;  %15664 = vadd.xlane.f32.xlu1 %v15663_v43 }
 0x85a   :  { %v17068_v26 = vpack.c.bf16 %v12719_v22, %v12719_v22  ;;  %v12720_v1 = vmax.f32 %v12704_v0, 0.0  ;;  %v15688_v22 = vlaneseq }
 0x85b   :  { %12801 = vst.msk [vmem:[%s24389_s11 + $0x8] sm:$0xf] %vm43_vm0, %v17070_v21  ;;  %v17071_v46 = vpack.c.bf16 %v12722_v9, %v12722_v9 }
 0x85c   :  { %12799 = vst.msk [vmem:[%s24389_s11] sm:$0xf] %vm43_vm0, %v17068_v26  ;;  %v17069_v63 = vpack.c.bf16 %v12720_v1, %v12720_v1  ;;  %v18244_v2 = vpop.f32.mrb[4].mxu0  ;;  %v15689_v43 = vand.u32 127, %v15688_v22  ;;  %v15691_v26 = vshrl.u32 %v15688_v22, 7 }
 0x85d   :  { %12802 = vst.msk [vmem:[%s24389_s11 + $0xc] sm:$0xf] %vm43_vm0, %v17071_v46  ;;  %v12709_v49 = vadd.f32 %v18244_v2, %v24290_v36  ;;  %v12634_v58 = vpop.f32.mrb[5].mxu0  ;;  %15670 = vadd.xlane.f32.xlu1 %v15669_v57 }
 0x85e   :  { %12800 = vst.msk [vmem:[%s24389_s11 + $0x4] sm:$0xf] %vm43_vm0, %v17069_v63  ;;  %v12707_v38 = vadd.f32 %v24290_v36, %v12634_v58  ;;  %v18245_v31 = vpop.f32.mrb[6].mxu0  ;;  %v15694_v21 = vadd.s32 4294967288, %v15689_v43  ;;  %v15701_v46 = vadd.s32 4294967280, %v15689_v43  ;;  %v15692_v57 = vsub.s32 %v15689_v43, %v15691_v26 }
 0x85f   :  { %v12725_v14 = vmax.f32 %v12709_v49, 0.0  ;;  %v12710_v11 = vadd.f32 %v18245_v31, %v24290_v36  ;;  %v12637_v33 = vpop.f32.mrb[7].mxu0  ;;  %v15708_v49 = vadd.s32 4294967272, %v15689_v43  ;;  %v15715_v58 = vadd.s32 4294967264, %v15689_v43 }
 0x860   :  { %v12723_v25 = vmax.f32 %v12707_v38, 0.0  ;;  %v12708_v62 = vadd.f32 %v24290_v36, %v12637_v33  ;;  %v15697_v1 = vsub.s32 %v15694_v21, %v15691_v26  ;;  %v15722_v31 = vadd.s32 4294967256, %v15689_v43 }
 0x861   :  { %v17074_v4 = vpack.c.bf16 %v12725_v14, %v12725_v14  ;;  %v12726_v24 = vmax.f32 %v12710_v11, 0.0  ;;  %v15704_v11 = vsub.s32 %v15701_v46, %v15691_v26 }
 0x862   :  { %v17072_v42 = vpack.c.bf16 %v12723_v25, %v12723_v25  ;;  %v12724_v28 = vmax.f32 %v12708_v62, 0.0 }
 0x863   :  { %12805 = vst.msk [vmem:[%s24389_s11 + $0x18] sm:$0xf] %vm43_vm0, %v17074_v4  ;;  %v17075_v12 = vpack.c.bf16 %v12726_v24, %v12726_v24  ;;  %v15711_v4 = vsub.s32 %v15708_v49, %v15691_v26  ;;  %v15718_v24 = vsub.s32 %v15715_v58, %v15691_v26 }
 0x864   :  { %12803 = vst.msk [vmem:[%s24389_s11 + $0x10] sm:$0xf] %vm43_vm0, %v17072_v42  ;;  %v17073_v16 = vpack.c.bf16 %v12724_v28, %v12724_v28  ;;  %v18248_v7 = vpop.f32.mrb[8].mxu0 }
 0x865   :  { %12806 = vst.msk [vmem:[%s24389_s11 + $0x1c] sm:$0xf] %vm43_vm0, %v17075_v12  ;;  %v12713_v40 = vadd.f32 %v18248_v7, %v24290_v36  ;;  %v12650_v6 = vpop.f32.mrb[9].mxu0  ;;  %v15725_v12 = vsub.s32 %v15722_v31, %v15691_v26 }
 0x866   :  { %12804 = vst.msk [vmem:[%s24389_s11 + $0x14] sm:$0xf] %vm43_vm0, %v17073_v16  ;;  %v12711_v19 = vadd.f32 %v24290_v36, %v12650_v6  ;;  %v18249_v17 = vpop.f32.mrb[10].mxu0  ;;  %v15736_v16 = vadd.s32 4294967240, %v15689_v43  ;;  %v15729_v6 = vadd.s32 4294967248, %v15689_v43 }
 0x867   :  { %v12729_v39 = vmax.f32 %v12713_v40, 0.0  ;;  %v12714_v54 = vadd.f32 %v18249_v17, %v24290_v36  ;;  %v12653_v23 = vpop.f32.mrb[11].mxu0 }
 0x868   :  { %v12727_v55 = vmax.f32 %v12711_v19, 0.0  ;;  %v12712_v37 = vadd.f32 %v24290_v36, %v12653_v23 }
 0x869   :  { %v17078_v44 = vpack.c.bf16 %v12729_v39, %v12729_v39  ;;  %v12730_v60 = vmax.f32 %v12714_v54, 0.0 }
 0x86a   :  { %v17076_v34 = vpack.c.bf16 %v12727_v55, %v12727_v55  ;;  %v12728_v53 = vmax.f32 %v12712_v37, 0.0 }
 0x86b   :  { %12809 = vst.msk [vmem:[%s24389_s11 + $0x28] sm:$0xf] %vm43_vm0, %v17078_v44  ;;  %v17079_v48 = vpack.c.bf16 %v12730_v60, %v12730_v60 }
 0x86c   :  { %12807 = vst.msk [vmem:[%s24389_s11 + $0x20] sm:$0xf] %vm43_vm0, %v17076_v34  ;;  %v17077_v13 = vpack.c.bf16 %v12728_v53, %v12728_v53  ;;  %v18252_v45 = vpop.f32.mrb[12].mxu0  ;;  %v15739_v34 = vsub.s32 %v15736_v16, %v15691_v26  ;;  %v15732_v53 = vsub.s32 %v15729_v6, %v15691_v26 }
 0x86d   :  { %12810 = vst.msk [vmem:[%s24389_s11 + $0x2c] sm:$0xf] %vm43_vm0, %v17079_v48  ;;  %v12717_v56 = vadd.f32 %v18252_v45, %v24290_v36  ;;  %v12666_v20 = vpop.f32.mrb[13].mxu0 }
 0x86e   :  { %12808 = vst.msk [vmem:[%s24389_s11 + $0x24] sm:$0xf] %vm43_vm0, %v17077_v13  ;;  %v12715_v50 = vadd.f32 %v24290_v36, %v12666_v20  ;;  %v18253_v8 = vpop.f32.mrb[14].mxu0 }
 0x86f   :  { %v12733_v59 = vmax.f32 %v12717_v56, 0.0  ;;  %v12718_v5 = vadd.f32 %v18253_v8, %v24290_v36  ;;  %v12669_v61 = vpop.f32.mrb[15].mxu0 }
 0x870   :  { %v12731_v41 = vmax.f32 %v12715_v50, 0.0  ;;  %v12716_v3 = vadd.f32 %v24290_v36, %v12669_v61 }
 0x871   :  { %v17082_v27 = vpack.c.bf16 %v12733_v59, %v12733_v59  ;;  %v12734_v51 = vmax.f32 %v12718_v5, 0.0 }
 0x872   :  { %v17080_v15 = vpack.c.bf16 %v12731_v41, %v12731_v41  ;;  %v12732_v32 = vmax.f32 %v12716_v3, 0.0 }
 0x873   :  { %12813 = vst.msk [vmem:[%s24389_s11 + $0x38] sm:$0xf] %vm43_vm0, %v17082_v27  ;;  %v17083_v18 = vpack.c.bf16 %v12734_v51, %v12734_v51 }
 0x874   :  { %12811 = vst.msk [vmem:[%s24389_s11 + $0x30] sm:$0xf] %vm43_vm0, %v17080_v15  ;;  %v17081_v10 = vpack.c.bf16 %v12732_v32, %v12732_v32 }
 0x875   :  { %12814 = vst.msk [vmem:[%s24389_s11 + $0x3c] sm:$0xf] %vm43_vm0, %v17083_v18 }
 0x876   :  { %12812 = vst.msk [vmem:[%s24389_s11 + $0x34] sm:$0xf] %vm43_vm0, %v17081_v10  ;;  %vm15699_vm0 = vcmask 130112  }
 0x8be   :  { %v15632_v36 = vpop.xlane.xlu0 %15631 }
 0x8bf   :  { %v15705_v40 = vrot.slane %v15632_v36, %v15704_v11 }
 0x8c2   :  { %v15626_v47 = vpop.xlane.xlu0 %15625 }
 0x8c3   :  { %v15693_v25 = vrot.slane %v15626_v47, %v15692_v57 }
 0x8c6   :  { %v15635_v35 = vpop.xlane.xlu0 %15634 }
 0x8c7   :  { %v15712_v37 = vrot.slane %v15635_v35, %v15711_v4  ;;  %v17002_v35 = vld [vmem:[#allocation4] ss:$0 sm:$0xff] }
 0x8ca   :  { %v15629_v52 = vpop.xlane.xlu0 %15628 }
 0x8cb   :  { %v15698_v38 = vrot.slane %v15629_v52, %v15697_v1 }
 0x8cd   :  { %v15700_v28 = vsel %vm15699_vm0, %v15698_v38, %v15693_v25 }
 0x8ce   :  { %v15656_v29 = vpop.xlane.xlu1 %15655  ;;  %v15644_v30 = vpop.xlane.xlu0 %15643  ;;  %v15707_v39 = vsel %vm15706_vm3, %v15705_v40, %v15700_v28 }
 0x8cf   :  { %v15755_v19 = vrot.slane %v15656_v29, %v15704_v11  ;;  %v15714_v45 = vsel %vm15713_vm5, %v15712_v37, %v15707_v39  ;;  %v15733_v41 = vrot.slane %v15644_v30, %v15732_v53 }
 0x8d2   :  { %v15650_v0 = vpop.xlane.xlu1 %15649  ;;  %v15638_v63 = vpop.xlane.xlu0 %15637 }
 0x8d3   :  { %v15746_v62 = vrot.slane %v15650_v0, %v15692_v57  ;;  %v15719_v54 = vrot.slane %v15638_v63, %v15718_v24 }
 0x8d5   :  { %v15721_v50 = vsel %vm15720_vm9, %v15719_v54, %v15714_v45 }
 0x8d6   :  { %v15659_v9 = vpop.xlane.xlu1 %15658  ;;  %v15641_v42 = vpop.xlane.xlu0 %15640 }
 0x8d7   :  { %v15726_v44 = vrot.slane %v15641_v42, %v15725_v12  ;;  %v15760_v60 = vrot.slane %v15659_v9, %v15711_v4 }
 0x8d9   :  { %v15728_v59 = vsel %vm15727_vm10, %v15726_v44, %v15721_v50 }
 0x8da   :  { %v15653_v2 = vpop.xlane.xlu1 %15652  ;;  %v15647_v48 = vpop.xlane.xlu0 %15646  ;;  %v15735_v15 = vsel %vm15734_vm11, %v15733_v41, %v15728_v59 }
 0x8db   :  { %v15750_v14 = vrot.slane %v15653_v2, %v15697_v1  ;;  %v15740_v5 = vrot.slane %v15647_v48, %v15739_v34 }
 0x8dd   :  { %v15751_v7 = vsel %vm15699_vm0, %v15750_v14, %v15746_v62  ;;  %v15742_v18 = vsel %vm15741_vm12, %v15740_v5, %v15735_v15 }
 0x8de   :  { %v15668_v33 = vpop.xlane.xlu1 %15667  ;;  %v15756_v23 = vsel %vm15706_vm3, %v15755_v19, %v15751_v7 }
 0x8df   :  { %v15761_v56 = vsel %vm15713_vm5, %v15760_v60, %v15756_v23  ;;  %v15775_v3 = vrot.slane %v15668_v33, %v15732_v53 }
 0x8e2   :  { %v15662_v17 = vpop.xlane.xlu1 %15661 }
 0x8e3   :  { %v15765_v55 = vrot.slane %v15662_v17, %v15718_v24 }
 0x8e5   :  { %v15766_v8 = vsel %vm15720_vm9, %v15765_v55, %v15761_v56 }
 0x8e6   :  { %v15665_v13 = vpop.xlane.xlu1 %15664 }
 0x8e7   :  { %v15770_v20 = vrot.slane %v15665_v13, %v15725_v12 }
 0x8e9   :  { %v15771_v61 = vsel %vm15727_vm10, %v15770_v20, %v15766_v8 }
 0x8ea   :  { %v15671_v27 = vpop.xlane.xlu1 %15670  ;;  %v15776_v32 = vsel %vm15734_vm11, %v15775_v3, %v15771_v61 }
 0x8eb   :  { %v15780_v51 = vrot.slane %v15671_v27, %v15739_v34 }
 0x8ed   :  { %v15781_v10 = vsel %vm15741_vm12, %v15780_v51, %v15776_v32 }
 0x8ee   :  { %v15783_v36 = vsel %vm15782_vm13, %v15781_v10, %v15742_v18 }
 0x8ef   :  { %v15786_v47 = vsel %vm15785_vm14, %v15783_v36, 0.0 }
 0x8f0   :  { %15787 = vadd.xlane.f32.xlu0 %v15786_v47 }
 0x97d   :  { %v15788_v52 = vpop.xlane.xlu0 %15787 }
 0x97e   :  { %v15796_v29 = vadd.f32 %v17002_v35, %v15788_v52 }
 0x980   :  { %19330 = vtanh.f32 %v15796_v29 }
 0x98a   :  { %v19331_v22 = vpop.eup %19330 }
 0x98b   :  { %15799 = vst.msk [vmem:[%s24390_s12] sm:$0x3] %vm15798_vm15, %v19331_v22 }

</bundles_post_ra>
